<compile_context>
chip_gen: v7x
topology: tpu7x:2x2x1
jax: 0.10.0
libtpu: 0.0.40
codegen_flags: <defaults>
</compile_context>

<pallas_src>
import functools

import numpy as np
import jax
import jax.numpy as jnp
from jax.experimental import pallas as pl
from jax.experimental.pallas import tpu as pltpu

NUM_CLASS = 21
RATES = (6, 12, 18)        # ASPP dilation rates for os=16
LANE = 128
VMEM_LIMIT = 64 * 1024 * 1024


def _pick_tile(dim, gran, cap):
    """Largest tile <= cap that is a multiple of `gran` and divides `dim`;
    falls back to the full dimension (always a legal block dim)."""
    t = (min(cap, dim) // gran) * gran
    while t >= gran:
        if dim % t == 0:
            return t
        t -= gran
    return dim


# ---------------------------------------------------------------------------
# Kernel 1: tiled matmul with fused per-channel affine (folded BN / bias)
#           + optional ReLU epilogue.  f32 accumulator in VMEM scratch.
# ---------------------------------------------------------------------------
def _mm_fused_kernel(a_ref, b_ref, s_ref, t_ref, o_ref, acc_ref, *, relu):
    @pl.when(pl.program_id(2) == 0)
    def _():
        acc_ref[...] = jnp.zeros_like(acc_ref)

    acc_ref[...] += jnp.dot(a_ref[...], b_ref[...],
                            preferred_element_type=jnp.float32)

    @pl.when(pl.program_id(2) == pl.num_programs(2) - 1)
    def _():
        y = acc_ref[...] * s_ref[...] + t_ref[...]
        if relu:
            y = jnp.maximum(y, 0.0)
        o_ref[...] = y.astype(o_ref.dtype)


def matmul_fused(a, b, scale, shift, *, relu, out_dtype,
                 tm_cap=512, tn_cap=512, tk_cap=1024):
    """(M,K) @ (K,N) with fused y = [relu](acc * scale + shift)."""
    M, K = a.shape
    K2, N = b.shape
    assert K == K2 and scale.shape == (1, N) and shift.shape == (1, N)
    tm = _pick_tile(M, 8, tm_cap)
    tn = _pick_tile(N, LANE, tn_cap)
    tk = _pick_tile(K, LANE, tk_cap)
    return pl.pallas_call(
        functools.partial(_mm_fused_kernel, relu=relu),
        out_shape=jax.ShapeDtypeStruct((M, N), out_dtype),
        grid=(M // tm, N // tn, K // tk),
        in_specs=[pl.BlockSpec((tm, tk), lambda i, j, k: (i, k)),
                  pl.BlockSpec((tk, tn), lambda i, j, k: (k, j)),
                  pl.BlockSpec((1, tn), lambda i, j, k: (0, j)),
                  pl.BlockSpec((1, tn), lambda i, j, k: (0, j))],
        out_specs=pl.BlockSpec((tm, tn), lambda i, j, k: (i, j)),
        scratch_shapes=[pltpu.VMEM((tm, tn), jnp.float32)],
        compiler_params=pltpu.CompilerParams(
            dimension_semantics=("parallel", "parallel", "arbitrary")),
    )(a, b, scale, shift)


# ---------------------------------------------------------------------------
# Kernel 2: fused ASPP branches.  Reads the (flattened, zero-padded) OS=16
# feature map ONCE per image and computes:
#   * 1x1 conv branch (b1)
#   * three dilated 3x3 conv branches (b2..b4), one big dot per tap
#   * global-average-pool branch folded into a per-image rank-1 projection
#     bias (gp @ proj_w5)
# Branches are written lane-concatenated into one (HW_ext, 4*Cb) buffer so the
# projection becomes a single K=4*Cb matmul.
# ---------------------------------------------------------------------------
def _aspp_branches_kernel(x_ref, w1_ref, s1_ref, t1_ref,
                          w234_ref, s234_ref, t234_ref,
                          gw_ref, gs_ref, gt_ref, w5_ref,
                          br_ref, gpb_ref, *, rates, rmax, Hf, Wf, Wp):
    Cb = w1_ref.shape[-1]
    m_ext = Hf * Wp

    # ---- center window (dy = dx = rmax): shared by 1x1 branch + global pool
    c0 = rmax * Wp + rmax
    center = x_ref[0, c0:c0 + m_ext, :]                       # (m_ext, Cf) bf16

    # 1x1 conv branch
    y1 = jnp.dot(center, w1_ref[...], preferred_element_type=jnp.float32)
    y1 = jnp.maximum(y1 * s1_ref[...] + t1_ref[...], 0.0)
    br_ref[0, :, 0:Cb] = y1.astype(br_ref.dtype)

    # global-average-pool branch -> per-image rank-1 bias for the projection.
    # Extra padded columns in `center` are exact zeros, so the sum is exact.
    mean = (jnp.sum(center.astype(jnp.float32), axis=0, keepdims=True)
            * (1.0 / float(Hf * Wf)))                          # (1, Cf)
    g = jnp.dot(mean.astype(gw_ref.dtype), gw_ref[...],
                preferred_element_type=jnp.float32)            # (1, Cb)
    g = jnp.maximum(g * gs_ref[...] + gt_ref[...], 0.0)
    gpb_ref[0] = jnp.dot(g.astype(w5_ref.dtype), w5_ref[...],
                         preferred_element_type=jnp.float32
                         ).astype(gpb_ref.dtype)

    # ---- three dilated 3x3 branches: one (m_ext,Cf)@(Cf,Cb) dot per tap
    for bi, rate in enumerate(rates):
        off = rmax - rate
        acc = jnp.zeros((m_ext, Cb), jnp.float32)
        for ky in range(3):
            for kx in range(3):
                start = (off + ky * rate) * Wp + (off + kx * rate)
                tap = x_ref[0, start:start + m_ext, :]
                acc = acc + jnp.dot(tap, w234_ref[bi, ky * 3 + kx],
                                    preferred_element_type=jnp.float32)
        y = jnp.maximum(acc * s234_ref[bi:bi + 1, :] + t234_ref[bi:bi + 1, :],
                        0.0)
        br_ref[0, :, (bi + 1) * Cb:(bi + 2) * Cb] = y.astype(br_ref.dtype)


def aspp_branches(xflat, w1, s1, t1, w234, s234, t234, gw, gs, gt, w5,
                  *, rates, rmax, Hf, Wf, Wp, out_dtype=jnp.bfloat16):
    N, S, Cf = xflat.shape
    Cb = w1.shape[-1]
    m_ext = Hf * Wp
    kernel = functools.partial(_aspp_branches_kernel, rates=rates, rmax=rmax,
                               Hf=Hf, Wf=Wf, Wp=Wp)
    # TODO(synk): grid is batch-only; a halo'd spatial tile axis would shard a
    # batch-1 call across both v7x TensorCores.
    return pl.pallas_call(
        kernel,
        out_shape=(jax.ShapeDtypeStruct((N, m_ext, 4 * Cb), out_dtype),
                   jax.ShapeDtypeStruct((N, 1, Cb), jnp.float32)),
        grid=(N,),
        in_specs=[pl.BlockSpec((1, S, Cf), lambda n: (n, 0, 0)),
                  pl.BlockSpec((Cf, Cb), lambda n: (0, 0)),
                  pl.BlockSpec((1, Cb), lambda n: (0, 0)),
                  pl.BlockSpec((1, Cb), lambda n: (0, 0)),
                  pl.BlockSpec((3, 9, Cf, Cb), lambda n: (0, 0, 0, 0)),
                  pl.BlockSpec((3, Cb), lambda n: (0, 0)),
                  pl.BlockSpec((3, Cb), lambda n: (0, 0)),
                  pl.BlockSpec((Cf, Cb), lambda n: (0, 0)),
                  pl.BlockSpec((1, Cb), lambda n: (0, 0)),
                  pl.BlockSpec((1, Cb), lambda n: (0, 0)),
                  pl.BlockSpec((Cb, Cb), lambda n: (0, 0))],
        out_specs=(pl.BlockSpec((1, m_ext, 4 * Cb), lambda n: (n, 0, 0)),
                   pl.BlockSpec((1, 1, Cb), lambda n: (n, 0, 0))),
        compiler_params=pltpu.CompilerParams(
            dimension_semantics=("parallel",),
            vmem_limit_bytes=VMEM_LIMIT),
    )(xflat, w1, s1, t1, w234, s234, t234, gw, gs, gt, w5)


# ---------------------------------------------------------------------------
# Kernel 3: ASPP projection — one K=4*Cb matmul over the lane-concatenated
#           branch buffer + per-image global-pool bias + BN + ReLU epilogue.
# ---------------------------------------------------------------------------
def _aspp_proj_kernel(b_ref, w_ref, gpb_ref, s_ref, t_ref, o_ref):
    acc = jnp.dot(b_ref[0], w_ref[...], preferred_element_type=jnp.float32)
    acc = acc + gpb_ref[0]
    y = jnp.maximum(acc * s_ref[...] + t_ref[...], 0.0)
    o_ref[0] = y.astype(o_ref.dtype)


def aspp_project(branches, w, gpb, scale, shift, out_dtype=jnp.bfloat16,
                 thw_cap=1024):
    N, HW, K4 = branches.shape
    Cb = w.shape[-1]
    thw = _pick_tile(HW, 8, thw_cap)
    return pl.pallas_call(
        _aspp_proj_kernel,
        out_shape=jax.ShapeDtypeStruct((N, HW, Cb), out_dtype),
        grid=(N, HW // thw),
        in_specs=[pl.BlockSpec((1, thw, K4), lambda n, i: (n, i, 0)),
                  pl.BlockSpec((K4, Cb), lambda n, i: (0, 0)),
                  pl.BlockSpec((1, 1, Cb), lambda n, i: (n, 0, 0)),
                  pl.BlockSpec((1, Cb), lambda n, i: (0, 0)),
                  pl.BlockSpec((1, Cb), lambda n, i: (0, 0))],
        out_specs=pl.BlockSpec((1, thw, Cb), lambda n, i: (n, i, 0)),
        compiler_params=pltpu.CompilerParams(
            dimension_semantics=("parallel", "parallel"),
            vmem_limit_bytes=VMEM_LIMIT),
    )(branches, w, gpb, scale, shift)


# ---------------------------------------------------------------------------
# Kernel 4: separable bilinear upsample, one matmul per (image, row-tile).
#           Channels stay in lanes; bf16 in / f32 accumulate / bf16 out.
# ---------------------------------------------------------------------------
def _upsample_kernel(m_ref, x_ref, o_ref):
    o_ref[0] = jnp.dot(m_ref[...], x_ref[0],
                       preferred_element_type=jnp.float32).astype(o_ref.dtype)


def upsample_matmul(m, x3d, out_dtype=jnp.bfloat16, tile_cap=512):
    """x3d: (N, K, L) -> (N, Mout, L) with out[n] = m @ x3d[n]."""
    N, K, L = x3d.shape
    Mout = m.shape[0]
    tmo = _pick_tile(Mout, 8, tile_cap)
    return pl.pallas_call(
        _upsample_kernel,
        out_shape=jax.ShapeDtypeStruct((N, Mout, L), out_dtype),
        grid=(N, Mout // tmo),
        in_specs=[pl.BlockSpec((tmo, K), lambda n, i: (i, 0)),
                  pl.BlockSpec((1, K, L), lambda n, i: (n, 0, 0))],
        out_specs=pl.BlockSpec((1, tmo, L), lambda n, i: (n, i, 0)),
        compiler_params=pltpu.CompilerParams(
            dimension_semantics=("parallel", "parallel"),
            vmem_limit_bytes=VMEM_LIMIT),
    )(m, x3d)


def _bilinear_matrix(out_size, in_size, align_corners=False):
    # TODO(synk): legacy F.upsample(mode='bilinear') may imply
    # align_corners=True; flip the flag if parity with that path is required.
    i = np.arange(out_size)
    if align_corners and out_size > 1:
        src = i * (in_size - 1) / max(out_size - 1, 1)
    else:
        scale = in_size / out_size
        src = np.clip((i + 0.5) * scale - 0.5, 0.0, None)
    i0 = np.clip(np.floor(src).astype(np.int64), 0, in_size - 1)
    i1 = np.minimum(i0 + 1, in_size - 1)
    w1 = (src - i0).astype(np.float32)
    w0 = 1.0 - w1
    A = np.zeros((out_size, in_size), dtype=np.float32)
    A[i, i0] += w0
    A[i, i1] += w1
    return jnp.asarray(A)


# ---------------------------------------------------------------------------
# Full model forward (NCHW in / NCHW out, like the PyTorch module)
# ---------------------------------------------------------------------------
@jax.jit
def deeplabv3_forward(params, x_nchw):
    N, Cin, H, W = x_nchw.shape
    Hf, Wf = H // 16, W // 16
    HWf = Hf * Wf
    x = jnp.transpose(x_nchw, (0, 2, 3, 1)).astype(jnp.bfloat16)      # NHWC

    # ---- backbone stand-in: stride-16 patchify conv + bias + ReLU (OS=16) ---
    patches = (x.reshape(N, Hf, 16, Wf, 16, Cin)
                .transpose(0, 1, 3, 2, 4, 5)
                .reshape(N * Hf * Wf, 16 * 16 * Cin))
    feat2d = matmul_fused(patches, params["bb_w"], params["bb_s"],
                          params["bb_t"], relu=True, out_dtype=jnp.bfloat16)
    Cf = feat2d.shape[-1]
    feat = feat2d.reshape(N, Hf, Wf, Cf)

    # ---- fused ASPP branches over the zero-padded, spatially-flattened map --
    rmax = max(RATES)
    Wp = Wf + 2 * rmax
    Hp = Hf + 2 * rmax + 1           # +1 bottom row keeps shifted windows in bounds
    xpad = jnp.pad(feat, ((0, 0), (rmax, rmax + 1), (rmax, rmax), (0, 0)))
    xflat = xpad.reshape(N, Hp * Wp, Cf)

    br_ext, gpb = aspp_branches(
        xflat, params["aspp1_w"], params["aspp1_s"], params["aspp1_t"],
        params["aspp234_w"], params["aspp234_s"], params["aspp234_t"],
        params["gp_w"], params["gp_s"], params["gp_t"], params["proj_w5"],
        rates=RATES, rmax=rmax, Hf=Hf, Wf=Wf, Wp=Wp)

    # drop the padded-width columns produced by the flattened-window trick
    # (low-resolution XLA slice)
    Cb4 = br_ext.shape[-1]
    br = (br_ext.reshape(N, Hf, Wp, Cb4)[:, :, :Wf, :]
                .reshape(N, HWf, Cb4))
    Cb = Cb4 // 4

    # ---- projection: single K=4*Cb matmul + gp bias + BN + ReLU ------------
    proj = aspp_project(br, params["proj_w"], gpb,
                        params["proj_s"], params["proj_t"])

    # ---- classifier (1x1 conv to NUM_CLASS channels, fused bias) -----------
    logits = matmul_fused(proj.reshape(N * HWf, Cb), params["cls_w"],
                          params["cls_s"], params["cls_t"],
                          relu=False, out_dtype=jnp.bfloat16)          # (.,21)

    # ---- separable bilinear upsample to input resolution (bf16 matmuls) ----
    A = _bilinear_matrix(H, Hf).astype(jnp.bfloat16)
    Bm = _bilinear_matrix(W, Wf).astype(jnp.bfloat16)
    C = NUM_CLASS
    lg = logits.reshape(N, Hf, Wf, C)
    # W-upsample at low resolution: (N, Wf, Hf*C) -> (N, W, Hf*C)
    xw = jnp.transpose(lg, (0, 2, 1, 3)).reshape(N, Wf, Hf * C)
    uw = upsample_matmul(Bm, xw, out_dtype=jnp.bfloat16)
    # H-upsample writes the only full-resolution tensor: (N, Hf, W*C) -> (N, H, W*C)
    vh = (jnp.transpose(uw.reshape(N, W, Hf, C), (0, 2, 1, 3))
             .reshape(N, Hf, W * C))
    uh = upsample_matmul(A, vh, out_dtype=jnp.bfloat16)

    out = uh.reshape(N, H, W, C).transpose(0, 3, 1, 2).astype(jnp.float32)
    return out                                                         # NCHW


# ---------------------------------------------------------------------------
# Deterministic parameter init (eval-mode BN folded into scale/shift; weights
# stored bf16 and laid out once — never re-padded / re-packed per call)
# ---------------------------------------------------------------------------
def init_params(key, cin=3, cfeat=128, cb=128, num_class=NUM_CLASS):
    ks = iter(jax.random.split(key, 32))

    def w(shape, s=0.05):
        return (jax.random.normal(next(ks), shape, dtype=jnp.float32) * s
                ).astype(jnp.bfloat16)

    def bn(shape):  # eval-mode BN (mean=0, var=1) folded into (scale, shift)
        gamma = 1.0 + jax.random.normal(next(ks), shape, jnp.float32) * 0.05
        beta = jax.random.normal(next(ks), shape, jnp.float32) * 0.05
        return gamma / jnp.sqrt(1.0 + 1e-5), beta

    p = {}
    # backbone stand-in
    p["bb_w"] = w((16 * 16 * cin, cfeat))
    p["bb_s"] = jnp.ones((1, cfeat), jnp.float32)
    p["bb_t"] = jax.random.normal(next(ks), (1, cfeat), jnp.float32) * 0.05

    # ASPP branches
    p["aspp1_w"] = w((cfeat, cb))
    p["aspp1_s"], p["aspp1_t"] = bn((1, cb))
    p["aspp234_w"] = w((3, 9, cfeat, cb))
    p["aspp234_s"], p["aspp234_t"] = bn((3, cb))
    p["gp_w"] = w((cfeat, cb))
    p["gp_s"], p["gp_t"] = bn((1, cb))

    # projection: concat weight stored as one (4*cb, cb) block + gp block
    p["proj_w"] = w((4 * cb, cb))
    p["proj_w5"] = w((cb, cb))
    p["proj_s"], p["proj_t"] = bn((1, cb))

    # classifier (bias only, no BN), NUM_CLASS output channels
    p["cls_w"] = w((cb, num_class))
    p["cls_s"] = jnp.ones((1, num_class), jnp.float32)
    p["cls_t"] = (jax.random.normal(next(ks), (1, num_class), jnp.float32)
                  * 0.05)
    return p


if __name__ == "__main__":
    x = jax.random.normal(jax.random.PRNGKey(0), (2, 3, 64, 64),
                          dtype=jnp.float32)                    # NCHW
    params = init_params(jax.random.PRNGKey(42))
    out = deeplabv3_forward(params, x)
    out = jax.block_until_ready(out)
    assert out.shape == (2, NUM_CLASS, 64, 64), out.shape
    assert bool(jnp.all(jnp.isfinite(out)))
    print("KERNEL_OK")
</pallas_src>

<mosaic_0001>
module attributes {stable_mosaic.version = 11 : i64} {
  func.func @_mm_fused_kernel(%arg0: i32, %arg1: i32, %arg2: i32, %arg3: memref<32x768xbf16, #tpu.memory_space<vmem>>, %arg4: memref<768x128xbf16, #tpu.memory_space<vmem>>, %arg5: memref<1x128xf32, #tpu.memory_space<vmem>>, %arg6: memref<1x128xf32, #tpu.memory_space<vmem>>, %arg7: memref<32x128xbf16, #tpu.memory_space<vmem>>, %arg8: memref<32x128xf32, #tpu.memory_space<vmem>>) attributes {dimension_semantics = [#tpu.dimension_semantics<parallel>, #tpu.dimension_semantics<parallel>, #tpu.dimension_semantics<arbitrary>], iteration_bounds = array<i64: 1, 1, 1>, scalar_prefetch = 0 : i64, scratch_operands = 1 : i64, tpu.core_type = #tpu.core_type<tc>, window_params = [{transform_indices = @transform_0, window_bounds = array<i64: 32, 768>}, {transform_indices = @transform_1, window_bounds = array<i64: 768, 128>}, {transform_indices = @transform_2, window_bounds = array<i64: 1, 128>}, {transform_indices = @transform_3, window_bounds = array<i64: 1, 128>}, {transform_indices = @transform_4, window_bounds = array<i64: 32, 128>}]} {
    %c0_i32 = arith.constant 0 : i32
    %0 = arith.cmpi eq, %arg2, %c0_i32 : i32
    %1 = arith.extui %0 : i1 to i32
    %c0_i32_0 = arith.constant 0 : i32
    %2 = arith.cmpi ne, %1, %c0_i32_0 : i32
    scf.if %2 {
      %cst_10 = arith.constant 0.000000e+00 : f32
      %12 = vector.broadcast %cst_10 : f32 to vector<32x128xf32>
      %c0_11 = arith.constant 0 : index
      %c0_12 = arith.constant 0 : index
      %13 = vector.load %arg8[%c0_11, %c0_12] : memref<32x128xf32, #tpu.memory_space<vmem>>, vector<32x128xf32>
      tpu.vector_store %arg8[%c0_11, %c0_12], %12 {strides = array<i32>} : memref<32x128xf32, #tpu.memory_space<vmem>>, vector<32x128xf32>,
    } else {
    }
    %c0 = arith.constant 0 : index
    %c0_1 = arith.constant 0 : index
    %3 = vector.load %arg8[%c0, %c0_1] : memref<32x128xf32, #tpu.memory_space<vmem>>, vector<32x128xf32>
    %c0_2 = arith.constant 0 : index
    %c0_3 = arith.constant 0 : index
    %4 = vector.load %arg3[%c0_2, %c0_3] : memref<32x768xbf16, #tpu.memory_space<vmem>>, vector<32x768xbf16>
    %c0_4 = arith.constant 0 : index
    %c0_5 = arith.constant 0 : index
    %5 = vector.load %arg4[%c0_4, %c0_5] : memref<768x128xbf16, #tpu.memory_space<vmem>>, vector<768x128xbf16>
    %cst = arith.constant dense<0.000000e+00> : vector<32x128xf32>
    %6 = tpu.matmul %4, %5, %cst {dimension_numbers = #tpu.dot_dimension_numbers<[1], [0], [0], [1], [0, 0, 1, 1], [], []>} : vector<32x768xbf16>, vector<768x128xbf16>, vector<32x128xf32> -> vector<32x128xf32>
    %7 = arith.addf %3, %6 : vector<32x128xf32>
    %c0_6 = arith.constant 0 : index
    %c0_7 = arith.constant 0 : index
    %8 = vector.load %arg8[%c0_6, %c0_7] : memref<32x128xf32, #tpu.memory_space<vmem>>, vector<32x128xf32>
    tpu.vector_store %arg8[%c0_6, %c0_7], %7 {strides = array<i32>} : memref<32x128xf32, #tpu.memory_space<vmem>>, vector<32x128xf32>,
    %c0_i32_8 = arith.constant 0 : i32
    %9 = arith.cmpi eq, %arg2, %c0_i32_8 : i32
    %10 = arith.extui %9 : i1 to i32
    %c0_i32_9 = arith.constant 0 : i32
    %11 = arith.cmpi ne, %10, %c0_i32_9 : i32
    scf.if %11 {
      %c0_10 = arith.constant 0 : index
      %c0_11 = arith.constant 0 : index
      %12 = vector.load %arg8[%c0_10, %c0_11] : memref<32x128xf32, #tpu.memory_space<vmem>>, vector<32x128xf32>
      %c0_12 = arith.constant 0 : index
      %c0_13 = arith.constant 0 : index
      %13 = vector.load %arg5[%c0_12, %c0_13] : memref<1x128xf32, #tpu.memory_space<vmem>>, vector<1x128xf32>
      %14 = vector.broadcast %13 : vector<1x128xf32> to vector<32x128xf32>
      %15 = arith.mulf %12, %14 : vector<32x128xf32>
      %c0_14 = arith.constant 0 : index
      %c0_15 = arith.constant 0 : index
      %16 = vector.load %arg6[%c0_14, %c0_15] : memref<1x128xf32, #tpu.memory_space<vmem>>, vector<1x128xf32>
      %17 = vector.broadcast %16 : vector<1x128xf32> to vector<32x128xf32>
      %18 = arith.addf %15, %17 : vector<32x128xf32>
      %cst_16 = arith.constant 0.000000e+00 : f32
      %19 = vector.broadcast %cst_16 : f32 to vector<32x128xf32>
      %20 = arith.maximumf %18, %19 : vector<32x128xf32>
      %21 = arith.truncf %20 : vector<32x128xf32> to vector<32x128xbf16>
      %c0_17 = arith.constant 0 : index
      %c0_18 = arith.constant 0 : index
      %22 = vector.load %arg7[%c0_17, %c0_18] : memref<32x128xbf16, #tpu.memory_space<vmem>>, vector<32x128xbf16>
      tpu.vector_store %arg7[%c0_17, %c0_18], %21 {strides = array<i32>} : memref<32x128xbf16, #tpu.memory_space<vmem>>, vector<32x128xbf16>,
    } else {
    }
    return
  }
  func.func @transform_0(%arg0: i32, %arg1: i32, %arg2: i32) -> (i32, i32) {
    %c0_i32 = arith.constant 0 : i32
    return %arg0, %arg2 : i32, i32
  }
  func.func @transform_1(%arg0: i32, %arg1: i32, %arg2: i32) -> (i32, i32) {
    %c0_i32 = arith.constant 0 : i32
    return %arg2, %arg1 : i32, i32
  }
  func.func @transform_2(%arg0: i32, %arg1: i32, %arg2: i32) -> (i32, i32) {
    %c0_i32 = arith.constant 0 : i32
    %c0_i32_0 = arith.constant 0 : i32
    return %c0_i32, %arg1 : i32, i32
  }
  func.func @transform_3(%arg0: i32, %arg1: i32, %arg2: i32) -> (i32, i32) {
    %c0_i32 = arith.constant 0 : i32
    %c0_i32_0 = arith.constant 0 : i32
    return %c0_i32, %arg1 : i32, i32
  }
  func.func @transform_4(%arg0: i32, %arg1: i32, %arg2: i32) -> (i32, i32) {
    %c0_i32 = arith.constant 0 : i32
    return %arg0, %arg1 : i32, i32
  }
}

module attributes {stable_mosaic.version = 11 : i64} {
  func.func @_aspp_branches_kernel(%arg0: i32, %arg1: memref<1x1640x128xbf16, #tpu.memory_space<vmem>>, %arg2: memref<128x128xbf16, #tpu.memory_space<vmem>>, %arg3: memref<1x128xf32, #tpu.memory_space<vmem>>, %arg4: memref<1x128xf32, #tpu.memory_space<vmem>>, %arg5: memref<3x9x128x128xbf16, #tpu.memory_space<vmem>>, %arg6: memref<3x128xf32, #tpu.memory_space<vmem>>, %arg7: memref<3x128xf32, #tpu.memory_space<vmem>>, %arg8: memref<128x128xbf16, #tpu.memory_space<vmem>>, %arg9: memref<1x128xf32, #tpu.memory_space<vmem>>, %arg10: memref<1x128xf32, #tpu.memory_space<vmem>>, %arg11: memref<128x128xbf16, #tpu.memory_space<vmem>>, %arg12: memref<1x160x512xbf16, #tpu.memory_space<vmem>>, %arg13: memref<1x1x128xf32, #tpu.memory_space<vmem>>) attributes {dimension_semantics = [#tpu.dimension_semantics<parallel>], iteration_bounds = array<i64: 2>, scalar_prefetch = 0 : i64, scratch_operands = 0 : i64, tpu.core_type = #tpu.core_type<tc>, window_params = [{transform_indices = @transform_0, window_bounds = array<i64: 1, 1640, 128>}, {pipeline_mode = #tpu.pipeline_mode<synchronous>, transform_indices = @transform_1, window_bounds = array<i64: 128, 128>}, {pipeline_mode = #tpu.pipeline_mode<synchronous>, transform_indices = @transform_2, window_bounds = array<i64: 1, 128>}, {pipeline_mode = #tpu.pipeline_mode<synchronous>, transform_indices = @transform_3, window_bounds = array<i64: 1, 128>}, {pipeline_mode = #tpu.pipeline_mode<synchronous>, transform_indices = @transform_4, window_bounds = array<i64: 3, 9, 128, 128>}, {pipeline_mode = #tpu.pipeline_mode<synchronous>, transform_indices = @transform_5, window_bounds = array<i64: 3, 128>}, {pipeline_mode = #tpu.pipeline_mode<synchronous>, transform_indices = @transform_6, window_bounds = array<i64: 3, 128>}, {pipeline_mode = #tpu.pipeline_mode<synchronous>, transform_indices = @transform_7, window_bounds = array<i64: 128, 128>}, {pipeline_mode = #tpu.pipeline_mode<synchronous>, transform_indices = @transform_8, window_bounds = array<i64: 1, 128>}, {pipeline_mode = #tpu.pipeline_mode<synchronous>, transform_indices = @transform_9, window_bounds = array<i64: 1, 128>}, {pipeline_mode = #tpu.pipeline_mode<synchronous>, transform_indices = @transform_10, window_bounds = array<i64: 128, 128>}, {transform_indices = @transform_11, window_bounds = array<i64: 1, 160, 512>}, {transform_indices = @transform_12, window_bounds = array<i64: 1, 1, 128>}]} {
    %c0 = arith.constant 0 : index
    %c738 = arith.constant 738 : index
    %c0_0 = arith.constant 0 : index
    %0 = vector.load %arg1[%c0, %c738, %c0_0] : memref<1x1640x128xbf16, #tpu.memory_space<vmem>>, vector<1x160x128xbf16>
    %1 = vector.shape_cast %0 : vector<1x160x128xbf16> to vector<160x128xbf16>
    %c0_1 = arith.constant 0 : index
    %c0_2 = arith.constant 0 : index
    %2 = vector.load %arg2[%c0_1, %c0_2] : memref<128x128xbf16, #tpu.memory_space<vmem>>, vector<128x128xbf16>
    %cst = arith.constant dense<0.000000e+00> : vector<160x128xf32>
    %3 = tpu.matmul %1, %2, %cst {dimension_numbers = #tpu.dot_dimension_numbers<[1], [0], [0], [1], [0, 0, 1, 1], [], []>} : vector<160x128xbf16>, vector<128x128xbf16>, vector<160x128xf32> -> vector<160x128xf32>
    %c0_3 = arith.constant 0 : index
    %c0_4 = arith.constant 0 : index
    %4 = vector.load %arg3[%c0_3, %c0_4] : memref<1x128xf32, #tpu.memory_space<vmem>>, vector<1x128xf32>
    %5 = vector.broadcast %4 : vector<1x128xf32> to vector<160x128xf32>
    %6 = arith.mulf %3, %5 : vector<160x128xf32>
    %c0_5 = arith.constant 0 : index
    %c0_6 = arith.constant 0 : index
    %7 = vector.load %arg4[%c0_5, %c0_6] : memref<1x128xf32, #tpu.memory_space<vmem>>, vector<1x128xf32>
    %8 = vector.broadcast %7 : vector<1x128xf32> to vector<160x128xf32>
    %9 = arith.addf %6, %8 : vector<160x128xf32>
    %cst_7 = arith.constant 0.000000e+00 : f32
    %10 = vector.broadcast %cst_7 : f32 to vector<160x128xf32>
    %11 = arith.maximumf %9, %10 : vector<160x128xf32>
    %12 = arith.truncf %11 : vector<160x128xf32> to vector<160x128xbf16>
    %c0_8 = arith.constant 0 : index
    %c0_9 = arith.constant 0 : index
    %c0_10 = arith.constant 0 : index
    %13 = vector.load %arg12[%c0_8, %c0_9, %c0_10] : memref<1x160x512xbf16, #tpu.memory_space<vmem>>, vector<1x160x128xbf16>
    %14 = vector.shape_cast %13 : vector<1x160x128xbf16> to vector<160x128xbf16>
    %15 = vector.shape_cast %12 : vector<160x128xbf16> to vector<1x160x128xbf16>
    tpu.vector_store %arg12[%c0_8, %c0_9, %c0_10], %15 {strides = array<i32>} : memref<1x160x512xbf16, #tpu.memory_space<vmem>>, vector<1x160x128xbf16>,
    %16 = arith.extf %1 : vector<160x128xbf16> to vector<160x128xf32>
    %cst_11 = arith.constant dense<0.000000e+00> : vector<128xf32>
    %17 = vector.multi_reduction <add>, %16, %cst_11 [0] : vector<160x128xf32> to vector<128xf32>
    %18 = vector.shape_cast %17 : vector<128xf32> to vector<1x128xf32>
    %cst_12 = arith.constant 6.250000e-02 : f32
    %19 = vector.broadcast %cst_12 : f32 to vector<1x128xf32>
    %20 = arith.mulf %18, %19 : vector<1x128xf32>
    %21 = arith.truncf %20 : vector<1x128xf32> to vector<1x128xbf16>
    %c0_13 = arith.constant 0 : index
    %c0_14 = arith.constant 0 : index
    %22 = vector.load %arg8[%c0_13, %c0_14] : memref<128x128xbf16, #tpu.memory_space<vmem>>, vector<128x128xbf16>
    %cst_15 = arith.constant dense<0.000000e+00> : vector<1x128xf32>
    %23 = tpu.matmul %21, %22, %cst_15 {dimension_numbers = #tpu.dot_dimension_numbers<[1], [0], [0], [1], [0, 0, 1, 1], [], []>} : vector<1x128xbf16>, vector<128x128xbf16>, vector<1x128xf32> -> vector<1x128xf32>
    %c0_16 = arith.constant 0 : index
    %c0_17 = arith.constant 0 : index
    %24 = vector.load %arg9[%c0_16, %c0_17] : memref<1x128xf32, #tpu.memory_space<vmem>>, vector<1x128xf32>
    %25 = arith.mulf %23, %24 : vector<1x128xf32>
    %c0_18 = arith.constant 0 : index
    %c0_19 = arith.constant 0 : index
    %26 = vector.load %arg10[%c0_18, %c0_19] : memref<1x128xf32, #tpu.memory_space<vmem>>, vector<1x128xf32>
    %27 = arith.addf %25, %26 : vector<1x128xf32>
    %cst_20 = arith.constant 0.000000e+00 : f32
    %28 = vector.broadcast %cst_20 : f32 to vector<1x128xf32>
    %29 = arith.maximumf %27, %28 : vector<1x128xf32>
    %30 = arith.truncf %29 : vector<1x128xf32> to vector<1x128xbf16>
    %c0_21 = arith.constant 0 : index
    %c0_22 = arith.constant 0 : index
    %31 = vector.load %arg11[%c0_21, %c0_22] : memref<128x128xbf16, #tpu.memory_space<vmem>>, vector<128x128xbf16>
    %cst_23 = arith.constant dense<0.000000e+00> : vector<1x128xf32>
    %32 = tpu.matmul %30, %31, %cst_23 {dimension_numbers = #tpu.dot_dimension_numbers<[1], [0], [0], [1], [0, 0, 1, 1], [], []>} : vector<1x128xbf16>, vector<128x128xbf16>, vector<1x128xf32> -> vector<1x128xf32>
    %c0_24 = arith.constant 0 : index
    %c0_25 = arith.constant 0 : index
    %c0_26 = arith.constant 0 : index
    %33 = vector.load %arg13[%c0_24, %c0_25, %c0_26] : memref<1x1x128xf32, #tpu.memory_space<vmem>>, vector<1x1x128xf32>
    %34 = vector.shape_cast %33 : vector<1x1x128xf32> to vector<1x128xf32>
    %35 = vector.shape_cast %32 : vector<1x128xf32> to vector<1x1x128xf32>
    tpu.vector_store %arg13[%c0_24, %c0_25, %c0_26], %35 {strides = array<i32>} : memref<1x1x128xf32, #tpu.memory_space<vmem>>, vector<1x1x128xf32>,
    %cst_27 = arith.constant 0.000000e+00 : f32
    %36 = vector.broadcast %cst_27 : f32 to vector<160x128xf32>
    %c0_28 = arith.constant 0 : index
    %c492 = arith.constant 492 : index
    %c0_29 = arith.constant 0 : index
    %37 = vector.load %arg1[%c0_28, %c492, %c0_29] : memref<1x1640x128xbf16, #tpu.memory_space<vmem>>, vector<1x160x128xbf16>
    %38 = vector.shape_cast %37 : vector<1x160x128xbf16> to vector<160x128xbf16>
    %c0_30 = arith.constant 0 : index
    %c0_31 = arith.constant 0 : index
    %c0_32 = arith.constant 0 : index
    %c0_33 = arith.constant 0 : index
    %39 = vector.load %arg5[%c0_30, %c0_31, %c0_32, %c0_33] : memref<3x9x128x128xbf16, #tpu.memory_space<vmem>>, vector<1x1x128x128xbf16>
    %40 = vector.shape_cast %39 : vector<1x1x128x128xbf16> to vector<128x128xbf16>
    %cst_34 = arith.constant dense<0.000000e+00> : vector<160x128xf32>
    %41 = tpu.matmul %38, %40, %cst_34 {dimension_numbers = #tpu.dot_dimension_numbers<[1], [0], [0], [1], [0, 0, 1, 1], [], []>} : vector<160x128xbf16>, vector<128x128xbf16>, vector<160x128xf32> -> vector<160x128xf32>
    %42 = arith.addf %36, %41 : vector<160x128xf32>
    %c0_35 = arith.constant 0 : index
    %c498 = arith.constant 498 : index
    %c0_36 = arith.constant 0 : index
    %43 = vector.load %arg1[%c0_35, %c498, %c0_36] : memref<1x1640x128xbf16, #tpu.memory_space<vmem>>, vector<1x160x128xbf16>
    %44 = vector.shape_cast %43 : vector<1x160x128xbf16> to vector<160x128xbf16>
    %c0_37 = arith.constant 0 : index
    %c1 = arith.constant 1 : index
    %c0_38 = arith.constant 0 : index
    %c0_39 = arith.constant 0 : index
    %45 = vector.load %arg5[%c0_37, %c1, %c0_38, %c0_39] : memref<3x9x128x128xbf16, #tpu.memory_space<vmem>>, vector<1x1x128x128xbf16>
    %46 = vector.shape_cast %45 : vector<1x1x128x128xbf16> to vector<128x128xbf16>
    %cst_40 = arith.constant dense<0.000000e+00> : vector<160x128xf32>
    %47 = tpu.matmul %44, %46, %cst_40 {dimension_numbers = #tpu.dot_dimension_numbers<[1], [0], [0], [1], [0, 0, 1, 1], [], []>} : vector<160x128xbf16>, vector<128x128xbf16>, vector<160x128xf32> -> vector<160x128xf32>
    %48 = arith.addf %42, %47 : vector<160x128xf32>
    %c0_41 = arith.constant 0 : index
    %c504 = arith.constant 504 : index
    %c0_42 = arith.constant 0 : index
    %49 = vector.load %arg1[%c0_41, %c504, %c0_42] : memref<1x1640x128xbf16, #tpu.memory_space<vmem>>, vector<1x160x128xbf16>
    %50 = vector.shape_cast %49 : vector<1x160x128xbf16> to vector<160x128xbf16>
    %c0_43 = arith.constant 0 : index
    %c2 = arith.constant 2 : index
    %c0_44 = arith.constant 0 : index
    %c0_45 = arith.constant 0 : index
    %51 = vector.load %arg5[%c0_43, %c2, %c0_44, %c0_45] : memref<3x9x128x128xbf16, #tpu.memory_space<vmem>>, vector<1x1x128x128xbf16>
    %52 = vector.shape_cast %51 : vector<1x1x128x128xbf16> to vector<128x128xbf16>
    %cst_46 = arith.constant dense<0.000000e+00> : vector<160x128xf32>
    %53 = tpu.matmul %50, %52, %cst_46 {dimension_numbers = #tpu.dot_dimension_numbers<[1], [0], [0], [1], [0, 0, 1, 1], [], []>} : vector<160x128xbf16>, vector<128x128xbf16>, vector<160x128xf32> -> vector<160x128xf32>
    %54 = arith.addf %48, %53 : vector<160x128xf32>
    %c0_47 = arith.constant 0 : index
    %c732 = arith.constant 732 : index
    %c0_48 = arith.constant 0 : index
    %55 = vector.load %arg1[%c0_47, %c732, %c0_48] : memref<1x1640x128xbf16, #tpu.memory_space<vmem>>, vector<1x160x128xbf16>
    %56 = vector.shape_cast %55 : vector<1x160x128xbf16> to vector<160x128xbf16>
    %c0_49 = arith.constant 0 : index
    %c3 = arith.constant 3 : index
    %c0_50 = arith.constant 0 : index
    %c0_51 = arith.constant 0 : index
    %57 = vector.load %arg5[%c0_49, %c3, %c0_50, %c0_51] : memref<3x9x128x128xbf16, #tpu.memory_space<vmem>>, vector<1x1x128x128xbf16>
    %58 = vector.shape_cast %57 : vector<1x1x128x128xbf16> to vector<128x128xbf16>
    %cst_52 = arith.constant dense<0.000000e+00> : vector<160x128xf32>
    %59 = tpu.matmul %56, %58, %cst_52 {dimension_numbers = #tpu.dot_dimension_numbers<[1], [0], [0], [1], [0, 0, 1, 1], [], []>} : vector<160x128xbf16>, vector<128x128xbf16>, vector<160x128xf32> -> vector<160x128xf32>
    %60 = arith.addf %54, %59 : vector<160x128xf32>
    %c0_53 = arith.constant 0 : index
    %c738_54 = arith.constant 738 : index
    %c0_55 = arith.constant 0 : index
    %61 = vector.load %arg1[%c0_53, %c738_54, %c0_55] : memref<1x1640x128xbf16, #tpu.memory_space<vmem>>, vector<1x160x128xbf16>
    %62 = vector.shape_cast %61 : vector<1x160x128xbf16> to vector<160x128xbf16>
    %c0_56 = arith.constant 0 : index
    %c4 = arith.constant 4 : index
    %c0_57 = arith.constant 0 : index
    %c0_58 = arith.constant 0 : index
    %63 = vector.load %arg5[%c0_56, %c4, %c0_57, %c0_58] : memref<3x9x128x128xbf16, #tpu.memory_space<vmem>>, vector<1x1x128x128xbf16>
    %64 = vector.shape_cast %63 : vector<1x1x128x128xbf16> to vector<128x128xbf16>
    %cst_59 = arith.constant dense<0.000000e+00> : vector<160x128xf32>
    %65 = tpu.matmul %62, %64, %cst_59 {dimension_numbers = #tpu.dot_dimension_numbers<[1], [0], [0], [1], [0, 0, 1, 1], [], []>} : vector<160x128xbf16>, vector<128x128xbf16>, vector<160x128xf32> -> vector<160x128xf32>
    %66 = arith.addf %60, %65 : vector<160x128xf32>
    %c0_60 = arith.constant 0 : index
    %c744 = arith.constant 744 : index
    %c0_61 = arith.constant 0 : index
    %67 = vector.load %arg1[%c0_60, %c744, %c0_61] : memref<1x1640x128xbf16, #tpu.memory_space<vmem>>, vector<1x160x128xbf16>
    %68 = vector.shape_cast %67 : vector<1x160x128xbf16> to vector<160x128xbf16>
    %c0_62 = arith.constant 0 : index
    %c5 = arith.constant 5 : index
    %c0_63 = arith.constant 0 : index
    %c0_64 = arith.constant 0 : index
    %69 = vector.load %arg5[%c0_62, %c5, %c0_63, %c0_64] : memref<3x9x128x128xbf16, #tpu.memory_space<vmem>>, vector<1x1x128x128xbf16>
    %70 = vector.shape_cast %69 : vector<1x1x128x128xbf16> to vector<128x128xbf16>
    %cst_65 = arith.constant dense<0.000000e+00> : vector<160x128xf32>
    %71 = tpu.matmul %68, %70, %cst_65 {dimension_numbers = #tpu.dot_dimension_numbers<[1], [0], [0], [1], [0, 0, 1, 1], [], []>} : vector<160x128xbf16>, vector<128x128xbf16>, vector<160x128xf32> -> vector<160x128xf32>
    %72 = arith.addf %66, %71 : vector<160x128xf32>
    %c0_66 = arith.constant 0 : index
    %c972 = arith.constant 972 : index
    %c0_67 = arith.constant 0 : index
    %73 = vector.load %arg1[%c0_66, %c972, %c0_67] : memref<1x1640x128xbf16, #tpu.memory_space<vmem>>, vector<1x160x128xbf16>
    %74 = vector.shape_cast %73 : vector<1x160x128xbf16> to vector<160x128xbf16>
    %c0_68 = arith.constant 0 : index
    %c6 = arith.constant 6 : index
    %c0_69 = arith.constant 0 : index
    %c0_70 = arith.constant 0 : index
    %75 = vector.load %arg5[%c0_68, %c6, %c0_69, %c0_70] : memref<3x9x128x128xbf16, #tpu.memory_space<vmem>>, vector<1x1x128x128xbf16>
    %76 = vector.shape_cast %75 : vector<1x1x128x128xbf16> to vector<128x128xbf16>
    %cst_71 = arith.constant dense<0.000000e+00> : vector<160x128xf32>
    %77 = tpu.matmul %74, %76, %cst_71 {dimension_numbers = #tpu.dot_dimension_numbers<[1], [0], [0], [1], [0, 0, 1, 1], [], []>} : vector<160x128xbf16>, vector<128x128xbf16>, vector<160x128xf32> -> vector<160x128xf32>
    %78 = arith.addf %72, %77 : vector<160x128xf32>
    %c0_72 = arith.constant 0 : index
    %c978 = arith.constant 978 : index
    %c0_73 = arith.constant 0 : index
    %79 = vector.load %arg1[%c0_72, %c978, %c0_73] : memref<1x1640x128xbf16, #tpu.memory_space<vmem>>, vector<1x160x128xbf16>
    %80 = vector.shape_cast %79 : vector<1x160x128xbf16> to vector<160x128xbf16>
    %c0_74 = arith.constant 0 : index
    %c7 = arith.constant 7 : index
    %c0_75 = arith.constant 0 : index
    %c0_76 = arith.constant 0 : index
    %81 = vector.load %arg5[%c0_74, %c7, %c0_75, %c0_76] : memref<3x9x128x128xbf16, #tpu.memory_space<vmem>>, vector<1x1x128x128xbf16>
    %82 = vector.shape_cast %81 : vector<1x1x128x128xbf16> to vector<128x128xbf16>
    %cst_77 = arith.constant dense<0.000000e+00> : vector<160x128xf32>
    %83 = tpu.matmul %80, %82, %cst_77 {dimension_numbers = #tpu.dot_dimension_numbers<[1], [0], [0], [1], [0, 0, 1, 1], [], []>} : vector<160x128xbf16>, vector<128x128xbf16>, vector<160x128xf32> -> vector<160x128xf32>
    %84 = arith.addf %78, %83 : vector<160x128xf32>
    %c0_78 = arith.constant 0 : index
    %c984 = arith.constant 984 : index
    %c0_79 = arith.constant 0 : index
    %85 = vector.load %arg1[%c0_78, %c984, %c0_79] : memref<1x1640x128xbf16, #tpu.memory_space<vmem>>, vector<1x160x128xbf16>
    %86 = vector.shape_cast %85 : vector<1x160x128xbf16> to vector<160x128xbf16>
    %c0_80 = arith.constant 0 : index
    %c8 = arith.constant 8 : index
    %c0_81 = arith.constant 0 : index
    %c0_82 = arith.constant 0 : index
    %87 = vector.load %arg5[%c0_80, %c8, %c0_81, %c0_82] : memref<3x9x128x128xbf16, #tpu.memory_space<vmem>>, vector<1x1x128x128xbf16>
    %88 = vector.shape_cast %87 : vector<1x1x128x128xbf16> to vector<128x128xbf16>
    %cst_83 = arith.constant dense<0.000000e+00> : vector<160x128xf32>
    %89 = tpu.matmul %86, %88, %cst_83 {dimension_numbers = #tpu.dot_dimension_numbers<[1], [0], [0], [1], [0, 0, 1, 1], [], []>} : vector<160x128xbf16>, vector<128x128xbf16>, vector<160x128xf32> -> vector<160x128xf32>
    %90 = arith.addf %84, %89 : vector<160x128xf32>
    %c0_84 = arith.constant 0 : index
    %c0_85 = arith.constant 0 : index
    %91 = vector.load %arg6[%c0_84, %c0_85] : memref<3x128xf32, #tpu.memory_space<vmem>>, vector<1x128xf32>
    %92 = vector.broadcast %91 : vector<1x128xf32> to vector<160x128xf32>
    %93 = arith.mulf %90, %92 : vector<160x128xf32>
    %c0_86 = arith.constant 0 : index
    %c0_87 = arith.constant 0 : index
    %94 = vector.load %arg7[%c0_86, %c0_87] : memref<3x128xf32, #tpu.memory_space<vmem>>, vector<1x128xf32>
    %95 = vector.broadcast %94 : vector<1x128xf32> to vector<160x128xf32>
    %96 = arith.addf %93, %95 : vector<160x128xf32>
    %cst_88 = arith.constant 0.000000e+00 : f32
    %97 = vector.broadcast %cst_88 : f32 to vector<160x128xf32>
    %98 = arith.maximumf %96, %97 : vector<160x128xf32>
    %99 = arith.truncf %98 : vector<160x128xf32> to vector<160x128xbf16>
    %c0_89 = arith.constant 0 : index
    %c0_90 = arith.constant 0 : index
    %c128 = arith.constant 128 : index
    %100 = vector.load %arg12[%c0_89, %c0_90, %c128] : memref<1x160x512xbf16, #tpu.memory_space<vmem>>, vector<1x160x128xbf16>
    %101 = vector.shape_cast %100 : vector<1x160x128xbf16> to vector<160x128xbf16>
    %102 = vector.shape_cast %99 : vector<160x128xbf16> to vector<1x160x128xbf16>
    tpu.vector_store %arg12[%c0_89, %c0_90, %c128], %102 {strides = array<i32>} : memref<1x160x512xbf16, #tpu.memory_space<vmem>>, vector<1x160x128xbf16>,
    %cst_91 = arith.constant 0.000000e+00 : f32
    %103 = vector.broadcast %cst_91 : f32 to vector<160x128xf32>
    %c0_92 = arith.constant 0 : index
    %c246 = arith.constant 246 : index
    %c0_93 = arith.constant 0 : index
    %104 = vector.load %arg1[%c0_92, %c246, %c0_93] : memref<1x1640x128xbf16, #tpu.memory_space<vmem>>, vector<1x160x128xbf16>
    %105 = vector.shape_cast %104 : vector<1x160x128xbf16> to vector<160x128xbf16>
    %c1_94 = arith.constant 1 : index
    %c0_95 = arith.constant 0 : index
    %c0_96 = arith.constant 0 : index
    %c0_97 = arith.constant 0 : index
    %106 = vector.load %arg5[%c1_94, %c0_95, %c0_96, %c0_97] : memref<3x9x128x128xbf16, #tpu.memory_space<vmem>>, vector<1x1x128x128xbf16>
    %107 = vector.shape_cast %106 : vector<1x1x128x128xbf16> to vector<128x128xbf16>
    %cst_98 = arith.constant dense<0.000000e+00> : vector<160x128xf32>
    %108 = tpu.matmul %105, %107, %cst_98 {dimension_numbers = #tpu.dot_dimension_numbers<[1], [0], [0], [1], [0, 0, 1, 1], [], []>} : vector<160x128xbf16>, vector<128x128xbf16>, vector<160x128xf32> -> vector<160x128xf32>
    %109 = arith.addf %103, %108 : vector<160x128xf32>
    %c0_99 = arith.constant 0 : index
    %c258 = arith.constant 258 : index
    %c0_100 = arith.constant 0 : index
    %110 = vector.load %arg1[%c0_99, %c258, %c0_100] : memref<1x1640x128xbf16, #tpu.memory_space<vmem>>, vector<1x160x128xbf16>
    %111 = vector.shape_cast %110 : vector<1x160x128xbf16> to vector<160x128xbf16>
    %c1_101 = arith.constant 1 : index
    %c1_102 = arith.constant 1 : index
    %c0_103 = arith.constant 0 : index
    %c0_104 = arith.constant 0 : index
    %112 = vector.load %arg5[%c1_101, %c1_102, %c0_103, %c0_104] : memref<3x9x128x128xbf16, #tpu.memory_space<vmem>>, vector<1x1x128x128xbf16>
    %113 = vector.shape_cast %112 : vector<1x1x128x128xbf16> to vector<128x128xbf16>
    %cst_105 = arith.constant dense<0.000000e+00> : vector<160x128xf32>
    %114 = tpu.matmul %111, %113, %cst_105 {dimension_numbers = #tpu.dot_dimension_numbers<[1], [0], [0], [1], [0, 0, 1, 1], [], []>} : vector<160x128xbf16>, vector<128x128xbf16>, vector<160x128xf32> -> vector<160x128xf32>
    %115 = arith.addf %109, %114 : vector<160x128xf32>
    %c0_106 = arith.constant 0 : index
    %c270 = arith.constant 270 : index
    %c0_107 = arith.constant 0 : index
    %116 = vector.load %arg1[%c0_106, %c270, %c0_107] : memref<1x1640x128xbf16, #tpu.memory_space<vmem>>, vector<1x160x128xbf16>
    %117 = vector.shape_cast %116 : vector<1x160x128xbf16> to vector<160x128xbf16>
    %c1_108 = arith.constant 1 : index
    %c2_109 = arith.constant 2 : index
    %c0_110 = arith.constant 0 : index
    %c0_111 = arith.constant 0 : index
    %118 = vector.load %arg5[%c1_108, %c2_109, %c0_110, %c0_111] : memref<3x9x128x128xbf16, #tpu.memory_space<vmem>>, vector<1x1x128x128xbf16>
    %119 = vector.shape_cast %118 : vector<1x1x128x128xbf16> to vector<128x128xbf16>
    %cst_112 = arith.constant dense<0.000000e+00> : vector<160x128xf32>
    %120 = tpu.matmul %117, %119, %cst_112 {dimension_numbers = #tpu.dot_dimension_numbers<[1], [0], [0], [1], [0, 0, 1, 1], [], []>} : vector<160x128xbf16>, vector<128x128xbf16>, vector<160x128xf32> -> vector<160x128xf32>
    %121 = arith.addf %115, %120 : vector<160x128xf32>
    %c0_113 = arith.constant 0 : index
    %c726 = arith.constant 726 : index
    %c0_114 = arith.constant 0 : index
    %122 = vector.load %arg1[%c0_113, %c726, %c0_114] : memref<1x1640x128xbf16, #tpu.memory_space<vmem>>, vector<1x160x128xbf16>
    %123 = vector.shape_cast %122 : vector<1x160x128xbf16> to vector<160x128xbf16>
    %c1_115 = arith.constant 1 : index
    %c3_116 = arith.constant 3 : index
    %c0_117 = arith.constant 0 : index
    %c0_118 = arith.constant 0 : index
    %124 = vector.load %arg5[%c1_115, %c3_116, %c0_117, %c0_118] : memref<3x9x128x128xbf16, #tpu.memory_space<vmem>>, vector<1x1x128x128xbf16>
    %125 = vector.shape_cast %124 : vector<1x1x128x128xbf16> to vector<128x128xbf16>
    %cst_119 = arith.constant dense<0.000000e+00> : vector<160x128xf32>
    %126 = tpu.matmul %123, %125, %cst_119 {dimension_numbers = #tpu.dot_dimension_numbers<[1], [0], [0], [1], [0, 0, 1, 1], [], []>} : vector<160x128xbf16>, vector<128x128xbf16>, vector<160x128xf32> -> vector<160x128xf32>
    %127 = arith.addf %121, %126 : vector<160x128xf32>
    %c0_120 = arith.constant 0 : index
    %c738_121 = arith.constant 738 : index
    %c0_122 = arith.constant 0 : index
    %128 = vector.load %arg1[%c0_120, %c738_121, %c0_122] : memref<1x1640x128xbf16, #tpu.memory_space<vmem>>, vector<1x160x128xbf16>
    %129 = vector.shape_cast %128 : vector<1x160x128xbf16> to vector<160x128xbf16>
    %c1_123 = arith.constant 1 : index
    %c4_124 = arith.constant 4 : index
    %c0_125 = arith.constant 0 : index
    %c0_126 = arith.constant 0 : index
    %130 = vector.load %arg5[%c1_123, %c4_124, %c0_125, %c0_126] : memref<3x9x128x128xbf16, #tpu.memory_space<vmem>>, vector<1x1x128x128xbf16>
    %131 = vector.shape_cast %130 : vector<1x1x128x128xbf16> to vector<128x128xbf16>
    %cst_127 = arith.constant dense<0.000000e+00> : vector<160x128xf32>
    %132 = tpu.matmul %129, %131, %cst_127 {dimension_numbers = #tpu.dot_dimension_numbers<[1], [0], [0], [1], [0, 0, 1, 1], [], []>} : vector<160x128xbf16>, vector<128x128xbf16>, vector<160x128xf32> -> vector<160x128xf32>
    %133 = arith.addf %127, %132 : vector<160x128xf32>
    %c0_128 = arith.constant 0 : index
    %c750 = arith.constant 750 : index
    %c0_129 = arith.constant 0 : index
    %134 = vector.load %arg1[%c0_128, %c750, %c0_129] : memref<1x1640x128xbf16, #tpu.memory_space<vmem>>, vector<1x160x128xbf16>
    %135 = vector.shape_cast %134 : vector<1x160x128xbf16> to vector<160x128xbf16>
    %c1_130 = arith.constant 1 : index
    %c5_131 = arith.constant 5 : index
    %c0_132 = arith.constant 0 : index
    %c0_133 = arith.constant 0 : index
    %136 = vector.load %arg5[%c1_130, %c5_131, %c0_132, %c0_133] : memref<3x9x128x128xbf16, #tpu.memory_space<vmem>>, vector<1x1x128x128xbf16>
    %137 = vector.shape_cast %136 : vector<1x1x128x128xbf16> to vector<128x128xbf16>
    %cst_134 = arith.constant dense<0.000000e+00> : vector<160x128xf32>
    %138 = tpu.matmul %135, %137, %cst_134 {dimension_numbers = #tpu.dot_dimension_numbers<[1], [0], [0], [1], [0, 0, 1, 1], [], []>} : vector<160x128xbf16>, vector<128x128xbf16>, vector<160x128xf32> -> vector<160x128xf32>
    %139 = arith.addf %133, %138 : vector<160x128xf32>
    %c0_135 = arith.constant 0 : index
    %c1206 = arith.constant 1206 : index
    %c0_136 = arith.constant 0 : index
    %140 = vector.load %arg1[%c0_135, %c1206, %c0_136] : memref<1x1640x128xbf16, #tpu.memory_space<vmem>>, vector<1x160x128xbf16>
    %141 = vector.shape_cast %140 : vector<1x160x128xbf16> to vector<160x128xbf16>
    %c1_137 = arith.constant 1 : index
    %c6_138 = arith.constant 6 : index
    %c0_139 = arith.constant 0 : index
    %c0_140 = arith.constant 0 : index
    %142 = vector.load %arg5[%c1_137, %c6_138, %c0_139, %c0_140] : memref<3x9x128x128xbf16, #tpu.memory_space<vmem>>, vector<1x1x128x128xbf16>
    %143 = vector.shape_cast %142 : vector<1x1x128x128xbf16> to vector<128x128xbf16>
    %cst_141 = arith.constant dense<0.000000e+00> : vector<160x128xf32>
    %144 = tpu.matmul %141, %143, %cst_141 {dimension_numbers = #tpu.dot_dimension_numbers<[1], [0], [0], [1], [0, 0, 1, 1], [], []>} : vector<160x128xbf16>, vector<128x128xbf16>, vector<160x128xf32> -> vector<160x128xf32>
    %145 = arith.addf %139, %144 : vector<160x128xf32>
    %c0_142 = arith.constant 0 : index
    %c1218 = arith.constant 1218 : index
    %c0_143 = arith.constant 0 : index
    %146 = vector.load %arg1[%c0_142, %c1218, %c0_143] : memref<1x1640x128xbf16, #tpu.memory_space<vmem>>, vector<1x160x128xbf16>
    %147 = vector.shape_cast %146 : vector<1x160x128xbf16> to vector<160x128xbf16>
    %c1_144 = arith.constant 1 : index
    %c7_145 = arith.constant 7 : index
    %c0_146 = arith.constant 0 : index
    %c0_147 = arith.constant 0 : index
    %148 = vector.load %arg5[%c1_144, %c7_145, %c0_146, %c0_147] : memref<3x9x128x128xbf16, #tpu.memory_space<vmem>>, vector<1x1x128x128xbf16>
    %149 = vector.shape_cast %148 : vector<1x1x128x128xbf16> to vector<128x128xbf16>
    %cst_148 = arith.constant dense<0.000000e+00> : vector<160x128xf32>
    %150 = tpu.matmul %147, %149, %cst_148 {dimension_numbers = #tpu.dot_dimension_numbers<[1], [0], [0], [1], [0, 0, 1, 1], [], []>} : vector<160x128xbf16>, vector<128x128xbf16>, vector<160x128xf32> -> vector<160x128xf32>
    %151 = arith.addf %145, %150 : vector<160x128xf32>
    %c0_149 = arith.constant 0 : index
    %c1230 = arith.constant 1230 : index
    %c0_150 = arith.constant 0 : index
    %152 = vector.load %arg1[%c0_149, %c1230, %c0_150] : memref<1x1640x128xbf16, #tpu.memory_space<vmem>>, vector<1x160x128xbf16>
    %153 = vector.shape_cast %152 : vector<1x160x128xbf16> to vector<160x128xbf16>
    %c1_151 = arith.constant 1 : index
    %c8_152 = arith.constant 8 : index
    %c0_153 = arith.constant 0 : index
    %c0_154 = arith.constant 0 : index
    %154 = vector.load %arg5[%c1_151, %c8_152, %c0_153, %c0_154] : memref<3x9x128x128xbf16, #tpu.memory_space<vmem>>, vector<1x1x128x128xbf16>
    %155 = vector.shape_cast %154 : vector<1x1x128x128xbf16> to vector<128x128xbf16>
    %cst_155 = arith.constant dense<0.000000e+00> : vector<160x128xf32>
    %156 = tpu.matmul %153, %155, %cst_155 {dimension_numbers = #tpu.dot_dimension_numbers<[1], [0], [0], [1], [0, 0, 1, 1], [], []>} : vector<160x128xbf16>, vector<128x128xbf16>, vector<160x128xf32> -> vector<160x128xf32>
    %157 = arith.addf %151, %156 : vector<160x128xf32>
    %c1_156 = arith.constant 1 : index
    %c0_157 = arith.constant 0 : index
    %158 = vector.load %arg6[%c1_156, %c0_157] : memref<3x128xf32, #tpu.memory_space<vmem>>, vector<1x128xf32>
    %159 = vector.broadcast %158 : vector<1x128xf32> to vector<160x128xf32>
    %160 = arith.mulf %157, %159 : vector<160x128xf32>
    %c1_158 = arith.constant 1 : index
    %c0_159 = arith.constant 0 : index
    %161 = vector.load %arg7[%c1_158, %c0_159] : memref<3x128xf32, #tpu.memory_space<vmem>>, vector<1x128xf32>
    %162 = vector.broadcast %161 : vector<1x128xf32> to vector<160x128xf32>
    %163 = arith.addf %160, %162 : vector<160x128xf32>
    %cst_160 = arith.constant 0.000000e+00 : f32
    %164 = vector.broadcast %cst_160 : f32 to vector<160x128xf32>
    %165 = arith.maximumf %163, %164 : vector<160x128xf32>
    %166 = arith.truncf %165 : vector<160x128xf32> to vector<160x128xbf16>
    %c0_161 = arith.constant 0 : index
    %c0_162 = arith.constant 0 : index
    %c256 = arith.constant 256 : index
    %167 = vector.load %arg12[%c0_161, %c0_162, %c256] : memref<1x160x512xbf16, #tpu.memory_space<vmem>>, vector<1x160x128xbf16>
    %168 = vector.shape_cast %167 : vector<1x160x128xbf16> to vector<160x128xbf16>
    %169 = vector.shape_cast %166 : vector<160x128xbf16> to vector<1x160x128xbf16>
    tpu.vector_store %arg12[%c0_161, %c0_162, %c256], %169 {strides = array<i32>} : memref<1x160x512xbf16, #tpu.memory_space<vmem>>, vector<1x160x128xbf16>,
    %cst_163 = arith.constant 0.000000e+00 : f32
    %170 = vector.broadcast %cst_163 : f32 to vector<160x128xf32>
    %c0_164 = arith.constant 0 : index
    %c0_165 = arith.constant 0 : index
    %c0_166 = arith.constant 0 : index
    %171 = vector.load %arg1[%c0_164, %c0_165, %c0_166] : memref<1x1640x128xbf16, #tpu.memory_space<vmem>>, vector<1x160x128xbf16>
    %172 = vector.shape_cast %171 : vector<1x160x128xbf16> to vector<160x128xbf16>
    %c2_167 = arith.constant 2 : index
    %c0_168 = arith.constant 0 : index
    %c0_169 = arith.constant 0 : index
    %c0_170 = arith.constant 0 : index
    %173 = vector.load %arg5[%c2_167, %c0_168, %c0_169, %c0_170] : memref<3x9x128x128xbf16, #tpu.memory_space<vmem>>, vector<1x1x128x128xbf16>
    %174 = vector.shape_cast %173 : vector<1x1x128x128xbf16> to vector<128x128xbf16>
    %cst_171 = arith.constant dense<0.000000e+00> : vector<160x128xf32>
    %175 = tpu.matmul %172, %174, %cst_171 {dimension_numbers = #tpu.dot_dimension_numbers<[1], [0], [0], [1], [0, 0, 1, 1], [], []>} : vector<160x128xbf16>, vector<128x128xbf16>, vector<160x128xf32> -> vector<160x128xf32>
    %176 = arith.addf %170, %175 : vector<160x128xf32>
    %c0_172 = arith.constant 0 : index
    %c18 = arith.constant 18 : index
    %c0_173 = arith.constant 0 : index
    %177 = vector.load %arg1[%c0_172, %c18, %c0_173] : memref<1x1640x128xbf16, #tpu.memory_space<vmem>>, vector<1x160x128xbf16>
    %178 = vector.shape_cast %177 : vector<1x160x128xbf16> to vector<160x128xbf16>
    %c2_174 = arith.constant 2 : index
    %c1_175 = arith.constant 1 : index
    %c0_176 = arith.constant 0 : index
    %c0_177 = arith.constant 0 : index
    %179 = vector.load %arg5[%c2_174, %c1_175, %c0_176, %c0_177] : memref<3x9x128x128xbf16, #tpu.memory_space<vmem>>, vector<1x1x128x128xbf16>
    %180 = vector.shape_cast %179 : vector<1x1x128x128xbf16> to vector<128x128xbf16>
    %cst_178 = arith.constant dense<0.000000e+00> : vector<160x128xf32>
    %181 = tpu.matmul %178, %180, %cst_178 {dimension_numbers = #tpu.dot_dimension_numbers<[1], [0], [0], [1], [0, 0, 1, 1], [], []>} : vector<160x128xbf16>, vector<128x128xbf16>, vector<160x128xf32> -> vector<160x128xf32>
    %182 = arith.addf %176, %181 : vector<160x128xf32>
    %c0_179 = arith.constant 0 : index
    %c36 = arith.constant 36 : index
    %c0_180 = arith.constant 0 : index
    %183 = vector.load %arg1[%c0_179, %c36, %c0_180] : memref<1x1640x128xbf16, #tpu.memory_space<vmem>>, vector<1x160x128xbf16>
    %184 = vector.shape_cast %183 : vector<1x160x128xbf16> to vector<160x128xbf16>
    %c2_181 = arith.constant 2 : index
    %c2_182 = arith.constant 2 : index
    %c0_183 = arith.constant 0 : index
    %c0_184 = arith.constant 0 : index
    %185 = vector.load %arg5[%c2_181, %c2_182, %c0_183, %c0_184] : memref<3x9x128x128xbf16, #tpu.memory_space<vmem>>, vector<1x1x128x128xbf16>
    %186 = vector.shape_cast %185 : vector<1x1x128x128xbf16> to vector<128x128xbf16>
    %cst_185 = arith.constant dense<0.000000e+00> : vector<160x128xf32>
    %187 = tpu.matmul %184, %186, %cst_185 {dimension_numbers = #tpu.dot_dimension_numbers<[1], [0], [0], [1], [0, 0, 1, 1], [], []>} : vector<160x128xbf16>, vector<128x128xbf16>, vector<160x128xf32> -> vector<160x128xf32>
    %188 = arith.addf %182, %187 : vector<160x128xf32>
    %c0_186 = arith.constant 0 : index
    %c720 = arith.constant 720 : index
    %c0_187 = arith.constant 0 : index
    %189 = vector.load %arg1[%c0_186, %c720, %c0_187] : memref<1x1640x128xbf16, #tpu.memory_space<vmem>>, vector<1x160x128xbf16>
    %190 = vector.shape_cast %189 : vector<1x160x128xbf16> to vector<160x128xbf16>
    %c2_188 = arith.constant 2 : index
    %c3_189 = arith.constant 3 : index
    %c0_190 = arith.constant 0 : index
    %c0_191 = arith.constant 0 : index
    %191 = vector.load %arg5[%c2_188, %c3_189, %c0_190, %c0_191] : memref<3x9x128x128xbf16, #tpu.memory_space<vmem>>, vector<1x1x128x128xbf16>
    %192 = vector.shape_cast %191 : vector<1x1x128x128xbf16> to vector<128x128xbf16>
    %cst_192 = arith.constant dense<0.000000e+00> : vector<160x128xf32>
    %193 = tpu.matmul %190, %192, %cst_192 {dimension_numbers = #tpu.dot_dimension_numbers<[1], [0], [0], [1], [0, 0, 1, 1], [], []>} : vector<160x128xbf16>, vector<128x128xbf16>, vector<160x128xf32> -> vector<160x128xf32>
    %194 = arith.addf %188, %193 : vector<160x128xf32>
    %c0_193 = arith.constant 0 : index
    %c738_194 = arith.constant 738 : index
    %c0_195 = arith.constant 0 : index
    %195 = vector.load %arg1[%c0_193, %c738_194, %c0_195] : memref<1x1640x128xbf16, #tpu.memory_space<vmem>>, vector<1x160x128xbf16>
    %196 = vector.shape_cast %195 : vector<1x160x128xbf16> to vector<160x128xbf16>
    %c2_196 = arith.constant 2 : index
    %c4_197 = arith.constant 4 : index
    %c0_198 = arith.constant 0 : index
    %c0_199 = arith.constant 0 : index
    %197 = vector.load %arg5[%c2_196, %c4_197, %c0_198, %c0_199] : memref<3x9x128x128xbf16, #tpu.memory_space<vmem>>, vector<1x1x128x128xbf16>
    %198 = vector.shape_cast %197 : vector<1x1x128x128xbf16> to vector<128x128xbf16>
    %cst_200 = arith.constant dense<0.000000e+00> : vector<160x128xf32>
    %199 = tpu.matmul %196, %198, %cst_200 {dimension_numbers = #tpu.dot_dimension_numbers<[1], [0], [0], [1], [0, 0, 1, 1], [], []>} : vector<160x128xbf16>, vector<128x128xbf16>, vector<160x128xf32> -> vector<160x128xf32>
    %200 = arith.addf %194, %199 : vector<160x128xf32>
    %c0_201 = arith.constant 0 : index
    %c756 = arith.constant 756 : index
    %c0_202 = arith.constant 0 : index
    %201 = vector.load %arg1[%c0_201, %c756, %c0_202] : memref<1x1640x128xbf16, #tpu.memory_space<vmem>>, vector<1x160x128xbf16>
    %202 = vector.shape_cast %201 : vector<1x160x128xbf16> to vector<160x128xbf16>
    %c2_203 = arith.constant 2 : index
    %c5_204 = arith.constant 5 : index
    %c0_205 = arith.constant 0 : index
    %c0_206 = arith.constant 0 : index
    %203 = vector.load %arg5[%c2_203, %c5_204, %c0_205, %c0_206] : memref<3x9x128x128xbf16, #tpu.memory_space<vmem>>, vector<1x1x128x128xbf16>
    %204 = vector.shape_cast %203 : vector<1x1x128x128xbf16> to vector<128x128xbf16>
    %cst_207 = arith.constant dense<0.000000e+00> : vector<160x128xf32>
    %205 = tpu.matmul %202, %204, %cst_207 {dimension_numbers = #tpu.dot_dimension_numbers<[1], [0], [0], [1], [0, 0, 1, 1], [], []>} : vector<160x128xbf16>, vector<128x128xbf16>, vector<160x128xf32> -> vector<160x128xf32>
    %206 = arith.addf %200, %205 : vector<160x128xf32>
    %c0_208 = arith.constant 0 : index
    %c1440 = arith.constant 1440 : index
    %c0_209 = arith.constant 0 : index
    %207 = vector.load %arg1[%c0_208, %c1440, %c0_209] : memref<1x1640x128xbf16, #tpu.memory_space<vmem>>, vector<1x160x128xbf16>
    %208 = vector.shape_cast %207 : vector<1x160x128xbf16> to vector<160x128xbf16>
    %c2_210 = arith.constant 2 : index
    %c6_211 = arith.constant 6 : index
    %c0_212 = arith.constant 0 : index
    %c0_213 = arith.constant 0 : index
    %209 = vector.load %arg5[%c2_210, %c6_211, %c0_212, %c0_213] : memref<3x9x128x128xbf16, #tpu.memory_space<vmem>>, vector<1x1x128x128xbf16>
    %210 = vector.shape_cast %209 : vector<1x1x128x128xbf16> to vector<128x128xbf16>
    %cst_214 = arith.constant dense<0.000000e+00> : vector<160x128xf32>
    %211 = tpu.matmul %208, %210, %cst_214 {dimension_numbers = #tpu.dot_dimension_numbers<[1], [0], [0], [1], [0, 0, 1, 1], [], []>} : vector<160x128xbf16>, vector<128x128xbf16>, vector<160x128xf32> -> vector<160x128xf32>
    %212 = arith.addf %206, %211 : vector<160x128xf32>
    %c0_215 = arith.constant 0 : index
    %c1458 = arith.constant 1458 : index
    %c0_216 = arith.constant 0 : index
    %213 = vector.load %arg1[%c0_215, %c1458, %c0_216] : memref<1x1640x128xbf16, #tpu.memory_space<vmem>>, vector<1x160x128xbf16>
    %214 = vector.shape_cast %213 : vector<1x160x128xbf16> to vector<160x128xbf16>
    %c2_217 = arith.constant 2 : index
    %c7_218 = arith.constant 7 : index
    %c0_219 = arith.constant 0 : index
    %c0_220 = arith.constant 0 : index
    %215 = vector.load %arg5[%c2_217, %c7_218, %c0_219, %c0_220] : memref<3x9x128x128xbf16, #tpu.memory_space<vmem>>, vector<1x1x128x128xbf16>
    %216 = vector.shape_cast %215 : vector<1x1x128x128xbf16> to vector<128x128xbf16>
    %cst_221 = arith.constant dense<0.000000e+00> : vector<160x128xf32>
    %217 = tpu.matmul %214, %216, %cst_221 {dimension_numbers = #tpu.dot_dimension_numbers<[1], [0], [0], [1], [0, 0, 1, 1], [], []>} : vector<160x128xbf16>, vector<128x128xbf16>, vector<160x128xf32> -> vector<160x128xf32>
    %218 = arith.addf %212, %217 : vector<160x128xf32>
    %c0_222 = arith.constant 0 : index
    %c1476 = arith.constant 1476 : index
    %c0_223 = arith.constant 0 : index
    %219 = vector.load %arg1[%c0_222, %c1476, %c0_223] : memref<1x1640x128xbf16, #tpu.memory_space<vmem>>, vector<1x160x128xbf16>
    %220 = vector.shape_cast %219 : vector<1x160x128xbf16> to vector<160x128xbf16>
    %c2_224 = arith.constant 2 : index
    %c8_225 = arith.constant 8 : index
    %c0_226 = arith.constant 0 : index
    %c0_227 = arith.constant 0 : index
    %221 = vector.load %arg5[%c2_224, %c8_225, %c0_226, %c0_227] : memref<3x9x128x128xbf16, #tpu.memory_space<vmem>>, vector<1x1x128x128xbf16>
    %222 = vector.shape_cast %221 : vector<1x1x128x128xbf16> to vector<128x128xbf16>
    %cst_228 = arith.constant dense<0.000000e+00> : vector<160x128xf32>
    %223 = tpu.matmul %220, %222, %cst_228 {dimension_numbers = #tpu.dot_dimension_numbers<[1], [0], [0], [1], [0, 0, 1, 1], [], []>} : vector<160x128xbf16>, vector<128x128xbf16>, vector<160x128xf32> -> vector<160x128xf32>
    %224 = arith.addf %218, %223 : vector<160x128xf32>
    %c2_229 = arith.constant 2 : index
    %c0_230 = arith.constant 0 : index
    %225 = vector.load %arg6[%c2_229, %c0_230] : memref<3x128xf32, #tpu.memory_space<vmem>>, vector<1x128xf32>
    %226 = vector.broadcast %225 : vector<1x128xf32> to vector<160x128xf32>
    %227 = arith.mulf %224, %226 : vector<160x128xf32>
    %c2_231 = arith.constant 2 : index
    %c0_232 = arith.constant 0 : index
    %228 = vector.load %arg7[%c2_231, %c0_232] : memref<3x128xf32, #tpu.memory_space<vmem>>, vector<1x128xf32>
    %229 = vector.broadcast %228 : vector<1x128xf32> to vector<160x128xf32>
    %230 = arith.addf %227, %229 : vector<160x128xf32>
    %cst_233 = arith.constant 0.000000e+00 : f32
    %231 = vector.broadcast %cst_233 : f32 to vector<160x128xf32>
    %232 = arith.maximumf %230, %231 : vector<160x128xf32>
    %233 = arith.truncf %232 : vector<160x128xf32> to vector<160x128xbf16>
    %c0_234 = arith.constant 0 : index
    %c0_235 = arith.constant 0 : index
    %c384 = arith.constant 384 : index
    %234 = vector.load %arg12[%c0_234, %c0_235, %c384] : memref<1x160x512xbf16, #tpu.memory_space<vmem>>, vector<1x160x128xbf16>
    %235 = vector.shape_cast %234 : vector<1x160x128xbf16> to vector<160x128xbf16>
    %236 = vector.shape_cast %233 : vector<160x128xbf16> to vector<1x160x128xbf16>
    tpu.vector_store %arg12[%c0_234, %c0_235, %c384], %236 {strides = array<i32>} : memref<1x160x512xbf16, #tpu.memory_space<vmem>>, vector<1x160x128xbf16>,
    return
  }
  func.func @transform_0(%arg0: i32) -> (i32, i32, i32) {
    %c0_i32 = arith.constant 0 : i32
    %c0_i32_0 = arith.constant 0 : i32
    %c0_i32_1 = arith.constant 0 : i32
    return %arg0, %c0_i32, %c0_i32_0 : i32, i32, i32
  }
  func.func @transform_1(%arg0: i32) -> (i32, i32) {
    %c0_i32 = arith.constant 0 : i32
    %c0_i32_0 = arith.constant 0 : i32
    %c0_i32_1 = arith.constant 0 : i32
    return %c0_i32, %c0_i32_0 : i32, i32
  }
  func.func @transform_2(%arg0: i32) -> (i32, i32) {
    %c0_i32 = arith.constant 0 : i32
    %c0_i32_0 = arith.constant 0 : i32
    %c0_i32_1 = arith.constant 0 : i32
    return %c0_i32, %c0_i32_0 : i32, i32
  }
  func.func @transform_3(%arg0: i32) -> (i32, i32) {
    %c0_i32 = arith.constant 0 : i32
    %c0_i32_0 = arith.constant 0 : i32
    %c0_i32_1 = arith.constant 0 : i32
    return %c0_i32, %c0_i32_0 : i32, i32
  }
  func.func @transform_4(%arg0: i32) -> (i32, i32, i32, i32) {
    %c0_i32 = arith.constant 0 : i32
    %c0_i32_0 = arith.constant 0 : i32
    %c0_i32_1 = arith.constant 0 : i32
    %c0_i32_2 = arith.constant 0 : i32
    %c0_i32_3 = arith.constant 0 : i32
    return %c0_i32, %c0_i32_0, %c0_i32_1, %c0_i32_2 : i32, i32, i32, i32
  }
  func.func @transform_5(%arg0: i32) -> (i32, i32) {
    %c0_i32 = arith.constant 0 : i32
    %c0_i32_0 = arith.constant 0 : i32
    %c0_i32_1 = arith.constant 0 : i32
    return %c0_i32, %c0_i32_0 : i32, i32
  }
  func.func @transform_6(%arg0: i32) -> (i32, i32) {
    %c0_i32 = arith.constant 0 : i32
    %c0_i32_0 = arith.constant 0 : i32
    %c0_i32_1 = arith.constant 0 : i32
    return %c0_i32, %c0_i32_0 : i32, i32
  }
  func.func @transform_7(%arg0: i32) -> (i32, i32) {
    %c0_i32 = arith.constant 0 : i32
    %c0_i32_0 = arith.constant 0 : i32
    %c0_i32_1 = arith.constant 0 : i32
    return %c0_i32, %c0_i32_0 : i32, i32
  }
  func.func @transform_8(%arg0: i32) -> (i32, i32) {
    %c0_i32 = arith.constant 0 : i32
    %c0_i32_0 = arith.constant 0 : i32
    %c0_i32_1 = arith.constant 0 : i32
    return %c0_i32, %c0_i32_0 : i32, i32
  }
  func.func @transform_9(%arg0: i32) -> (i32, i32) {
    %c0_i32 = arith.constant 0 : i32
    %c0_i32_0 = arith.constant 0 : i32
    %c0_i32_1 = arith.constant 0 : i32
    return %c0_i32, %c0_i32_0 : i32, i32
  }
  func.func @transform_10(%arg0: i32) -> (i32, i32) {
    %c0_i32 = arith.constant 0 : i32
    %c0_i32_0 = arith.constant 0 : i32
    %c0_i32_1 = arith.constant 0 : i32
    return %c0_i32, %c0_i32_0 : i32, i32
  }
  func.func @transform_11(%arg0: i32) -> (i32, i32, i32) {
    %c0_i32 = arith.constant 0 : i32
    %c0_i32_0 = arith.constant 0 : i32
    %c0_i32_1 = arith.constant 0 : i32
    return %arg0, %c0_i32, %c0_i32_0 : i32, i32, i32
  }
  func.func @transform_12(%arg0: i32) -> (i32, i32, i32) {
    %c0_i32 = arith.constant 0 : i32
    %c0_i32_0 = arith.constant 0 : i32
    %c0_i32_1 = arith.constant 0 : i32
    return %arg0, %c0_i32, %c0_i32_0 : i32, i32, i32
  }
}

module attributes {stable_mosaic.version = 11 : i64} {
  func.func @_aspp_proj_kernel(%arg0: i32, %arg1: i32, %arg2: memref<1x16x512xbf16, #tpu.memory_space<vmem>>, %arg3: memref<512x128xbf16, #tpu.memory_space<vmem>>, %arg4: memref<1x1x128xf32, #tpu.memory_space<vmem>>, %arg5: memref<1x128xf32, #tpu.memory_space<vmem>>, %arg6: memref<1x128xf32, #tpu.memory_space<vmem>>, %arg7: memref<1x16x128xbf16, #tpu.memory_space<vmem>>) attributes {dimension_semantics = [#tpu.dimension_semantics<parallel>, #tpu.dimension_semantics<parallel>], iteration_bounds = array<i64: 2, 1>, scalar_prefetch = 0 : i64, scratch_operands = 0 : i64, tpu.core_type = #tpu.core_type<tc>, window_params = [{transform_indices = @transform_0, window_bounds = array<i64: 1, 16, 512>}, {pipeline_mode = #tpu.pipeline_mode<synchronous>, transform_indices = @transform_1, window_bounds = array<i64: 512, 128>}, {transform_indices = @transform_2, window_bounds = array<i64: 1, 1, 128>}, {pipeline_mode = #tpu.pipeline_mode<synchronous>, transform_indices = @transform_3, window_bounds = array<i64: 1, 128>}, {pipeline_mode = #tpu.pipeline_mode<synchronous>, transform_indices = @transform_4, window_bounds = array<i64: 1, 128>}, {transform_indices = @transform_5, window_bounds = array<i64: 1, 16, 128>}]} {
    %c0 = arith.constant 0 : index
    %c0_0 = arith.constant 0 : index
    %c0_1 = arith.constant 0 : index
    %0 = vector.load %arg2[%c0, %c0_0, %c0_1] : memref<1x16x512xbf16, #tpu.memory_space<vmem>>, vector<1x16x512xbf16>
    %1 = vector.shape_cast %0 : vector<1x16x512xbf16> to vector<16x512xbf16>
    %c0_2 = arith.constant 0 : index
    %c0_3 = arith.constant 0 : index
    %2 = vector.load %arg3[%c0_2, %c0_3] : memref<512x128xbf16, #tpu.memory_space<vmem>>, vector<512x128xbf16>
    %cst = arith.constant dense<0.000000e+00> : vector<16x128xf32>
    %3 = tpu.matmul %1, %2, %cst {dimension_numbers = #tpu.dot_dimension_numbers<[1], [0], [0], [1], [0, 0, 1, 1], [], []>} : vector<16x512xbf16>, vector<512x128xbf16>, vector<16x128xf32> -> vector<16x128xf32>
    %c0_4 = arith.constant 0 : index
    %c0_5 = arith.constant 0 : index
    %c0_6 = arith.constant 0 : index
    %4 = vector.load %arg4[%c0_4, %c0_5, %c0_6] : memref<1x1x128xf32, #tpu.memory_space<vmem>>, vector<1x1x128xf32>
    %5 = vector.shape_cast %4 : vector<1x1x128xf32> to vector<1x128xf32>
    %6 = vector.broadcast %5 : vector<1x128xf32> to vector<16x128xf32>
    %7 = arith.addf %3, %6 : vector<16x128xf32>
    %c0_7 = arith.constant 0 : index
    %c0_8 = arith.constant 0 : index
    %8 = vector.load %arg5[%c0_7, %c0_8] : memref<1x128xf32, #tpu.memory_space<vmem>>, vector<1x128xf32>
    %9 = vector.broadcast %8 : vector<1x128xf32> to vector<16x128xf32>
    %10 = arith.mulf %7, %9 : vector<16x128xf32>
    %c0_9 = arith.constant 0 : index
    %c0_10 = arith.constant 0 : index
    %11 = vector.load %arg6[%c0_9, %c0_10] : memref<1x128xf32, #tpu.memory_space<vmem>>, vector<1x128xf32>
    %12 = vector.broadcast %11 : vector<1x128xf32> to vector<16x128xf32>
    %13 = arith.addf %10, %12 : vector<16x128xf32>
    %cst_11 = arith.constant 0.000000e+00 : f32
    %14 = vector.broadcast %cst_11 : f32 to vector<16x128xf32>
    %15 = arith.maximumf %13, %14 : vector<16x128xf32>
    %16 = arith.truncf %15 : vector<16x128xf32> to vector<16x128xbf16>
    %c0_12 = arith.constant 0 : index
    %c0_13 = arith.constant 0 : index
    %c0_14 = arith.constant 0 : index
    %17 = vector.load %arg7[%c0_12, %c0_13, %c0_14] : memref<1x16x128xbf16, #tpu.memory_space<vmem>>, vector<1x16x128xbf16>
    %18 = vector.shape_cast %17 : vector<1x16x128xbf16> to vector<16x128xbf16>
    %19 = vector.shape_cast %16 : vector<16x128xbf16> to vector<1x16x128xbf16>
    tpu.vector_store %arg7[%c0_12, %c0_13, %c0_14], %19 {strides = array<i32>} : memref<1x16x128xbf16, #tpu.memory_space<vmem>>, vector<1x16x128xbf16>,
    return
  }
  func.func @transform_0(%arg0: i32, %arg1: i32) -> (i32, i32, i32) {
    %c0_i32 = arith.constant 0 : i32
    %c0_i32_0 = arith.constant 0 : i32
    return %arg0, %arg1, %c0_i32 : i32, i32, i32
  }
  func.func @transform_1(%arg0: i32, %arg1: i32) -> (i32, i32) {
    %c0_i32 = arith.constant 0 : i32
    %c0_i32_0 = arith.constant 0 : i32
    %c0_i32_1 = arith.constant 0 : i32
    return %c0_i32, %c0_i32_0 : i32, i32
  }
  func.func @transform_2(%arg0: i32, %arg1: i32) -> (i32, i32, i32) {
    %c0_i32 = arith.constant 0 : i32
    %c0_i32_0 = arith.constant 0 : i32
    %c0_i32_1 = arith.constant 0 : i32
    return %arg0, %c0_i32, %c0_i32_0 : i32, i32, i32
  }
  func.func @transform_3(%arg0: i32, %arg1: i32) -> (i32, i32) {
    %c0_i32 = arith.constant 0 : i32
    %c0_i32_0 = arith.constant 0 : i32
    %c0_i32_1 = arith.constant 0 : i32
    return %c0_i32, %c0_i32_0 : i32, i32
  }
  func.func @transform_4(%arg0: i32, %arg1: i32) -> (i32, i32) {
    %c0_i32 = arith.constant 0 : i32
    %c0_i32_0 = arith.constant 0 : i32
    %c0_i32_1 = arith.constant 0 : i32
    return %c0_i32, %c0_i32_0 : i32, i32
  }
  func.func @transform_5(%arg0: i32, %arg1: i32) -> (i32, i32, i32) {
    %c0_i32 = arith.constant 0 : i32
    %c0_i32_0 = arith.constant 0 : i32
    return %arg0, %arg1, %c0_i32 : i32, i32, i32
  }
}

module attributes {stable_mosaic.version = 11 : i64} {
  func.func @_mm_fused_kernel(%arg0: i32, %arg1: i32, %arg2: i32, %arg3: memref<32x128xbf16, #tpu.memory_space<vmem>>, %arg4: memref<128x21xbf16, #tpu.memory_space<vmem>>, %arg5: memref<1x21xf32, #tpu.memory_space<vmem>>, %arg6: memref<1x21xf32, #tpu.memory_space<vmem>>, %arg7: memref<32x21xbf16, #tpu.memory_space<vmem>>, %arg8: memref<32x21xf32, #tpu.memory_space<vmem>>) attributes {dimension_semantics = [#tpu.dimension_semantics<parallel>, #tpu.dimension_semantics<parallel>, #tpu.dimension_semantics<arbitrary>], iteration_bounds = array<i64: 1, 1, 1>, scalar_prefetch = 0 : i64, scratch_operands = 1 : i64, tpu.core_type = #tpu.core_type<tc>, window_params = [{transform_indices = @transform_0, window_bounds = array<i64: 32, 128>}, {transform_indices = @transform_1, window_bounds = array<i64: 128, 21>}, {transform_indices = @transform_2, window_bounds = array<i64: 1, 21>}, {transform_indices = @transform_3, window_bounds = array<i64: 1, 21>}, {transform_indices = @transform_4, window_bounds = array<i64: 32, 21>}]} {
    %c0_i32 = arith.constant 0 : i32
    %0 = arith.cmpi eq, %arg2, %c0_i32 : i32
    %1 = arith.extui %0 : i1 to i32
    %c0_i32_0 = arith.constant 0 : i32
    %2 = arith.cmpi ne, %1, %c0_i32_0 : i32
    scf.if %2 {
      %cst_10 = arith.constant 0.000000e+00 : f32
      %12 = vector.broadcast %cst_10 : f32 to vector<32x21xf32>
      %c0_11 = arith.constant 0 : index
      %c0_12 = arith.constant 0 : index
      %13 = vector.load %arg8[%c0_11, %c0_12] : memref<32x21xf32, #tpu.memory_space<vmem>>, vector<32x21xf32>
      tpu.vector_store %arg8[%c0_11, %c0_12], %12 {strides = array<i32>} : memref<32x21xf32, #tpu.memory_space<vmem>>, vector<32x21xf32>,
    } else {
    }
    %c0 = arith.constant 0 : index
    %c0_1 = arith.constant 0 : index
    %3 = vector.load %arg8[%c0, %c0_1] : memref<32x21xf32, #tpu.memory_space<vmem>>, vector<32x21xf32>
    %c0_2 = arith.constant 0 : index
    %c0_3 = arith.constant 0 : index
    %4 = vector.load %arg3[%c0_2, %c0_3] : memref<32x128xbf16, #tpu.memory_space<vmem>>, vector<32x128xbf16>
    %c0_4 = arith.constant 0 : index
    %c0_5 = arith.constant 0 : index
    %5 = vector.load %arg4[%c0_4, %c0_5] : memref<128x21xbf16, #tpu.memory_space<vmem>>, vector<128x21xbf16>
    %cst = arith.constant dense<0.000000e+00> : vector<32x21xf32>
    %6 = tpu.matmul %4, %5, %cst {dimension_numbers = #tpu.dot_dimension_numbers<[1], [0], [0], [1], [0, 0, 1, 1], [], []>} : vector<32x128xbf16>, vector<128x21xbf16>, vector<32x21xf32> -> vector<32x21xf32>
    %7 = arith.addf %3, %6 : vector<32x21xf32>
    %c0_6 = arith.constant 0 : index
    %c0_7 = arith.constant 0 : index
    %8 = vector.load %arg8[%c0_6, %c0_7] : memref<32x21xf32, #tpu.memory_space<vmem>>, vector<32x21xf32>
    tpu.vector_store %arg8[%c0_6, %c0_7], %7 {strides = array<i32>} : memref<32x21xf32, #tpu.memory_space<vmem>>, vector<32x21xf32>,
    %c0_i32_8 = arith.constant 0 : i32
    %9 = arith.cmpi eq, %arg2, %c0_i32_8 : i32
    %10 = arith.extui %9 : i1 to i32
    %c0_i32_9 = arith.constant 0 : i32
    %11 = arith.cmpi ne, %10, %c0_i32_9 : i32
    scf.if %11 {
      %c0_10 = arith.constant 0 : index
      %c0_11 = arith.constant 0 : index
      %12 = vector.load %arg8[%c0_10, %c0_11] : memref<32x21xf32, #tpu.memory_space<vmem>>, vector<32x21xf32>
      %c0_12 = arith.constant 0 : index
      %c0_13 = arith.constant 0 : index
      %13 = vector.load %arg5[%c0_12, %c0_13] : memref<1x21xf32, #tpu.memory_space<vmem>>, vector<1x21xf32>
      %14 = vector.broadcast %13 : vector<1x21xf32> to vector<32x21xf32>
      %15 = arith.mulf %12, %14 : vector<32x21xf32>
      %c0_14 = arith.constant 0 : index
      %c0_15 = arith.constant 0 : index
      %16 = vector.load %arg6[%c0_14, %c0_15] : memref<1x21xf32, #tpu.memory_space<vmem>>, vector<1x21xf32>
      %17 = vector.broadcast %16 : vector<1x21xf32> to vector<32x21xf32>
      %18 = arith.addf %15, %17 : vector<32x21xf32>
      %19 = arith.truncf %18 : vector<32x21xf32> to vector<32x21xbf16>
      %c0_16 = arith.constant 0 : index
      %c0_17 = arith.constant 0 : index
      %20 = vector.load %arg7[%c0_16, %c0_17] : memref<32x21xbf16, #tpu.memory_space<vmem>>, vector<32x21xbf16>
      tpu.vector_store %arg7[%c0_16, %c0_17], %19 {strides = array<i32>} : memref<32x21xbf16, #tpu.memory_space<vmem>>, vector<32x21xbf16>,
    } else {
    }
    return
  }
  func.func @transform_0(%arg0: i32, %arg1: i32, %arg2: i32) -> (i32, i32) {
    %c0_i32 = arith.constant 0 : i32
    return %arg0, %arg2 : i32, i32
  }
  func.func @transform_1(%arg0: i32, %arg1: i32, %arg2: i32) -> (i32, i32) {
    %c0_i32 = arith.constant 0 : i32
    return %arg2, %arg1 : i32, i32
  }
  func.func @transform_2(%arg0: i32, %arg1: i32, %arg2: i32) -> (i32, i32) {
    %c0_i32 = arith.constant 0 : i32
    %c0_i32_0 = arith.constant 0 : i32
    return %c0_i32, %arg1 : i32, i32
  }
  func.func @transform_3(%arg0: i32, %arg1: i32, %arg2: i32) -> (i32, i32) {
    %c0_i32 = arith.constant 0 : i32
    %c0_i32_0 = arith.constant 0 : i32
    return %c0_i32, %arg1 : i32, i32
  }
  func.func @transform_4(%arg0: i32, %arg1: i32, %arg2: i32) -> (i32, i32) {
    %c0_i32 = arith.constant 0 : i32
    return %arg0, %arg1 : i32, i32
  }
}

module attributes {stable_mosaic.version = 11 : i64} {
  func.func @_upsample_kernel(%arg0: i32, %arg1: i32, %arg2: memref<64x4xbf16, #tpu.memory_space<vmem>>, %arg3: memref<1x4x84xbf16, #tpu.memory_space<vmem>>, %arg4: memref<1x64x84xbf16, #tpu.memory_space<vmem>>) attributes {dimension_semantics = [#tpu.dimension_semantics<parallel>, #tpu.dimension_semantics<parallel>], iteration_bounds = array<i64: 2, 1>, scalar_prefetch = 0 : i64, scratch_operands = 0 : i64, tpu.core_type = #tpu.core_type<tc>, window_params = [{transform_indices = @transform_0, window_bounds = array<i64: 64, 4>}, {transform_indices = @transform_1, window_bounds = array<i64: 1, 4, 84>}, {transform_indices = @transform_2, window_bounds = array<i64: 1, 64, 84>}]} {
    %c0 = arith.constant 0 : index
    %c0_0 = arith.constant 0 : index
    %0 = vector.load %arg2[%c0, %c0_0] : memref<64x4xbf16, #tpu.memory_space<vmem>>, vector<64x4xbf16>
    %c0_1 = arith.constant 0 : index
    %c0_2 = arith.constant 0 : index
    %c0_3 = arith.constant 0 : index
    %1 = vector.load %arg3[%c0_1, %c0_2, %c0_3] : memref<1x4x84xbf16, #tpu.memory_space<vmem>>, vector<1x4x84xbf16>
    %2 = vector.shape_cast %1 : vector<1x4x84xbf16> to vector<4x84xbf16>
    %cst = arith.constant dense<0.000000e+00> : vector<64x84xf32>
    %3 = tpu.matmul %0, %2, %cst {dimension_numbers = #tpu.dot_dimension_numbers<[1], [0], [0], [1], [0, 0, 1, 1], [], []>} : vector<64x4xbf16>, vector<4x84xbf16>, vector<64x84xf32> -> vector<64x84xf32>
    %4 = arith.truncf %3 : vector<64x84xf32> to vector<64x84xbf16>
    %c0_4 = arith.constant 0 : index
    %c0_5 = arith.constant 0 : index
    %c0_6 = arith.constant 0 : index
    %5 = vector.load %arg4[%c0_4, %c0_5, %c0_6] : memref<1x64x84xbf16, #tpu.memory_space<vmem>>, vector<1x64x84xbf16>
    %6 = vector.shape_cast %5 : vector<1x64x84xbf16> to vector<64x84xbf16>
    %7 = vector.shape_cast %4 : vector<64x84xbf16> to vector<1x64x84xbf16>
    tpu.vector_store %arg4[%c0_4, %c0_5, %c0_6], %7 {strides = array<i32>} : memref<1x64x84xbf16, #tpu.memory_space<vmem>>, vector<1x64x84xbf16>,
    return
  }
  func.func @transform_0(%arg0: i32, %arg1: i32) -> (i32, i32) {
    %c0_i32 = arith.constant 0 : i32
    %c0_i32_0 = arith.constant 0 : i32
    return %arg1, %c0_i32 : i32, i32
  }
  func.func @transform_1(%arg0: i32, %arg1: i32) -> (i32, i32, i32) {
    %c0_i32 = arith.constant 0 : i32
    %c0_i32_0 = arith.constant 0 : i32
    %c0_i32_1 = arith.constant 0 : i32
    return %arg0, %c0_i32, %c0_i32_0 : i32, i32, i32
  }
  func.func @transform_2(%arg0: i32, %arg1: i32) -> (i32, i32, i32) {
    %c0_i32 = arith.constant 0 : i32
    %c0_i32_0 = arith.constant 0 : i32
    return %arg0, %arg1, %c0_i32 : i32, i32, i32
  }
}

module attributes {stable_mosaic.version = 11 : i64} {
  func.func @_upsample_kernel(%arg0: i32, %arg1: i32, %arg2: memref<64x4xbf16, #tpu.memory_space<vmem>>, %arg3: memref<1x4x1344xbf16, #tpu.memory_space<vmem>>, %arg4: memref<1x64x1344xbf16, #tpu.memory_space<vmem>>) attributes {dimension_semantics = [#tpu.dimension_semantics<parallel>, #tpu.dimension_semantics<parallel>], iteration_bounds = array<i64: 2, 1>, scalar_prefetch = 0 : i64, scratch_operands = 0 : i64, tpu.core_type = #tpu.core_type<tc>, window_params = [{transform_indices = @transform_0, window_bounds = array<i64: 64, 4>}, {transform_indices = @transform_1, window_bounds = array<i64: 1, 4, 1344>}, {transform_indices = @transform_2, window_bounds = array<i64: 1, 64, 1344>}]} {
    %c0 = arith.constant 0 : index
    %c0_0 = arith.constant 0 : index
    %0 = vector.load %arg2[%c0, %c0_0] : memref<64x4xbf16, #tpu.memory_space<vmem>>, vector<64x4xbf16>
    %c0_1 = arith.constant 0 : index
    %c0_2 = arith.constant 0 : index
    %c0_3 = arith.constant 0 : index
    %1 = vector.load %arg3[%c0_1, %c0_2, %c0_3] : memref<1x4x1344xbf16, #tpu.memory_space<vmem>>, vector<1x4x1344xbf16>
    %2 = vector.shape_cast %1 : vector<1x4x1344xbf16> to vector<4x1344xbf16>
    %cst = arith.constant dense<0.000000e+00> : vector<64x1344xf32>
    %3 = tpu.matmul %0, %2, %cst {dimension_numbers = #tpu.dot_dimension_numbers<[1], [0], [0], [1], [0, 0, 1, 1], [], []>} : vector<64x4xbf16>, vector<4x1344xbf16>, vector<64x1344xf32> -> vector<64x1344xf32>
    %4 = arith.truncf %3 : vector<64x1344xf32> to vector<64x1344xbf16>
    %c0_4 = arith.constant 0 : index
    %c0_5 = arith.constant 0 : index
    %c0_6 = arith.constant 0 : index
    %5 = vector.load %arg4[%c0_4, %c0_5, %c0_6] : memref<1x64x1344xbf16, #tpu.memory_space<vmem>>, vector<1x64x1344xbf16>
    %6 = vector.shape_cast %5 : vector<1x64x1344xbf16> to vector<64x1344xbf16>
    %7 = vector.shape_cast %4 : vector<64x1344xbf16> to vector<1x64x1344xbf16>
    tpu.vector_store %arg4[%c0_4, %c0_5, %c0_6], %7 {strides = array<i32>} : memref<1x64x1344xbf16, #tpu.memory_space<vmem>>, vector<1x64x1344xbf16>,
    return
  }
  func.func @transform_0(%arg0: i32, %arg1: i32) -> (i32, i32) {
    %c0_i32 = arith.constant 0 : i32
    %c0_i32_0 = arith.constant 0 : i32
    return %arg1, %c0_i32 : i32, i32
  }
  func.func @transform_1(%arg0: i32, %arg1: i32) -> (i32, i32, i32) {
    %c0_i32 = arith.constant 0 : i32
    %c0_i32_0 = arith.constant 0 : i32
    %c0_i32_1 = arith.constant 0 : i32
    return %arg0, %c0_i32, %c0_i32_0 : i32, i32, i32
  }
  func.func @transform_2(%arg0: i32, %arg1: i32) -> (i32, i32, i32) {
    %c0_i32 = arith.constant 0 : i32
    %c0_i32_0 = arith.constant 0 : i32
    return %arg0, %arg1, %c0_i32 : i32, i32, i32
  }
}

</mosaic_0001>

<bundles_post_ra>
// kernel: deeplabv3_forward.6
= control target key start
LH: loop header
LB: loop body
LE: loop exit
PB: predicated region body
PF: predicated region fallthrough
CT: control target
= control target key end

     0   :  { %s1162_s1 = inlined_call_operand.vmem [shape: bf16[768,128], index: 1, kind: input, shape index: {}]   ;;  %s1163_s0 = inlined_call_operand.vmem [shape: bf16[32,768], index: 0, kind: input, shape index: {}]   ;;  %s1164_s2 = inlined_call_operand.vmem [shape: f32[1,128], index: 2, kind: input, shape index: {}]   ;;  %s1165_s3 = inlined_call_operand.vmem [shape: f32[1,128], index: 3, kind: input, shape index: {}]   ;;  %s1166_s4 = inlined_call_operand.vmem [shape: bf16[32,128], index: 4, kind: output, shape index: {}]  }
   0x1   :  { %v879_v0 = vld [vmem:[%s1162_s1 + $0x40] sm:$0xff]   ;;  %v883_v4 = vld [vmem:[%s1162_s1 + $0x48] sm:$0xff]   ;;  %v887_v8 = vld [vmem:[%s1162_s1 + $0x50] sm:$0xff]  }
   0x2   :  { %v880_v1 = vld [vmem:[%s1162_s1 + $0xc0] sm:$0xff]   ;;  %779 = vmatprep.subr.bf16.mxu0 %v879_v0  ;;  %v884_v5 = vld [vmem:[%s1162_s1 + $0xc8] sm:$0xff]   ;;  %v888_v9 = vld [vmem:[%s1162_s1 + $0xd0] sm:$0xff]  }
   0x3   :  { %v881_v2 = vld [vmem:[%s1162_s1] sm:$0xff]   ;;  %807 = vmatprep.subr.bf16.mxu1 %v880_v1  ;;  %v885_v6 = vld [vmem:[%s1162_s1 + $0x8] sm:$0xff]   ;;  %v889_v10 = vld [vmem:[%s1162_s1 + $0x10] sm:$0xff]  }
   0x4   :  { %v882_v3 = vld [vmem:[%s1162_s1 + $0x80] sm:$0xff]   ;;  %780 = vmatpush3.bf16.msra.mxu0 %v881_v2  ;;  %v886_v7 = vld [vmem:[%s1162_s1 + $0x88] sm:$0xff]   ;;  %v890_v11 = vld [vmem:[%s1162_s1 + $0x90] sm:$0xff]  }
   0x5   :  { %808 = vmatpush3.bf16.msra.mxu1 %v882_v3  ;;  %781 = vmatprep.subr.bf16.mxu0 %v883_v4  ;;  %v891_v12 = vld [vmem:[%s1162_s1 + $0x58] sm:$0xff]   ;;  %v895_v16 = vld [vmem:[%s1162_s1 + $0x60] sm:$0xff]   ;;  %v899_v20 = vld [vmem:[%s1162_s1 + $0x68] sm:$0xff]  }
   0x6   :  { %809 = vmatprep.subr.bf16.mxu1 %v884_v5  ;;  %v892_v13 = vld [vmem:[%s1162_s1 + $0xd8] sm:$0xff]   ;;  %v896_v17 = vld [vmem:[%s1162_s1 + $0xe0] sm:$0xff]   ;;  %v900_v21 = vld [vmem:[%s1162_s1 + $0xe8] sm:$0xff]  }
   0x7   :  { %v893_v14 = vld [vmem:[%s1162_s1 + $0x18] sm:$0xff]   ;;  %v897_v18 = vld [vmem:[%s1162_s1 + $0x20] sm:$0xff]   ;;  %v901_v22 = vld [vmem:[%s1162_s1 + $0x28] sm:$0xff]  }
   0x8   :  { %782 = vmatpush3.bf16.msra.mxu0 %v885_v6  ;;  %v894_v15 = vld [vmem:[%s1162_s1 + $0x98] sm:$0xff]   ;;  %v898_v19 = vld [vmem:[%s1162_s1 + $0xa0] sm:$0xff]   ;;  %v902_v23 = vld [vmem:[%s1162_s1 + $0xa8] sm:$0xff]  }
   0x9   :  { %810 = vmatpush3.bf16.msra.mxu1 %v886_v7  ;;  %783 = vmatprep.subr.bf16.mxu0 %v887_v8  ;;  %v903_v24 = vld [vmem:[%s1162_s1 + $0x70] sm:$0xff]   ;;  %v907_v28 = vld [vmem:[%s1162_s1 + $0x78] sm:$0xff]   ;;  %v914_v34 = vld [vmem:[%s1163_s0 + $0x8] ss:$24 sps:$4 sm:$0xff]  }
   0xa   :  { %811 = vmatprep.subr.bf16.mxu1 %v888_v9  ;;  %v904_v25 = vld [vmem:[%s1162_s1 + $0xf0] sm:$0xff]   ;;  %v908_v29 = vld [vmem:[%s1162_s1 + $0xf8] sm:$0xff]   ;;  %v916_v35 = vld [vmem:[%s1163_s0 + $0xc] ss:$24 sps:$4 sm:$0xff]  }
   0xb   :  { %v905_v26 = vld [vmem:[%s1162_s1 + $0x30] sm:$0xff]   ;;  %v909_v30 = vld [vmem:[%s1162_s1 + $0x38] sm:$0xff]   ;;  %v917_v36 = vld [vmem:[%s1162_s1 + $0x140] sm:$0xff]   ;;  %567 = vmatprep.mubr.bf16.mxu1 %v916_v35 }
   0xc   :  { %784 = vmatpush3.bf16.msra.mxu0 %v889_v10  ;;  %v906_v27 = vld [vmem:[%s1162_s1 + $0xb0] sm:$0xff]   ;;  %v910_v31 = vld [vmem:[%s1162_s1 + $0xb8] sm:$0xff]   ;;  %v918_v37 = vld [vmem:[%s1162_s1 + $0x100] sm:$0xff]  }
   0xd   :  { %812 = vmatpush3.bf16.msra.mxu1 %v890_v11  ;;  %785 = vmatprep.subr.bf16.mxu0 %v891_v12  ;;  %v911_v32 = vld [vmem:[%s1163_s0] ss:$24 sps:$4 sm:$0xff]   ;;  %v913_v33 = vld [vmem:[%s1163_s0 + $0x4] ss:$24 sps:$4 sm:$0xff]   ;;  %v919_v38 = vld [vmem:[%s1162_s1 + $0x148] sm:$0xff]  }
   0xe   :  { %813 = vmatprep.subr.bf16.mxu1 %v892_v13  ;;  %518 = vmatprep.mubr.bf16.mxu0 %v913_v33  ;;  %v920_v39 = vld [vmem:[%s1162_s1 + $0x108] sm:$0xff]   ;;  %v921_v40 = vld [vmem:[%s1162_s1 + $0x150] sm:$0xff]   ;;  %v923_v42 = vld [vmem:[%s1162_s1 + $0x158] sm:$0xff]  }
   0xf   :  { %v922_v41 = vld [vmem:[%s1162_s1 + $0x110] sm:$0xff]   ;;  %v924_v43 = vld [vmem:[%s1162_s1 + $0x118] sm:$0xff]   ;;  %v925_v46 = vld [vmem:[%s1162_s1 + $0x160] sm:$0xff]  }
  0x10   :  { %786 = vmatpush3.bf16.msra.mxu0 %v893_v14  ;;  %v927_v44 = vld [vmem:[%s1163_s0 + $0x34] ss:$24 sps:$4 sm:$0xff]   ;;  %v932_v47 = vld [vmem:[%s1163_s0 + $0x30] ss:$24 sps:$4 sm:$0xff]   ;;  %v926_v49 = vld [vmem:[%s1162_s1 + $0x120] sm:$0xff]  }
  0x11   :  { %814 = vmatpush3.bf16.msra.mxu1 %v894_v15  ;;  %787 = vmatprep.subr.bf16.mxu0 %v895_v16  ;;  %v929_v45 = vld [vmem:[%s1163_s0 + $0x3c] ss:$24 sps:$4 sm:$0xff]   ;;  %v933_v48 = vld [vmem:[%s1163_s0 + $0x38] ss:$24 sps:$4 sm:$0xff]   ;;  %v931_v50 = vld [vmem:[%s1162_s1 + $0x168] sm:$0xff]  }
  0x12   :  { %815 = vmatprep.subr.bf16.mxu1 %v896_v17  ;;  %v934_v51 = vld [vmem:[%s1162_s1 + $0x128] sm:$0xff]   ;;  %v935_v53 = vld [vmem:[%s1162_s1 + $0x170] sm:$0xff]   ;;  %v944_v54 = vld [vmem:[%s1163_s0 + $0x44] ss:$24 sps:$4 sm:$0xff]  }
  0x13   :  { %v941_v52 = vld [vmem:[%s1163_s0 + $0x14] ss:$24 sps:$4 sm:$0xff]   ;;  %v937_v56 = vld [vmem:[%s1162_s1 + $0x178] sm:$0xff]   ;;  %v939_v58 = vld [vmem:[%s1163_s0 + $0x10] ss:$24 sps:$4 sm:$0xff]  }
  0x14   :  { %788 = vmatpush3.bf16.msra.mxu0 %v897_v18  ;;  %v936_v55 = vld [vmem:[%s1162_s1 + $0x130] sm:$0xff]   ;;  %v938_v57 = vld [vmem:[%s1162_s1 + $0x138] sm:$0xff]  }
  0x15   :  { %816 = vmatpush3.bf16.msra.mxu1 %v898_v19  ;;  %789 = vmatprep.subr.bf16.mxu0 %v899_v20  ;;  %v942_v59 = vld [vmem:[%s1163_s0 + $0x40] ss:$24 sps:$4 sm:$0xff]  }
  0x16   :  { %817 = vmatprep.subr.bf16.mxu1 %v900_v21 }
  0x18   :  { %790 = vmatpush3.bf16.msra.mxu0 %v901_v22 }
  0x19   :  { %818 = vmatpush3.bf16.msra.mxu1 %v902_v23  ;;  %791 = vmatprep.subr.bf16.mxu0 %v903_v24 }
  0x1a   :  { %819 = vmatprep.subr.bf16.mxu1 %v904_v25 }
  0x1c   :  { %792 = vmatpush3.bf16.msra.mxu0 %v905_v26 }
  0x1d   :  { %820 = vmatpush3.bf16.msra.mxu1 %v906_v27  ;;  %793 = vmatprep.subr.bf16.mxu0 %v907_v28 }
  0x1e   :  { %821 = vmatprep.subr.bf16.mxu1 %v908_v29 }
  0x20   :  { %794 = vmatpush3.bf16.msra.mxu0 %v909_v30  ;;  %v758_v30 = vld [vmem:[%s1164_s2] ss:$0 sm:$0xff] }
  0x21   :  { %822 = vmatpush3.bf16.msra.mxu1 %v910_v31  ;;  %835 = vmatprep.subr.bf16.mxu0 %v917_v36 }
  0x22   :  { %863 = vmatprep.subr.bf16.mxu1 %v917_v36 }
  0x23   :  { %519 = vmatmul.mubr.bf16.vlgmr.msra.gmra.mrb[0].mxu0 %v911_v32 }
  0x24   :  { %568 = vmatmul.mubr.bf16.vlgmr.msra.gmra.mrb[0].mxu1 %v914_v34  ;;  %836 = vmatpush3.bf16.msra.mxu0 %v918_v37 }
  0x25   :  { %871 = vmatpush3.bf16.msra.mxu1 %v918_v37  ;;  %837 = vmatprep.subr.bf16.mxu0 %v919_v38  ;;  %v759_v37 = vld [vmem:[%s1165_s3] ss:$0 sm:$0xff] }
  0x26   :  { %864 = vmatprep.subr.bf16.mxu1 %v919_v38  ;;  %526 = vmatprep.mubr.bf16.mxu0 %v927_v44 }
  0x27   :  { %575 = vmatprep.mubr.bf16.mxu1 %v929_v45 }
  0x28   :  { %838 = vmatpush3.bf16.msra.mxu0 %v920_v39 }
  0x29   :  { %872 = vmatpush3.bf16.msra.mxu1 %v920_v39  ;;  %839 = vmatprep.subr.bf16.mxu0 %v921_v40 }
  0x2a   :  { %865 = vmatprep.subr.bf16.mxu1 %v921_v40 }
  0x2b   :  { %527 = vmatmul.mubr.bf16.gmra.mrb[4].mxu0 %v932_v47 }
  0x2c   :  { %840 = vmatpush3.bf16.msra.mxu0 %v922_v41  ;;  %576 = vmatmul.mubr.bf16.gmra.mrb[4].mxu1 %v933_v48 }
  0x2d   :  { %873 = vmatpush3.bf16.msra.mxu1 %v922_v41  ;;  %841 = vmatprep.subr.bf16.mxu0 %v923_v42 }
  0x2e   :  { %866 = vmatprep.subr.bf16.mxu1 %v923_v42  ;;  %616 = vmatprep.mubr.bf16.mxu0 %v941_v52 }
  0x2f   :  { %624 = vmatprep.mubr.bf16.mxu1 %v944_v54 }
  0x30   :  { %842 = vmatpush3.bf16.msra.mxu0 %v924_v43 }
  0x31   :  { %874 = vmatpush3.bf16.msra.mxu1 %v924_v43  ;;  %843 = vmatprep.subr.bf16.mxu0 %v925_v46 }
  0x32   :  { %867 = vmatprep.subr.bf16.mxu1 %v925_v46 }
  0x34   :  { %844 = vmatpush3.bf16.msra.mxu0 %v926_v49 }
  0x35   :  { %875 = vmatpush3.bf16.msra.mxu1 %v926_v49  ;;  %845 = vmatprep.subr.bf16.mxu0 %v931_v50 }
  0x36   :  { %868 = vmatprep.subr.bf16.mxu1 %v931_v50 }
  0x38   :  { %846 = vmatpush3.bf16.msra.mxu0 %v934_v51 }
  0x39   :  { %876 = vmatpush3.bf16.msra.mxu1 %v934_v51  ;;  %847 = vmatprep.subr.bf16.mxu0 %v935_v53 }
  0x3a   :  { %869 = vmatprep.subr.bf16.mxu1 %v935_v53 }
  0x3c   :  { %848 = vmatpush3.bf16.msra.mxu0 %v936_v55 }
  0x3d   :  { %877 = vmatpush3.bf16.msra.mxu1 %v936_v55  ;;  %849 = vmatprep.subr.bf16.mxu0 %v937_v56 }
  0x3e   :  { %870 = vmatprep.subr.bf16.mxu1 %v937_v56 }
  0x40   :  { %850 = vmatpush3.bf16.msra.mxu0 %v938_v57 }
  0x41   :  { %878 = vmatpush3.bf16.msra.mxu1 %v938_v57 }
  0x43   :  { %617 = vmatmul.mubr.bf16.vlgmr.msra.gmra.mrb[8].mxu0 %v939_v58 }
  0x44   :  { %625 = vmatmul.mubr.bf16.vlgmr.msra.gmra.mrb[8].mxu1 %v942_v59 }
  0xf6   :  { %v795_v60 = vpop.f32.mrb[0].mxu0 }
  0xf7   :  { %v823_v61 = vpop.f32.mrb[0].mxu1  ;;  %v796_v62 = vpop.f32.mrb[1].mxu0 }
  0xf8   :  { %v797_v63 = vadd.f32 %v796_v62, %v795_v60  ;;  %v824_v0 = vpop.f32.mrb[1].mxu1  ;;  %v798_v1 = vpop.f32.mrb[2].mxu0 }
  0xf9   :  { %v825_v2 = vadd.f32 %v824_v0, %v823_v61  ;;  %v826_v3 = vpop.f32.mrb[2].mxu1  ;;  %v799_v4 = vpop.f32.mrb[3].mxu0 }
  0xfa   :  { %v800_v5 = vadd.f32 %v799_v4, %v798_v1  ;;  %v827_v6 = vpop.f32.mrb[3].mxu1 }
  0xfb   :  { %v570_v7 = vadd.f32 %v825_v2, %v797_v63  ;;  %v828_v8 = vadd.f32 %v827_v6, %v826_v3 }
  0xfd   :  { %v573_v9 = vadd.f32 %v828_v8, %v800_v5 }
  0xfe   :  { %v801_v10 = vpop.f32.mrb[4].mxu0 }
  0xff   :  { %v829_v11 = vpop.f32.mrb[4].mxu1  ;;  %v802_v12 = vpop.f32.mrb[5].mxu0 }
 0x100   :  { %v803_v13 = vadd.f32 %v802_v12, %v801_v10  ;;  %v830_v14 = vpop.f32.mrb[5].mxu1  ;;  %v804_v15 = vpop.f32.mrb[6].mxu0 }
 0x101   :  { %v831_v16 = vadd.f32 %v830_v14, %v829_v11  ;;  %v832_v17 = vpop.f32.mrb[6].mxu1  ;;  %v805_v18 = vpop.f32.mrb[7].mxu0 }
 0x102   :  { %v806_v19 = vadd.f32 %v805_v18, %v804_v15  ;;  %v833_v20 = vpop.f32.mrb[7].mxu1 }
 0x103   :  { %v578_v21 = vadd.f32 %v831_v16, %v803_v13  ;;  %v834_v22 = vadd.f32 %v833_v20, %v832_v17 }
 0x105   :  { %v581_v23 = vadd.f32 %v834_v22, %v806_v19 }
 0x116   :  { %v851_v24 = vpop.f32.mrb[8].mxu0 }
 0x117   :  { %v857_v25 = vpop.f32.mrb[8].mxu1  ;;  %v852_v26 = vpop.f32.mrb[9].mxu0 }
 0x118   :  { %v853_v27 = vadd.f32 %v852_v26, %v851_v24  ;;  %v858_v28 = vpop.f32.mrb[9].mxu1  ;;  %v854_v29 = vpop.f32.mrb[10].mxu0 }
 0x119   :  { %v859_v31 = vadd.f32 %v858_v28, %v857_v25  ;;  %v860_v32 = vpop.f32.mrb[10].mxu1  ;;  %v855_v33 = vpop.f32.mrb[11].mxu0 }
 0x11a   :  { %v619_v34 = vadd.f32 %v853_v27, %v570_v7  ;;  %v856_v35 = vadd.f32 %v855_v33, %v854_v29  ;;  %v861_v36 = vpop.f32.mrb[11].mxu1 }
 0x11b   :  { %v627_v38 = vadd.f32 %v859_v31, %v578_v21  ;;  %v862_v39 = vadd.f32 %v861_v36, %v860_v32 }
 0x11c   :  { %v655_v40 = vmul.f32 %v758_v30, %v619_v34  ;;  %v622_v41 = vadd.f32 %v856_v35, %v573_v9 }
 0x11d   :  { %v657_v42 = vmul.f32 %v758_v30, %v627_v38  ;;  %v630_v43 = vadd.f32 %v862_v39, %v581_v23 }
 0x11e   :  { %v666_v44 = vadd.f32 %v759_v37, %v655_v40  ;;  %v656_v45 = vmul.f32 %v758_v30, %v622_v41 }
 0x11f   :  { %v668_v46 = vadd.f32 %v759_v37, %v657_v42  ;;  %v658_v47 = vmul.f32 %v758_v30, %v630_v43 }
 0x120   :  { %v667_v48 = vadd.f32 %v759_v37, %v656_v45  ;;  %v670_v50 = vmax.f32 %v666_v44, 0.0 }
 0x121   :  { %v669_v49 = vadd.f32 %v759_v37, %v658_v47  ;;  %v672_v52 = vmax.f32 %v668_v46, 0.0 }
 0x122   :  { %v671_v51 = vmax.f32 %v667_v48, 0.0 }
 0x123   :  { %v673_v53 = vmax.f32 %v669_v49, 0.0 }
 0x124   :  { %v771_v54 = vpack.c.bf16 %v671_v51, %v670_v50 }
 0x125   :  { %v776_v55 = vpack.c.bf16 %v673_v53, %v672_v52 }
 0x126   :  { %772 = vst [vmem:[%s1166_s4] sm:$0xff] %v771_v54  }
 0x127   :  { %778 = vst [vmem:[%s1166_s4 + $0x8] sm:$0xff] %v776_v55  }

// kernel: deeplabv3_forward.8
= control target key start
LH: loop header
LB: loop body
LE: loop exit
PB: predicated region body
PF: predicated region fallthrough
CT: control target
= control target key end

     0   :  { %s1748_s0 = inlined_call_operand.hbm [shape: bf16[2,16,512], index: 0, kind: input, shape index: {}]   ;;  %s1749_s1 = inlined_call_operand.hbm [shape: bf16[512,128], index: 1, kind: input, shape index: {}]   ;;  %s1750_s2 = inlined_call_operand.hbm [shape: f32[2,1,128], index: 2, kind: input, shape index: {}]   ;;  %s1751_s3 = inlined_call_operand.hbm [shape: f32[1,128], index: 3, kind: input, shape index: {}]   ;;  %s1752_s4 = inlined_call_operand.hbm [shape: f32[1,128], index: 4, kind: input, shape index: {}]   ;;  %s1753_s5 = inlined_call_operand.hbm [shape: bf16[2,16,128], index: 5, kind: output, shape index: {}]  }
   0x1   :  { %1766 = sst [smem:[#allocation22_spill]] %s1748_s0 }
   0x2   :  { %1767 = sst [smem:[#allocation23_spill]] %s1749_s1 }
   0x3   :  { %10 = vsyncpa [#allocation3], 0 }
   0x4   :  { %12 = vsyncpa [#allocation3 + $0x1], 0 }
   0x5   :  { %13 = vsyncpa [#allocation6], 0 }
   0x6   :  { %14 = vsyncpa [#allocation10], 0 }
   0x7   :  { %15 = vsyncpa [#allocation4], 0 }
   0x8   :  { %17 = vsyncpa [#allocation4 + $0x1], 0  ;;  %s1428_s18 = smov 0   ;;  %s1430_s19 = smov 0  }
   0x9   :  { %s1432_s20 = smov 0   ;;  %s1434_s21 = smov 0  }
   0xa   :  { %s1436_s22 = smov 0   ;;  %s1438_s23 = smov 0  }
   0xb LB: > { %1768 = sst [smem:[#allocation18_spill]] %s1384_s23  ;;  %s1459_s24 = sadd.s32 4294967295, %s1384_s23   ;;  %s1384_s23 = sphi %s1438_s23, %s23_s23   ;;  %s1380_s22 = sphi %s1436_s22, %s1806_s22   ;;  %s1376_s21 = sphi %s1434_s21, %s1805_s21   ;;  %s1372_s20 = sphi %s1432_s20, %s1804_s20   ;;  %s1368_s19 = sphi %s1430_s19, %s1803_s19   ;;  %s1364_s18 = sphi %s1428_s18, %s1802_s18  }
   0xc   : > { %s885_s25 = sadd.s32 4294967294, %s1384_s23   ;;  %p57_p0 = scmp.ne.s32.totalorder %s1368_s19, %s1364_s18 }
   0xd   : > { %p1754_p1 = scmp.eq.s32.totalorder %s1459_s24, 0  ;;  %p178_p3 = scmp.eq.s32.totalorder %s885_s25, 1 }
   0xe   : > { %p886_p5 = scmp.ge.s32.totalorder %s1384_s23, 1  ;;  %p185_p7 = scmp.lt.s32.totalorder %s1384_s23, 3 }
   0xf   : > { %p1468_p4 = por %p1754_p1, %p57_p0  ;;  %p1473_p6 = por %p178_p3, %p57_p0 }
  0x10   : > { %p1478_p8 = pnand %p886_p5, %p185_p7  ;;  %s1386_s29 = smov [#allocation5]  }
  0x11   : > { %s1769_s26 = scalar_select %p1468_p4, 1, 0 }
  0x12   : > { %s1770_s27 = scalar_select %p1473_p6, 1, 0 }
  0x13   : > { %s1772_s28 = scalar_select %p1478_p8, 1, 0 }
  0x14   : > { %1771 = sst [smem:[#allocation19_spill]] %s1770_s27  ;;  %s197_s30 = sshll.u32 %s1386_s29, 4  ;;  %s198_s30 = int_to_ptr.vmem [resolvable:$true] %s197_s30 }
  0x15   : > { %p1018_p9 = pneg %p1478_p8  ;;  %s35_s7 = sadd.s32 1, %s1380_s22 }
  0x16   : > { %s1774_s1 = sld [smem:[#allocation23_spill]] }
  0x17   : > { %p1487_p11 = pnand %p1018_p9, %p1754_p1 }
  0x19   : > { %s1773_s6 = scalar_select %p1487_p11, 1, 0 }
  0x1a   : > { %p1500_p13 = pneg %p1487_p11 }
  0x1c   : > { %s1142_s10 = scalar_lea.hbm %s1774_s1, 4096 }
  0x1d   : > { %p1143_p12 = scmp.ne.s32.totalorder %s1774_s1, %s1142_s10  ;;  %p1149_p5 = scmp.lt.u32.totalorder %s1142_s10, %s1774_s1 }
  0x1f   : > { %p1145_p0 = pnand %p1500_p13, %p1143_p12 }
  0x21   : > { %p1146_p3 = pneg %p1145_p0 }
  0x23   : > { %p1151_p7 = pnand %p1149_p5, %p1146_p3 }
  0x25   : > { %1154 = shalt.err (!%p1151_p7)
}
  0x26   : > { %s1155_s16 = scalar_lea.vmem %s198_s30, 4096  ;;  %p1163_p2 = scmp.lt.s32.totalorder %s198_s30, %s198_s30 }
  0x27   : > { %p1156_p9 = scmp.ne.s32.totalorder %s198_s30, %s1155_s16  ;;  %p1164_p6 = scmp.lt.s32.totalorder %s1155_s16, %s1155_s16 }
  0x29   : > { %p1158_p10 = pnand %p1156_p9, %p1500_p13  ;;  %p1165_p4 = por %p1164_p6, %p1163_p2 }
  0x2b   : > { %p1159_p1 = pneg %p1158_p10 }
  0x2d   : > { %p1166_p8 = pnand %p1165_p4, %p1159_p1 }
  0x2f   : > { %1169 = shalt.err (!%p1166_p8)
}
  0x30   : > { %s1387_s17 = smov 64   ;;  %s1388_s25 = smov 4  }
  0x31   : > { %1021 = dma.hbm_to_vmem [thread:$0]  (!%p1487_p11), %s1774_s1, 4096, %s198_s30, [#allocation6], %s1387_s17, %s1387_s17, %s1388_s25  }
  0x32   : > { %p37_p1 = scmp.ge.s32.totalorder %s35_s7, 2  ;;  %s44_s9 = sadd.s32 1, %s1372_s20 }
  0x33   : > { %p51_p2 = scmp.ne.s32.totalorder %s1372_s20, %s1368_s19  ;;  %p52_p4 = scmp.eq.s32.totalorder %s1384_s23, 0 }
  0x34   : > { %s1808_s7 = smov (%p37_p1, %s35_s7), 0  ;;  %p1778_p8 = scmp.eq.s32.totalorder %s1459_s24, 1 }
  0x35   : > { %1776 = sst [smem:[#allocation20_spill]] %s1808_s7  ;;  %p1522_p6 = por %p52_p4, %p51_p2 }
  0x36   : > { %p1528_p10 = por %p1778_p8, %p51_p2  ;;  %s39_s12 = ssub.s32 %s1380_s22, %s1808_s7 }
  0x37   : > { %p1042_p12 = scmp.lt.s32.totalorder %s1384_s23, 2  ;;  %p42_p0 = scmp.eq.s32.totalorder %s39_s12, 0 }
  0x38   : > { %s1779_s11 = scalar_select %p1528_p10, 1, 0 }
  0x39   : > { %s233_s30 = sand.u32 1, %s1384_s23   ;;  %s1761_s14 = sand.u32 1, %s1372_s20  }
  0x3a   : > { %s1538_s15 = scalar_select %p42_p0, %s1372_s20, %s44_s9  }
  0x3b   : > { %s891_s16 = sshll.u32 %s1761_s14, 5  ;;  %s947_s17 = sshll.u32 %s1380_s22, 9 }
  0x3c   : > { %1780 = sst [smem:[#allocation21_spill]] %s1538_s15  ;;  %s1781_s0 = sld [smem:[#allocation22_spill]] }
  0x3d   : > { %s237_s1 = scalar_lea.vmem [#allocation2], %s891_s16  ;;  %p1550_p3 = pnand %p1042_p12, %p1522_p6 }
  0x3e   : > { %s247_s7 = sshll.u32 %s237_s1, 4  ;;  %s1556_s9 = scalar_lea.sflag [#allocation3], %s233_s30  ;;  %s1554_s7 = int_to_ptr.vmem [resolvable:$true] %s247_s7 }
  0x3f   : > { %p1765_p7 = pneg %p1550_p3 }
  0x42   : > { %s1546_s8 = scalar_lea.hbm %s1781_s0, %s947_s17  ;;  %s1175_s16 = scalar_lea.hbm %s1781_s0, 1024 }
  0x43   : > { %s1170_s25 = scalar_lea.hbm %s1546_s8, 512  ;;  %p1176_p2 = scmp.lt.u32.totalorder %s1546_s8, %s1781_s0 }
  0x44   : > { %p1171_p5 = scmp.ne.s32.totalorder %s1546_s8, %s1170_s25  ;;  %p1177_p4 = scmp.lt.u32.totalorder %s1175_s16, %s1170_s25 }
  0x45   : > { %p1179_p8 = scmp.lt.u32.totalorder %s1170_s25, %s1546_s8 }
  0x46   : > { %p1173_p9 = pnand %p1765_p7, %p1171_p5  ;;  %p1178_p6 = por %p1177_p4, %p1176_p2 }
  0x48   : > { %p1174_p1 = pneg %p1173_p9  ;;  %p1180_p12 = por %p1179_p8, %p1178_p6 }
  0x4a   : > { %p1181_p0 = pnand %p1180_p12, %p1174_p1 }
  0x4c   : > { %1184 = shalt.err (!%p1181_p0)
}
  0x4d   : > { %s1185_s30 = scalar_lea.vmem %s1554_s7, 512  ;;  %s1389_s1 = smov [#allocation2]  }
  0x4e   : > { %p1186_p5 = scmp.ne.s32.totalorder %s1554_s7, %s1185_s30  ;;  %s1190_s10 = sshll.u32 %s1389_s1, 4  ;;  %s1191_s10 = int_to_ptr.vmem [resolvable:$false] %s1190_s10 }
  0x4f   : > { %s1192_s17 = scalar_lea.vmem %s1191_s10, 1024  ;;  %p1193_p11 = scmp.lt.s32.totalorder %s1554_s7, %s1191_s10 }
  0x50   : > { %p1188_p9 = pnand %p1186_p5, %p1765_p7  ;;  %p1194_p2 = scmp.lt.s32.totalorder %s1192_s17, %s1185_s30 }
  0x52   : > { %p1189_p10 = pneg %p1188_p9  ;;  %p1195_p4 = por %p1194_p2, %p1193_p11 }
  0x54   : > { %p1196_p6 = pnand %p1195_p4, %p1189_p10 }
  0x56   : > { %1199 = shalt.err (!%p1196_p6)
}
  0x57   : > { %s1390_s25 = smov 256   ;;  %s1391_s16 = smov 16  }
  0x58   : > { %1031 = dma.hbm_to_vmem [thread:$0]  (!%p1550_p3), %s1546_s8, 512, %s1554_s7, %s1556_s9, %s1390_s25, %s1390_s25, %s1391_s16  }
  0x59   : > { %s1392_s29 = smov [#allocation8]   ;;  %s1393_s0 = smov [#allocation9]  }
  0x5a   : > { %s211_s14 = sshll.u32 %s1392_s29, 4  ;;  %s222_s1 = sshll.u32 %s1393_s0, 4  ;;  %s212_s14 = int_to_ptr.vmem [resolvable:$true] %s211_s14  ;;  %s1584_s1 = int_to_ptr.vmem [resolvable:$true] %s222_s1 }
  0x5b   : > { %s1200_s17 = scalar_lea.hbm %s1751_s3, 16 }
  0x5c   : > { %p1201_p11 = scmp.ne.s32.totalorder %s1751_s3, %s1200_s17  ;;  %p1207_p8 = scmp.lt.u32.totalorder %s1200_s17, %s1751_s3 }
  0x5e   : > { %p1203_p10 = pnand %p1201_p11, %p1500_p13 }
  0x60   : > { %p1204_p1 = pneg %p1203_p10 }
  0x62   : > { %p1209_p12 = pnand %p1207_p8, %p1204_p1 }
  0x64   : > { %1212 = shalt.err (!%p1209_p12)
}
  0x65   : > { %s1213_s0 = scalar_lea.vmem %s212_s14, 16  ;;  %s1220_s8 = scalar_lea.vmem %s212_s14, 32 }
  0x66   : > { %p1214_p0 = scmp.ne.s32.totalorder %s212_s14, %s1213_s0  ;;  %p1221_p2 = scmp.lt.s32.totalorder %s212_s14, %s212_s14 }
  0x67   : > { %p1222_p4 = scmp.lt.s32.totalorder %s1220_s8, %s1213_s0 }
  0x68   : > { %p1216_p5 = pnand %p1214_p0, %p1500_p13 }
  0x69   : > { %p1223_p6 = por %p1222_p4, %p1221_p2 }
  0x6a   : > { %p1217_p9 = pneg %p1216_p5 }
  0x6c   : > { %p1224_p7 = pnand %p1223_p6, %p1217_p9 }
  0x6e   : > { %1227 = shalt.err (!%p1224_p7)
}
  0x6f   : > { %p1783_p11 = scmp.ne.s32.totalorder %s1773_s6, 0  ;;  %s1228_s16 = scalar_lea.hbm %s1752_s4, 16 }
  0x70   : > { %p1229_p10 = scmp.ne.s32.totalorder %s1752_s4, %s1228_s16  ;;  %p1235_p7 = scmp.lt.u32.totalorder %s1228_s16, %s1752_s4 }
  0x71   : > { %1024 = dma.hbm_to_vmem [thread:$0]  (!%p1783_p11), %s1751_s3, 16, %s212_s14, [#allocation6]  }
  0x72   : > { %p1231_p1 = pnand %p1229_p10, %p1500_p13 }
  0x74   : > { %p1232_p8 = pneg %p1231_p1 }
  0x76   : > { %p1237_p12 = pnand %p1235_p7, %p1232_p8 }
  0x78   : > { %1240 = shalt.err (!%p1237_p12)
}
  0x79   : > { %s1241_s14 = scalar_lea.vmem %s1584_s1, 16  ;;  %s1248_s7 = scalar_lea.vmem %s1584_s1, 32 }
  0x7a   : > { %p1242_p0 = scmp.ne.s32.totalorder %s1584_s1, %s1241_s14  ;;  %p1249_p2 = scmp.lt.s32.totalorder %s1584_s1, %s1584_s1 }
  0x7b   : > { %p1250_p4 = scmp.lt.s32.totalorder %s1248_s7, %s1241_s14 }
  0x7c   : > { %p1244_p5 = pnand %p1242_p0, %p1500_p13 }
  0x7d   : > { %p1251_p6 = por %p1250_p4, %p1249_p2 }
  0x7e   : > { %p1245_p9 = pneg %p1244_p5 }
  0x80   : > { %p1252_p10 = pnand %p1251_p6, %p1245_p9 }
  0x82   : > { %1255 = shalt.err (!%p1252_p10)
}
  0x83   : > { %1027 = dma.hbm_to_vmem [thread:$0]  (!%p1783_p11), %s1752_s4, 16, %s1584_s1, [#allocation10]  }
  0x84   : > { %s894_s13 = sshll.u32 %s1380_s22, 4  ;;  %s1784_s25 = sand.u32 1, %s1372_s20  }
  0x85   : > { %s1632_s27 = scalar_lea.hbm %s1750_s2, %s894_s13  ;;  %s260_s6 = scalar_lea.vmem [#allocation7], %s1784_s25 }
  0x86   : > { %s267_s16 = sshll.u32 %s260_s6, 4  ;;  %s1256_s29 = scalar_lea.hbm %s1632_s27, 16  ;;  %s268_s16 = int_to_ptr.vmem [resolvable:$true] %s267_s16 }
  0x87   : > { %p1257_p13 = scmp.ne.s32.totalorder %s1632_s27, %s1256_s29  ;;  %p1785_p1 = pneg %p1550_p3 }
  0x88   : > { %s1261_s10 = scalar_lea.hbm %s1750_s2, 32  ;;  %p1262_p7 = scmp.lt.u32.totalorder %s1632_s27, %s1750_s2 }
  0x89   : > { %p1259_p8 = pnand %p1257_p13, %p1785_p1  ;;  %p1263_p12 = scmp.lt.u32.totalorder %s1261_s10, %s1256_s29 }
  0x8a   : > { %p1265_p5 = scmp.lt.u32.totalorder %s1256_s29, %s1632_s27 }
  0x8b   : > { %p1260_p11 = pneg %p1259_p8  ;;  %p1264_p0 = por %p1263_p12, %p1262_p7 }
  0x8d   : > { %p1266_p9 = por %p1265_p5, %p1264_p0 }
  0x8f   : > { %p1267_p2 = pnand %p1266_p9, %p1260_p11 }
  0x91   : > { %1270 = shalt.err (!%p1267_p2)
}
  0x92   : > { %s1271_s7 = scalar_lea.vmem %s268_s16, 16  ;;  %p1786_p6 = pmov %p1785_p1 }
  0x93   : > { %p1272_p4 = scmp.ne.s32.totalorder %s268_s16, %s1271_s7  ;;  %s1394_s0 = smov [#allocation7]  }
  0x94   : > { %s1276_s8 = sshll.u32 %s1394_s0, 4  ;;  %s1277_s8 = int_to_ptr.vmem [resolvable:$false] %s1276_s8 }
  0x95   : > { %p1274_p10 = pnand %p1272_p4, %p1786_p6  ;;  %s1278_s13 = scalar_lea.vmem %s1277_s8, 32 }
  0x96   : > { %p1279_p1 = scmp.lt.s32.totalorder %s268_s16, %s1277_s8  ;;  %p1280_p8 = scmp.lt.s32.totalorder %s1278_s13, %s1271_s7 }
  0x97   : > { %p1275_p13 = pneg %p1274_p10 }
  0x98   : > { %p1281_p7 = por %p1280_p8, %p1279_p1 }
  0x9a   : > { %p1282_p12 = pnand %p1281_p7, %p1275_p13 }
  0x9c   : > { %1285 = shalt.err (!%p1282_p12)
}
  0x9d   : > { %1034 = dma.hbm_to_vmem [thread:$0]  (!%p1550_p3), %s1632_s27, 16, %s268_s16, %s1556_s9  }
  0x9e   : > { %p1787_p11 = scmp.ne.s32.totalorder %s1772_s28, 0 }
  0x9f   : > { %s278_s23 = sand.u32 (!%p1787_p11), 1, %s1459_s24   ;;  %s1660_s15 = sand.u32 (!%p1787_p11), 1, %s1368_s19  }
  0xa0   : > { %276 = sbr.rel (%p1787_p11) target bundleno = 458 (0x1ca), region = 40  ;;  %s896_s25 = sshll.u32 (!%p1787_p11), %s1660_s15, 5 }
  0xa1   : > { %s279_s6 = scalar_lea.sflag (!%p1787_p11), [#allocation3], %s278_s23  ;;  %s1663_s29 = scalar_lea.vmem (!%p1787_p11), [#allocation2], %s896_s25 }
  0xa2   : > { %p1788_p0 = scmp.ne.s32.totalorder (!%p1787_p11), %s1769_s26, 0 }
  0xa7   : > { %1339 = dma.done.wait (%p1788_p0), %s279_s6, 512  }
  0xa8   : > { %1341 = vsyncadd (%p1788_p0), %s279_s6, 4294966784  ;;  %p1789_p3 = scmp.eq.s32.totalorder %s1459_s24, 0 }
  0xaa   : > { %1343 = dma.done.wait (%p1789_p3), [#allocation6], 4096   ;;  %p1790_p5 = pmov %p1789_p3 }
  0xab   : > { %s294_s28 = scalar_lea.vmem [#allocation7], %s1660_s15 }
  0xac   : > { %1345 = vsyncadd (%p1790_p5), [#allocation6], 4294963200 }
  0xad   : > { %1347 = dma.done.wait (%p1788_p0), %s279_s6, 16  }
  0xae   : > { %1349 = vsyncadd (%p1788_p0), %s279_s6, 4294967280  ;;  %p1791_p9 = pmov %p1789_p3 }
  0xaf   : > { %p1792_p2 = pmov %p1789_p3 }
  0xb0   : > { %1351 = dma.done.wait (%p1791_p9), [#allocation6], 16  }
  0xb1   : > { %1353 = vsyncadd (%p1792_p2), [#allocation6], 4294967280  ;;  %p1793_p4 = pmov %p1792_p2 }
  0xb2   : > { %p1794_p6 = pmov %p1792_p2 }
  0xb3   : > { %1355 = dma.done.wait (%p1793_p4), [#allocation10], 16  }
  0xb4   : > { %1357 = vsyncadd (%p1794_p6), [#allocation10], 4294967280  ;;  %v1104_v0 = vld [vmem:[#allocation5 + $0x40] sm:$0xff]   ;;  %v1108_v4 = vld [vmem:[#allocation5 + $0x48] sm:$0xff]   ;;  %s900_s24 = sshll.u32 %s1660_s15, 3  ;;  %s950_s26 = sshll.u32 %s1376_s21, 7 }
  0xb5   : > { %v1105_v1 = vld [vmem:[#allocation5 + $0xc0] sm:$0xff]   ;;  %956 = vmatprep.subr.bf16.mxu0 %v1104_v0  ;;  %v1109_v5 = vld [vmem:[#allocation5 + $0xc8] sm:$0xff]   ;;  %v1112_v8 = vld [vmem:[#allocation5 + $0x50] sm:$0xff]   ;;  %s332_s12 = scalar_lea.vmem [#allocation11], %s900_s24  ;;  %s1697_s1 = scalar_lea.hbm %s1753_s5, %s950_s26 }
  0xb6   : > { %v1106_v2 = vld [vmem:[#allocation5] sm:$0xff]   ;;  %978 = vmatprep.subr.bf16.mxu1 %v1105_v1  ;;  %v1110_v6 = vld [vmem:[#allocation5 + $0x8] sm:$0xff]   ;;  %v1113_v9 = vld [vmem:[#allocation5 + $0xd0] sm:$0xff]   ;;  %s751_s9 = sshll.u32 %s332_s12, 4  ;;  %s736_s30 = scalar_lea.sflag [#allocation4], %s1660_s15  ;;  %s1699_s9 = int_to_ptr.vmem [resolvable:$true] %s751_s9 }
  0xb7   : > { %v1107_v3 = vld [vmem:[#allocation5 + $0x80] sm:$0xff]   ;;  %957 = vmatpush3.bf16.msra.mxu0 %v1106_v2  ;;  %v1111_v7 = vld [vmem:[#allocation5 + $0x88] sm:$0xff]   ;;  %v1114_v10 = vld [vmem:[#allocation5 + $0x10] sm:$0xff]   ;;  %s1286_s10 = scalar_lea.vmem %s1699_s9, 128  ;;  %p1795_p13 = scmp.ne.s32.totalorder %s1779_s11, 0 }
  0xb8   : > { %979 = vmatpush3.bf16.msra.mxu1 %v1107_v3  ;;  %958 = vmatprep.subr.bf16.mxu0 %v1108_v4  ;;  %v1115_v11 = vld [vmem:[#allocation5 + $0x90] sm:$0xff]   ;;  %v1116_v12 = vld [vmem:[#allocation5 + $0x58] sm:$0xff]   ;;  %v1120_v16 = vld [vmem:[#allocation5 + $0x60] sm:$0xff]   ;;  %p1287_p10 = scmp.ne.s32.totalorder %s1699_s9, %s1286_s10  ;;  %s1395_s21 = smov [#allocation11]  }
  0xb9   : > { %980 = vmatprep.subr.bf16.mxu1 %v1109_v5  ;;  %v1117_v13 = vld [vmem:[#allocation5 + $0xd8] sm:$0xff]   ;;  %v1121_v17 = vld [vmem:[#allocation5 + $0xe0] sm:$0xff]   ;;  %v1124_v20 = vld [vmem:[#allocation5 + $0x68] sm:$0xff]   ;;  %s1290_s17 = sshll.u32 %s1395_s21, 4  ;;  %s1291_s17 = int_to_ptr.vmem [resolvable:$false] %s1290_s17 }
  0xba   : > { %v1118_v14 = vld [vmem:[#allocation5 + $0x18] sm:$0xff]   ;;  %v1122_v18 = vld [vmem:[#allocation5 + $0x20] sm:$0xff]   ;;  %v1125_v21 = vld [vmem:[#allocation5 + $0xe8] sm:$0xff]   ;;  %p1288_p1 = pnand %p1287_p10, %p1795_p13  ;;  %s1292_s14 = scalar_lea.vmem %s1291_s17, 256 }
  0xbb   : > { %959 = vmatpush3.bf16.msra.mxu0 %v1110_v6  ;;  %v1119_v15 = vld [vmem:[#allocation5 + $0x98] sm:$0xff]   ;;  %v1123_v19 = vld [vmem:[#allocation5 + $0xa0] sm:$0xff]   ;;  %v1126_v22 = vld [vmem:[#allocation5 + $0x28] sm:$0xff]   ;;  %p1293_p7 = scmp.lt.s32.totalorder %s1699_s9, %s1291_s17  ;;  %p1294_p12 = scmp.lt.s32.totalorder %s1292_s14, %s1286_s10 }
  0xbc   : > { %981 = vmatpush3.bf16.msra.mxu1 %v1111_v7  ;;  %960 = vmatprep.subr.bf16.mxu0 %v1112_v8  ;;  %v1127_v23 = vld [vmem:[#allocation5 + $0xa8] sm:$0xff]   ;;  %v1128_v24 = vld [vmem:[#allocation5 + $0x70] sm:$0xff]   ;;  %v1132_v28 = vld [vmem:[#allocation5 + $0x78] sm:$0xff]   ;;  %p1289_p8 = pneg %p1288_p1 }
  0xbd   : > { %982 = vmatprep.subr.bf16.mxu1 %v1113_v9  ;;  %v1129_v25 = vld [vmem:[#allocation5 + $0xf0] sm:$0xff]   ;;  %v1133_v29 = vld [vmem:[#allocation5 + $0xf8] sm:$0xff]   ;;  %v901_v38 = vld [vmem:[%s294_s28] ss:$0 sm:$0xff]  ;;  %p1295_p11 = por %p1294_p12, %p1293_p7 }
  0xbe   : > { %v1130_v26 = vld [vmem:[#allocation5 + $0x30] sm:$0xff]   ;;  %v1134_v30 = vld [vmem:[#allocation5 + $0x38] sm:$0xff]   ;;  %v938_v49 = vld [vmem:[#allocation8] ss:$0 sm:$0xff] }
  0xbf   : > { %961 = vmatpush3.bf16.msra.mxu0 %v1114_v10  ;;  %v1131_v27 = vld [vmem:[#allocation5 + $0xb0] sm:$0xff]   ;;  %v1135_v31 = vld [vmem:[#allocation5 + $0xb8] sm:$0xff]   ;;  %v939_v53 = vld [vmem:[#allocation9] ss:$0 sm:$0xff]  ;;  %p1296_p0 = pnand %p1295_p11, %p1289_p8 }
  0xc0   : > { %983 = vmatpush3.bf16.msra.mxu1 %v1115_v11  ;;  %962 = vmatprep.subr.bf16.mxu0 %v1116_v12  ;;  %v1136_v32 = vld [vmem:[%s1663_s29] ss:$16 sps:$4 sm:$0xff]   ;;  %v1138_v33 = vld [vmem:[%s1663_s29 + $0x4] ss:$16 sps:$4 sm:$0xff]   ;;  %v1139_v34 = vld [vmem:[%s1663_s29 + $0x8] ss:$16 sps:$4 sm:$0xff]  }
  0xc1   : > { %984 = vmatprep.subr.bf16.mxu1 %v1117_v13  ;;  %v1141_v35 = vld [vmem:[%s1663_s29 + $0xc] ss:$16 sps:$4 sm:$0xff]   ;;  %655 = vmatprep.mubr.bf16.mxu0 %v1138_v33 }
  0xc2   : > { %696 = vmatprep.mubr.bf16.mxu1 %v1141_v35 }
  0xc3   : > { %963 = vmatpush3.bf16.msra.mxu0 %v1118_v14 }
  0xc4   : > { %985 = vmatpush3.bf16.msra.mxu1 %v1119_v15  ;;  %964 = vmatprep.subr.bf16.mxu0 %v1120_v16 }
  0xc5   : > { %986 = vmatprep.subr.bf16.mxu1 %v1121_v17 }
  0xc7   : > { %965 = vmatpush3.bf16.msra.mxu0 %v1122_v18 }
  0xc8   : > { %987 = vmatpush3.bf16.msra.mxu1 %v1123_v19  ;;  %966 = vmatprep.subr.bf16.mxu0 %v1124_v20 }
  0xc9   : > { %988 = vmatprep.subr.bf16.mxu1 %v1125_v21 }
  0xcb   : > { %967 = vmatpush3.bf16.msra.mxu0 %v1126_v22 }
  0xcc   : > { %989 = vmatpush3.bf16.msra.mxu1 %v1127_v23  ;;  %968 = vmatprep.subr.bf16.mxu0 %v1128_v24 }
  0xcd   : > { %990 = vmatprep.subr.bf16.mxu1 %v1129_v25 }
  0xcf   : > { %969 = vmatpush3.bf16.msra.mxu0 %v1130_v26 }
  0xd0   : > { %991 = vmatpush3.bf16.msra.mxu1 %v1131_v27  ;;  %970 = vmatprep.subr.bf16.mxu0 %v1132_v28 }
  0xd1   : > { %992 = vmatprep.subr.bf16.mxu1 %v1133_v29 }
  0xd3   : > { %971 = vmatpush3.bf16.msra.mxu0 %v1134_v30 }
  0xd4   : > { %993 = vmatpush3.bf16.msra.mxu1 %v1135_v31 }
  0xd6   : > { %656 = vmatmul.mubr.bf16.vlgmr.msra.gmra.mrb[0].mxu0 %v1136_v32 }
  0xd7   : > { %697 = vmatmul.mubr.bf16.vlgmr.msra.gmra.mrb[0].mxu1 %v1139_v34 }
 0x1a9   : > { %v972_v36 = vpop.f32.mrb[0].mxu0 }
 0x1aa   : > { %v994_v37 = vpop.f32.mrb[0].mxu1  ;;  %v973_v39 = vpop.f32.mrb[1].mxu0 }
 0x1ab   : > { %v974_v40 = vadd.f32 %v973_v39, %v972_v36  ;;  %v995_v41 = vpop.f32.mrb[1].mxu1  ;;  %v975_v42 = vpop.f32.mrb[2].mxu0 }
 0x1ac   : > { %v996_v43 = vadd.f32 %v995_v41, %v994_v37  ;;  %v997_v44 = vpop.f32.mrb[2].mxu1  ;;  %v976_v45 = vpop.f32.mrb[3].mxu0 }
 0x1ad   : > { %v658_v46 = vadd.f32 %v974_v40, %v901_v38  ;;  %v977_v47 = vadd.f32 %v976_v45, %v975_v42  ;;  %v998_v48 = vpop.f32.mrb[3].mxu1 }
 0x1ae   : > { %v999_v50 = vadd.f32 %v998_v48, %v997_v44 }
 0x1af   : > { %v699_v51 = vadd.f32 %v996_v43, %v658_v46  ;;  %v661_v52 = vadd.f32 %v977_v47, %v901_v38 }
 0x1b1   : > { %v712_v54 = vmul.f32 %v938_v49, %v699_v51  ;;  %v702_v55 = vadd.f32 %v999_v50, %v661_v52 }
 0x1b3   : > { %v721_v56 = vadd.f32 %v939_v53, %v712_v54  ;;  %v713_v57 = vmul.f32 %v938_v49, %v702_v55 }
 0x1b5   : > { %v722_v58 = vadd.f32 %v939_v53, %v713_v57  ;;  %v723_v59 = vmax.f32 %v721_v56, 0.0 }
 0x1b7   : > { %v724_v60 = vmax.f32 %v722_v58, 0.0 }
 0x1b9   : > { %v954_v61 = vpack.c.bf16 %v724_v60, %v723_v59 }
 0x1bb   : > { %955 = vst [vmem:[%s332_s12] sm:$0xff] %v954_v61  }
 0x1bc   : > { %1299 = shalt.err (!%p1296_p0)
}
 0x1bd   : > { %s1300_s7 = scalar_lea.hbm %s1697_s1, 128  ;;  %s1304_s13 = scalar_lea.hbm %s1753_s5, 256 }
 0x1be   : > { %p1301_p3 = scmp.ne.s32.totalorder %s1697_s1, %s1300_s7  ;;  %p1305_p2 = scmp.lt.u32.totalorder %s1697_s1, %s1753_s5 }
 0x1bf   : > { %p1306_p4 = scmp.lt.u32.totalorder %s1304_s13, %s1300_s7  ;;  %p1308_p10 = scmp.lt.u32.totalorder %s1300_s7, %s1697_s1 }
 0x1c0   : > { %p1302_p5 = pnand %p1301_p3, %p1795_p13 }
 0x1c1   : > { %p1307_p6 = por %p1306_p4, %p1305_p2 }
 0x1c2   : > { %p1303_p9 = pneg %p1302_p5 }
 0x1c3   : > { %p1309_p1 = por %p1308_p10, %p1307_p6 }
 0x1c5   : > { %p1310_p8 = pnand %p1309_p1, %p1303_p9 }
 0x1c7   : > { %1313 = shalt.err (!%p1310_p8)
}
 0x1c8   : > { %s1396_s6 = smov 64   ;;  %s1397_s29 = smov 4  }
 0x1c9   : > { %1016 = dma.vmem_to_hbm [thread:$0]  (%p1795_p13), %s1699_s9, 128, %s1697_s1, %s736_s30, %s1396_s6, %s1396_s6, %s1397_s29  }
 0x1ca PF: > { %s1796_s28 = sld [smem:[#allocation19_spill]]  ;;  %s1797_s24 = sld [smem:[#allocation18_spill]] }
 0x1cb   : > { %s766_s26 = sand.u32 1, %s1364_s18  }
 0x1cc   : > { %s767_s12 = scalar_lea.sflag [#allocation4], %s766_s26 }
 0x1d0   : > { %p1798_p7 = scmp.ne.s32.totalorder %s1796_s28, 0  ;;  %p1799_p12 = scmp.ge.s32.totalorder %s1797_s24, 2 }
 0x1d2   : > { %p1036_p11 = pnand %p1799_p12, %p1798_p7 }
 0x1d4   : > { %1359 = dma.done.wait (!%p1036_p11), %s767_s12, 128  }
 0x1d5   : > { %1361 = vsyncadd (!%p1036_p11), %s767_s12, 4294967168  ;;  %s23_s23 = sadd.s32 1, %s1797_s24   ;;  %s1800_s27 = sld [smem:[#allocation21_spill]] }
 0x1d6   : > { %p20_p0 = scmp.ge.s32.totalorder %s23_s23, 4   ;;  %s1801_s11 = sld [smem:[#allocation20_spill]] }
 0x1d7   : > { %s1802_s18 = smov %s1368_s19  ;;  %s1803_s19 = smov %s1372_s20 }
 0x1d8   : > { %s1805_s21 = smov %s1380_s22  ;;  %22 = sbr.rel (!%p20_p0) target bundleno = 11 (0xb), region = 108 }
 0x1db   : > { %s1804_s20 = smov %s1800_s27 }
 0x1dc   : > { %s1806_s22 = smov %s1801_s11 }
 0x1df   :  { %772 = vsyncpa [#allocation3], 1 }
 0x1e0   :  { %774 = vsyncpa [#allocation3 + $0x1], 1 }
 0x1e1   :  { %775 = vsyncpa [#allocation6], 1 }
 0x1e2   :  { %776 = vsyncpa [#allocation10], 1 }
 0x1e3   :  { %777 = vsyncpa [#allocation4], 1 }
 0x1e4   :  { %779 = vsyncpa [#allocation4 + $0x1], 1 }

// kernel: deeplabv3_forward.9
= control target key start
LH: loop header
LB: loop body
LE: loop exit
PB: predicated region body
PF: predicated region fallthrough
CT: control target
= control target key end

     0   :  { %9 = vsyncpa [#allocation4], 0  ;;  %s545_s0 = inlined_call_operand.hbm [shape: bf16[32,128], index: 0, kind: input, shape index: {}]   ;;  %s546_s1 = inlined_call_operand.hbm [shape: bf16[128,21], index: 1, kind: input, shape index: {}]   ;;  %s547_s2 = inlined_call_operand.hbm [shape: f32[1,21], index: 2, kind: input, shape index: {}]   ;;  %s548_s3 = inlined_call_operand.hbm [shape: f32[1,21], index: 3, kind: input, shape index: {}]   ;;  %s549_s4 = inlined_call_operand.vmem [shape: bf16[32,21], index: 4, kind: output, shape index: {}]  }
   0x1   :  { %10 = vsyncpa [#allocation6], 0 }
   0x2   :  { %11 = vsyncpa [#allocation9], 0  ;;  %s438_s15 = smov [#allocation5]   ;;  %s439_s17 = smov [#allocation3]  }
   0x3   :  { %s29_s16 = sshll.u32 %s438_s15, 4  ;;  %s17_s18 = sshll.u32 %s439_s17, 4  ;;  %s30_s16 = int_to_ptr.vmem [resolvable:$true] %s29_s16  ;;  %s470_s18 = int_to_ptr.vmem [resolvable:$true] %s17_s18 }
   0x4   :  { %s344_s21 = scalar_lea.hbm %s546_s1, 1024 }
   0x5   :  { %p345_p0 = scmp.ne.s32.totalorder %s546_s1, %s344_s21  ;;  %p348_p1 = scmp.lt.u32.totalorder %s344_s21, %s546_s1 }
   0x7   :  { %p350_p2 = pnand %p348_p1, %p345_p0 }
   0x9   :  { %353 = shalt.err (!%p350_p2)
}
   0xa   :  { %s354_s26 = scalar_lea.vmem %s30_s16, 1024  ;;  %p359_p4 = scmp.lt.s32.totalorder %s30_s16, %s30_s16 }
   0xb   :  { %p355_p3 = scmp.ne.s32.totalorder %s30_s16, %s354_s26  ;;  %p360_p5 = scmp.lt.s32.totalorder %s354_s26, %s354_s26 }
   0xd   :  { %p361_p6 = por %p360_p5, %p359_p4 }
   0xf   :  { %p362_p7 = pnand %p361_p6, %p355_p3 }
  0x11   :  { %365 = shalt.err (!%p362_p7)
}
  0x12   :  { %s440_s27 = smov 64   ;;  %s441_s28 = smov 4  }
  0x13   :  { %35 = dma.hbm_to_vmem [thread:$0]  %s546_s1, 1024, %s30_s16, [#allocation6], %s440_s27, %s440_s27, %s441_s28  }
  0x14   :  { %s366_s7 = scalar_lea.hbm %s545_s0, 256 }
  0x15   :  { %p367_p8 = scmp.ne.s32.totalorder %s545_s0, %s366_s7  ;;  %p370_p9 = scmp.lt.u32.totalorder %s366_s7, %s545_s0 }
  0x17   :  { %p372_p10 = pnand %p370_p9, %p367_p8 }
  0x19   :  { %375 = shalt.err (!%p372_p10)
}
  0x1a   :  { %s376_s12 = scalar_lea.vmem %s470_s18, 256  ;;  %p381_p12 = scmp.lt.s32.totalorder %s470_s18, %s470_s18 }
  0x1b   :  { %p377_p11 = scmp.ne.s32.totalorder %s470_s18, %s376_s12  ;;  %p382_p13 = scmp.lt.s32.totalorder %s376_s12, %s376_s12 }
  0x1d   :  { %p383_p0 = por %p382_p13, %p381_p12 }
  0x1f   :  { %p384_p1 = pnand %p383_p0, %p377_p11 }
  0x21   :  { %387 = shalt.err (!%p384_p1)
}
  0x22   :  { %23 = dma.hbm_to_vmem [thread:$0]  %s545_s0, 256, %s470_s18, [#allocation4], %s440_s27, %s440_s27, %s441_s28  }
  0x23   :  { %s442_s14 = smov [#allocation7]   ;;  %s443_s16 = smov [#allocation8]  }
  0x24   :  { %s42_s15 = sshll.u32 %s442_s14, 4  ;;  %s52_s17 = sshll.u32 %s443_s16, 4  ;;  %s43_s15 = int_to_ptr.vmem [resolvable:$true] %s42_s15  ;;  %s53_s17 = int_to_ptr.vmem [resolvable:$true] %s52_s17 }
  0x25   :  { %s388_s21 = scalar_lea.hbm %s547_s2, 16 }
  0x26   :  { %p389_p2 = scmp.ne.s32.totalorder %s547_s2, %s388_s21  ;;  %p392_p3 = scmp.lt.u32.totalorder %s388_s21, %s547_s2 }
  0x28   :  { %p394_p4 = pnand %p392_p3, %p389_p2 }
  0x2a   :  { %397 = shalt.err (!%p394_p4)
}
  0x2b   :  { %s398_s0 = scalar_lea.vmem %s43_s15, 16  ;;  %s402_s18 = scalar_lea.vmem %s43_s15, 32 }
  0x2c   :  { %p399_p5 = scmp.ne.s32.totalorder %s43_s15, %s398_s0  ;;  %p403_p6 = scmp.lt.s32.totalorder %s43_s15, %s43_s15 }
  0x2d   :  { %p404_p7 = scmp.lt.s32.totalorder %s402_s18, %s398_s0 }
  0x2f   :  { %p405_p8 = por %p404_p7, %p403_p6 }
  0x31   :  { %p406_p9 = pnand %p405_p8, %p399_p5 }
  0x33   :  { %409 = shalt.err (!%p406_p9)
}
  0x34   :  { %45 = dma.hbm_to_vmem [thread:$0]  %s547_s2, 16, %s43_s15, [#allocation6]  }
  0x35   :  { %s410_s30 = scalar_lea.hbm %s548_s3, 16 }
  0x36   :  { %p411_p10 = scmp.ne.s32.totalorder %s548_s3, %s410_s30  ;;  %p414_p11 = scmp.lt.u32.totalorder %s410_s30, %s548_s3 }
  0x38   :  { %p416_p12 = pnand %p414_p11, %p411_p10 }
  0x3a   :  { %419 = shalt.err (!%p416_p12)
}
  0x3b   :  { %s420_s9 = scalar_lea.vmem %s53_s17, 16  ;;  %s424_s10 = scalar_lea.vmem %s53_s17, 32 }
  0x3c   :  { %p421_p13 = scmp.ne.s32.totalorder %s53_s17, %s420_s9  ;;  %p425_p0 = scmp.lt.s32.totalorder %s53_s17, %s53_s17 }
  0x3d   :  { %p426_p1 = scmp.lt.s32.totalorder %s424_s10, %s420_s9 }
  0x3f   :  { %p427_p2 = por %p426_p1, %p425_p0 }
  0x41   :  { %p428_p3 = pnand %p427_p2, %p421_p13 }
  0x43   :  { %431 = shalt.err (!%p428_p3)
}
  0x44   :  { %55 = dma.hbm_to_vmem [thread:$0]  %s548_s3, 16, %s53_s17, [#allocation9]  }
  0x45   :  { %432 = dma.done.wait [#allocation4], 256  }
  0x46   :  { %433 = vsyncadd [#allocation4], 4294967040 }
  0x47   :  { %434 = dma.done.wait [#allocation6], 1040  }
  0x48   :  { %435 = vsyncadd [#allocation6], 4294966256 }
  0x49   :  { %436 = dma.done.wait [#allocation9], 16  }
  0x4a   :  { %437 = vsyncadd [#allocation9], 4294967280  ;;  %vm73_vm0 = vcmask 171008   ;;  %v444_v0 = vmov 0.0   ;;  %v334_v1 = vld [vmem:[#allocation5] sm:$0xff]   ;;  %v335_v2 = vld [vmem:[#allocation5 + $0x8] sm:$0xff]  }
  0x4b   :  { %76 = vst.msk [vmem:[#allocation2 + $0x10] sm:$0xff] %vm73_vm0, %v444_v0  ;;  %74 = vst.msk [vmem:[#allocation2] sm:$0xff] %vm73_vm0, %v444_v0  ;;  %307 = vmatprep.subr.bf16.mxu0 %v334_v1  ;;  %v336_v3 = vld [vmem:[#allocation5 + $0x10] sm:$0xff]   ;;  %v337_v4 = vld [vmem:[#allocation5 + $0x18] sm:$0xff]   ;;  %vm265_vm1 = vcmask 166912  }
  0x4c   :  { %75 = vst.msk [vmem:[#allocation2 + $0x8] sm:$0xff] %vm73_vm0, %v444_v0  ;;  %77 = vst.msk [vmem:[#allocation2 + $0x18] sm:$0xff] %vm73_vm0, %v444_v0  ;;  %308 = vmatpush3.bf16.msra.mxu0 %v334_v1  ;;  %v342_v5 = vld [vmem:[#allocation3] sm:$0xff]   ;;  %v338_v6 = vld [vmem:[#allocation5 + $0x20] sm:$0xff]  }
  0x4d   :  { %309 = vmatprep.subr.bf16.mxu0 %v335_v2  ;;  %323 = vmatprep.mubr.bf16.mxu0 %v342_v5  ;;  %v339_v7 = vld [vmem:[#allocation5 + $0x28] sm:$0xff]   ;;  %v340_v8 = vld [vmem:[#allocation5 + $0x30] sm:$0xff]   ;;  %v341_v9 = vld [vmem:[#allocation5 + $0x38] sm:$0xff]  }
  0x4e   :  { %v343_v10 = vld [vmem:[#allocation3 + $0x8] sm:$0xff]   ;;  %v287_v23 = vld [vmem:[#allocation7] ss:$0 sm:$0xff]  ;;  %v288_v25 = vld [vmem:[#allocation8] ss:$0 sm:$0xff] }
  0x50   :  { %310 = vmatpush3.bf16.msra.mxu0 %v335_v2 }
  0x51   :  { %311 = vmatprep.subr.bf16.mxu0 %v336_v3 }
  0x52   :  { %v80_v11 = vld [vmem:[#allocation2 + $0x10] sm:$0xff]  ;;  %v78_v12 = vld [vmem:[#allocation2] sm:$0xff] }
  0x53   :  { %v81_v14 = vld [vmem:[#allocation2 + $0x18] sm:$0xff]  ;;  %v79_v17 = vld [vmem:[#allocation2 + $0x8] sm:$0xff] }
  0x54   :  { %312 = vmatpush3.bf16.msra.mxu0 %v336_v3 }
  0x55   :  { %313 = vmatprep.subr.bf16.mxu0 %v337_v4 }
  0x58   :  { %314 = vmatpush3.bf16.msra.mxu0 %v337_v4 }
  0x59   :  { %315 = vmatprep.subr.bf16.mxu0 %v338_v6 }
  0x5c   :  { %316 = vmatpush3.bf16.msra.mxu0 %v338_v6 }
  0x5d   :  { %317 = vmatprep.subr.bf16.mxu0 %v339_v7 }
  0x60   :  { %318 = vmatpush3.bf16.msra.mxu0 %v339_v7 }
  0x61   :  { %319 = vmatprep.subr.bf16.mxu0 %v340_v8 }
  0x64   :  { %320 = vmatpush3.bf16.msra.mxu0 %v340_v8 }
  0x65   :  { %321 = vmatprep.subr.bf16.mxu0 %v341_v9 }
  0x68   :  { %322 = vmatpush3.bf16.msra.mxu0 %v341_v9 }
  0x6b   :  { %324 = vmatmul.mubr.bf16.vlgmr.msra.gmra.mrb[0].mxu0 %v343_v10 }
 0x13e   :  { %v325_v13 = vpop.f32.mrb[0].mxu0 }
 0x13f   :  { %v213_v15 = vadd.f32 %v325_v13, %v80_v11  ;;  %v196_v16 = vpop.f32.mrb[1].mxu0 }
 0x140   :  { %v211_v18 = vadd.f32 %v196_v16, %v78_v12  ;;  %v326_v19 = vpop.f32.mrb[2].mxu0 }
 0x141   :  { %218 = vst.msk [vmem:[#allocation2 + $0x10] sm:$0xff] %vm73_vm0, %v213_v15  ;;  %v214_v20 = vadd.f32 %v326_v19, %v81_v14  ;;  %v199_v21 = vpop.f32.mrb[3].mxu0 }
 0x142   :  { %216 = vst.msk [vmem:[#allocation2] sm:$0xff] %vm73_vm0, %v211_v18  ;;  %v212_v22 = vadd.f32 %v199_v21, %v79_v17 }
 0x143   :  { %219 = vst.msk [vmem:[#allocation2 + $0x18] sm:$0xff] %vm73_vm0, %v214_v20 }
 0x144   :  { %217 = vst.msk [vmem:[#allocation2 + $0x8] sm:$0xff] %vm73_vm0, %v212_v22 }
 0x148   :  { %v225_v24 = vld [vmem:[#allocation2 + $0x10] sm:$0xff] }
 0x149   :  { %v236_v26 = vmul.f32 %v287_v23, %v225_v24  ;;  %v223_v27 = vld [vmem:[#allocation2] sm:$0xff] }
 0x14a   :  { %v234_v28 = vmul.f32 %v287_v23, %v223_v27  ;;  %v226_v29 = vld [vmem:[#allocation2 + $0x18] sm:$0xff] }
 0x14b   :  { %v247_v30 = vadd.f32 %v288_v25, %v236_v26  ;;  %v237_v31 = vmul.f32 %v287_v23, %v226_v29  ;;  %v224_v32 = vld [vmem:[#allocation2 + $0x8] sm:$0xff] }
 0x14c   :  { %v245_v33 = vadd.f32 %v288_v25, %v234_v28  ;;  %v235_v34 = vmul.f32 %v287_v23, %v224_v32 }
 0x14d   :  { %v295_v35 = vpack.c.bf16 %v247_v30, %v247_v30  ;;  %v248_v36 = vadd.f32 %v288_v25, %v237_v31 }
 0x14e   :  { %v293_v37 = vpack.c.bf16 %v245_v33, %v245_v33  ;;  %v246_v38 = vadd.f32 %v288_v25, %v235_v34 }
 0x14f   :  { %268 = vst.msk [vmem:[%s549_s4 + $0x8] sm:$0xf] %vm265_vm1, %v295_v35  ;;  %v296_v39 = vpack.c.bf16 %v248_v36, %v248_v36 }
 0x150   :  { %266 = vst.msk [vmem:[%s549_s4] sm:$0xf] %vm265_vm1, %v293_v37  ;;  %v294_v40 = vpack.c.bf16 %v246_v38, %v246_v38 }
 0x151   :  { %269 = vst.msk [vmem:[%s549_s4 + $0xc] sm:$0xf] %vm265_vm1, %v296_v39 }
 0x152   :  { %267 = vst.msk [vmem:[%s549_s4 + $0x4] sm:$0xf] %vm265_vm1, %v294_v40 }
 0x153   :  { %274 = vsyncpa [#allocation4], 1 }
 0x154   :  { %275 = vsyncpa [#allocation6], 1 }
 0x155   :  { %276 = vsyncpa [#allocation9], 1 }

// kernel: deeplabv3_forward.10
= control target key start
LH: loop header
LB: loop body
LE: loop exit
PB: predicated region body
PF: predicated region fallthrough
CT: control target
= control target key end

     0   :  { %7 = vsyncpa [#allocation3], 0  ;;  %s999_s0 = inlined_call_operand.hbm [shape: bf16[64,4], index: 0, kind: input, shape index: {}]   ;;  %s1000_s1 = inlined_call_operand.hbm [shape: bf16[2,4,84], index: 1, kind: input, shape index: {}]   ;;  %s1001_s2 = inlined_call_operand.hbm [shape: bf16[2,64,84], index: 2, kind: output, shape index: {}]  }
   0x1   :  { %8 = vsyncpa [#allocation6], 0 }
   0x2   :  { %10 = vsyncpa [#allocation6 + $0x1], 0 }
   0x3   :  { %11 = vsyncpa [#allocation4], 0 }
   0x4   :  { %13 = vsyncpa [#allocation4 + $0x1], 0  ;;  %s774_s9 = smov 0   ;;  %s776_s10 = smov 0  }
   0x5   :  { %s778_s11 = smov 0   ;;  %s780_s12 = smov 0  }
   0x6   :  { %s782_s13 = smov 0   ;;  %s784_s14 = smov 0  }
   0x7 LB: > { %s465_s15 = sadd.s32 4294967295, %s750_s14   ;;  %s466_s16 = sadd.s32 4294967294, %s750_s14   ;;  %s750_s14 = sphi %s784_s14, %s19_s14   ;;  %s746_s13 = sphi %s782_s13, %s1025_s13   ;;  %s742_s12 = sphi %s780_s12, %s1024_s12   ;;  %s738_s11 = sphi %s778_s11, %s1023_s11   ;;  %s734_s10 = sphi %s776_s10, %s1022_s10   ;;  %s730_s9 = sphi %s774_s9, %s1021_s9  }
   0x8   : > { %p77_p0 = scmp.ne.s32.totalorder %s734_s10, %s730_s9  ;;  %p808_p1 = scmp.eq.s32.totalorder %s465_s15, 0 }
   0x9   : > { %p812_p2 = scmp.eq.s32.totalorder %s465_s15, 1  ;;  %p109_p3 = scmp.eq.s32.totalorder %s466_s16, 1 }
   0xa   : > { %s1006_s17 = scalar_select %p808_p1, 1, 0 }
   0xb   : > { %s1007_s18 = scalar_select %p812_p2, 1, 0 }
   0xc   : > { %p818_p4 = por %p808_p1, %p77_p0  ;;  %p467_p5 = scmp.ge.s32.totalorder %s750_s14, 1 }
   0xd   : > { %p823_p6 = por %p109_p3, %p77_p0  ;;  %p116_p7 = scmp.lt.s32.totalorder %s750_s14, 3 }
   0xe   : > { %s1008_s19 = scalar_select %p818_p4, 1, 0 }
   0xf   : > { %s1009_s20 = scalar_select %p823_p6, 1, 0 }
  0x10   : > { %p828_p8 = pnand %p467_p5, %p116_p7  ;;  %s752_s22 = smov [#allocation2]  }
  0x11   : > { %s131_s23 = sshll.u32 %s752_s22, 4  ;;  %s31_s25 = sadd.s32 1, %s746_s13  ;;  %s132_s23 = int_to_ptr.vmem [resolvable:$true] %s131_s23 }
  0x12   : > { %s1010_s21 = scalar_select %p828_p8, 1, 0 }
  0x13   : > { %p533_p9 = pneg %p828_p8  ;;  %s606_s28 = scalar_lea.hbm %s999_s0, 512 }
  0x14   : > { %p607_p12 = scmp.ne.s32.totalorder %s999_s0, %s606_s28  ;;  %p613_p5 = scmp.lt.u32.totalorder %s606_s28, %s999_s0 }
  0x15   : > { %p837_p11 = pnand %p533_p9, %p808_p1 }
  0x17   : > { %p608_p13 = pneg %p837_p11 }
  0x19   : > { %p609_p0 = pnand %p608_p13, %p607_p12 }
  0x1b   : > { %p610_p3 = pneg %p609_p0 }
  0x1d   : > { %p615_p7 = pnand %p613_p5, %p610_p3 }
  0x1f   : > { %618 = shalt.err (!%p615_p7)
}
  0x20   : > { %s619_s5 = scalar_lea.vmem %s132_s23, 512  ;;  %p627_p4 = scmp.lt.s32.totalorder %s132_s23, %s132_s23 }
  0x21   : > { %p620_p9 = scmp.ne.s32.totalorder %s132_s23, %s619_s5  ;;  %p628_p1 = scmp.lt.s32.totalorder %s619_s5, %s619_s5 }
  0x23   : > { %p622_p10 = pnand %p620_p9, %p608_p13  ;;  %p629_p8 = por %p628_p1, %p627_p4 }
  0x25   : > { %p623_p6 = pneg %p622_p10 }
  0x27   : > { %p630_p2 = pnand %p629_p8, %p623_p6 }
  0x29   : > { %633 = shalt.err (!%p630_p2)
}
  0x2a   : > { %s753_s6 = smov 64   ;;  %s754_s7 = smov 4  }
  0x2b   : > { %536 = dma.hbm_to_vmem [thread:$0]  (!%p837_p11), %s999_s0, 512, %s132_s23, [#allocation3], %s753_s6, %s753_s6, %s754_s7  }
  0x2c   : > { %p33_p1 = scmp.ge.s32.totalorder %s31_s25, 2  ;;  %s64_s16 = sadd.s32 1, %s738_s11 }
  0x2d   : > { %p71_p2 = scmp.ne.s32.totalorder %s738_s11, %s734_s10  ;;  %p72_p4 = scmp.eq.s32.totalorder %s750_s14, 0 }
  0x2e   : > { %s1027_s25 = smov (%p33_p1, %s31_s25), 0  ;;  %p1013_p8 = scmp.ne.s32.totalorder %s1007_s18, 0 }
  0x2f   : > { %p864_p6 = por %p72_p4, %p71_p2  ;;  %s61_s24 = ssub.s32 %s746_s13, %s1027_s25 }
  0x30   : > { %p870_p10 = por %p1013_p8, %p71_p2  ;;  %p546_p12 = scmp.lt.s32.totalorder %s750_s14, 2 }
  0x31   : > { %p62_p11 = scmp.eq.s32.totalorder %s61_s24, 0  ;;  %s145_s23 = sand.u32 1, %s738_s11  }
  0x32   : > { %s470_s27 = sshll.u32 %s145_s23, 1  ;;  %s471_s29 = sshll.u32 %s746_s13, 5 }
  0x33   : > { %s879_s28 = scalar_select %p62_p11, %s738_s11, %s64_s16  }
  0x34   : > { %s885_s4 = scalar_lea.hbm %s1000_s1, %s471_s29  ;;  %s149_s18 = scalar_lea.vmem [#allocation5], %s470_s27 }
  0x35   : > { %s156_s5 = sshll.u32 %s149_s18, 4  ;;  %p891_p13 = pnand %p546_p12, %p864_p6  ;;  %s887_s5 = int_to_ptr.vmem [resolvable:$true] %s156_s5 }
  0x36   : > { %s146_s7 = scalar_lea.sflag [#allocation6], %s145_s23  ;;  %s634_s8 = scalar_lea.hbm %s885_s4, 32 }
  0x37   : > { %p635_p0 = scmp.ne.s32.totalorder %s885_s4, %s634_s8  ;;  %p636_p3 = pneg %p891_p13 }
  0x38   : > { %s639_s24 = scalar_lea.hbm %s1000_s1, 64  ;;  %p640_p9 = scmp.lt.u32.totalorder %s885_s4, %s1000_s1 }
  0x39   : > { %p637_p5 = pnand %p636_p3, %p635_p0  ;;  %p641_p1 = scmp.lt.u32.totalorder %s639_s24, %s634_s8 }
  0x3a   : > { %p643_p4 = scmp.lt.u32.totalorder %s634_s8, %s885_s4 }
  0x3b   : > { %p638_p7 = pneg %p637_p5  ;;  %p642_p2 = por %p641_p1, %p640_p9 }
  0x3d   : > { %p644_p6 = por %p643_p4, %p642_p2 }
  0x3f   : > { %p645_p8 = pnand %p644_p6, %p638_p7 }
  0x41   : > { %648 = shalt.err (!%p645_p8)
}
  0x42   : > { %s649_s23 = scalar_lea.vmem %s887_s5, 32  ;;  %s755_s29 = smov [#allocation5]  }
  0x43   : > { %p650_p12 = scmp.ne.s32.totalorder %s887_s5, %s649_s23  ;;  %s654_s30 = sshll.u32 %s755_s29, 4  ;;  %s655_s30 = int_to_ptr.vmem [resolvable:$false] %s654_s30 }
  0x44   : > { %s656_s3 = scalar_lea.vmem %s655_s30, 64  ;;  %p657_p5 = scmp.lt.s32.totalorder %s887_s5, %s655_s30 }
  0x45   : > { %p652_p11 = pnand %p650_p12, %p636_p3  ;;  %p658_p9 = scmp.lt.s32.totalorder %s656_s3, %s649_s23 }
  0x47   : > { %p653_p0 = pneg %p652_p11  ;;  %p659_p1 = por %p658_p9, %p657_p5 }
  0x49   : > { %p660_p2 = pnand %p659_p1, %p653_p0 }
  0x4b   : > { %663 = shalt.err (!%p660_p2)
}
  0x4c   : > { %540 = dma.hbm_to_vmem [thread:$0]  (!%p891_p13), %s885_s4, 32, %s887_s5, %s146_s7  }
  0x4d   : > { %p1016_p7 = scmp.ne.s32.totalorder %s1010_s21, 0 }
  0x4e   : > { %p1017_p3 = scmp.ne.s32.totalorder (!%p1016_p7), %s1006_s17, 0 }
  0x4f   : > { %165 = sbr.rel (%p1016_p7) target bundleno = 328 (0x148), region = 28 }
  0x56   : > { %717 = dma.done.wait (%p1017_p3), [#allocation3], 512  }
  0x57   : > { %719 = vsyncadd (%p1017_p3), [#allocation3], 4294966784  ;;  %s927_s18 = sand.u32 1, %s734_s10   ;;  %p1018_p4 = scmp.ne.s32.totalorder %s1008_s19, 0 }
  0x58   : > { %s474_s8 = sshll.u32 %s927_s18, 1  ;;  %s172_s6 = scalar_lea.sflag [#allocation6], %s927_s18 }
  0x59   : > { %s175_s15 = scalar_lea.vmem [#allocation5], %s474_s8 }
  0x5a   : > { %721 = dma.done.wait (%p1018_p4), %s172_s6, 32  }
  0x5b   : > { %723 = vsyncadd (%p1018_p4), %s172_s6, 4294967264  ;;  %vm241_vm0 = vcmask 1041408   ;;  %vm228_vm1 = vcmask 31744   ;;  %v207_v0 = vld [vmem:[%s175_s15] sm:$0x3]  ;;  %v603_v3 = vld [vmem:[#allocation2 + $0x10] sm:$0xff]  }
  0x5c   : > { %523 = vmatprep.subr.msk.bf16.mxu0 %vm241_vm0, %v207_v0  ;;  %524 = vmatprep.subr.msk.bf16.mxu1 %vm241_vm0, %v207_v0  ;;  %v243_v1 = vsel %vm241_vm0, %v207_v0, 0  ;;  %v602_v2 = vld [vmem:[#allocation2] sm:$0xff]   ;;  %v604_v4 = vld [vmem:[#allocation2 + $0x8] sm:$0xff]   ;;  %v605_v5 = vld [vmem:[#allocation2 + $0x18] sm:$0xff]   ;;  %s475_s17 = sshll.u32 %s927_s18, 5  ;;  %vm342_vm2 = vcmask 683008  }
  0x5d   : > { %512 = vmatpush3.bf16.msra.mxu0 %v243_v1  ;;  %522 = vmatpush3.bf16.msra.mxu1 %v243_v1  ;;  %s505_s19 = sshll.u32 %s742_s12, 9  ;;  %s195_s21 = scalar_lea.vmem [#allocation7], %s475_s17 }
  0x5e   : > { %513 = vmatprep.mubr.msk.bf16.mxu0 %vm228_vm1, %v602_v2  ;;  %517 = vmatprep.mubr.msk.bf16.mxu1 %vm228_vm1, %v603_v3  ;;  %s367_s4 = sshll.u32 %s195_s21, 4  ;;  %s943_s7 = scalar_lea.hbm %s1001_s2, %s505_s19  ;;  %s945_s4 = int_to_ptr.vmem [resolvable:$true] %s367_s4 }
  0x5f   : > { %s352_s16 = scalar_lea.sflag [#allocation4], %s927_s18  ;;  %s664_s24 = scalar_lea.vmem %s945_s4, 512 }
  0x60   : > { %514 = vmatmul.mubr.msk.bf16.vlgmr.msra.gmra.mrb[0].mxu0 %vm228_vm1, %v604_v4  ;;  %518 = vmatmul.mubr.msk.bf16.vlgmr.msra.gmra.mrb[0].mxu1 %vm228_vm1, %v605_v5  ;;  %p665_p13 = scmp.ne.s32.totalorder %s945_s4, %s664_s24  ;;  %s756_s22 = smov [#allocation7]  }
  0x61   : > { %s668_s27 = sshll.u32 %s756_s22, 4  ;;  %s669_s27 = int_to_ptr.vmem [resolvable:$false] %s668_s27 }
  0x62   : > { %p666_p6 = pnand %p665_p13, %p870_p10  ;;  %s670_s23 = scalar_lea.vmem %s669_s27, 1024 }
  0x63   : > { %p671_p12 = scmp.lt.s32.totalorder %s945_s4, %s669_s27  ;;  %p672_p11 = scmp.lt.s32.totalorder %s670_s23, %s664_s24 }
  0x64   : > { %p667_p8 = pneg %p666_p6 }
  0x65   : > { %p673_p0 = por %p672_p11, %p671_p12 }
  0x67   : > { %p674_p5 = pnand %p673_p0, %p667_p8 }
 0x133   : > { %v515_v6 = vpop.f32.mrb[0].mxu0  ;;  %v519_v8 = vpop.f32.mrb[0].mxu1 }
 0x134   : > { %v499_v7 = vpack.c.bf16 %v515_v6, %v515_v6  ;;  %v279_v9 = vpop.f32.mrb[1].mxu0  ;;  %v503_v10 = vpack.c.bf16 %v519_v8, %v519_v8  ;;  %v295_v12 = vpop.f32.mrb[1].mxu1 }
 0x135   : > { %v497_v11 = vpack.c.bf16 %v279_v9, %v279_v9  ;;  %v516_v13 = vpop.f32.mrb[2].mxu0  ;;  %v501_v14 = vpack.c.bf16 %v295_v12, %v295_v12  ;;  %v520_v16 = vpop.f32.mrb[2].mxu1 }
 0x136   : > { %345 = vst.msk [vmem:[%s195_s21 + $0x8] sm:$0xf] %vm342_vm2, %v499_v7  ;;  %v500_v15 = vpack.c.bf16 %v516_v13, %v516_v13  ;;  %v282_v17 = vpop.f32.mrb[3].mxu0  ;;  %349 = vst.msk [vmem:[%s195_s21 + $0x18] sm:$0xf] %vm342_vm2, %v503_v10  ;;  %v504_v18 = vpack.c.bf16 %v520_v16, %v520_v16  ;;  %v298_v20 = vpop.f32.mrb[3].mxu1 }
 0x137   : > { %343 = vst.msk [vmem:[%s195_s21] sm:$0xf] %vm342_vm2, %v497_v11  ;;  %v498_v19 = vpack.c.bf16 %v282_v17, %v282_v17  ;;  %347 = vst.msk [vmem:[%s195_s21 + $0x10] sm:$0xf] %vm342_vm2, %v501_v14  ;;  %v502_v21 = vpack.c.bf16 %v298_v20, %v298_v20 }
 0x138   : > { %346 = vst.msk [vmem:[%s195_s21 + $0xc] sm:$0xf] %vm342_vm2, %v500_v15  ;;  %350 = vst.msk [vmem:[%s195_s21 + $0x1c] sm:$0xf] %vm342_vm2, %v504_v18 }
 0x139   : > { %344 = vst.msk [vmem:[%s195_s21 + $0x4] sm:$0xf] %vm342_vm2, %v498_v19  ;;  %348 = vst.msk [vmem:[%s195_s21 + $0x14] sm:$0xf] %vm342_vm2, %v502_v21 }
 0x13a   : > { %677 = shalt.err (!%p674_p5)
}
 0x13b   : > { %s678_s29 = scalar_lea.hbm %s943_s7, 512  ;;  %s682_s8 = scalar_lea.hbm %s1001_s2, 1024 }
 0x13c   : > { %p679_p9 = scmp.ne.s32.totalorder %s943_s7, %s678_s29  ;;  %p683_p7 = scmp.lt.u32.totalorder %s943_s7, %s1001_s2 }
 0x13d   : > { %p684_p3 = scmp.lt.u32.totalorder %s682_s8, %s678_s29  ;;  %p686_p13 = scmp.lt.u32.totalorder %s678_s29, %s943_s7 }
 0x13e   : > { %p680_p1 = pnand %p679_p9, %p870_p10 }
 0x13f   : > { %p685_p4 = por %p684_p3, %p683_p7 }
 0x140   : > { %p681_p2 = pneg %p680_p1 }
 0x141   : > { %p687_p6 = por %p686_p13, %p685_p4 }
 0x143   : > { %p688_p8 = pnand %p687_p6, %p681_p2 }
 0x145   : > { %691 = shalt.err (!%p688_p8)
}
 0x146   : > { %s757_s17 = smov 64   ;;  %s758_s19 = smov 4  }
 0x147   : > { %531 = dma.vmem_to_hbm [thread:$0]  (%p870_p10), %s945_s4, 512, %s943_s7, %s352_s16, %s757_s17, %s757_s17, %s758_s19  }
 0x148 PF: > { %s382_s21 = sand.u32 1, %s730_s9   ;;  %p1019_p12 = scmp.ne.s32.totalorder %s1009_s20, 0 }
 0x149   : > { %p1020_p11 = scmp.ge.s32.totalorder %s750_s14, 2  ;;  %s383_s12 = scalar_lea.sflag [#allocation4], %s382_s21 }
 0x14b   : > { %p542_p0 = pnand %p1020_p11, %p1019_p12 }
 0x14d   : > { %725 = dma.done.wait (!%p542_p0), %s383_s12, 512  }
 0x14e   : > { %727 = vsyncadd (!%p542_p0), %s383_s12, 4294966784  ;;  %s19_s14 = sadd.s32 1, %s750_s14   ;;  %s1021_s9 = smov %s734_s10 }
 0x14f   : > { %p16_p5 = scmp.ge.s32.totalorder %s19_s14, 4   ;;  %s1022_s10 = smov %s738_s11 }
 0x150   : > { %s1023_s11 = smov %s879_s28  ;;  %s1024_s12 = smov %s746_s13 }
 0x151   : > { %s1025_s13 = smov %s1027_s25  ;;  %18 = sbr.rel (!%p16_p5) target bundleno = 7 (0x7), region = 79 }
 0x158   :  { %388 = vsyncpa [#allocation3], 1 }
 0x159   :  { %390 = vsyncpa [#allocation3 + $0x1], 1 }
 0x15a   :  { %391 = vsyncpa [#allocation6], 1 }
 0x15b   :  { %393 = vsyncpa [#allocation6 + $0x1], 1 }
 0x15c   :  { %394 = vsyncpa [#allocation4], 1 }
 0x15d   :  { %396 = vsyncpa [#allocation4 + $0x1], 1 }

// kernel: deeplabv3_forward.11
= control target key start
LH: loop header
LB: loop body
LE: loop exit
PB: predicated region body
PF: predicated region fallthrough
CT: control target
= control target key end

     0   :  { %7 = vsyncpa [#allocation3], 0  ;;  %s1959_s0 = inlined_call_operand.hbm [shape: bf16[64,4], index: 0, kind: input, shape index: {}]   ;;  %s1960_s1 = inlined_call_operand.hbm [shape: bf16[2,4,1344], index: 1, kind: input, shape index: {}]   ;;  %s1961_s2 = inlined_call_operand.hbm [shape: bf16[2,64,1344], index: 2, kind: output, shape index: {}]  }
   0x1   :  { %8 = vsyncpa [#allocation6], 0 }
   0x2   :  { %10 = vsyncpa [#allocation6 + $0x1], 0 }
   0x3   :  { %11 = vsyncpa [#allocation4], 0 }
   0x4   :  { %13 = vsyncpa [#allocation4 + $0x1], 0  ;;  %s1616_s9 = smov 0   ;;  %s1618_s10 = smov 0  }
   0x5   :  { %s1620_s11 = smov 0   ;;  %s1622_s12 = smov 0  }
   0x6   :  { %s1624_s13 = smov 0   ;;  %s1626_s14 = smov 0  }
   0x7 LB: > { %s1197_s15 = sadd.s32 4294967295, %s1590_s14   ;;  %s1198_s16 = sadd.s32 4294967294, %s1590_s14   ;;  %s1590_s14 = sphi %s1626_s14, %s19_s14   ;;  %s1586_s13 = sphi %s1624_s13, %s1984_s13   ;;  %s1582_s12 = sphi %s1622_s12, %s1983_s12   ;;  %s1578_s11 = sphi %s1620_s11, %s1982_s11   ;;  %s1574_s10 = sphi %s1618_s10, %s1981_s10   ;;  %s1570_s9 = sphi %s1616_s9, %s1980_s9  }
   0x8   : > { %p77_p0 = scmp.ne.s32.totalorder %s1574_s10, %s1570_s9  ;;  %p1650_p1 = scmp.eq.s32.totalorder %s1197_s15, 0 }
   0x9   : > { %p1654_p2 = scmp.eq.s32.totalorder %s1197_s15, 1  ;;  %p109_p3 = scmp.eq.s32.totalorder %s1198_s16, 1 }
   0xa   : > { %s1966_s17 = scalar_select %p1650_p1, 1, 0 }
   0xb   : > { %s1967_s18 = scalar_select %p1654_p2, 1, 0 }
   0xc   : > { %p1660_p4 = por %p1650_p1, %p77_p0  ;;  %p1199_p5 = scmp.ge.s32.totalorder %s1590_s14, 1 }
   0xd   : > { %p1665_p6 = por %p109_p3, %p77_p0  ;;  %p116_p7 = scmp.lt.s32.totalorder %s1590_s14, 3 }
   0xe   : > { %s1968_s19 = scalar_select %p1660_p4, 1, 0 }
   0xf   : > { %s1969_s20 = scalar_select %p1665_p6, 1, 0 }
  0x10   : > { %p1670_p8 = pnand %p1199_p5, %p116_p7  ;;  %s1592_s22 = smov [#allocation2]  }
  0x11   : > { %s131_s23 = sshll.u32 %s1592_s22, 4  ;;  %s31_s25 = sadd.s32 1, %s1586_s13  ;;  %s132_s23 = int_to_ptr.vmem [resolvable:$true] %s131_s23 }
  0x12   : > { %s1970_s21 = scalar_select %p1670_p8, 1, 0 }
  0x13   : > { %p1368_p9 = pneg %p1670_p8  ;;  %s1446_s28 = scalar_lea.hbm %s1959_s0, 512 }
  0x14   : > { %p1447_p12 = scmp.ne.s32.totalorder %s1959_s0, %s1446_s28  ;;  %p1453_p5 = scmp.lt.u32.totalorder %s1446_s28, %s1959_s0 }
  0x15   : > { %p1679_p11 = pnand %p1368_p9, %p1650_p1 }
  0x17   : > { %p1448_p13 = pneg %p1679_p11 }
  0x19   : > { %p1449_p0 = pnand %p1448_p13, %p1447_p12 }
  0x1b   : > { %p1450_p3 = pneg %p1449_p0 }
  0x1d   : > { %p1455_p7 = pnand %p1453_p5, %p1450_p3 }
  0x1f   : > { %1458 = shalt.err (!%p1455_p7)
}
  0x20   : > { %s1459_s5 = scalar_lea.vmem %s132_s23, 512  ;;  %p1467_p4 = scmp.lt.s32.totalorder %s132_s23, %s132_s23 }
  0x21   : > { %p1460_p9 = scmp.ne.s32.totalorder %s132_s23, %s1459_s5  ;;  %p1468_p1 = scmp.lt.s32.totalorder %s1459_s5, %s1459_s5 }
  0x23   : > { %p1462_p10 = pnand %p1460_p9, %p1448_p13  ;;  %p1469_p8 = por %p1468_p1, %p1467_p4 }
  0x25   : > { %p1463_p6 = pneg %p1462_p10 }
  0x27   : > { %p1470_p2 = pnand %p1469_p8, %p1463_p6 }
  0x29   : > { %1473 = shalt.err (!%p1470_p2)
}
  0x2a   : > { %s1593_s6 = smov 64   ;;  %s1594_s7 = smov 4  }
  0x2b   : > { %1371 = dma.hbm_to_vmem [thread:$0]  (!%p1679_p11), %s1959_s0, 512, %s132_s23, [#allocation3], %s1593_s6, %s1593_s6, %s1594_s7  }
  0x2c   : > { %p33_p1 = scmp.ge.s32.totalorder %s31_s25, 2  ;;  %s64_s16 = sadd.s32 1, %s1578_s11 }
  0x2d   : > { %p71_p2 = scmp.ne.s32.totalorder %s1578_s11, %s1574_s10  ;;  %p72_p4 = scmp.eq.s32.totalorder %s1590_s14, 0 }
  0x2e   : > { %s1986_s25 = smov (%p33_p1, %s31_s25), 0  ;;  %p1972_p8 = scmp.ne.s32.totalorder %s1967_s18, 0 }
  0x2f   : > { %p73_p6 = por %p72_p4, %p71_p2  ;;  %s61_s26 = ssub.s32 %s1586_s13, %s1986_s25 }
  0x30   : > { %p1708_p10 = por %p1972_p8, %p71_p2  ;;  %p1381_p12 = scmp.lt.s32.totalorder %s1590_s14, 2 }
  0x31   : > { %p62_p13 = scmp.eq.s32.totalorder %s61_s26, 0  ;;  %s145_s24 = sand.u32 1, %s1578_s11  }
  0x32   : > { %s1355_s27 = smul.u32 22, %s145_s24  ;;  %p1720_p11 = pnand %p1381_p12, %p73_p6 }
  0x33   : > { %s1717_s28 = scalar_select %p62_p13, %s1578_s11, %s64_s16  }
  0x34   : > { %s1356_s23 = smul.u32 352, %s1586_s13  ;;  %s149_s29 = scalar_lea.vmem [#allocation5], %s1355_s27 }
  0x35   : > { %s157_s30 = sshll.u32 %s149_s29, 4  ;;  %s146_s6 = scalar_lea.sflag [#allocation6], %s145_s24  ;;  %s1729_s30 = int_to_ptr.vmem [resolvable:$true] %s157_s30 }
  0x36   : > { %s1727_s5 = scalar_lea.hbm %s1960_s1, %s1356_s23  ;;  %p1476_p3 = pneg %p1720_p11 }
  0x37   : > { %s1474_s7 = scalar_lea.hbm %s1727_s5, 352  ;;  %s1479_s16 = scalar_lea.hbm %s1960_s1, 704 }
  0x38   : > { %p1475_p0 = scmp.ne.s32.totalorder %s1727_s5, %s1474_s7  ;;  %p1480_p9 = scmp.lt.u32.totalorder %s1727_s5, %s1960_s1 }
  0x39   : > { %p1481_p1 = scmp.lt.u32.totalorder %s1479_s16, %s1474_s7  ;;  %p1483_p4 = scmp.lt.u32.totalorder %s1474_s7, %s1727_s5 }
  0x3a   : > { %p1477_p5 = pnand %p1476_p3, %p1475_p0 }
  0x3b   : > { %p1482_p2 = por %p1481_p1, %p1480_p9 }
  0x3c   : > { %p1478_p7 = pneg %p1477_p5 }
  0x3d   : > { %p1484_p6 = por %p1483_p4, %p1482_p2 }
  0x3f   : > { %p1485_p8 = pnand %p1484_p6, %p1478_p7 }
  0x41   : > { %1488 = shalt.err (!%p1485_p8)
}
  0x42   : > { %s1489_s24 = scalar_lea.vmem %s1729_s30, 352  ;;  %s1595_s23 = smov [#allocation5]  }
  0x43   : > { %p1490_p12 = scmp.ne.s32.totalorder %s1729_s30, %s1489_s24  ;;  %s1494_s29 = sshll.u32 %s1595_s23, 4  ;;  %s1495_s29 = int_to_ptr.vmem [resolvable:$false] %s1494_s29 }
  0x44   : > { %s1496_s4 = scalar_lea.vmem %s1495_s29, 704  ;;  %p1497_p5 = scmp.lt.s32.totalorder %s1729_s30, %s1495_s29 }
  0x45   : > { %p1492_p13 = pnand %p1490_p12, %p1476_p3  ;;  %p1498_p9 = scmp.lt.s32.totalorder %s1496_s4, %s1489_s24 }
  0x47   : > { %p1493_p0 = pneg %p1492_p13  ;;  %p1499_p1 = por %p1498_p9, %p1497_p5 }
  0x49   : > { %p1500_p2 = pnand %p1499_p1, %p1493_p0 }
  0x4b   : > { %1503 = shalt.err (!%p1500_p2)
}
  0x4c   : > { %1375 = dma.hbm_to_vmem [thread:$0]  (!%p1720_p11), %s1727_s5, 352, %s1729_s30, %s146_s6  }
  0x4d   : > { %p1975_p7 = scmp.ne.s32.totalorder %s1970_s21, 0 }
  0x4e   : > { %p1976_p3 = scmp.ne.s32.totalorder (!%p1975_p7), %s1966_s17, 0 }
  0x4f   : > { %166 = sbr.rel (%p1975_p7) target bundleno = 419 (0x1a3), region = 28 }
  0x56   : > { %1557 = dma.done.wait (%p1976_p3), [#allocation3], 512  }
  0x57   : > { %1559 = vsyncadd (%p1976_p3), [#allocation3], 4294966784  ;;  %s1763_s18 = sand.u32 1, %s1574_s10   ;;  %p1977_p4 = scmp.ne.s32.totalorder %s1968_s19, 0 }
  0x58   : > { %s1357_s7 = smul.u32 22, %s1763_s18  ;;  %s173_s3 = scalar_lea.sflag [#allocation6], %s1763_s18 }
  0x5a   : > { %s176_s8 = scalar_lea.vmem [#allocation5], %s1357_s7 }
  0x5b   : > { %1561 = dma.done.wait (%p1977_p4), %s173_s3, 352  }
  0x5c   : > { %1563 = vsyncadd (%p1977_p4), %s173_s3, 4294966944  ;;  %v238_v0 = vlaneseq  ;;  %v1596_v1 = vmov 1983009808   ;;  %v1597_v3 = vmov 0   ;;  %v208_v7 = vld [vmem:[%s176_s8] sm:$0xff]  ;;  %vm297_vm0 = vcmask 1041408  }
  0x5d   : > { %v236_v2 = vunpack.c.l.s4 %v1596_v1  ;;  %363 = vmatprep.mubr.bf16.mxu0 %v1597_v3  ;;  %393 = vmatprep.mubr.bf16.mxu1 %v1597_v3  ;;  %v234_v8 = vcombine.high %v208_v7, %v208_v7  ;;  %v209_v10 = vld [vmem:[%s176_s8 + $0x8] sm:$0xff]  ;;  %v210_v16 = vld [vmem:[%s176_s8 + $0x10] sm:$0x3f]  ;;  %vm284_vm1 = vcmask 31744   ;;  %s1358_s17 = smul.u32 352, %s1763_s18  ;;  %vm1038_vm2 = vcmask 519168  }
  0x5e   : > { %v239_v4 = vshrl.u32 %v238_v0, 7  ;;  %v251_v15 = vcombine.high %v209_v10, %v209_v10  ;;  %v1776_v17 = vld [vmem:[#allocation2] sm:$0xff]   ;;  %v1778_v18 = vld [vmem:[#allocation2 + $0x18] sm:$0xff]   ;;  %v268_v27 = vcombine.high %v210_v16, %v210_v16  ;;  %v1442_v28 = vld [vmem:[#allocation2 + $0x8] sm:$0xff]   ;;  %s1359_s21 = smul.u32 5632, %s1582_s12  ;;  %s1083_s15 = scalar_lea.sflag [#allocation4], %s1763_s18 }
  0x5f   : > { %v237_v5 = vunpack.c.0.s8 %v236_v2  ;;  %v1444_v31 = vld [vmem:[#allocation2 + $0x10] sm:$0xff]   ;;  %s1845_s19 = scalar_lea.vmem [#allocation7], %s1358_s17  ;;  %s1598_s26 = smov [#allocation7]  }
  0x60   : > { %s1099_s30 = sshll.u32 %s1845_s19, 4  ;;  %s1900_s6 = scalar_lea.hbm %s1961_s2, %s1359_s21  ;;  %s1902_s30 = int_to_ptr.vmem [resolvable:$true] %s1099_s30 }
  0x61   : > { %v240_v6 = vsub.s32 %v237_v5, %v239_v4  ;;  %s1504_s16 = scalar_lea.vmem %s1902_s30, 5632  ;;  %s1508_s27 = sshll.u32 %s1598_s26, 4  ;;  %s1509_s27 = int_to_ptr.vmem [resolvable:$false] %s1508_s27 }
  0x62   : > { %p1505_p11 = scmp.ne.s32.totalorder %s1902_s30, %s1504_s16  ;;  %s1510_s24 = scalar_lea.vmem %s1509_s27, 11264 }
  0x63   : > { %v241_v9 = vrot.slane %v208_v7, %v240_v6  ;;  %v248_v11 = vrot.slane %v234_v8, %v240_v6  ;;  %v258_v14 = vrot.slane %v209_v10, %v240_v6  ;;  %v265_v21 = vrot.slane %v251_v15, %v240_v6  ;;  %p1511_p12 = scmp.lt.s32.totalorder %s1902_s30, %s1509_s27  ;;  %p1512_p13 = scmp.lt.s32.totalorder %s1510_s24, %s1504_s16 }
  0x64   : > { %v275_v22 = vrot.slane %v210_v16, %v240_v6  ;;  %v282_v30 = vrot.slane %v268_v27, %v240_v6  ;;  %p1506_p6 = pnand %p1505_p11, %p1708_p10 }
  0x65   : > { %v249_v12 = vcombine.high %v241_v9, %v241_v9  ;;  %v299_v13 = vsel %vm297_vm0, %v241_v9, 0  ;;  %v250_v19 = vcombine.high %v248_v11, %v248_v11  ;;  %v266_v20 = vcombine.high %v258_v14, %v258_v14  ;;  %p1513_p0 = por %p1512_p13, %p1511_p12 }
  0x66   : > { %v305_v23 = vsel %vm297_vm0, %v248_v11, 0  ;;  %v311_v24 = vsel %vm297_vm0, %v258_v14, 0  ;;  %v267_v25 = vcombine.high %v265_v21, %v265_v21  ;;  %v283_v26 = vcombine.high %v275_v22, %v275_v22  ;;  %p1507_p8 = pneg %p1506_p6 }
  0x67   : > { %1209 = vmatprep.subr.msk.bf16.mxu0 %vm297_vm0, %v249_v12  ;;  %1352 = vmatprep.subr.msk.bf16.mxu1 %vm297_vm0, %v249_v12  ;;  %v317_v29 = vsel %vm297_vm0, %v265_v21, 0  ;;  %v323_v32 = vsel %vm297_vm0, %v275_v22, 0  ;;  %v329_v33 = vsel %vm297_vm0, %v282_v30, 0 }
  0x68   : > { %332 = vmatpush1.bf16.msra.mxu0 %v299_v13  ;;  %1353 = vmatpush1.bf16.msra.mxu1 %v299_v13  ;;  %p1514_p5 = pnand %p1513_p0, %p1507_p8 }
  0x69   : > { %1214 = vmatprep.subr.msk.bf16.mxu1 %vm297_vm0, %v250_v19  ;;  %1219 = vmatprep.subr.msk.bf16.mxu0 %vm297_vm0, %v266_v20 }
  0x6b   : > { %1210 = vmatmul.mubr.msk.bf16.vlgmr.msra.gmra.mrb[0].mxu0 %vm284_vm1, %v1776_v17  ;;  %1213 = vmatmul.mubr.msk.bf16.vlgmr.msra.gmra.mrb[0].mxu1 %vm284_vm1, %v1778_v18 }
  0x6c   : > { %405 = vmatpush1.bf16.msra.mxu1 %v305_v23  ;;  %478 = vmatpush1.bf16.msra.mxu0 %v311_v24 }
  0x6d   : > { %373 = vmatprep.mubr.bf16.mxu0 %v1597_v3  ;;  %436 = vmatprep.mubr.bf16.mxu1 %v1597_v3 }
  0x6e   : > { %1224 = vmatprep.subr.msk.bf16.mxu1 %vm297_vm0, %v267_v25  ;;  %1229 = vmatprep.subr.msk.bf16.mxu0 %vm297_vm0, %v283_v26 }
  0x73   : > { %1211 = vmatmul.mubr.msk.bf16.gmra.mrb[4].mxu0 %vm284_vm1, %v1442_v28  ;;  %1215 = vmatmul.mubr.msk.bf16.vlgmr.msra.gmra.mrb[4].mxu1 %vm284_vm1, %v1776_v17 }
  0x74   : > { %551 = vmatpush1.bf16.msra.mxu1 %v317_v29  ;;  %383 = vmatprep.mubr.bf16.mxu0 %v1597_v3 }
  0x75   : > { %446 = vmatprep.mubr.bf16.mxu1 %v1597_v3  ;;  %1354 = vmatprep.subr.msk.bf16.mxu1 %vm297_vm0, %v282_v30 }
  0x7b   : > { %1212 = vmatmul.mubr.msk.bf16.gmra.mrb[8].mxu0 %vm284_vm1, %v1444_v31  ;;  %1216 = vmatmul.mubr.msk.bf16.gmra.mrb[8].mxu1 %vm284_vm1, %v1442_v28 }
  0x7c   : > { %456 = vmatprep.mubr.bf16.mxu1 %v1597_v3  ;;  %509 = vmatprep.mubr.bf16.mxu0 %v1597_v3 }
  0x83   : > { %1217 = vmatmul.mubr.msk.bf16.gmra.mrb[12].mxu1 %vm284_vm1, %v1444_v31  ;;  %1220 = vmatmul.mubr.msk.bf16.vlgmr.msra.gmra.mrb[12].mxu0 %vm284_vm1, %v1776_v17 }
  0x84   : > { %624 = vmatpush1.bf16.msra.mxu0 %v323_v32  ;;  %466 = vmatprep.mubr.bf16.mxu1 %v1597_v3 }
  0x85   : > { %519 = vmatprep.mubr.bf16.mxu0 %v1597_v3 }
  0x8b   : > { %1218 = vmatmul.mubr.msk.bf16.gmra.mrb[16].mxu1 %vm284_vm1, %v1778_v18  ;;  %1221 = vmatmul.mubr.msk.bf16.gmra.mrb[16].mxu0 %vm284_vm1, %v1442_v28 }
  0x8c   : > { %529 = vmatprep.mubr.bf16.mxu0 %v1597_v3  ;;  %582 = vmatprep.mubr.bf16.mxu1 %v1597_v3 }
  0x93   : > { %1222 = vmatmul.mubr.msk.bf16.gmra.mrb[20].mxu0 %vm284_vm1, %v1444_v31  ;;  %1225 = vmatmul.mubr.msk.bf16.vlgmr.msra.gmra.mrb[20].mxu1 %vm284_vm1, %v1776_v17 }
  0x94   : > { %1343 = vmatpush3.bf16.msra.mxu1 %v329_v33  ;;  %539 = vmatprep.mubr.bf16.mxu0 %v1597_v3 }
  0x95   : > { %592 = vmatprep.mubr.bf16.mxu1 %v1597_v3 }
  0x9b   : > { %1223 = vmatmul.mubr.msk.bf16.gmra.mrb[24].mxu0 %vm284_vm1, %v1778_v18  ;;  %1226 = vmatmul.mubr.msk.bf16.gmra.mrb[24].mxu1 %vm284_vm1, %v1442_v28 }
  0x9c   : > { %602 = vmatprep.mubr.bf16.mxu1 %v1597_v3  ;;  %655 = vmatprep.mubr.bf16.mxu0 %v1597_v3 }
  0xa3   : > { %1227 = vmatmul.mubr.msk.bf16.gmra.mrb[28].mxu1 %vm284_vm1, %v1444_v31  ;;  %1230 = vmatmul.mubr.msk.bf16.vlgmr.msra.gmra.mrb[28].mxu0 %vm284_vm1, %v1776_v17 }
  0xa4   : > { %612 = vmatprep.mubr.bf16.mxu1 %v1597_v3  ;;  %665 = vmatprep.mubr.bf16.mxu0 %v1597_v3 }
  0xab   : > { %1228 = vmatmul.mubr.msk.bf16.gmra.mrb[32].mxu1 %vm284_vm1, %v1778_v18  ;;  %1231 = vmatmul.mubr.msk.bf16.gmra.mrb[32].mxu0 %vm284_vm1, %v1442_v28 }
  0xac   : > { %675 = vmatprep.mubr.bf16.mxu0 %v1597_v3  ;;  %1344 = vmatprep.mubr.msk.bf16.mxu1 %vm284_vm1, %v1776_v17 }
  0xb3   : > { %1232 = vmatmul.mubr.msk.bf16.gmra.mrb[36].mxu0 %vm284_vm1, %v1444_v31  ;;  %1345 = vmatmul.mubr.msk.bf16.vlgmr.msra.gmra.mrb[36].mxu1 %vm284_vm1, %v1442_v28 }
  0xb4   : > { %685 = vmatprep.mubr.bf16.mxu0 %v1597_v3  ;;  %1348 = vmatprep.mubr.msk.bf16.mxu1 %vm284_vm1, %v1444_v31 }
  0xbb   : > { %1233 = vmatmul.mubr.msk.bf16.gmra.mrb[40].mxu0 %vm284_vm1, %v1778_v18  ;;  %1349 = vmatmul.mubr.msk.bf16.gmra.mrb[40].mxu1 %vm284_vm1, %v1778_v18 }
 0x13e   : > { %v365_v34 = vpop.f32.mrb[0].mxu0  ;;  %v395_v35 = vpop.f32.mrb[0].mxu1 }
 0x13f   : > { %v367_v36 = vpop.f32.mrb[1].mxu0  ;;  %v397_v37 = vpop.f32.mrb[1].mxu1 }
 0x140   : > { %v1289_v38 = vpack.c.bf16 %v367_v36, %v365_v34  ;;  %v1325_v39 = vpack.c.bf16 %v397_v37, %v395_v35  ;;  %v369_v40 = vpop.f32.mrb[2].mxu0  ;;  %v399_v41 = vpop.f32.mrb[2].mxu1 }
 0x141   : > { %v371_v42 = vpop.f32.mrb[3].mxu0  ;;  %v401_v43 = vpop.f32.mrb[3].mxu1 }
 0x142   : > { %1033 = vst [vmem:[%s1845_s19] sm:$0xff] %v1289_v38  ;;  %1070 = vst [vmem:[%s1845_s19 + $0x108] sm:$0xff] %v1325_v39  ;;  %v1295_v44 = vpack.c.bf16 %v371_v42, %v369_v40  ;;  %v1331_v45 = vpack.c.bf16 %v401_v43, %v399_v41 }
 0x144   : > { %1040 = vst [vmem:[%s1845_s19 + $0x2c] sm:$0xff] %v1295_v44  ;;  %1076 = vst [vmem:[%s1845_s19 + $0x134] sm:$0xff] %v1331_v45 }
 0x146   : > { %v375_v46 = vpop.f32.mrb[4].mxu0  ;;  %v438_v47 = vpop.f32.mrb[4].mxu1 }
 0x147   : > { %v377_v48 = vpop.f32.mrb[5].mxu0  ;;  %v440_v49 = vpop.f32.mrb[5].mxu1 }
 0x148   : > { %v1301_v50 = vpack.c.bf16 %v377_v48, %v375_v46  ;;  %v1290_v51 = vpack.c.bf16 %v440_v49, %v438_v47  ;;  %v379_v52 = vpop.f32.mrb[6].mxu0  ;;  %v442_v53 = vpop.f32.mrb[6].mxu1 }
 0x149   : > { %v381_v54 = vpop.f32.mrb[7].mxu0  ;;  %v444_v55 = vpop.f32.mrb[7].mxu1 }
 0x14a   : > { %1046 = vst [vmem:[%s1845_s19 + $0x58] sm:$0xff] %v1301_v50  ;;  %1034 = vst [vmem:[%s1845_s19 + $0x8] sm:$0xff] %v1290_v51  ;;  %v1307_v56 = vpack.c.bf16 %v381_v54, %v379_v52  ;;  %v1296_v57 = vpack.c.bf16 %v444_v55, %v442_v53 }
 0x14c   : > { %1052 = vst [vmem:[%s1845_s19 + $0x84] sm:$0xff] %v1307_v56  ;;  %1041 = vst [vmem:[%s1845_s19 + $0x34] sm:$0xff] %v1296_v57 }
 0x14e   : > { %v385_v58 = vpop.f32.mrb[8].mxu0  ;;  %v448_v59 = vpop.f32.mrb[8].mxu1 }
 0x14f   : > { %v387_v60 = vpop.f32.mrb[9].mxu0  ;;  %v450_v61 = vpop.f32.mrb[9].mxu1 }
 0x150   : > { %v1313_v62 = vpack.c.bf16 %v387_v60, %v385_v58  ;;  %v1302_v63 = vpack.c.bf16 %v450_v61, %v448_v59  ;;  %v389_v0 = vpop.f32.mrb[10].mxu0  ;;  %v452_v1 = vpop.f32.mrb[10].mxu1 }
 0x151   : > { %v391_v2 = vpop.f32.mrb[11].mxu0  ;;  %v454_v3 = vpop.f32.mrb[11].mxu1 }
 0x152   : > { %1058 = vst [vmem:[%s1845_s19 + $0xb0] sm:$0xff] %v1313_v62  ;;  %1047 = vst [vmem:[%s1845_s19 + $0x60] sm:$0xff] %v1302_v63  ;;  %v1319_v4 = vpack.c.bf16 %v391_v2, %v389_v0  ;;  %v1308_v5 = vpack.c.bf16 %v454_v3, %v452_v1 }
 0x154   : > { %1064 = vst [vmem:[%s1845_s19 + $0xdc] sm:$0xff] %v1319_v4  ;;  %1053 = vst [vmem:[%s1845_s19 + $0x8c] sm:$0xff] %v1308_v5 }
 0x156   : > { %v458_v6 = vpop.f32.mrb[12].mxu1  ;;  %v511_v7 = vpop.f32.mrb[12].mxu0 }
 0x157   : > { %v460_v8 = vpop.f32.mrb[13].mxu1  ;;  %v513_v9 = vpop.f32.mrb[13].mxu0 }
 0x158   : > { %v1314_v10 = vpack.c.bf16 %v460_v8, %v458_v6  ;;  %v1291_v11 = vpack.c.bf16 %v513_v9, %v511_v7  ;;  %v462_v12 = vpop.f32.mrb[14].mxu1  ;;  %v515_v13 = vpop.f32.mrb[14].mxu0 }
 0x159   : > { %v464_v14 = vpop.f32.mrb[15].mxu1  ;;  %v517_v15 = vpop.f32.mrb[15].mxu0 }
 0x15a   : > { %1059 = vst [vmem:[%s1845_s19 + $0xb8] sm:$0xff] %v1314_v10  ;;  %1035 = vst [vmem:[%s1845_s19 + $0x10] sm:$0xff] %v1291_v11  ;;  %v1320_v16 = vpack.c.bf16 %v464_v14, %v462_v12  ;;  %v1297_v17 = vpack.c.bf16 %v517_v15, %v515_v13 }
 0x15c   : > { %1065 = vst [vmem:[%s1845_s19 + $0xe4] sm:$0xff] %v1320_v16  ;;  %1042 = vst [vmem:[%s1845_s19 + $0x3c] sm:$0xff] %v1297_v17 }
 0x15e   : > { %v468_v18 = vpop.f32.mrb[16].mxu1  ;;  %v521_v19 = vpop.f32.mrb[16].mxu0 }
 0x15f   : > { %v470_v20 = vpop.f32.mrb[17].mxu1  ;;  %v523_v21 = vpop.f32.mrb[17].mxu0 }
 0x160   : > { %v1326_v22 = vpack.c.bf16 %v470_v20, %v468_v18  ;;  %v1303_v23 = vpack.c.bf16 %v523_v21, %v521_v19  ;;  %v472_v24 = vpop.f32.mrb[18].mxu1  ;;  %v525_v25 = vpop.f32.mrb[18].mxu0 }
 0x161   : > { %v474_v26 = vpop.f32.mrb[19].mxu1  ;;  %v527_v27 = vpop.f32.mrb[19].mxu0 }
 0x162   : > { %1071 = vst [vmem:[%s1845_s19 + $0x110] sm:$0xff] %v1326_v22  ;;  %1048 = vst [vmem:[%s1845_s19 + $0x68] sm:$0xff] %v1303_v23  ;;  %v1332_v28 = vpack.c.bf16 %v474_v26, %v472_v24  ;;  %v1309_v29 = vpack.c.bf16 %v527_v27, %v525_v25 }
 0x164   : > { %1077 = vst [vmem:[%s1845_s19 + $0x13c] sm:$0xff] %v1332_v28  ;;  %1054 = vst [vmem:[%s1845_s19 + $0x94] sm:$0xff] %v1309_v29 }
 0x166   : > { %v531_v30 = vpop.f32.mrb[20].mxu0  ;;  %v584_v31 = vpop.f32.mrb[20].mxu1 }
 0x167   : > { %v533_v32 = vpop.f32.mrb[21].mxu0  ;;  %v586_v33 = vpop.f32.mrb[21].mxu1 }
 0x168   : > { %v1315_v34 = vpack.c.bf16 %v533_v32, %v531_v30  ;;  %v1292_v35 = vpack.c.bf16 %v586_v33, %v584_v31  ;;  %v535_v36 = vpop.f32.mrb[22].mxu0  ;;  %v588_v37 = vpop.f32.mrb[22].mxu1 }
 0x169   : > { %v537_v38 = vpop.f32.mrb[23].mxu0  ;;  %v590_v39 = vpop.f32.mrb[23].mxu1 }
 0x16a   : > { %1060 = vst [vmem:[%s1845_s19 + $0xc0] sm:$0xff] %v1315_v34  ;;  %1036 = vst [vmem:[%s1845_s19 + $0x18] sm:$0xff] %v1292_v35  ;;  %v1321_v40 = vpack.c.bf16 %v537_v38, %v535_v36  ;;  %v1298_v41 = vpack.c.bf16 %v590_v39, %v588_v37 }
 0x16c   : > { %1066 = vst [vmem:[%s1845_s19 + $0xec] sm:$0xff] %v1321_v40  ;;  %1043 = vst [vmem:[%s1845_s19 + $0x44] sm:$0xff] %v1298_v41 }
 0x16e   : > { %v541_v42 = vpop.f32.mrb[24].mxu0  ;;  %v594_v43 = vpop.f32.mrb[24].mxu1 }
 0x16f   : > { %v543_v44 = vpop.f32.mrb[25].mxu0  ;;  %v596_v45 = vpop.f32.mrb[25].mxu1 }
 0x170   : > { %v1327_v46 = vpack.c.bf16 %v543_v44, %v541_v42  ;;  %v1304_v47 = vpack.c.bf16 %v596_v45, %v594_v43  ;;  %v545_v48 = vpop.f32.mrb[26].mxu0  ;;  %v598_v49 = vpop.f32.mrb[26].mxu1 }
 0x171   : > { %v547_v50 = vpop.f32.mrb[27].mxu0  ;;  %v600_v51 = vpop.f32.mrb[27].mxu1 }
 0x172   : > { %1072 = vst [vmem:[%s1845_s19 + $0x118] sm:$0xff] %v1327_v46  ;;  %1049 = vst [vmem:[%s1845_s19 + $0x70] sm:$0xff] %v1304_v47  ;;  %v1333_v52 = vpack.c.bf16 %v547_v50, %v545_v48  ;;  %v1310_v53 = vpack.c.bf16 %v600_v51, %v598_v49 }
 0x174   : > { %1078 = vst [vmem:[%s1845_s19 + $0x144] sm:$0xff] %v1333_v52  ;;  %1055 = vst [vmem:[%s1845_s19 + $0x9c] sm:$0xff] %v1310_v53 }
 0x176   : > { %v604_v54 = vpop.f32.mrb[28].mxu1  ;;  %v657_v55 = vpop.f32.mrb[28].mxu0 }
 0x177   : > { %v606_v56 = vpop.f32.mrb[29].mxu1  ;;  %v659_v57 = vpop.f32.mrb[29].mxu0 }
 0x178   : > { %v1316_v58 = vpack.c.bf16 %v606_v56, %v604_v54  ;;  %v1293_v59 = vpack.c.bf16 %v659_v57, %v657_v55  ;;  %v608_v60 = vpop.f32.mrb[30].mxu1  ;;  %v661_v61 = vpop.f32.mrb[30].mxu0 }
 0x179   : > { %v610_v62 = vpop.f32.mrb[31].mxu1  ;;  %v663_v63 = vpop.f32.mrb[31].mxu0 }
 0x17a   : > { %1061 = vst [vmem:[%s1845_s19 + $0xc8] sm:$0xff] %v1316_v58  ;;  %1037 = vst [vmem:[%s1845_s19 + $0x20] sm:$0xff] %v1293_v59  ;;  %v1322_v0 = vpack.c.bf16 %v610_v62, %v608_v60  ;;  %v1299_v1 = vpack.c.bf16 %v663_v63, %v661_v61 }
 0x17c   : > { %1067 = vst [vmem:[%s1845_s19 + $0xf4] sm:$0xff] %v1322_v0  ;;  %1044 = vst [vmem:[%s1845_s19 + $0x4c] sm:$0xff] %v1299_v1 }
 0x17e   : > { %v614_v2 = vpop.f32.mrb[32].mxu1  ;;  %v667_v3 = vpop.f32.mrb[32].mxu0 }
 0x17f   : > { %v616_v4 = vpop.f32.mrb[33].mxu1  ;;  %v669_v5 = vpop.f32.mrb[33].mxu0 }
 0x180   : > { %v1328_v6 = vpack.c.bf16 %v616_v4, %v614_v2  ;;  %v1305_v7 = vpack.c.bf16 %v669_v5, %v667_v3  ;;  %v618_v8 = vpop.f32.mrb[34].mxu1  ;;  %v671_v9 = vpop.f32.mrb[34].mxu0 }
 0x181   : > { %v620_v10 = vpop.f32.mrb[35].mxu1  ;;  %v673_v11 = vpop.f32.mrb[35].mxu0 }
 0x182   : > { %1073 = vst [vmem:[%s1845_s19 + $0x120] sm:$0xff] %v1328_v6  ;;  %1050 = vst [vmem:[%s1845_s19 + $0x78] sm:$0xff] %v1305_v7  ;;  %v1334_v12 = vpack.c.bf16 %v620_v10, %v618_v8  ;;  %v1311_v13 = vpack.c.bf16 %v673_v11, %v671_v9 }
 0x184   : > { %1079 = vst [vmem:[%s1845_s19 + $0x14c] sm:$0xff] %v1334_v12  ;;  %1056 = vst [vmem:[%s1845_s19 + $0xa4] sm:$0xff] %v1311_v13 }
 0x186   : > { %v677_v14 = vpop.f32.mrb[36].mxu0  ;;  %v1346_v15 = vpop.f32.mrb[36].mxu1 }
 0x187   : > { %v1306_v16 = vpack.c.bf16 %v1346_v15, %v1346_v15  ;;  %v679_v17 = vpop.f32.mrb[37].mxu0  ;;  %v730_v18 = vpop.f32.mrb[37].mxu1 }
 0x188   : > { %v1317_v19 = vpack.c.bf16 %v679_v17, %v677_v14  ;;  %v1294_v20 = vpack.c.bf16 %v730_v18, %v730_v18  ;;  %v681_v21 = vpop.f32.mrb[38].mxu0  ;;  %v1347_v22 = vpop.f32.mrb[38].mxu1 }
 0x189   : > { %1051 = vst.msk [vmem:[%s1845_s19 + $0x80] sm:$0xf] %vm1038_vm2, %v1306_v16  ;;  %v1312_v23 = vpack.c.bf16 %v1347_v22, %v1347_v22  ;;  %v683_v24 = vpop.f32.mrb[39].mxu0  ;;  %v733_v25 = vpop.f32.mrb[39].mxu1 }
 0x18a   : > { %1062 = vst [vmem:[%s1845_s19 + $0xd0] sm:$0xff] %v1317_v19  ;;  %1039 = vst.msk [vmem:[%s1845_s19 + $0x28] sm:$0xf] %vm1038_vm2, %v1294_v20  ;;  %v1323_v26 = vpack.c.bf16 %v683_v24, %v681_v21  ;;  %v1300_v27 = vpack.c.bf16 %v733_v25, %v733_v25 }
 0x18b   : > { %1057 = vst.msk [vmem:[%s1845_s19 + $0xac] sm:$0xf] %vm1038_vm2, %v1312_v23 }
 0x18c   : > { %1068 = vst [vmem:[%s1845_s19 + $0xfc] sm:$0xff] %v1323_v26  ;;  %1045 = vst.msk [vmem:[%s1845_s19 + $0x54] sm:$0xf] %vm1038_vm2, %v1300_v27 }
 0x18e   : > { %v687_v28 = vpop.f32.mrb[40].mxu0  ;;  %v1350_v29 = vpop.f32.mrb[40].mxu1 }
 0x18f   : > { %v1330_v30 = vpack.c.bf16 %v1350_v29, %v1350_v29  ;;  %v689_v31 = vpop.f32.mrb[41].mxu0  ;;  %v746_v32 = vpop.f32.mrb[41].mxu1 }
 0x190   : > { %v1329_v33 = vpack.c.bf16 %v689_v31, %v687_v28  ;;  %v1318_v34 = vpack.c.bf16 %v746_v32, %v746_v32  ;;  %v691_v35 = vpop.f32.mrb[42].mxu0  ;;  %v1351_v36 = vpop.f32.mrb[42].mxu1 }
 0x191   : > { %1075 = vst.msk [vmem:[%s1845_s19 + $0x130] sm:$0xf] %vm1038_vm2, %v1330_v30  ;;  %v1336_v37 = vpack.c.bf16 %v1351_v36, %v1351_v36  ;;  %v693_v38 = vpop.f32.mrb[43].mxu0  ;;  %v749_v39 = vpop.f32.mrb[43].mxu1 }
 0x192   : > { %1074 = vst [vmem:[%s1845_s19 + $0x128] sm:$0xff] %v1329_v33  ;;  %1063 = vst.msk [vmem:[%s1845_s19 + $0xd8] sm:$0xf] %vm1038_vm2, %v1318_v34  ;;  %v1335_v40 = vpack.c.bf16 %v693_v38, %v691_v35  ;;  %v1324_v41 = vpack.c.bf16 %v749_v39, %v749_v39 }
 0x193   : > { %1081 = vst.msk [vmem:[%s1845_s19 + $0x15c] sm:$0xf] %vm1038_vm2, %v1336_v37 }
 0x194   : > { %1080 = vst [vmem:[%s1845_s19 + $0x154] sm:$0xff] %v1335_v40  ;;  %1069 = vst.msk [vmem:[%s1845_s19 + $0x104] sm:$0xf] %vm1038_vm2, %v1324_v41 }
 0x195   : > { %1517 = shalt.err (!%p1514_p5)
}
 0x196   : > { %s1518_s23 = scalar_lea.hbm %s1900_s6, 5632  ;;  %s1522_s7 = scalar_lea.hbm %s1961_s2, 11264 }
 0x197   : > { %p1519_p9 = scmp.ne.s32.totalorder %s1900_s6, %s1518_s23  ;;  %p1523_p7 = scmp.lt.u32.totalorder %s1900_s6, %s1961_s2 }
 0x198   : > { %p1524_p3 = scmp.lt.u32.totalorder %s1522_s7, %s1518_s23  ;;  %p1526_p11 = scmp.lt.u32.totalorder %s1518_s23, %s1900_s6 }
 0x199   : > { %p1520_p1 = pnand %p1519_p9, %p1708_p10 }
 0x19a   : > { %p1525_p4 = por %p1524_p3, %p1523_p7 }
 0x19b   : > { %p1521_p2 = pneg %p1520_p1 }
 0x19c   : > { %p1527_p6 = por %p1526_p11, %p1525_p4 }
 0x19e   : > { %p1528_p8 = pnand %p1527_p6, %p1521_p2 }
 0x1a0   : > { %1531 = shalt.err (!%p1528_p8)
}
 0x1a1   : > { %s1599_s17 = smov 704   ;;  %s1600_s19 = smov 44  }
 0x1a2   : > { %1366 = dma.vmem_to_hbm [thread:$0]  (%p1708_p10), %s1902_s30, 5632, %s1900_s6, %s1083_s15, %s1599_s17, %s1599_s17, %s1600_s19  }
 0x1a3 PF: > { %s1114_s21 = sand.u32 1, %s1570_s9   ;;  %p1978_p12 = scmp.ne.s32.totalorder %s1969_s20, 0 }
 0x1a4   : > { %p1979_p13 = scmp.ge.s32.totalorder %s1590_s14, 2  ;;  %s1115_s12 = scalar_lea.sflag [#allocation4], %s1114_s21 }
 0x1a6   : > { %p1377_p0 = pnand %p1979_p13, %p1978_p12 }
 0x1a8   : > { %1565 = dma.done.wait (!%p1377_p0), %s1115_s12, 5632  }
 0x1a9   : > { %1567 = vsyncadd (!%p1377_p0), %s1115_s12, 4294961664  ;;  %s19_s14 = sadd.s32 1, %s1590_s14   ;;  %s1980_s9 = smov %s1574_s10 }
 0x1aa   : > { %p16_p5 = scmp.ge.s32.totalorder %s19_s14, 4   ;;  %s1981_s10 = smov %s1578_s11 }
 0x1ab   : > { %s1982_s11 = smov %s1717_s28  ;;  %s1983_s12 = smov %s1586_s13 }
 0x1ac   : > { %s1984_s13 = smov %s1986_s25  ;;  %18 = sbr.rel (!%p16_p5) target bundleno = 7 (0x7), region = 79 }
 0x1b3   :  { %1120 = vsyncpa [#allocation3], 1 }
 0x1b4   :  { %1122 = vsyncpa [#allocation3 + $0x1], 1 }
 0x1b5   :  { %1123 = vsyncpa [#allocation6], 1 }
 0x1b6   :  { %1125 = vsyncpa [#allocation6 + $0x1], 1 }
 0x1b7   :  { %1126 = vsyncpa [#allocation4], 1 }
 0x1b8   :  { %1128 = vsyncpa [#allocation4 + $0x1], 1 }

// kernel: deeplabv3_forward.7
= control target key start
LH: loop header
LB: loop body
LE: loop exit
PB: predicated region body
PF: predicated region fallthrough
CT: control target
= control target key end

     0   :  { %s15438_s0 = inlined_call_operand.hbm [shape: bf16[2,1640,128], index: 0, kind: input, shape index: {}]   ;;  %s15439_s1 = inlined_call_operand.hbm [shape: bf16[128,128], index: 1, kind: input, shape index: {}]   ;;  %s15440_s2 = inlined_call_operand.hbm [shape: f32[1,128], index: 2, kind: input, shape index: {}]   ;;  %s15441_s3 = inlined_call_operand.hbm [shape: f32[1,128], index: 3, kind: input, shape index: {}]   ;;  %s15442_s4 = inlined_call_operand.hbm [shape: bf16[3,9,128,128], index: 4, kind: input, shape index: {}]   ;;  %s15443_s5 = inlined_call_operand.hbm [shape: f32[3,128], index: 5, kind: input, shape index: {}]   ;;  %s15444_s6 = inlined_call_operand.hbm [shape: f32[3,128], index: 6, kind: input, shape index: {}]   ;;  %s15445_s7 = inlined_call_operand.hbm [shape: bf16[128,128], index: 7, kind: input, shape index: {}]   ;;  %s15446_s8 = inlined_call_operand.hbm [shape: f32[1,128], index: 8, kind: input, shape index: {}]   ;;  %s15447_s9 = inlined_call_operand.hbm [shape: f32[1,128], index: 9, kind: input, shape index: {}]   ;;  %s15448_s10 = inlined_call_operand.hbm [shape: bf16[128,128], index: 10, kind: input, shape index: {}]   ;;  %s15449_s11 = inlined_call_operand.hbm [shape: bf16[2,160,512], index: 11, kind: output, shape index: {0}]   ;;  %s15450_s12 = inlined_call_operand.hbm [shape: f32[2,1,128], index: 12, kind: output, shape index: {1}]  }
   0x1   :  { %15462 = sst [smem:[#allocation32_spill]] %s15438_s0 }
   0x2   :  { %15463 = sst [smem:[#allocation33_spill]] %s15439_s1 }
   0x3   :  { %15464 = sst [smem:[#allocation34_spill]] %s15440_s2 }
   0x4   :  { %15465 = sst [smem:[#allocation35_spill]] %s15441_s3 }
   0x5   :  { %15466 = sst [smem:[#allocation36_spill]] %s15442_s4 }
   0x6   :  { %15467 = sst [smem:[#allocation37_spill]] %s15443_s5 }
   0x7   :  { %15468 = sst [smem:[#allocation38_spill]] %s15449_s11 }
   0x8   :  { %15469 = sst [smem:[#allocation39_spill]] %s15450_s12 }
   0x9   :  { %18 = vsyncpa [#allocation3], 0 }
   0xa   :  { %20 = vsyncpa [#allocation3 + $0x1], 0 }
   0xb   :  { %21 = vsyncpa [#allocation6], 0 }
   0xc   :  { %22 = vsyncpa [#allocation9], 0 }
   0xd   :  { %23 = vsyncpa [#allocation12], 0 }
   0xe   :  { %24 = vsyncpa [#allocation15], 0 }
   0xf   :  { %25 = vsyncpa [#allocation18], 0 }
  0x10   :  { %26 = vsyncpa [#allocation4], 0 }
  0x11   :  { %28 = vsyncpa [#allocation4 + $0x1], 0 }
  0x12   :  { %29 = vsyncpa [#allocation22], 0 }
  0x13   :  { %31 = vsyncpa [#allocation22 + $0x1], 0  ;;  %s13668_s21 = smov 0   ;;  %s13670_s22 = smov 0  }
  0x14   :  { %s13672_s23 = smov 0   ;;  %s13674_s24 = smov 0  }
  0x15 LB: > { %s13584_s25 = smov [#allocation5]   ;;  %s13689_s27 = sadd.s32 4294967295, %s13582_s24   ;;  %s13582_s24 = sphi %s13674_s24, %s15507_s24   ;;  %s13578_s23 = sphi %s13672_s23, %s15506_s23   ;;  %s13574_s22 = sphi %s13670_s22, %s15505_s22   ;;  %s13570_s21 = sphi %s13668_s21, %s15504_s21  }
  0x16   : > { %s342_s26 = sshll.u32 %s13584_s25, 4  ;;  %p9677_p0 = scmp.ge.s32.totalorder %s13582_s24, 1  ;;  %s13694_s26 = int_to_ptr.vmem [resolvable:$true] %s342_s26 }
  0x17   : > { %p15457_p1 = scmp.eq.s32.totalorder %s13689_s27, 0  ;;  %p330_p2 = scmp.lt.s32.totalorder %s13582_s24, 3 }
  0x18   : > { %s13585_s29 = smov [#allocation8]   ;;  %s13586_s14 = smov [#allocation11]  }
  0x19   : > { %p13696_p3 = pnand %p9677_p0, %p330_p2  ;;  %s367_s30 = sshll.u32 %s13585_s29, 4  ;;  %s13709_s30 = int_to_ptr.vmem [resolvable:$true] %s367_s30 }
  0x1a   : > { %s391_s15 = sshll.u32 %s13586_s14, 4  ;;  %s15473_s1 = sld [smem:[#allocation33_spill]]  ;;  %s13711_s15 = int_to_ptr.vmem [resolvable:$true] %s391_s15 }
  0x1b   : > { %s15470_s28 = scalar_select %p13696_p3, 1, 0 }
  0x1c   : > { %p12507_p5 = pneg %p13696_p3 }
  0x1d   : > { %15471 = sst [smem:[#allocation31_spill]] %s15470_s28 }
  0x1e   : > { %p13705_p6 = pnand %p12507_p5, %p15457_p1 }
  0x20   : > { %s13154_s18 = scalar_lea.hbm %s15473_s1, 1024  ;;  %p13721_p8 = pneg %p13705_p6 }
  0x21   : > { %p13155_p7 = scmp.ne.s32.totalorder %s15473_s1, %s13154_s18  ;;  %p13161_p11 = scmp.lt.u32.totalorder %s13154_s18, %s15473_s1 }
  0x23   : > { %p13157_p9 = pnand %p13721_p8, %p13155_p7 }
  0x25   : > { %p13158_p10 = pneg %p13157_p9 }
  0x27   : > { %p13163_p12 = pnand %p13161_p11, %p13158_p10 }
  0x29   : > { %13166 = shalt.err (!%p13163_p12)
}
  0x2a   : > { %s13167_s16 = scalar_lea.vmem %s13694_s26, 1024  ;;  %p13175_p5 = scmp.lt.s32.totalorder %s13694_s26, %s13694_s26 }
  0x2b   : > { %p13168_p13 = scmp.ne.s32.totalorder %s13694_s26, %s13167_s16  ;;  %p13176_p4 = scmp.lt.s32.totalorder %s13167_s16, %s13167_s16 }
  0x2d   : > { %p13170_p0 = pnand %p13168_p13, %p13721_p8  ;;  %p13177_p7 = por %p13176_p4, %p13175_p5 }
  0x2f   : > { %p13171_p2 = pneg %p13170_p0 }
  0x31   : > { %p13178_p9 = pnand %p13177_p7, %p13171_p2 }
  0x33   : > { %13181 = shalt.err (!%p13178_p9)
}
  0x34   : > { %s15455_s17 = smov 64   ;;  %s15459_s18 = smov 4  }
  0x35   : > { %12510 = dma.hbm_to_vmem [thread:$0]  (!%p13705_p6), %s15473_s1, 1024, %s13694_s26, [#allocation6], %s15455_s17, %s15455_s17, %s15459_s18  }
  0x36   : > { %s15475_s3 = sld [smem:[#allocation35_spill]] }
  0x3c   : > { %s13182_s16 = scalar_lea.hbm %s15475_s3, 16 }
  0x3d   : > { %p13183_p4 = scmp.ne.s32.totalorder %s15475_s3, %s13182_s16  ;;  %p13189_p12 = scmp.lt.u32.totalorder %s13182_s16, %s15475_s3 }
  0x3f   : > { %p13185_p10 = pnand %p13183_p4, %p13721_p8 }
  0x41   : > { %p13186_p11 = pneg %p13185_p10 }
  0x43   : > { %p13191_p13 = pnand %p13189_p12, %p13186_p11 }
  0x45   : > { %13194 = shalt.err (!%p13191_p13)
}
  0x46   : > { %s13195_s26 = scalar_lea.vmem %s13709_s30, 16  ;;  %s13202_s11 = scalar_lea.vmem %s13709_s30, 32 }
  0x47   : > { %p13196_p0 = scmp.ne.s32.totalorder %s13709_s30, %s13195_s26  ;;  %p13203_p7 = scmp.lt.s32.totalorder %s13709_s30, %s13709_s30 }
  0x48   : > { %p13204_p9 = scmp.lt.s32.totalorder %s13202_s11, %s13195_s26 }
  0x49   : > { %p13198_p2 = pnand %p13196_p0, %p13721_p8 }
  0x4a   : > { %p13205_p4 = por %p13204_p9, %p13203_p7 }
  0x4b   : > { %p13199_p5 = pneg %p13198_p2 }
  0x4d   : > { %p13206_p10 = pnand %p13205_p4, %p13199_p5 }
  0x4f   : > { %13209 = shalt.err (!%p13206_p10)
}
  0x50   : > { %12516 = dma.hbm_to_vmem [thread:$0]  (!%p13705_p6), %s15475_s3, 16, %s13709_s30, [#allocation9]  }
  0x51   : > { %s15476_s5 = sld [smem:[#allocation37_spill]] }
  0x57   : > { %s13210_s20 = scalar_lea.hbm %s15476_s5, 64 }
  0x58   : > { %p13211_p11 = scmp.ne.s32.totalorder %s15476_s5, %s13210_s20  ;;  %p13217_p0 = scmp.lt.u32.totalorder %s13210_s20, %s15476_s5 }
  0x5a   : > { %p13213_p12 = pnand %p13211_p11, %p13721_p8 }
  0x5c   : > { %p13214_p13 = pneg %p13213_p12 }
  0x5e   : > { %p13219_p2 = pnand %p13217_p0, %p13214_p13 }
  0x60   : > { %13222 = shalt.err (!%p13219_p2)
}
  0x61   : > { %s13223_s30 = scalar_lea.vmem %s13711_s15, 64  ;;  %p13231_p4 = scmp.lt.s32.totalorder %s13711_s15, %s13711_s15 }
  0x62   : > { %p13224_p5 = scmp.ne.s32.totalorder %s13711_s15, %s13223_s30  ;;  %p13232_p10 = scmp.lt.s32.totalorder %s13223_s30, %s13223_s30 }
  0x64   : > { %p13226_p7 = pnand %p13224_p5, %p13721_p8  ;;  %p13233_p11 = por %p13232_p10, %p13231_p4 }
  0x66   : > { %p13227_p9 = pneg %p13226_p7 }
  0x68   : > { %p13234_p12 = pnand %p13233_p11, %p13227_p9 }
  0x6a   : > { %13237 = shalt.err (!%p13234_p12)
}
  0x6b   : > { %12522 = dma.hbm_to_vmem [thread:$0]  (!%p13705_p6), %s15476_s5, 64, %s13711_s15, [#allocation12]  }
  0x6c   : > { %s13589_s12 = smov [#allocation14]   ;;  %s13590_s19 = smov [#allocation17]  }
  0x6d   : > { %s412_s28 = sshll.u32 %s13589_s12, 4  ;;  %s437_s20 = sshll.u32 %s13590_s19, 4  ;;  %s413_s28 = int_to_ptr.vmem [resolvable:$true] %s412_s28  ;;  %s438_s20 = int_to_ptr.vmem [resolvable:$true] %s437_s20 }
  0x6e   : > { %s13238_s16 = scalar_lea.hbm %s15445_s7, 1024 }
  0x6f   : > { %p13239_p13 = scmp.ne.s32.totalorder %s15445_s7, %s13238_s16  ;;  %p13245_p5 = scmp.lt.u32.totalorder %s13238_s16, %s15445_s7 }
  0x71   : > { %p13241_p0 = pnand %p13239_p13, %p13721_p8 }
  0x73   : > { %p13242_p2 = pneg %p13241_p0 }
  0x75   : > { %p13247_p7 = pnand %p13245_p5, %p13242_p2 }
  0x77   : > { %13250 = shalt.err (!%p13247_p7)
}
  0x78   : > { %s13251_s15 = scalar_lea.vmem %s413_s28, 1024  ;;  %p13259_p11 = scmp.lt.s32.totalorder %s413_s28, %s413_s28 }
  0x79   : > { %p13252_p9 = scmp.ne.s32.totalorder %s413_s28, %s13251_s15  ;;  %p13260_p12 = scmp.lt.s32.totalorder %s13251_s15, %s13251_s15 }
  0x7b   : > { %p13254_p4 = pnand %p13252_p9, %p13721_p8  ;;  %p13261_p1 = por %p13260_p12, %p13259_p11 }
  0x7d   : > { %p13255_p10 = pneg %p13254_p4 }
  0x7f   : > { %p13262_p3 = pnand %p13261_p1, %p13255_p10 }
  0x81   : > { %13265 = shalt.err (!%p13262_p3)
}
  0x82   : > { %s15477_s0 = smov 64   ;;  %s13266_s14 = scalar_lea.hbm %s15447_s9, 16 }
  0x83   : > { %12528 = dma.hbm_to_vmem [thread:$0]  (!%p13705_p6), %s15445_s7, 1024, %s413_s28, [#allocation15], %s15477_s0, %s15477_s0, %s15459_s18  }
  0x84   : > { %p13267_p1 = scmp.ne.s32.totalorder %s15447_s9, %s13266_s14  ;;  %p13273_p0 = scmp.lt.u32.totalorder %s13266_s14, %s15447_s9 }
  0x86   : > { %p13269_p3 = pnand %p13267_p1, %p13721_p8 }
  0x88   : > { %p13270_p13 = pneg %p13269_p3 }
  0x8a   : > { %p13275_p2 = pnand %p13273_p0, %p13270_p13 }
  0x8c   : > { %13278 = shalt.err (!%p13275_p2)
}
  0x8d   : > { %s13279_s15 = scalar_lea.vmem %s438_s20, 16  ;;  %s13286_s28 = scalar_lea.vmem %s438_s20, 32 }
  0x8e   : > { %p13280_p5 = scmp.ne.s32.totalorder %s438_s20, %s13279_s15  ;;  %p13287_p4 = scmp.lt.s32.totalorder %s438_s20, %s438_s20 }
  0x8f   : > { %p13288_p10 = scmp.lt.s32.totalorder %s13286_s28, %s13279_s15 }
  0x90   : > { %p13282_p7 = pnand %p13280_p5, %p13721_p8 }
  0x91   : > { %p13289_p11 = por %p13288_p10, %p13287_p4 }
  0x92   : > { %p13283_p9 = pneg %p13282_p7 }
  0x94   : > { %p13290_p12 = pnand %p13289_p11, %p13283_p9 }
  0x96   : > { %13293 = shalt.err (!%p13290_p12)
}
  0x97   : > { %12534 = dma.hbm_to_vmem [thread:$0]  (!%p13705_p6), %s15447_s9, 16, %s438_s20, [#allocation18]  }
  0x98   : > { %s13591_s19 = smov [#allocation7]   ;;  %s13592_s14 = smov [#allocation10]  }
  0x99   : > { %s356_s29 = sshll.u32 %s13591_s19, 4  ;;  %s377_s16 = sshll.u32 %s13592_s14, 4  ;;  %s357_s29 = int_to_ptr.vmem [resolvable:$true] %s356_s29  ;;  %s378_s16 = int_to_ptr.vmem [resolvable:$true] %s377_s16 }
  0x9a   : > { %s15478_s2 = sld [smem:[#allocation34_spill]] }
  0xa0   : > { %s13294_s11 = scalar_lea.hbm %s15478_s2, 16 }
  0xa1   : > { %p13295_p1 = scmp.ne.s32.totalorder %s15478_s2, %s13294_s11  ;;  %p13301_p0 = scmp.lt.u32.totalorder %s13294_s11, %s15478_s2 }
  0xa3   : > { %p13297_p3 = pnand %p13295_p1, %p13721_p8 }
  0xa5   : > { %p13298_p13 = pneg %p13297_p3 }
  0xa7   : > { %p13303_p2 = pnand %p13301_p0, %p13298_p13 }
  0xa9   : > { %13306 = shalt.err (!%p13303_p2)
}
  0xaa   : > { %s13307_s20 = scalar_lea.vmem %s357_s29, 16  ;;  %s13314_s12 = scalar_lea.vmem %s357_s29, 32 }
  0xab   : > { %p13308_p5 = scmp.ne.s32.totalorder %s357_s29, %s13307_s20  ;;  %p13315_p4 = scmp.lt.s32.totalorder %s357_s29, %s357_s29 }
  0xac   : > { %p13316_p10 = scmp.lt.s32.totalorder %s13314_s12, %s13307_s20 }
  0xad   : > { %p13310_p7 = pnand %p13308_p5, %p13721_p8 }
  0xae   : > { %p13317_p11 = por %p13316_p10, %p13315_p4 }
  0xaf   : > { %p13311_p9 = pneg %p13310_p7 }
  0xb1   : > { %p13318_p12 = pnand %p13317_p11, %p13311_p9 }
  0xb3   : > { %13321 = shalt.err (!%p13318_p12)
}
  0xb4   : > { %12513 = dma.hbm_to_vmem [thread:$0]  (!%p13705_p6), %s15478_s2, 16, %s357_s29, [#allocation6]  }
  0xb5   : > { %s15479_s4 = sld [smem:[#allocation36_spill]] }
  0xbb   : > { %s13322_s30 = scalar_lea.hbm %s15479_s4, 27648 }
  0xbc   : > { %p13323_p1 = scmp.ne.s32.totalorder %s15479_s4, %s13322_s30  ;;  %p13329_p0 = scmp.lt.u32.totalorder %s13322_s30, %s15479_s4 }
  0xbe   : > { %p13325_p3 = pnand %p13323_p1, %p13721_p8 }
  0xc0   : > { %p13326_p13 = pneg %p13325_p3 }
  0xc2   : > { %p13331_p2 = pnand %p13329_p0, %p13326_p13 }
  0xc4   : > { %13334 = shalt.err (!%p13331_p2)
}
  0xc5   : > { %s13335_s20 = scalar_lea.vmem %s378_s16, 27648  ;;  %p13343_p4 = scmp.lt.s32.totalorder %s378_s16, %s378_s16 }
  0xc6   : > { %p13336_p5 = scmp.ne.s32.totalorder %s378_s16, %s13335_s20  ;;  %p13344_p10 = scmp.lt.s32.totalorder %s13335_s20, %s13335_s20 }
  0xc8   : > { %p13338_p7 = pnand %p13336_p5, %p13721_p8  ;;  %p13345_p11 = por %p13344_p10, %p13343_p4 }
  0xca   : > { %p13339_p9 = pneg %p13338_p7 }
  0xcc   : > { %p13346_p12 = pnand %p13345_p11, %p13339_p9 }
  0xce   : > { %13349 = shalt.err (!%p13346_p12)
}
  0xcf   : > { %s15480_s29 = smov 4   ;;  %s13593_s14 = smov [#allocation13]  }
  0xd0   : > { %12519 = dma.hbm_to_vmem [thread:$0]  (!%p13705_p6), %s15479_s4, 27648, %s378_s16, [#allocation9], %s15477_s0, %s15477_s0, %s15480_s29  }
  0xd1   : > { %s402_s18 = sshll.u32 %s13593_s14, 4  ;;  %s13594_s26 = smov [#allocation16]   ;;  %s403_s18 = int_to_ptr.vmem [resolvable:$true] %s402_s18 }
  0xd2   : > { %s426_s30 = sshll.u32 %s13594_s26, 4  ;;  %s13350_s28 = scalar_lea.hbm %s15444_s6, 64  ;;  %s427_s30 = int_to_ptr.vmem [resolvable:$true] %s426_s30 }
  0xd3   : > { %p13351_p1 = scmp.ne.s32.totalorder %s15444_s6, %s13350_s28  ;;  %p13357_p0 = scmp.lt.u32.totalorder %s13350_s28, %s15444_s6 }
  0xd5   : > { %p13353_p3 = pnand %p13351_p1, %p13721_p8 }
  0xd7   : > { %p13354_p13 = pneg %p13353_p3 }
  0xd9   : > { %p13359_p2 = pnand %p13357_p0, %p13354_p13 }
  0xdb   : > { %13362 = shalt.err (!%p13359_p2)
}
  0xdc   : > { %s13363_s16 = scalar_lea.vmem %s403_s18, 64  ;;  %p13371_p4 = scmp.lt.s32.totalorder %s403_s18, %s403_s18 }
  0xdd   : > { %p13364_p5 = scmp.ne.s32.totalorder %s403_s18, %s13363_s16  ;;  %p13372_p10 = scmp.lt.s32.totalorder %s13363_s16, %s13363_s16 }
  0xdf   : > { %p13366_p7 = pnand %p13364_p5, %p13721_p8  ;;  %p13373_p11 = por %p13372_p10, %p13371_p4 }
  0xe1   : > { %p13367_p9 = pneg %p13366_p7 }
  0xe3   : > { %p13374_p12 = pnand %p13373_p11, %p13367_p9 }
  0xe5   : > { %13377 = shalt.err (!%p13374_p12)
}
  0xe6   : > { %12525 = dma.hbm_to_vmem [thread:$0]  (!%p13705_p6), %s15444_s6, 64, %s403_s18, [#allocation12]  }
  0xe7   : > { %s13378_s11 = scalar_lea.hbm %s15446_s8, 16 }
  0xe8   : > { %p13379_p1 = scmp.ne.s32.totalorder %s15446_s8, %s13378_s11  ;;  %p13385_p0 = scmp.lt.u32.totalorder %s13378_s11, %s15446_s8 }
  0xea   : > { %p13381_p3 = pnand %p13379_p1, %p13721_p8 }
  0xec   : > { %p13382_p13 = pneg %p13381_p3 }
  0xee   : > { %p13387_p2 = pnand %p13385_p0, %p13382_p13 }
  0xf0   : > { %13390 = shalt.err (!%p13387_p2)
}
  0xf1   : > { %s13391_s12 = scalar_lea.vmem %s427_s30, 16  ;;  %s13398_s18 = scalar_lea.vmem %s427_s30, 32 }
  0xf2   : > { %p13392_p5 = scmp.ne.s32.totalorder %s427_s30, %s13391_s12  ;;  %p13399_p4 = scmp.lt.s32.totalorder %s427_s30, %s427_s30 }
  0xf3   : > { %p13400_p10 = scmp.lt.s32.totalorder %s13398_s18, %s13391_s12 }
  0xf4   : > { %p13394_p7 = pnand %p13392_p5, %p13721_p8 }
  0xf5   : > { %p13401_p11 = por %p13400_p10, %p13399_p4 }
  0xf6   : > { %p13395_p9 = pneg %p13394_p7 }
  0xf8   : > { %p13402_p12 = pnand %p13401_p11, %p13395_p9 }
  0xfa   : > { %13405 = shalt.err (!%p13402_p12)
}
  0xfb   : > { %12531 = dma.hbm_to_vmem [thread:$0]  (!%p13705_p6), %s15446_s8, 16, %s427_s30, [#allocation15]  }
  0xfc   : > { %s13595_s14 = smov [#allocation19]   ;;  %s13406_s15 = scalar_lea.hbm %s15448_s10, 1024 }
  0xfd   : > { %s447_s1 = sshll.u32 %s13595_s14, 4  ;;  %p13407_p1 = scmp.ne.s32.totalorder %s15448_s10, %s13406_s15  ;;  %s448_s1 = int_to_ptr.vmem [resolvable:$true] %s447_s1 }
  0xfe   : > { %p13413_p0 = scmp.lt.u32.totalorder %s13406_s15, %s15448_s10 }
  0xff   : > { %p13409_p3 = pnand %p13407_p1, %p13721_p8 }
 0x101   : > { %p13410_p13 = pneg %p13409_p3 }
 0x103   : > { %p13415_p2 = pnand %p13413_p0, %p13410_p13 }
 0x105   : > { %13418 = shalt.err (!%p13415_p2)
}
 0x106   : > { %s13419_s30 = scalar_lea.vmem %s448_s1, 1024  ;;  %p13427_p4 = scmp.lt.s32.totalorder %s448_s1, %s448_s1 }
 0x107   : > { %p13420_p5 = scmp.ne.s32.totalorder %s448_s1, %s13419_s30  ;;  %p13428_p10 = scmp.lt.s32.totalorder %s13419_s30, %s13419_s30 }
 0x109   : > { %p13422_p7 = pnand %p13420_p5, %p13721_p8  ;;  %p13429_p11 = por %p13428_p10, %p13427_p4 }
 0x10b   : > { %p13423_p9 = pneg %p13422_p7 }
 0x10d   : > { %p13430_p12 = pnand %p13429_p11, %p13423_p9 }
 0x10f   : > { %13433 = shalt.err (!%p13430_p12)
}
 0x110   : > { %12537 = dma.hbm_to_vmem [thread:$0]  (!%p13705_p6), %s15448_s10, 1024, %s448_s1, [#allocation18], %s15477_s0, %s15477_s0, %s15480_s29  }
 0x111   : > { %s9676_s13 = sadd.s32 4294967294, %s13582_s24   ;;  %s13929_s25 = sadd.s32 1, %s13582_s24  }
 0x112   : > { %s41_s19 = ssub.s32 %s13582_s24, %s13929_s25  ;;  %s44_s14 = sadd.s32 1, %s13578_s23 }
 0x113   : > { %p42_p8 = scmp.eq.s32.totalorder %s41_s19, 0  ;;  %p51_p1 = scmp.ne.s32.totalorder %s13578_s23, %s13574_s22 }
 0x114   : > { %p52_p3 = scmp.eq.s32.totalorder %s13582_s24, 0  ;;  %p57_p13 = scmp.ne.s32.totalorder %s13574_s22, %s13570_s21 }
 0x115   : > { %s13940_s26 = scalar_select %p42_p8, %s13578_s23, %s44_s14  }
 0x116   : > { %p53_p0 = por %p52_p3, %p51_p1  ;;  %p15481_p2 = scmp.eq.s32.totalorder %s13689_s27, 0 }
 0x117   : > { %p291_p6 = scmp.eq.s32.totalorder %s13689_s27, 1  ;;  %p297_p7 = scmp.eq.s32.totalorder %s9676_s13, 1 }
 0x118   : > { %p13944_p5 = por %p15481_p2, %p57_p13  ;;  %p12559_p9 = scmp.lt.s32.totalorder %s13582_s24, 2 }
 0x119   : > { %s461_s1 = sand.u32 1, %s13578_s23   ;;  %p13951_p4 = por %p291_p6, %p51_p1 }
 0x11a   : > { %p13955_p10 = por %p297_p7, %p57_p13  ;;  %s12456_s17 = smul.u32 820, %s461_s1 }
 0x11b   : > { %s15483_s15 = scalar_select %p13951_p4, 1, 0 }
 0x11c   : > { %s15484_s28 = scalar_select %p13955_p10, 1, 0 }
 0x11d   : > { %s12457_s20 = smul.u32 13120, %s13582_s24  ;;  %p13960_p11 = pnand %p12559_p9, %p53_p0 }
 0x11e   : > { %s15486_s16 = sld [smem:[#allocation32_spill]]  ;;  %s465_s19 = scalar_lea.vmem [#allocation2], %s12456_s17 }
 0x11f   : > { %s472_s14 = sshll.u32 %s465_s19, 4  ;;  %s13971_s2 = scalar_lea.sflag [#allocation3], %s461_s1  ;;  %s13969_s14 = int_to_ptr.vmem [resolvable:$true] %s472_s14 }
 0x120   : > { %p13436_p8 = pneg %p13960_p11 }
 0x124   : > { %s13967_s13 = scalar_lea.hbm %s15486_s16, %s12457_s20  ;;  %s13439_s18 = scalar_lea.hbm %s15486_s16, 26240 }
 0x125   : > { %s13434_s3 = scalar_lea.hbm %s13967_s13, 13120  ;;  %p13440_p13 = scmp.lt.u32.totalorder %s13967_s13, %s15486_s16 }
 0x126   : > { %p13435_p12 = scmp.ne.s32.totalorder %s13967_s13, %s13434_s3  ;;  %p13441_p0 = scmp.lt.u32.totalorder %s13439_s18, %s13434_s3 }
 0x127   : > { %p13443_p6 = scmp.lt.u32.totalorder %s13434_s3, %s13967_s13 }
 0x128   : > { %p13437_p1 = pnand %p13436_p8, %p13435_p12  ;;  %p13442_p2 = por %p13441_p0, %p13440_p13 }
 0x12a   : > { %p13438_p3 = pneg %p13437_p1  ;;  %p13444_p7 = por %p13443_p6, %p13442_p2 }
 0x12c   : > { %p13445_p9 = pnand %p13444_p7, %p13438_p3 }
 0x12e   : > { %13448 = shalt.err (!%p13445_p9)
}
 0x12f   : > { %s13449_s1 = scalar_lea.vmem %s13969_s14, 13120  ;;  %s13596_s17 = smov [#allocation2]  }
 0x130   : > { %p13450_p12 = scmp.ne.s32.totalorder %s13969_s14, %s13449_s1  ;;  %s13454_s19 = sshll.u32 %s13596_s17, 4  ;;  %s13455_s19 = int_to_ptr.vmem [resolvable:$false] %s13454_s19 }
 0x131   : > { %s13456_s4 = scalar_lea.vmem %s13455_s19, 26240  ;;  %p13457_p4 = scmp.lt.s32.totalorder %s13969_s14, %s13455_s19 }
 0x132   : > { %p13452_p1 = pnand %p13450_p12, %p13436_p8  ;;  %p13458_p13 = scmp.lt.s32.totalorder %s13456_s4, %s13449_s1 }
 0x134   : > { %p13453_p10 = pneg %p13452_p1  ;;  %p13459_p0 = por %p13458_p13, %p13457_p4 }
 0x136   : > { %p13460_p2 = pnand %p13459_p0, %p13453_p10 }
 0x138   : > { %13463 = shalt.err (!%p13460_p2)
}
 0x139   : > { %12541 = dma.hbm_to_vmem [thread:$0]  (!%p13960_p11), %s13967_s13, 13120, %s13969_s14, %s13971_s2, %s15477_s0, %s15477_s0, %s15480_s29  }
 0x13a   : > { %s15487_s3 = sld [smem:[#allocation31_spill]] }
 0x140   : > { %p15488_p8 = scmp.ne.s32.totalorder %s15487_s3, 0 }
 0x141   : > { %s14005_s5 = sand.u32 (!%p15488_p8), 1, %s13574_s22  }
 0x142   : > { %484 = sbr.rel (%p15488_p8) target bundleno = 1391 (0x56f), region = 64  ;;  %s487_s30 = scalar_lea.sflag (!%p15488_p8), [#allocation3], %s14005_s5 }
 0x143   : > { %s12458_s20 = smul.u32 (!%p15488_p8), 820, %s14005_s5 }
 0x145   : > { %s14009_s18 = scalar_lea.vmem (!%p15488_p8), [#allocation2], %s12458_s20 }
 0x149   : > { %13537 = dma.done.wait (%p13944_p5), %s487_s30, 13120  }
 0x14a   : > { %13539 = vsyncadd (%p13944_p5), %s487_s30, 4294954176  ;;  %p15489_p4 = scmp.eq.s32.totalorder %s13689_s27, 0 }
 0x14c   : > { %13541 = dma.done.wait (%p15489_p4), [#allocation6], 1040   ;;  %p15490_p10 = pmov %p15489_p4 }
 0x14d   : > { %p15491_p11 = pmov %p15489_p4 }
 0x14e   : > { %13543 = vsyncadd (%p15490_p10), [#allocation6], 4294966256 }
 0x14f   : > { %13545 = dma.done.wait (%p15491_p11), [#allocation9], 27664   ;;  %p15492_p3 = pmov %p15489_p4 }
 0x151   : > { %13547 = vsyncadd (%p15492_p3), [#allocation9], 4294939632  ;;  %p15493_p6 = pmov %p15492_p3 }
 0x152   : > { %p15494_p7 = pmov %p15492_p3 }
 0x153   : > { %13549 = dma.done.wait (%p15493_p6), [#allocation12], 128  }
 0x154   : > { %13551 = vsyncadd (%p15494_p7), [#allocation12], 4294967168  ;;  %p15495_p5 = pmov %p15492_p3 }
 0x155   : > { %p15496_p9 = pmov %p15492_p3 }
 0x156   : > { %13553 = dma.done.wait (%p15495_p5), [#allocation15], 1040  }
 0x157   : > { %13555 = vsyncadd (%p15496_p9), [#allocation15], 4294966256  ;;  %p15497_p12 = pmov %p15492_p3 }
 0x158   : > { %p15498_p1 = pmov %p15492_p3 }
 0x159   : > { %13557 = dma.done.wait (%p15497_p12), [#allocation18], 1040  }
 0x15a   : > { %13559 = vsyncadd (%p15498_p1), [#allocation18], 4294966256  ;;  %v12619_v0 = vld [vmem:[#allocation5] sm:$0xff]   ;;  %v12621_v2 = vld [vmem:[#allocation5 + $0x8] sm:$0xff]   ;;  %vm666_vm0 = vcmask 1046528   ;;  %vm1075_vm1 = vcmask 1045504  }
 0x15b   : > { %v12620_v1 = vld [vmem:[#allocation10 + $0xc0] sm:$0xff]   ;;  %10912 = vmatprep.subr.bf16.mxu1 %v12619_v0  ;;  %v12622_v3 = vld [vmem:[#allocation10 + $0xc8] sm:$0xff]   ;;  %v12624_v5 = vld [vmem:[#allocation10 + $0xd0] sm:$0xff]   ;;  %vm13598_vm2 = vmmov 0   ;;  %s12459_s2 = smul.u32 320, %s14005_s5  ;;  %vm4242_vm3 = vcmask 1044480  }
 0x15c   : > { %11096 = vmatprep.subr.bf16.mxu0 %v12620_v1  ;;  %10913 = vmatpush3.bf16.msra.mxu1 %v12619_v0  ;;  %v12623_v4 = vld [vmem:[#allocation5 + $0x10] sm:$0xff]   ;;  %v12625_v6 = vld [vmem:[#allocation5 + $0x18] sm:$0xff]   ;;  %v12627_v8 = vld [vmem:[#allocation5 + $0x20] sm:$0xff]   ;;  %s574_s29 = scalar_lea.vmem [#allocation21], %s14005_s5  ;;  %s10307_s12 = sshll.u32 %s13689_s27, 4 }
 0x15d   : > { %11097 = vmatpush3.bf16.msra.mxu0 %v12620_v1  ;;  %10914 = vmatprep.subr.bf16.mxu1 %v12621_v2  ;;  %v12626_v7 = vld [vmem:[#allocation10 + $0xd8] sm:$0xff]   ;;  %v12628_v9 = vld [vmem:[#allocation10 + $0xe0] sm:$0xff]   ;;  %v12630_v11 = vld [vmem:[#allocation10 + $0xe8] sm:$0xff]   ;;  %s14464_s0 = scalar_lea.vmem [#allocation20], %s12459_s2  ;;  %s9483_s11 = sshll.u32 %s574_s29, 4  ;;  %s15285_s11 = int_to_ptr.vmem [resolvable:$true] %s9483_s11 }
 0x15e   : > { %11098 = vmatprep.subr.bf16.mxu0 %v12622_v3  ;;  %v12629_v10 = vld [vmem:[#allocation5 + $0x28] sm:$0xff]   ;;  %v12631_v18 = vld [vmem:[#allocation5 + $0x30] sm:$0xff]   ;;  %v12633_v40 = vld [vmem:[#allocation5 + $0x38] sm:$0xff]   ;;  %s15499_s1 = sld [smem:[#allocation39_spill]]  ;;  %s9455_s19 = scalar_lea.sflag [#allocation22], %s14005_s5 }
 0x15f   : > { %v576_v12 = vld [vmem:[%s14009_s18 + $0x170] sm:$0xe]  ;;  %v577_v13 = vld [vmem:[%s14009_s18 + $0x174] sm:$0xf]  ;;  %v14038_v14 = vld [vmem:[%s14009_s18 + $0x178] sm:$0xff]   ;;  %s13464_s4 = scalar_lea.vmem %s15285_s11, 16 }
 0x160   : > { %10915 = vmatpush3.bf16.msra.mxu1 %v12621_v2  ;;  %v9701_v15 = vcombine.low %v576_v12, %v577_v13  ;;  %v1033_v16 = vunpack.c.l.bf16 %v576_v12  ;;  %v1034_v17 = vunpack.c.l.bf16 %v577_v13  ;;  %v1035_v19 = vunpack.c.l.bf16 %v14038_v14  ;;  %v12637_v21 = vld [vmem:[%s14009_s18 + $0x16c] sm:$0xfc]   ;;  %v14044_v22 = vld [vmem:[%s14009_s18 + $0x174] sm:$0xff]   ;;  %v14048_v28 = vld [vmem:[%s14009_s18 + $0x180] sm:$0xff]   ;;  %p13465_p13 = scmp.ne.s32.totalorder %s15285_s11, %s13464_s4  ;;  %p15500_p0 = scmp.ne.s32.totalorder %s15483_s15, 0 }
 0x161   : > { %11099 = vmatpush3.bf16.msra.mxu0 %v12622_v3  ;;  %10916 = vmatprep.subr.bf16.mxu1 %v12623_v4  ;;  %v1036_v20 = vunpack.c.h.bf16 %v14038_v14  ;;  %v12632_v23 = vld [vmem:[#allocation10 + $0xf0] sm:$0xff]   ;;  %v668_v25 = vrot.slane %v14038_v14, 1  ;;  %v2194_v31 = vrot.slane %v12637_v21, 2  ;;  %v2195_v32 = vrot.slane %v14044_v22, 2  ;;  %v14065_v48 = vld [vmem:[%s14009_s18 + $0x190] sm:$0xff]   ;;  %s13599_s3 = smov [#allocation21]  }
 0x162   : > { %11100 = vmatprep.subr.bf16.mxu0 %v12624_v5  ;;  %v667_v24 = vrot.slane %v9701_v15, 1  ;;  %v1076_v26 = vrot.slane %v1033_v16, 2  ;;  %v1077_v27 = vrot.slane %v1034_v17, 2  ;;  %v1079_v29 = vrot.slane %v1035_v19, 2  ;;  %v12640_v43 = vld [vmem:[%s14009_s18 + $0x17c] sm:$0xff]   ;;  %v14060_v44 = vld [vmem:[%s14009_s18 + $0x188] sm:$0xff]   ;;  %p13466_p2 = pnand %p13465_p13, %p15500_p0 }
 0x163   : > { %v1081_v30 = vrot.slane %v1036_v20, 2  ;;  %v1037_v35 = vunpack.c.l.bf16 %v14048_v28  ;;  %v2196_v38 = vsel %vm1075_vm1, %v2194_v31, %v2195_v32  ;;  %v1038_v39 = vunpack.c.h.bf16 %v14048_v28  ;;  %v12634_v49 = vld [vmem:[#allocation10 + $0xf8] sm:$0xff]   ;;  %v12647_v1 = vld [vmem:[#allocation10 + $0x100] sm:$0xff]   ;;  %v12641_v3 = vld [vmem:[#allocation14] sm:$0xff]   ;;  %s13468_s20 = sshll.u32 %s13599_s3, 4  ;;  %s13469_s20 = int_to_ptr.vmem [resolvable:$false] %s13468_s20 }
 0x164   : > { %10917 = vmatpush3.bf16.msra.mxu1 %v12623_v4  ;;  %v669_v33 = vsel %vm666_vm0, %v667_v24, %v668_v25  ;;  %v1078_v34 = vsel %vm1075_vm1, %v1076_v26, %v1077_v27  ;;  %v1080_v36 = vsel %vm1075_vm1, %v1077_v27, %v1079_v29  ;;  %11112 = vmatprep.mubr.bf16.mxu0 %v2196_v38  ;;  %v1039_v46 = vunpack.c.l.bf16 %v14060_v44  ;;  %v14070_v55 = vld [vmem:[%s14009_s18 + $0x184] sm:$0xff]   ;;  %v14078_v2 = vld [vmem:[%s14009_s18 + $0x198] sm:$0xff]   ;;  %v12646_v15 = vld [vmem:[%s14009_s18 + $0x18c] sm:$0xff]   ;;  %s9481_s17 = scalar_lea.hbm %s15499_s1, %s10307_s12  ;;  %p13467_p8 = pneg %p13466_p2 }
 0x165   : > { %11101 = vmatpush3.bf16.msra.mxu0 %v12624_v5  ;;  %10918 = vmatprep.subr.bf16.mxu1 %v12625_v6  ;;  %v1082_v37 = vsel %vm1075_vm1, %v1079_v29, %v1081_v30  ;;  %v1137_v41 = vadd.f32 %v1080_v36, %v1078_v34  ;;  %v1083_v42 = vrot.slane %v1037_v35, 2  ;;  %v1085_v45 = vrot.slane %v1038_v39, 2  ;;  %v12649_v19 = vld [vmem:[#allocation10 + $0x108] sm:$0xff]   ;;  %v12642_v26 = vld [vmem:[#allocation14 + $0x8] sm:$0xff]   ;;  %s13470_s30 = scalar_lea.vmem %s13469_s20, 32  ;;  %p13471_p4 = scmp.lt.s32.totalorder %s15285_s11, %s13469_s20 }
 0x166   : > { %11102 = vmatprep.subr.bf16.mxu0 %v12626_v7  ;;  %10928 = vmatprep.mubr.bf16.mxu1 %v669_v33  ;;  %v1040_v47 = vunpack.c.h.bf16 %v14060_v44  ;;  %v1087_v53 = vrot.slane %v1039_v46, 2  ;;  %v670_v56 = vrot.slane %v14048_v28, 1  ;;  %v2197_v58 = vrot.slane %v12640_v43, 2  ;;  %v14094_v21 = vld [vmem:[%s14009_s18 + $0x194] sm:$0xff]   ;;  %v14105_v33 = vld [vmem:[%s14009_s18 + $0x1a8] sm:$0xff]   ;;  %p13472_p10 = scmp.lt.s32.totalorder %s13470_s30, %s13464_s4 }
 0x167   : > { %v1138_v50 = vadd.f32 %v1137_v41, %v1082_v37  ;;  %v1084_v51 = vsel %vm1075_vm1, %v1081_v30, %v1083_v42  ;;  %v1086_v52 = vsel %vm1075_vm1, %v1083_v42, %v1085_v45  ;;  %v1041_v59 = vunpack.c.l.bf16 %v14065_v48  ;;  %v14110_v37 = vld [vmem:[%s14009_s18 + $0x1b0] sm:$0xff]  }
 0x168   : > { %10919 = vmatpush3.bf16.msra.mxu1 %v12625_v6  ;;  %v1089_v54 = vrot.slane %v1040_v47, 2  ;;  %v1088_v60 = vsel %vm1075_vm1, %v1085_v45, %v1087_v53  ;;  %v1042_v61 = vunpack.c.h.bf16 %v14065_v48  ;;  %v672_v63 = vrot.slane %v14060_v44, 1  ;;  %v12648_v43 = vld [vmem:[#allocation14 + $0x10] sm:$0xff]   ;;  %v12654_v45 = vld [vmem:[%s14009_s18 + $0x19c] sm:$0xff]   ;;  %p13473_p11 = por %p13472_p10, %p13471_p4 }
 0x169   : > { %11103 = vmatpush3.bf16.msra.mxu0 %v12626_v7  ;;  %10920 = vmatprep.subr.bf16.mxu1 %v12627_v8  ;;  %v1139_v57 = vadd.f32 %v1138_v50, %v1084_v51  ;;  %v1091_v0 = vrot.slane %v1041_v59, 2  ;;  %v2199_v5 = vrot.slane %v14070_v55, 2  ;;  %v1043_v7 = vunpack.c.l.bf16 %v14078_v2 }
 0x16a   : > { %11104 = vmatprep.subr.bf16.mxu0 %v12628_v9  ;;  %v1090_v4 = vsel %vm1075_vm1, %v1087_v53, %v1089_v54  ;;  %v1093_v6 = vrot.slane %v1042_v61, 2  ;;  %v13597_v12 = vmov 0.0   ;;  %v2198_v13 = vsel %vm1075_vm1, %v2195_v32, %v2197_v58  ;;  %p13474_p3 = pnand %p13473_p11, %p13467_p8 }
 0x16b   : > { %v1140_v62 = vadd.f32 %v1139_v57, %v1086_v52  ;;  %v1092_v14 = vsel %vm1075_vm1, %v1089_v54, %v1091_v0  ;;  %v1095_v16 = vrot.slane %v1043_v7, 2  ;;  %v673_v17 = vsel %vm666_vm0, %v670_v56, %v672_v63  ;;  %v12656_v57 = vld [vmem:[#allocation10 + $0x118] sm:$0xff]   ;;  %v14139_v7 = vld [vmem:[%s14009_s18 + $0x1c0] sm:$0x1] }
 0x16c   : > { %10921 = vmatpush3.bf16.msra.mxu1 %v12627_v8  ;;  %v671_v8 = vsel %vm666_vm0, %v668_v25, %v670_v56  ;;  %v2200_v22 = vsel %vm1075_vm1, %v2197_v58, %v2199_v5  ;;  %v674_v27 = vrot.slane %v14065_v48, 1  ;;  %v2201_v29 = vrot.slane %v12646_v15, 2  ;;  %v12653_v56 = vld [vmem:[#allocation14 + $0x18] sm:$0xff]  }
 0x16d   : > { %11105 = vmatpush3.bf16.msra.mxu0 %v12628_v9  ;;  %10922 = vmatprep.subr.bf16.mxu1 %v12629_v10  ;;  %v1141_v9 = vadd.f32 %v1140_v62, %v1088_v60  ;;  %v676_v30 = vrot.slane %v14078_v2, 1  ;;  %v1096_v31 = vsel %vm1075_vm1, %v1093_v6, %v1095_v16  ;;  %v2203_v35 = vrot.slane %v14094_v21, 2  ;;  %v14131_v60 = vld [vmem:[%s14009_s18 + $0x1b8] sm:$0xff]  }
 0x16e   : > { %11106 = vmatprep.subr.bf16.mxu0 %v12630_v11  ;;  %v1047_v36 = vunpack.c.l.bf16 %v14105_v33  ;;  %v1048_v41 = vunpack.c.h.bf16 %v14105_v33  ;;  %v675_v42 = vsel %vm666_vm0, %v672_v63, %v674_v27  ;;  %v2202_v46 = vsel %vm1075_vm1, %v2199_v5, %v2201_v29 }
 0x16f   : > { %v1049_v50 = vunpack.c.l.bf16 %v14110_v37  ;;  %v677_v51 = vsel %vm666_vm0, %v674_v27, %v676_v30  ;;  %v2204_v53 = vsel %vm1075_vm1, %v2201_v29, %v2203_v35  ;;  %v1050_v59 = vunpack.c.h.bf16 %v14110_v37  ;;  %v12663_v29 = vld [vmem:[#allocation14 + $0x28] sm:$0xff]  }
 0x170   : > { %10923 = vmatpush3.bf16.msra.mxu1 %v12629_v10  ;;  %v1044_v10 = vunpack.c.h.bf16 %v14078_v2  ;;  %v1103_v48 = vrot.slane %v1047_v36, 2  ;;  %v1105_v58 = vrot.slane %v1048_v41, 2  ;;  %v2205_v62 = vrot.slane %v12654_v45, 2  ;;  %v14163_v36 = vld [vmem:[%s14009_s18 + $0x174] sm:$0xf] }
 0x171   : > { %11107 = vmatpush3.bf16.msra.mxu0 %v12630_v11  ;;  %10924 = vmatprep.subr.bf16.mxu1 %v12631_v18  ;;  %v14086_v11 = vld [vmem:[%s14009_s18 + $0x1a0] sm:$0xff]   ;;  %v680_v63 = vrot.slane %v14105_v33, 1  ;;  %v682_v2 = vrot.slane %v14110_v37, 1 }
 0x172   : > { %11108 = vmatprep.subr.bf16.mxu0 %v12632_v23  ;;  %v1097_v20 = vrot.slane %v1044_v10, 2  ;;  %v1045_v24 = vunpack.c.l.bf16 %v14086_v11  ;;  %v1046_v25 = vunpack.c.h.bf16 %v14086_v11  ;;  %v678_v54 = vrot.slane %v14086_v11, 1  ;;  %v12661_v10 = vld [vmem:[%s14009_s18 + $0x1ac] sm:$0xff]  }
 0x173   : > { %v12662_v11 = vld [vmem:[#allocation10 + $0x120] sm:$0xff]   ;;  %v683_v41 = vsel %vm666_vm0, %v680_v63, %v682_v2 }
 0x174   : > { %10925 = vmatpush3.bf16.msra.mxu1 %v12631_v18  ;;  %v1142_v18 = vadd.f32 %v1141_v9, %v1090_v4  ;;  %v1099_v32 = vrot.slane %v1045_v24, 2  ;;  %v1098_v38 = vsel %vm1075_vm1, %v1095_v16, %v1097_v20  ;;  %v1101_v39 = vrot.slane %v1046_v25, 2  ;;  %v12664_v25 = vld [vmem:[#allocation10 + $0x128] sm:$0xff]  }
 0x175   : > { %11109 = vmatpush3.bf16.msra.mxu0 %v12632_v23  ;;  %10926 = vmatprep.subr.bf16.mxu1 %v12633_v40  ;;  %v1094_v23 = vsel %vm1075_vm1, %v1091_v0, %v1093_v6  ;;  %v1051_v4 = vunpack.c.l.bf16 %v14131_v60  ;;  %v12657_v6 = vld [vmem:[#allocation14 + $0x20] sm:$0xff]   ;;  %v1109_v9 = vrot.slane %v1050_v59, 2  ;;  %v679_v15 = vsel %vm666_vm0, %v676_v30, %v678_v54 }
 0x176   : > { %11110 = vmatprep.subr.bf16.mxu0 %v12634_v49  ;;  %v1143_v28 = vadd.f32 %v1142_v18, %v1092_v14  ;;  %v1100_v47 = vsel %vm1075_vm1, %v1097_v20, %v1099_v32  ;;  %v1102_v55 = vsel %vm1075_vm1, %v1099_v32, %v1101_v39  ;;  %v1104_v0 = vsel %vm1075_vm1, %v1101_v39, %v1103_v48  ;;  %v14145_v14 = vld [vmem:[%s14009_s18 + $0x1b4] sm:$0xff]  }
 0x177   : > { %v1053_v20 = vunpack.c.l.bf16 %v14139_v7  ;;  %v681_v21 = vsel %vm666_vm0, %v678_v54, %v680_v63  ;;  %v684_v30 = vrot.slane %v14131_v60, 1 }
 0x178   : > { %10927 = vmatpush3.bf16.msra.mxu1 %v12633_v40  ;;  %v1144_v34 = vadd.f32 %v1143_v28, %v1094_v23  ;;  %v12655_v40 = vld [vmem:[#allocation10 + $0x110] sm:$0xff]   ;;  %v2209_v28 = vrot.slane %v12661_v10, 2 }
 0x179   : > { %11111 = vmatpush3.bf16.msra.mxu0 %v12634_v49  ;;  %10948 = vmatprep.subr.bf16.mxu1 %v13597_v12  ;;  %v14120_v49 = vld [vmem:[%s14009_s18 + $0x1a4] sm:$0xff]   ;;  %v1115_v33 = vrot.slane %v1053_v20, 2  ;;  %v685_v45 = vsel %vm666_vm0, %v682_v2, %v684_v30 }
 0x17a   : > { %11132 = vmatprep.subr.bf16.mxu0 %v12647_v1  ;;  %v1145_v44 = vadd.f32 %v1144_v34, %v1096_v31  ;;  %v2211_v31 = vrot.slane %v14145_v14, 2  ;;  %v12670_v34 = vld [vmem:[#allocation10 + $0x130] sm:$0xff]  }
 0x17b   : > { %10929 = vmatmul.mubr.bf16.vlgmr.msra.gmra.mrb[0].mxu1 %v671_v8  ;;  %v1106_v8 = vsel %vm1075_vm1, %v1103_v48, %v1105_v58  ;;  %v12669_v48 = vld [vmem:[%s14009_s18 + $0x1bc] ss:$0 sps:$4 sm:$0x33]  }
 0x17c   : > { %11113 = vmatmul.mubr.bf16.vlgmr.msra.gmra.mrb[0].mxu0 %v2198_v13  ;;  %10949 = vmatpush3.bf16.msra.mxu1 %v12641_v3  ;;  %v1146_v52 = vadd.f32 %v1145_v44, %v1098_v38  ;;  %v1107_v3 = vrot.slane %v1049_v50, 2  ;;  %v1052_v13 = vunpack.c.h.bf16 %v14131_v60  ;;  %v14167_v38 = vld [vmem:[%s14009_s18 + $0x178] sm:$0xf]  ;;  %v2213_v59 = vrot.slane %v12669_v48, 2 }
 0x17d   : > { %10950 = vmatprep.subr.bf16.mxu1 %v13597_v12  ;;  %10932 = vmatprep.mubr.bf16.mxu1 %v673_v17  ;;  %v2206_v17 = vsel %vm1075_vm1, %v2203_v35, %v2205_v62  ;;  %v2406_v35 = vld [vmem:[%s14009_s18 + $0x170] sm:$0xe] }
 0x17e   : > { %11116 = vmatprep.mubr.bf16.mxu0 %v2200_v22  ;;  %11133 = vmatpush3.bf16.msra.mxu0 %v12647_v1  ;;  %v1147_v61 = vadd.f32 %v1146_v52, %v1100_v47  ;;  %v2207_v1 = vrot.slane %v14120_v49, 2  ;;  %v1108_v18 = vsel %vm1075_vm1, %v1105_v58, %v1107_v3  ;;  %v1110_v24 = vsel %vm1075_vm1, %v1107_v3, %v1109_v9  ;;  %v14189_v58 = vld [vmem:[%s14009_s18 + $0x184] sm:$0xf]  ;;  %v12679_v3 = vld [vmem:[#allocation10 + $0x140] sm:$0xff]  }
 0x17f   : > { %11134 = vmatprep.subr.bf16.mxu0 %v12649_v19  ;;  %v9824_v49 = vcombine.low %v2406_v35, %v14163_v36 }
 0x180   : > { %10951 = vmatpush3.bf16.msra.mxu1 %v12642_v26  ;;  %v1148_v5 = vadd.f32 %v1147_v61, %v1102_v55  ;;  %v2208_v23 = vsel %vm1075_vm1, %v2205_v62, %v2207_v1  ;;  %v1113_v26 = vrot.slane %v1052_v13, 2  ;;  %v2210_v44 = vsel %vm1075_vm1, %v2207_v1, %v2209_v28  ;;  %v14198_v1 = vld [vmem:[%s14009_s18 + $0x18c] sm:$0xf] }
 0x181   : > { %10952 = vmatprep.subr.bf16.mxu1 %v13597_v12  ;;  %v2497_v60 = vrot.slane %v9824_v49, 1 }
 0x182   : > { %11135 = vmatpush3.bf16.msra.mxu0 %v12649_v19  ;;  %v1149_v16 = vadd.f32 %v1148_v5, %v1104_v0  ;;  %v1111_v19 = vrot.slane %v1051_v4, 2  ;;  %v1116_v47 = vsel %vm1075_vm1, %v1113_v26, %v1115_v33  ;;  %v14195_v0 = vld [vmem:[%s14009_s18 + $0x188] sm:$0xf] }
 0x183   : > { %10933 = vmatmul.mubr.bf16.gmra.mrb[4].mxu1 %v675_v42  ;;  %11136 = vmatprep.subr.bf16.mxu0 %v12655_v40  ;;  %v9827_v10 = vcombine.low %v14195_v0, %v14198_v1 }
 0x184   : > { %11117 = vmatmul.mubr.bf16.gmra.mrb[4].mxu0 %v2202_v46  ;;  %10953 = vmatpush3.bf16.msra.mxu1 %v12648_v43  ;;  %v1150_v22 = vadd.f32 %v1149_v16, %v1106_v8  ;;  %v1112_v32 = vsel %vm1075_vm1, %v1109_v9, %v1111_v19  ;;  %v1114_v39 = vsel %vm1075_vm1, %v1111_v19, %v1113_v26  ;;  %v12666_v46 = vld [vmem:[#allocation14 + $0x30] sm:$0xff]   ;;  %v14218_v16 = vld [vmem:[%s14009_s18 + $0x19c] sm:$0xf]  ;;  %v14227_v26 = vld [vmem:[%s14009_s18 + $0x1a0] sm:$0xf] }
 0x185   : > { %10936 = vmatprep.mubr.bf16.mxu1 %v677_v51  ;;  %10954 = vmatprep.subr.bf16.mxu1 %v13597_v12  ;;  %v9711_v43 = vcombine.low %v14139_v7, %v14139_v7  ;;  %v2212_v51 = vsel %vm1075_vm1, %v2209_v28, %v2211_v31  ;;  %v14203_v7 = vld [vmem:[%s14009_s18 + $0x190] sm:$0xf] }
 0x186   : > { %11120 = vmatprep.mubr.bf16.mxu0 %v2204_v53  ;;  %11137 = vmatpush3.bf16.msra.mxu0 %v12655_v40  ;;  %v1151_v27 = vadd.f32 %v1150_v22, %v1108_v18  ;;  %v14171_v40 = vld [vmem:[%s14009_s18 + $0x17c] sm:$0xf]  ;;  %v12672_v53 = vld [vmem:[#allocation10 + $0x138] sm:$0xff]   ;;  %v2502_v18 = vrot.slane %v9827_v10, 1  ;;  %v9846_v10 = vcombine.low %v14198_v1, %v14203_v7 }
 0x187   : > { %11138 = vmatprep.subr.bf16.mxu0 %v12656_v57  ;;  %v9825_v52 = vcombine.low %v14167_v38, %v14171_v40  ;;  %v686_v54 = vrot.slane %v9711_v43, 1  ;;  %v14250_v43 = vld [vmem:[%s14009_s18 + $0x1b4] sm:$0xf]  ;;  %v12710_v1 = vld [vmem:[%s14009_s18 + $0x1e4] sm:$0xfc]  }
 0x188   : > { %10955 = vmatpush3.bf16.msra.mxu1 %v12653_v56  ;;  %v1152_v37 = vadd.f32 %v1151_v27, %v1110_v24  ;;  %v12671_v56 = vld [vmem:[#allocation14 + $0x38] sm:$0xff]   ;;  %v14230_v27 = vld [vmem:[%s14009_s18 + $0x1a4] sm:$0xf] }
 0x189   : > { %10956 = vmatprep.subr.bf16.mxu1 %v13597_v12  ;;  %v2498_v62 = vrot.slane %v9825_v52, 1  ;;  %v687_v4 = vsel %vm666_vm0, %v684_v30, %v686_v54  ;;  %v12683_v30 = vld [vmem:[#allocation10 + $0x150] sm:$0xff]   ;;  %v9830_v33 = vcombine.low %v14227_v26, %v14230_v27 }
 0x18a   : > { %11139 = vmatpush3.bf16.msra.mxu0 %v12656_v57  ;;  %v1153_v42 = vadd.f32 %v1152_v37, %v1112_v32  ;;  %v14186_v57 = vld [vmem:[%s14009_s18 + $0x180] sm:$0xf]  ;;  %v14236_v32 = vld [vmem:[%s14009_s18 + $0x1ac] sm:$0xf] }
 0x18b   : > { %10937 = vmatmul.mubr.bf16.gmra.mrb[8].mxu1 %v679_v15  ;;  %11140 = vmatprep.subr.bf16.mxu0 %v12662_v11  ;;  %v9826_v63 = vcombine.low %v14186_v57, %v14189_v58  ;;  %v2499_v8 = vsel %vm666_vm0, %v2497_v60, %v2498_v62  ;;  %v14215_v15 = vld [vmem:[%s14009_s18 + $0x198] sm:$0xf] }
 0x18c   : > { %11121 = vmatmul.mubr.bf16.gmra.mrb[8].mxu0 %v2206_v17  ;;  %10957 = vmatpush3.bf16.msra.mxu1 %v12657_v6  ;;  %v1154_v50 = vadd.f32 %v1153_v42, %v1114_v39  ;;  %v2214_v6 = vsel %vm1075_vm1, %v2211_v31, %v2213_v59  ;;  %v14233_v31 = vld [vmem:[%s14009_s18 + $0x1a8] sm:$0xf]  ;;  %v14247_v42 = vld [vmem:[%s14009_s18 + $0x1b0] sm:$0xf] }
 0x18d   : > { %10940 = vmatprep.mubr.bf16.mxu1 %v681_v21  ;;  %11124 = vmatprep.mubr.bf16.mxu0 %v2208_v23  ;;  %v2500_v13 = vrot.slane %v9826_v63, 1  ;;  %v9829_v21 = vcombine.low %v14215_v15, %v14218_v16  ;;  %v12680_v23 = vld [vmem:[#allocation10 + $0x148] sm:$0xff]   ;;  %v9831_v35 = vcombine.low %v14233_v31, %v14236_v32  ;;  %v12684_v39 = vld [vmem:[#allocation10 + $0x158] sm:$0xff]   ;;  %v9832_v49 = vcombine.low %v14247_v42, %v14250_v43  ;;  %v12696_v63 = vld [vmem:[#allocation10 + $0x180] sm:$0xff]  }
 0x18e   : > { %10958 = vmatprep.subr.bf16.mxu1 %v13597_v12  ;;  %11141 = vmatpush3.bf16.msra.mxu0 %v12662_v11  ;;  %v1155_v55 = vadd.f32 %v1154_v50, %v1116_v47  ;;  %v14209_v11 = vld [vmem:[%s14009_s18 + $0x194] sm:$0xf]  ;;  %v14256_v47 = vld [vmem:[%s14009_s18 + $0x1bc] sm:$0xf] }
 0x18f   : > { %11142 = vmatprep.subr.bf16.mxu0 %v12664_v25  ;;  %v9828_v19 = vcombine.low %v14203_v7, %v14209_v11  ;;  %v2501_v22 = vsel %vm666_vm0, %v2498_v62, %v2500_v13  ;;  %v2503_v24 = vsel %vm666_vm0, %v2500_v13, %v2502_v18  ;;  %v12690_v59 = vld [vmem:[%s14009_s18 + $0x1c0] ss:$0 sps:$4 sm:$0x11]   ;;  %v12701_v13 = vld [vmem:[#allocation10 + $0x198] sm:$0xff]   ;;  %v9850_v7 = vcombine.low %v14236_v32, %v14247_v42 }
 0x190   : > { %10959 = vmatpush3.bf16.msra.mxu1 %v12663_v29  ;;  %v1156_v61 = vrot.slane %v1155_v55, 4  ;;  %v2506_v29 = vrot.slane %v9829_v21, 1  ;;  %v2516_v62 = vrot.slane %v12690_v59, 1  ;;  %v12764_v21 = vld [vmem:[#allocation19 + $0x8] sm:$0xff]   ;;  %v12718_v42 = vld [vmem:[%s14009_s18 + $0x214] sm:$0xff]  }
 0x191   : > { %10960 = vmatprep.subr.bf16.mxu1 %v13597_v12 }
 0x192   : > { %11143 = vmatpush3.bf16.msra.mxu0 %v12664_v25  ;;  %v1157_v5 = vadd.f32 %v1156_v61, %v1155_v55  ;;  %v2504_v25 = vrot.slane %v9828_v19, 1  ;;  %v12691_v55 = vld [vmem:[#allocation10 + $0x170] sm:$0xff]   ;;  %v12692_v61 = vld [vmem:[#allocation10 + $0x178] sm:$0xff]  }
 0x193   : > { %10941 = vmatmul.mubr.bf16.gmra.mrb[12].mxu1 %v683_v41  ;;  %11144 = vmatprep.subr.bf16.mxu0 %v12670_v34  ;;  %v2508_v41 = vrot.slane %v9830_v33, 1 }
 0x194   : > { %11125 = vmatmul.mubr.bf16.gmra.mrb[12].mxu0 %v2210_v44  ;;  %10944 = vmatprep.mubr.bf16.mxu1 %v685_v45  ;;  %v1158_v9 = vrot.slane %v1157_v5, 2  ;;  %v2507_v37 = vsel %vm666_vm0, %v2504_v25, %v2506_v29  ;;  %v2510_v44 = vrot.slane %v9831_v35, 1  ;;  %v12687_v45 = vld [vmem:[#allocation10 + $0x160] sm:$0xff]  }
 0x195   : > { %10961 = vmatpush3.bf16.msra.mxu1 %v12666_v46  ;;  %11128 = vmatprep.mubr.bf16.mxu0 %v2212_v51  ;;  %v14253_v46 = vld [vmem:[%s14009_s18 + $0x1b8] sm:$0xf]  ;;  %v2509_v48 = vsel %vm666_vm0, %v2506_v29, %v2508_v41  ;;  %v12714_v29 = vld [vmem:[%s14009_s18 + $0x204] sm:$0xff]  }
 0x196   : > { %11145 = vmatpush3.bf16.msra.mxu0 %v12670_v34  ;;  %10962 = vmatprep.subr.bf16.mxu1 %v13597_v12  ;;  %v1159_v14 = vadd.f32 %v1158_v9, %v1157_v5  ;;  %v2505_v34 = vsel %vm666_vm0, %v2502_v18, %v2504_v25  ;;  %v2511_v50 = vsel %vm666_vm0, %v2508_v41, %v2510_v44  ;;  %v12688_v51 = vld [vmem:[#allocation10 + $0x168] sm:$0xff]   ;;  %v12700_v9 = vld [vmem:[#allocation10 + $0x190] sm:$0xff]   ;;  %v3021_v18 = vrot.slane %v12710_v1, 2 }
 0x197   : > { %11146 = vmatprep.subr.bf16.mxu0 %v12672_v53  ;;  %v9833_v52 = vcombine.low %v14253_v46, %v14256_v47  ;;  %v9844_v5 = vcombine.low %v14171_v40, %v14186_v57  ;;  %v9848_v40 = vcombine.low %v14218_v16, %v14227_v26  ;;  %v12705_v57 = vld [vmem:[#allocation10 + $0x1a8] sm:$0xff]   ;;  %v9851_v16 = vcombine.low %v14250_v43, %v14253_v46  ;;  %v12778_v41 = vld [vmem:[#allocation19 + $0x28] sm:$0xff]  }
 0x198   : > { %v1160_v17 = vrot.slane %v1159_v14, 1  ;;  %v3028_v35 = vrot.slane %v12714_v29, 2  ;;  %v12721_v43 = vld [vmem:[%s14009_s18 + $0x21c] sm:$0xff]   ;;  %v14365_v29 = vld [vmem:[%s14009_s18 + $0x218] sm:$0xf] }
 0x199   : > { %10963 = vmatpush3.bf16.msra.mxu1 %v12671_v56  ;;  %v2514_v54 = vrot.slane %v9833_v52, 1  ;;  %v12725_v52 = vld [vmem:[%s14009_s18 + $0x22c] sm:$0xff]  }
 0x19a   : > { %11147 = vmatpush3.bf16.msra.mxu0 %v12672_v53  ;;  %10968 = vmatprep.subr.bf16.mxu1 %v13597_v12  ;;  %v1161_v20 = vadd.f32 %v1160_v17, %v1159_v14  ;;  %v2512_v53 = vrot.slane %v9832_v49, 1  ;;  %v12711_v14 = vld [vmem:[%s14009_s18 + $0x1ec] sm:$0xff]   ;;  %v2709_v17 = vld [vmem:[%s14009_s18 + $0x1c0] sm:$0xf]  ;;  %v3032_v49 = vrot.slane %v12718_v42, 2  ;;  %v3038_v59 = vrot.slane %v12725_v52, 2 }
 0x19b   : > { %10945 = vmatmul.mubr.bf16.gmra.mrb[16].mxu1 %v687_v4  ;;  %11168 = vmatprep.subr.bf16.mxu0 %v12679_v3  ;;  %v9843_v4 = vcombine.low %v14163_v36, %v14167_v38  ;;  %v9847_v36 = vcombine.low %v14209_v11, %v14215_v15  ;;  %v12704_v38 = vld [vmem:[#allocation10 + $0x1a0] sm:$0xff]   ;;  %v12709_v11 = vld [vmem:[#allocation10 + $0x1b8] sm:$0xff]   ;;  %v12761_v15 = vld [vmem:[#allocation19] sm:$0xff]   ;;  %v3022_v19 = vrot.slane %v12711_v14, 2 }
 0x19c   : > { %11129 = vmatmul.mubr.bf16.gmra.mrb[16].mxu0 %v2214_v6  ;;  %10964 = vmatprep.mubr.msk.bf16.mxu1 %vm13598_vm2, %v13597_v12  ;;  %v1162_v2 = vmul.f32 0.0625, %v1161_v20  ;;  %v2513_v56 = vsel %vm666_vm0, %v2510_v44, %v2512_v53  ;;  %v2515_v60 = vsel %vm666_vm0, %v2512_v53, %v2514_v54  ;;  %v12697_v6 = vld [vmem:[#allocation10 + $0x188] sm:$0xff]   ;;  %v12715_v20 = vld [vmem:[#allocation10 + $0x1c0] sm:$0xff]  }
 0x19d   : > { %11148 = vmatprep.mubr.bf16.mxu0 %v2499_v8  ;;  %v9845_v8 = vcombine.low %v14189_v58, %v14195_v0  ;;  %v9849_v58 = vcombine.low %v14230_v27, %v14233_v31  ;;  %v12708_v0 = vld [vmem:[#allocation10 + $0x1b0] sm:$0xff]   ;;  %v3023_v25 = vsel %vm1075_vm1, %v3021_v18, %v3022_v19  ;;  %v12781_v44 = vld [vmem:[#allocation19 + $0x30] sm:$0xff]   ;;  %v12784_v53 = vld [vmem:[#allocation19 + $0x38] sm:$0xff]  }
 0x19e   : > { %v1163_v28 = vpack.c.bf16 %v1162_v2, %v1162_v2  ;;  %v12713_v2 = vld [vmem:[%s14009_s18 + $0x1fc] sm:$0xff]  }
 0x19f   : > { %v3026_v27 = vrot.slane %v12713_v2, 2  ;;  %v12775_v31 = vld [vmem:[#allocation19 + $0x20] sm:$0xff]   ;;  %v12735_v14 = vld [vmem:[#allocation10 + $0x200] sm:$0xff]  }
 0x1a0   : > { %v12744_v52 = vld [vmem:[#allocation10 + $0x228] sm:$0xff]  }
 0x1a3   : > { %10965 = vmatmul.mubr.bf16.vlgmr.msra.gmra.mrb[20].mxu1 %v1163_v28  ;;  %v12772_v28 = vld [vmem:[#allocation19 + $0x18] sm:$0xff]  }
 0x1a4   : > { %11149 = vmatmul.mubr.bf16.vlgmr.msra.gmra.mrb[0].mxu0 %v2501_v22  ;;  %10984 = vmatprep.mubr.msk.bf16.mxu1 %vm13598_vm2, %v13597_v12  ;;  %v9852_v22 = vcombine.low %v14256_v47, %v2709_v17  ;;  %v12720_v47 = vld [vmem:[#allocation10 + $0x1d8] sm:$0xff]  }
 0x1a5   : > { %11152 = vmatprep.mubr.bf16.mxu0 %v2503_v24  ;;  %11169 = vmatpush3.bf16.msra.mxu0 %v12679_v3  ;;  %v2517_v3 = vsel %vm666_vm0, %v2514_v54, %v2516_v62  ;;  %v12767_v24 = vld [vmem:[#allocation19 + $0x10] sm:$0xff]  }
 0x1a6   : > { %11170 = vmatprep.subr.bf16.mxu0 %v12680_v23  ;;  %10969 = vmatpush3.bf16.msra.mxu1 %v12761_v15  ;;  %v12787_v54 = vld [vmem:[#allocation10 + $0x40] sm:$0xff]  }
 0x1a7   : > { %10970 = vmatprep.subr.bf16.mxu1 %v13597_v12  ;;  %v14314_v62 = vld [vmem:[%s14009_s18 + $0x1ec] sm:$0xf] }
 0x1a9   : > { %11171 = vmatpush3.bf16.msra.mxu0 %v12680_v23  ;;  %v12712_v23 = vld [vmem:[%s14009_s18 + $0x1f4] sm:$0xff]  }
 0x1aa   : > { %11172 = vmatprep.subr.bf16.mxu0 %v12683_v30  ;;  %10971 = vmatpush3.bf16.msra.mxu1 %v12764_v21  ;;  %v3024_v26 = vrot.slane %v12712_v23, 2  ;;  %v14353_v21 = vld [vmem:[%s14009_s18 + $0x210] sm:$0xf] }
 0x1ab   : > { %10972 = vmatprep.subr.bf16.mxu1 %v13597_v12 }
 0x1ac   : > { %11153 = vmatmul.mubr.bf16.gmra.mrb[4].mxu0 %v2505_v34  ;;  %v3025_v32 = vsel %vm1075_vm1, %v3022_v19, %v3024_v26  ;;  %v3027_v33 = vsel %vm1075_vm1, %v3024_v26, %v3026_v27  ;;  %v12716_v34 = vld [vmem:[#allocation10 + $0x1c8] sm:$0xff]   ;;  %v14347_v19 = vld [vmem:[%s14009_s18 + $0x208] sm:$0xf] }
 0x1ad   : > { %11156 = vmatprep.mubr.bf16.mxu0 %v2507_v37  ;;  %11173 = vmatpush3.bf16.msra.mxu0 %v12683_v30  ;;  %v12717_v30 = vld [vmem:[%s14009_s18 + $0x20c] sm:$0xff]  }
 0x1ae   : > { %11174 = vmatprep.subr.bf16.mxu0 %v12684_v39  ;;  %10973 = vmatpush3.bf16.msra.mxu1 %v12767_v24  ;;  %v3030_v37 = vrot.slane %v12717_v30, 2  ;;  %v14368_v30 = vld [vmem:[%s14009_s18 + $0x21c] sm:$0xf] }
 0x1af   : > { %10974 = vmatprep.subr.bf16.mxu1 %v13597_v12 }
 0x1b0   : > { %v3031_v46 = vsel %vm1075_vm1, %v3028_v35, %v3030_v37 }
 0x1b1   : > { %11175 = vmatpush3.bf16.msra.mxu0 %v12684_v39  ;;  %v12719_v39 = vld [vmem:[#allocation10 + $0x1d0] sm:$0xff]  }
 0x1b2   : > { %11176 = vmatprep.subr.bf16.mxu0 %v12687_v45  ;;  %10975 = vmatpush3.bf16.msra.mxu1 %v12772_v28 }
 0x1b3   : > { %10976 = vmatprep.subr.bf16.mxu1 %v13597_v12 }
 0x1b4   : > { %11157 = vmatmul.mubr.bf16.gmra.mrb[8].mxu0 %v2509_v48  ;;  %v12722_v48 = vld [vmem:[%s14009_s18 + $0x224] sm:$0xff]  }
 0x1b5   : > { %11160 = vmatprep.mubr.bf16.mxu0 %v2511_v50  ;;  %11177 = vmatpush3.bf16.msra.mxu0 %v12687_v45  ;;  %v3029_v45 = vsel %vm1075_vm1, %v3026_v27, %v3028_v35  ;;  %v3034_v50 = vrot.slane %v12721_v43, 2 }
 0x1b6   : > { %11178 = vmatprep.subr.bf16.mxu0 %v12688_v51  ;;  %10977 = vmatpush3.bf16.msra.mxu1 %v12775_v31  ;;  %v12739_v31 = vld [vmem:[#allocation10 + $0x210] sm:$0xff]  }
 0x1b7   : > { %10978 = vmatprep.subr.bf16.mxu1 %v13597_v12 }
 0x1b9   : > { %11179 = vmatpush3.bf16.msra.mxu0 %v12688_v51  ;;  %v12723_v51 = vld [vmem:[#allocation10 + $0x1e0] sm:$0xff]  }
 0x1ba   : > { %11180 = vmatprep.subr.bf16.mxu0 %v12691_v55  ;;  %10979 = vmatpush3.bf16.msra.mxu1 %v12778_v41  ;;  %v12740_v41 = vld [vmem:[#allocation10 + $0x218] sm:$0xff]  }
 0x1bb   : > { %10980 = vmatprep.subr.bf16.mxu1 %v13597_v12 }
 0x1bc   : > { %11161 = vmatmul.mubr.bf16.gmra.mrb[12].mxu0 %v2513_v56  ;;  %v12724_v56 = vld [vmem:[#allocation10 + $0x1e8] sm:$0xff]  }
 0x1bd   : > { %11164 = vmatprep.mubr.bf16.mxu0 %v2515_v60  ;;  %11181 = vmatpush3.bf16.msra.mxu0 %v12691_v55  ;;  %v3033_v55 = vsel %vm1075_vm1, %v3030_v37, %v3032_v49  ;;  %v3035_v60 = vsel %vm1075_vm1, %v3032_v49, %v3034_v50 }
 0x1be   : > { %11182 = vmatprep.subr.bf16.mxu0 %v12692_v61  ;;  %10981 = vmatpush3.bf16.msra.mxu1 %v12781_v44  ;;  %v14383_v44 = vld [vmem:[%s14009_s18 + $0x228] sm:$0xf] }
 0x1bf   : > { %10982 = vmatprep.subr.bf16.mxu1 %v13597_v12  ;;  %v3036_v12 = vrot.slane %v12722_v48, 2  ;;  %v14392_v48 = vld [vmem:[%s14009_s18 + $0x234] sm:$0xf] }
 0x1c1   : > { %11183 = vmatpush3.bf16.msra.mxu0 %v12692_v61  ;;  %v3233_v61 = vld [vmem:[%s14009_s18 + $0x1e8] sm:$0xe] }
 0x1c2   : > { %11204 = vmatprep.subr.bf16.mxu0 %v12696_v63  ;;  %10983 = vmatpush3.bf16.msra.mxu1 %v12784_v53 }
 0x1c3   : > { %10988 = vmatprep.subr.bf16.mxu1 %v12787_v54 }
 0x1c4   : > { %11165 = vmatmul.mubr.bf16.gmra.mrb[16].mxu0 %v2517_v3  ;;  %v14317_v3 = vld [vmem:[%s14009_s18 + $0x1f0] sm:$0xf] }
 0x1c5   : > { %11184 = vmatprep.mubr.bf16.mxu0 %v9843_v4  ;;  %v12726_v4 = vld [vmem:[%s14009_s18 + $0x234] ss:$0 sps:$4 sm:$0x33]  }
 0x1cc   : > { %11185 = vmatmul.mubr.bf16.vlgmr.msra.gmra.mrb[0].mxu0 %v9844_v5  ;;  %v14321_v5 = vld [vmem:[%s14009_s18 + $0x1f4] sm:$0xf] }
 0x1cd   : > { %11188 = vmatprep.mubr.bf16.mxu0 %v9845_v8  ;;  %11205 = vmatpush3.bf16.msra.mxu0 %v12696_v63  ;;  %v12727_v63 = vld [vmem:[#allocation10 + $0x1f0] sm:$0xff]  }
 0x1ce   : > { %11206 = vmatprep.subr.bf16.mxu0 %v12697_v6  ;;  %v14327_v8 = vld [vmem:[%s14009_s18 + $0x1fc] sm:$0xf] }
 0x1d1   : > { %11207 = vmatpush3.bf16.msra.mxu0 %v12697_v6  ;;  %v14324_v6 = vld [vmem:[%s14009_s18 + $0x1f8] sm:$0xf] }
 0x1d2   : > { %11208 = vmatprep.subr.bf16.mxu0 %v12700_v9  ;;  %v9882_v1 = vcombine.low %v14324_v6, %v14327_v8 }
 0x1d4   : > { %11189 = vmatmul.mubr.bf16.gmra.mrb[4].mxu0 %v9846_v10  ;;  %v9880_v10 = vcombine.low %v3233_v61, %v14314_v62  ;;  %v3327_v15 = vrot.slane %v9882_v1, 1  ;;  %v12748_v61 = vld [vmem:[#allocation10 + $0x238] sm:$0xff]   ;;  %v12753_v1 = vld [vmem:[#allocation10 + $0x4c8] sm:$0xff]  }
 0x1d5   : > { %11192 = vmatprep.mubr.bf16.mxu0 %v9847_v36  ;;  %11209 = vmatpush3.bf16.msra.mxu0 %v12700_v9  ;;  %v14330_v9 = vld [vmem:[%s14009_s18 + $0x200] sm:$0xf]  ;;  %v9881_v36 = vcombine.low %v14317_v3, %v14321_v5 }
 0x1d6   : > { %11210 = vmatprep.subr.bf16.mxu0 %v12701_v13 }
 0x1d9   : > { %11211 = vmatpush3.bf16.msra.mxu0 %v12701_v13  ;;  %v14334_v13 = vld [vmem:[%s14009_s18 + $0x204] sm:$0xf] }
 0x1da   : > { %11212 = vmatprep.subr.bf16.mxu0 %v12704_v38 }
 0x1dc   : > { %11193 = vmatmul.mubr.bf16.gmra.mrb[8].mxu0 %v9848_v40  ;;  %v12728_v40 = vld [vmem:[#allocation10 + $0x1f8] sm:$0xff]  }
 0x1dd   : > { %11196 = vmatprep.mubr.bf16.mxu0 %v9849_v58  ;;  %11213 = vmatpush3.bf16.msra.mxu0 %v12704_v38  ;;  %v3037_v38 = vsel %vm1075_vm1, %v3034_v50, %v3036_v12  ;;  %v3040_v58 = vrot.slane %v12726_v4, 2  ;;  %v12752_v4 = vld [vmem:[#allocation10 + $0x4c0] sm:$0xff]  }
 0x1de   : > { %11214 = vmatprep.subr.bf16.mxu0 %v12705_v57 }
 0x1df   : > { %v3041_v17 = vsel %vm1075_vm1, %v3038_v59, %v3040_v58 }
 0x1e1   : > { %11215 = vmatpush3.bf16.msra.mxu0 %v12705_v57  ;;  %v3039_v57 = vsel %vm1075_vm1, %v3036_v12, %v3038_v59  ;;  %v12746_v12 = vld [vmem:[%s14009_s18 + $0x238] ss:$0 sps:$4 sm:$0x11]  }
 0x1e2   : > { %11216 = vmatprep.subr.bf16.mxu0 %v12708_v0 }
 0x1e4   : > { %11197 = vmatmul.mubr.bf16.gmra.mrb[12].mxu0 %v9850_v7  ;;  %v9883_v7 = vcombine.low %v14330_v9, %v14334_v13 }
 0x1e5   : > { %11200 = vmatprep.mubr.bf16.mxu0 %v9851_v16  ;;  %11217 = vmatpush3.bf16.msra.mxu0 %v12708_v0  ;;  %v3324_v0 = vrot.slane %v9880_v10, 1 }
 0x1e6   : > { %11218 = vmatprep.subr.bf16.mxu0 %v12709_v11  ;;  %v3329_v16 = vrot.slane %v9883_v7, 1  ;;  %v14421_v7 = vld [vmem:[%s14009_s18 + $0xfc] sm:$0xf] }
 0x1e8   : > { %v3330_v26 = vsel %vm666_vm0, %v3327_v15, %v3329_v16 }
 0x1e9   : > { %11219 = vmatpush3.bf16.msra.mxu0 %v12709_v11  ;;  %v3325_v11 = vrot.slane %v9881_v36, 1  ;;  %v9899_v36 = vcombine.low %v14314_v62, %v14317_v3  ;;  %v14424_v62 = vld [vmem:[%s14009_s18 + $0x100] sm:$0xf] }
 0x1ea   : > { %11240 = vmatprep.subr.bf16.mxu0 %v12715_v20  ;;  %v14428_v3 = vcombine.low %v14421_v7, %v14424_v62 }
 0x1eb   : > { %v3326_v18 = vsel %vm666_vm0, %v3324_v0, %v3325_v11  ;;  %v3328_v24 = vsel %vm666_vm0, %v3325_v11, %v3327_v15  ;;  %v9901_v0 = vcombine.low %v14327_v8, %v14330_v9  ;;  %v9902_v8 = vcombine.low %v14334_v13, %v14347_v19  ;;  %v12757_v15 = vld [vmem:[#allocation10 + $0x4d8] sm:$0xff]  }
 0x1ec   : > { %11201 = vmatmul.mubr.bf16.gmra.mrb[16].mxu0 %v9852_v22  ;;  %v14356_v22 = vld [vmem:[%s14009_s18 + $0x214] sm:$0xf] }
 0x1ed   : > { %11220 = vmatprep.mubr.bf16.mxu0 %v3023_v25  ;;  %v9885_v2 = vcombine.low %v14353_v21, %v14356_v22  ;;  %v12736_v25 = vld [vmem:[#allocation10 + $0x208] sm:$0xff]  }
 0x1ef   : > { %v3333_v28 = vrot.slane %v9885_v2, 1 }
 0x1f4   : > { %11221 = vmatmul.mubr.bf16.vlgmr.msra.gmra.mrb[0].mxu0 %v3025_v32  ;;  %v14371_v32 = vld [vmem:[%s14009_s18 + $0x220] sm:$0xf] }
 0x1f5   : > { %11224 = vmatprep.mubr.bf16.mxu0 %v3027_v33  ;;  %11241 = vmatpush3.bf16.msra.mxu0 %v12715_v20  ;;  %v14350_v20 = vld [vmem:[%s14009_s18 + $0x20c] sm:$0xf]  ;;  %v14374_v33 = vld [vmem:[%s14009_s18 + $0x224] sm:$0xf] }
 0x1f6   : > { %11242 = vmatprep.subr.bf16.mxu0 %v12716_v34  ;;  %v9884_v23 = vcombine.low %v14347_v19, %v14350_v20  ;;  %v9887_v35 = vcombine.low %v14371_v32, %v14374_v33 }
 0x1f8   : > { %v3331_v27 = vrot.slane %v9884_v23, 1  ;;  %v3337_v43 = vrot.slane %v9887_v35, 1 }
 0x1f9   : > { %11243 = vmatpush3.bf16.msra.mxu0 %v12716_v34  ;;  %v9886_v34 = vcombine.low %v14365_v29, %v14368_v30 }
 0x1fa   : > { %11244 = vmatprep.subr.bf16.mxu0 %v12719_v39  ;;  %v3332_v37 = vsel %vm666_vm0, %v3329_v16, %v3331_v27  ;;  %v14443_v16 = vld [vmem:[#allocation7] ss:$0 sm:$0xff] }
 0x1fb   : > { %v3335_v42 = vrot.slane %v9886_v34, 1  ;;  %v12762_v34 = vld [vmem:[#allocation10 + $0x4e8] sm:$0xff]  }
 0x1fc   : > { %11225 = vmatmul.mubr.bf16.gmra.mrb[4].mxu0 %v3029_v45  ;;  %v14386_v45 = vld [vmem:[%s14009_s18 + $0x22c] sm:$0xf] }
 0x1fd   : > { %11228 = vmatprep.mubr.bf16.mxu0 %v3031_v46  ;;  %11245 = vmatpush3.bf16.msra.mxu0 %v12719_v39  ;;  %v3334_v39 = vsel %vm666_vm0, %v3331_v27, %v3333_v28  ;;  %v12743_v46 = vld [vmem:[#allocation10 + $0x220] sm:$0xff]   ;;  %v3336_v49 = vsel %vm666_vm0, %v3333_v28, %v3335_v42  ;;  %v9888_v50 = vcombine.low %v14383_v44, %v14386_v45 }
 0x1fe   : > { %11246 = vmatprep.subr.bf16.mxu0 %v12720_v47  ;;  %v9905_v27 = vcombine.low %v14368_v30, %v14371_v32  ;;  %v12766_v30 = vld [vmem:[#allocation10 + $0x4f0] sm:$0xff]  }
 0x1ff   : > { %v3339_v54 = vrot.slane %v9888_v50, 1 }
 0x201   : > { %11247 = vmatpush3.bf16.msra.mxu0 %v12720_v47  ;;  %v14389_v47 = vld [vmem:[%s14009_s18 + $0x230] sm:$0xf]  ;;  %v3340_v59 = vsel %vm666_vm0, %v3337_v43, %v3339_v54 }
 0x202   : > { %11248 = vmatprep.subr.bf16.mxu0 %v12723_v51  ;;  %v9889_v53 = vcombine.low %v14389_v47, %v14392_v48 }
 0x204   : > { %11229 = vmatmul.mubr.bf16.gmra.mrb[8].mxu0 %v3033_v55  ;;  %v3341_v55 = vrot.slane %v9889_v53, 1 }
 0x205   : > { %11232 = vmatprep.mubr.bf16.mxu0 %v3035_v60  ;;  %11249 = vmatpush3.bf16.msra.mxu0 %v12723_v51  ;;  %v3338_v51 = vsel %vm666_vm0, %v3335_v42, %v3337_v43 }
 0x206   : > { %11250 = vmatprep.subr.bf16.mxu0 %v12724_v56  ;;  %v3342_v60 = vsel %vm666_vm0, %v3339_v54, %v3341_v55 }
 0x209   : > { %11251 = vmatpush3.bf16.msra.mxu0 %v12724_v56  ;;  %v12747_v56 = vld [vmem:[#allocation10 + $0x230] sm:$0xff]  }
 0x20a   : > { %11252 = vmatprep.subr.bf16.mxu0 %v12727_v63 }
 0x20c   : > { %11233 = vmatmul.mubr.bf16.gmra.mrb[12].mxu0 %v3037_v38  ;;  %v14407_v38 = vld [vmem:[%s14009_s18 + $0x104] sm:$0xf] }
 0x20d   : > { %11236 = vmatprep.mubr.bf16.mxu0 %v3039_v57  ;;  %11253 = vmatpush3.bf16.msra.mxu0 %v12727_v63  ;;  %v3343_v63 = vrot.slane %v12746_v12, 1  ;;  %v9900_v57 = vcombine.low %v14321_v5, %v14324_v6  ;;  %v12756_v5 = vld [vmem:[#allocation10 + $0x4d0] sm:$0xff]   ;;  %v1700_v6 = vrot.slane %v14428_v3, 2  ;;  %v9906_v12 = vcombine.low %v14374_v33, %v14383_v44  ;;  %v12768_v33 = vld [vmem:[#allocation10 + $0x4f8] sm:$0xff]  }
 0x20e   : > { %11254 = vmatprep.subr.bf16.mxu0 %v12728_v40  ;;  %v14482_v44 = vld [vmem:[%s14009_s18 + $0x10] sm:$0xff]  }
 0x20f   : > { %v3344_v10 = vsel %vm666_vm0, %v3341_v55, %v3343_v63 }
 0x211   : > { %11255 = vmatpush3.bf16.msra.mxu0 %v12728_v40  ;;  %v14410_v40 = vld [vmem:[%s14009_s18 + $0x108] sm:$0xf] }
 0x212   : > { %11276 = vmatprep.subr.bf16.mxu0 %v12735_v14  ;;  %v14416_v58 = vcombine.low %v14407_v38, %v14410_v40 }
 0x214   : > { %11237 = vmatmul.mubr.bf16.gmra.mrb[16].mxu0 %v3041_v17  ;;  %v1702_v11 = vrot.slane %v14416_v58, 2  ;;  %v14445_v17 = vld [vmem:[#allocation8] ss:$0 sm:$0xff] }
 0x215   : > { %11256 = vmatprep.mubr.bf16.mxu0 %v3326_v18  ;;  %v12760_v18 = vld [vmem:[#allocation10 + $0x4e0] sm:$0xff]  }
 0x216   : > { %v14439_v9 = vsel %vm1075_vm1, %v1700_v6, %v1702_v11 }
 0x21c   : > { %11257 = vmatmul.mubr.bf16.vlgmr.msra.gmra.mrb[0].mxu0 %v3328_v24 }
 0x21d   : > { %11260 = vmatprep.mubr.bf16.mxu0 %v3330_v26  ;;  %11277 = vmatpush3.bf16.msra.mxu0 %v12735_v14  ;;  %v9903_v14 = vcombine.low %v14350_v20, %v14353_v21  ;;  %v9904_v20 = vcombine.low %v14356_v22, %v14365_v29 }
 0x21e   : > { %11278 = vmatprep.subr.bf16.mxu0 %v12736_v25 }
 0x221   : > { %11279 = vmatpush3.bf16.msra.mxu0 %v12736_v25 }
 0x222   : > { %11280 = vmatprep.subr.bf16.mxu0 %v12739_v31 }
 0x224   : > { %11261 = vmatmul.mubr.bf16.gmra.mrb[4].mxu0 %v3332_v37 }
 0x225   : > { %11264 = vmatprep.mubr.bf16.mxu0 %v3334_v39  ;;  %11281 = vmatpush3.bf16.msra.mxu0 %v12739_v31  ;;  %v14461_v39 = vld [vmem:[%s14009_s18 + $0xc] sm:$0xf] }
 0x226   : > { %11282 = vmatprep.subr.bf16.mxu0 %v12740_v41 }
 0x229   : > { %11283 = vmatpush3.bf16.msra.mxu0 %v12740_v41 }
 0x22a   : > { %11284 = vmatprep.subr.bf16.mxu0 %v12743_v46 }
 0x22c   : > { %11265 = vmatmul.mubr.bf16.gmra.mrb[8].mxu0 %v3336_v49  ;;  %v6763_v49 = vld [vmem:[%s14009_s18 + $0x8] sm:$0xe] }
 0x22d   : > { %11268 = vmatprep.mubr.bf16.mxu0 %v3338_v51  ;;  %11285 = vmatpush3.bf16.msra.mxu0 %v12743_v46  ;;  %v10124_v63 = vcombine.low %v6763_v49, %v14461_v39 }
 0x22e   : > { %11286 = vmatprep.subr.bf16.mxu0 %v12744_v52 }
 0x231   : > { %11287 = vmatpush3.bf16.msra.mxu0 %v12744_v52 }
 0x232   : > { %11288 = vmatprep.subr.bf16.mxu0 %v12747_v56 }
 0x234   : > { %11269 = vmatmul.mubr.bf16.gmra.mrb[12].mxu0 %v3340_v59 }
 0x235   : > { %11272 = vmatprep.mubr.bf16.mxu0 %v3342_v60  ;;  %11289 = vmatpush3.bf16.msra.mxu0 %v12747_v56 }
 0x236   : > { %11290 = vmatprep.subr.bf16.mxu0 %v12748_v61 }
 0x239   : > { %11291 = vmatpush3.bf16.msra.mxu0 %v12748_v61  ;;  %v9907_v61 = vcombine.low %v14386_v45, %v14389_v47 }
 0x23a   : > { %11636 = vmatprep.subr.bf16.mxu0 %v12752_v4 }
 0x23c   : > { %11273 = vmatmul.mubr.bf16.gmra.mrb[16].mxu0 %v3344_v10 }
 0x23d   : > { %11292 = vmatprep.mubr.bf16.mxu0 %v9899_v36 }
 0x244   : > { %11293 = vmatmul.mubr.bf16.vlgmr.msra.gmra.mrb[0].mxu0 %v9900_v57 }
 0x245   : > { %11296 = vmatprep.mubr.bf16.mxu0 %v9901_v0  ;;  %11637 = vmatpush3.bf16.msra.mxu0 %v12752_v4  ;;  %v3536_v0 = vld [vmem:[%s14009_s18 + $0x238] sm:$0xf] }
 0x246   : > { %11638 = vmatprep.subr.bf16.mxu0 %v12753_v1 }
 0x249   : > { %11639 = vmatpush3.bf16.msra.mxu0 %v12753_v1 }
 0x24a   : > { %11640 = vmatprep.subr.bf16.mxu0 %v12756_v5 }
 0x24c   : > { %11297 = vmatmul.mubr.bf16.gmra.mrb[4].mxu0 %v9902_v8  ;;  %v6837_v8 = vrot.slane %v10124_v63, 1 }
 0x24d   : > { %11300 = vmatprep.mubr.bf16.mxu0 %v9903_v14  ;;  %11641 = vmatpush3.bf16.msra.mxu0 %v12756_v5 }
 0x24e   : > { %v10930_v13 = vpop.f32.mrb[0].mxu1  ;;  %11642 = vmatprep.subr.bf16.mxu0 %v12757_v15 }
 0x24f   : > { %v868_v19 = vmul.f32 %v10930_v13, %v14443_v16  ;;  %v780_v23 = vpop.f32.mrb[1].mxu1 }
 0x250   : > { %v866_v2 = vmul.f32 %v14443_v16, %v780_v23  ;;  %v10931_v24 = vpop.f32.mrb[2].mxu1 }
 0x251   : > { %v895_v21 = vadd.f32 %v14445_v17, %v868_v19  ;;  %v869_v25 = vmul.f32 %v10931_v24, %v14443_v16  ;;  %v783_v26 = vpop.f32.mrb[3].mxu1  ;;  %11643 = vmatpush3.bf16.msra.mxu0 %v12757_v15  ;;  %v14488_v19 = vld [vmem:[#allocation10 + $0x480] sm:$0xff]  }
 0x252   : > { %v893_v28 = vadd.f32 %v14445_v17, %v866_v2  ;;  %v867_v31 = vmul.f32 %v14443_v16, %v783_v26  ;;  %11644 = vmatprep.subr.bf16.mxu0 %v12760_v18  ;;  %v9908_v26 = vcombine.low %v14392_v48, %v3536_v0  ;;  %v14507_v48 = vld [vmem:[%s14009_s18 + $0x20] sm:$0xff]  }
 0x253   : > { %v915_v35 = vmax.f32 %v895_v21, 0.0  ;;  %v896_v37 = vadd.f32 %v14445_v17, %v869_v25  ;;  %v12776_v0 = vld [vmem:[#allocation10 + $0x488] sm:$0xff]  }
 0x254   : > { %v913_v22 = vmax.f32 %v893_v28, 0.0  ;;  %v894_v29 = vadd.f32 %v14445_v17, %v867_v31  ;;  %11301 = vmatmul.mubr.bf16.gmra.mrb[8].mxu0 %v9904_v20 }
 0x255   : > { %v10312_v41 = vpack.c.bf16 %v915_v35, %v915_v35  ;;  %v916_v42 = vmax.f32 %v896_v37, 0.0  ;;  %11304 = vmatprep.mubr.bf16.mxu0 %v9905_v27  ;;  %11645 = vmatpush3.bf16.msra.mxu0 %v12760_v18  ;;  %v6838_v18 = vrot.slane %v14482_v44, 1 }
 0x256   : > { %v10310_v32 = vpack.c.bf16 %v913_v22, %v913_v22  ;;  %v914_v43 = vmax.f32 %v894_v29, 0.0  ;;  %v10934_v46 = vpop.f32.mrb[4].mxu1  ;;  %11646 = vmatprep.subr.bf16.mxu0 %v12762_v34 }
 0x257   : > { %1015 = vst [vmem:[%s14464_s0 + $0x20] sm:$0xf] %v10312_v41  ;;  %v10313_v50 = vpack.c.bf16 %v916_v42, %v916_v42  ;;  %v872_v51 = vmul.f32 %v10934_v46, %v14443_v16  ;;  %v796_v52 = vpop.f32.mrb[5].mxu1  ;;  %v6839_v22 = vsel %vm666_vm0, %v6837_v8, %v6838_v18 }
 0x258   : > { %1013 = vst [vmem:[%s14464_s0] sm:$0xf] %v10310_v32  ;;  %v10311_v53 = vpack.c.bf16 %v914_v43, %v914_v43  ;;  %v870_v54 = vmul.f32 %v14443_v16, %v796_v52  ;;  %v10935_v55 = vpop.f32.mrb[6].mxu1  ;;  %v6842_v52 = vrot.slane %v14507_v48, 1 }
 0x259   : > { %1016 = vst [vmem:[%s14464_s0 + $0x30] sm:$0xf] %v10313_v50  ;;  %v899_v56 = vadd.f32 %v14445_v17, %v872_v51  ;;  %v873_v59 = vmul.f32 %v10935_v55, %v14443_v16  ;;  %v799_v60 = vpop.f32.mrb[7].mxu1  ;;  %11647 = vmatpush3.bf16.msra.mxu0 %v12762_v34  ;;  %v14499_v34 = vld [vmem:[%s14009_s18 + $0x18] sm:$0xff]  }
 0x25a   : > { %1014 = vst [vmem:[%s14464_s0 + $0x10] sm:$0xf] %v10311_v53  ;;  %v897_v4 = vadd.f32 %v14445_v17, %v870_v54  ;;  %v871_v10 = vmul.f32 %v14443_v16, %v799_v60  ;;  %11648 = vmatprep.subr.bf16.mxu0 %v12766_v30  ;;  %v6840_v46 = vrot.slane %v14499_v34, 1 }
 0x25b   : > { %v919_v36 = vmax.f32 %v899_v56, 0.0  ;;  %v900_v57 = vadd.f32 %v14445_v17, %v873_v59 }
 0x25c   : > { %v917_v1 = vmax.f32 %v897_v4, 0.0  ;;  %v898_v5 = vadd.f32 %v14445_v17, %v871_v10  ;;  %11305 = vmatmul.mubr.bf16.gmra.mrb[12].mxu0 %v9906_v12  ;;  %v14516_v12 = vld [vmem:[%s14009_s18 + $0x28] sm:$0xff]   ;;  %v6841_v10 = vsel %vm666_vm0, %v6838_v18, %v6840_v46 }
 0x25d   : > { %v10316_v45 = vpack.c.bf16 %v919_v36, %v919_v36  ;;  %v920_v47 = vmax.f32 %v900_v57, 0.0  ;;  %11308 = vmatprep.mubr.bf16.mxu0 %v9907_v61  ;;  %11649 = vmatpush3.bf16.msra.mxu0 %v12766_v30 }
 0x25e   : > { %v10314_v14 = vpack.c.bf16 %v917_v1, %v917_v1  ;;  %v918_v15 = vmax.f32 %v898_v5, 0.0  ;;  %v10938_v13 = vpop.f32.mrb[8].mxu1  ;;  %11650 = vmatprep.subr.bf16.mxu0 %v12768_v33  ;;  %v6843_v1 = vsel %vm666_vm0, %v6840_v46, %v6842_v52 }
 0x25f   : > { %1019 = vst [vmem:[%s14464_s0 + $0x60] sm:$0xf] %v10316_v45  ;;  %v10317_v23 = vpack.c.bf16 %v920_v47, %v920_v47  ;;  %v876_v2 = vmul.f32 %v10938_v13, %v14443_v16  ;;  %v812_v24 = vpop.f32.mrb[9].mxu1  ;;  %v6844_v47 = vrot.slane %v14516_v12, 1 }
 0x260   : > { %1017 = vst [vmem:[%s14464_s0 + $0x40] sm:$0xf] %v10314_v14  ;;  %v10315_v20 = vpack.c.bf16 %v918_v15, %v918_v15  ;;  %v874_v21 = vmul.f32 %v14443_v16, %v812_v24  ;;  %v10939_v25 = vpop.f32.mrb[10].mxu1  ;;  %v12780_v15 = vld [vmem:[#allocation10 + $0x490] sm:$0xff]  }
 0x261   : > { %1020 = vst [vmem:[%s14464_s0 + $0x70] sm:$0xf] %v10317_v23  ;;  %v903_v27 = vadd.f32 %v14445_v17, %v876_v2  ;;  %v877_v28 = vmul.f32 %v10939_v25, %v14443_v16  ;;  %v815_v31 = vpop.f32.mrb[11].mxu1  ;;  %11651 = vmatpush3.bf16.msra.mxu0 %v12768_v33  ;;  %v14525_v33 = vld [vmem:[%s14009_s18 + $0x30] sm:$0xff]  }
 0x262   : > { %1018 = vst [vmem:[%s14464_s0 + $0x50] sm:$0xf] %v10315_v20  ;;  %v901_v35 = vadd.f32 %v14445_v17, %v874_v21  ;;  %v875_v37 = vmul.f32 %v14443_v16, %v815_v31  ;;  %11672 = vmatprep.subr.bf16.mxu0 %v14488_v19  ;;  %v6846_v23 = vrot.slane %v14525_v33, 1  ;;  %v14541_v31 = vld [vmem:[%s14009_s18 + $0x38] sm:$0xff]  }
 0x263   : > { %v923_v29 = vmax.f32 %v903_v27, 0.0  ;;  %v904_v41 = vadd.f32 %v14445_v17, %v877_v28 }
 0x264   : > { %v921_v42 = vmax.f32 %v901_v35, 0.0  ;;  %v902_v30 = vadd.f32 %v14445_v17, %v875_v37  ;;  %11309 = vmatmul.mubr.bf16.gmra.mrb[16].mxu0 %v9908_v26 }
 0x265   : > { %v10320_v32 = vpack.c.bf16 %v923_v29, %v923_v29  ;;  %v924_v43 = vmax.f32 %v904_v41, 0.0  ;;  %11652 = vmatprep.mubr.bf16.mxu0 %v6839_v22  ;;  %v6845_v29 = vsel %vm666_vm0, %v6842_v52, %v6844_v47  ;;  %v12782_v41 = vld [vmem:[#allocation10 + $0x498] sm:$0xff]   ;;  %v6848_v52 = vrot.slane %v14541_v31, 1 }
 0x266   : > { %v10318_v49 = vpack.c.bf16 %v921_v42, %v921_v42  ;;  %v922_v50 = vmax.f32 %v902_v30, 0.0  ;;  %v10942_v51 = vpop.f32.mrb[12].mxu1 }
 0x267   : > { %1023 = vst [vmem:[%s14464_s0 + $0xa0] sm:$0xf] %v10320_v32  ;;  %v10321_v53 = vpack.c.bf16 %v924_v43, %v924_v43  ;;  %v880_v54 = vmul.f32 %v10942_v51, %v14443_v16  ;;  %v828_v55 = vpop.f32.mrb[13].mxu1  ;;  %v6847_v32 = vsel %vm666_vm0, %v6844_v47, %v6846_v23  ;;  %v14552_v43 = vld [vmem:[%s14009_s18 + $0x40] sm:$0xff]  }
 0x268   : > { %1021 = vst [vmem:[%s14464_s0 + $0x80] sm:$0xf] %v10318_v49  ;;  %v10319_v56 = vpack.c.bf16 %v922_v50, %v922_v50  ;;  %v878_v59 = vmul.f32 %v14443_v16, %v828_v55  ;;  %v10943_v60 = vpop.f32.mrb[14].mxu1  ;;  %v1268_v55 = vld [vmem:[#allocation16] sm:$0x1] }
 0x269   : > { %1024 = vst [vmem:[%s14464_s0 + $0xb0] sm:$0xf] %v10321_v53  ;;  %v907_v61 = vadd.f32 %v14445_v17, %v880_v54  ;;  %v881_v63 = vmul.f32 %v10943_v60, %v14443_v16  ;;  %v831_v4 = vpop.f32.mrb[15].mxu1  ;;  %v1416_v53 = vld [vmem:[%s14009_s18 + $0xf8] sm:$0xe] }
 0x26a   : > { %1022 = vst [vmem:[%s14464_s0 + $0x90] sm:$0xf] %v10319_v56  ;;  %v905_v36 = vadd.f32 %v14445_v17, %v878_v59  ;;  %v879_v57 = vmul.f32 %v14443_v16, %v831_v4  ;;  %v12786_v56 = vld [vmem:[#allocation10 + $0x4a0] sm:$0xff]   ;;  %v1270_v4 = vld [vmem:[#allocation17] sm:$0x1] }
 0x26b   : > { %v927_v5 = vmax.f32 %v907_v61, 0.0  ;;  %v908_v45 = vadd.f32 %v14445_v17, %v881_v63  ;;  %v6850_v61 = vrot.slane %v14552_v43, 1  ;;  %v14560_v63 = vld [vmem:[%s14009_s18 + $0x48] sm:$0xff]   ;;  %v12788_v47 = vld [vmem:[#allocation10 + $0x4a8] sm:$0xff]  }
 0x26c   : > { %v925_v8 = vmax.f32 %v905_v36, 0.0  ;;  %v906_v14 = vadd.f32 %v14445_v17, %v879_v57  ;;  %11653 = vmatmul.mubr.bf16.vlgmr.msra.gmra.mrb[20].mxu0 %v6841_v10  ;;  %v9758_v36 = vcombine.low %v1416_v53, %v14421_v7  ;;  %v9759_v57 = vcombine.low %v14424_v62, %v14407_v38 }
 0x26d   : > { %v10324_v13 = vpack.c.bf16 %v927_v5, %v927_v5  ;;  %v928_v18 = vmax.f32 %v908_v45, 0.0  ;;  %11673 = vmatpush3.bf16.msra.mxu0 %v14488_v19  ;;  %11656 = vmatprep.mubr.bf16.mxu0 %v6843_v1  ;;  %v6849_v1 = vsel %vm666_vm0, %v6846_v23, %v6848_v52  ;;  %v6852_v7 = vrot.slane %v14560_v63, 1  ;;  %v12789_v23 = vld [vmem:[#allocation10 + $0x48] sm:$0xff]  }
 0x26e   : > { %v10322_v2 = vpack.c.bf16 %v925_v8, %v925_v8  ;;  %v926_v24 = vmax.f32 %v906_v14, 0.0  ;;  %v10946_v20 = vpop.f32.mrb[16].mxu1  ;;  %11674 = vmatprep.subr.bf16.mxu0 %v12776_v0  ;;  %v6851_v8 = vsel %vm666_vm0, %v6848_v52, %v6850_v61  ;;  %v1489_v38 = vrot.slane %v9758_v36, 1  ;;  %v12802_v52 = vld [vmem:[#allocation10 + $0x78] sm:$0xff]  }
 0x26f   : > { %1027 = vst [vmem:[%s14464_s0 + $0xe0] sm:$0xf] %v10324_v13  ;;  %v10325_v21 = vpack.c.bf16 %v928_v18, %v928_v18  ;;  %v884_v25 = vmul.f32 %v10946_v20, %v14443_v16  ;;  %v844_v26 = vpop.f32.mrb[17].mxu1  ;;  %v14572_v62 = vrot.slane %v9759_v57, 1  ;;  %v12822_v36 = vld [vmem:[%s14009_s18 + $0x10] sm:$0xfc]  }
 0x270   : > { %1025 = vst [vmem:[%s14464_s0 + $0xc0] sm:$0xf] %v10322_v2  ;;  %v10323_v27 = vpack.c.bf16 %v926_v24, %v926_v24  ;;  %v882_v28 = vmul.f32 %v14443_v16, %v844_v26  ;;  %v10947_v19 = vpop.f32.mrb[18].mxu1  ;;  %v12792_v2 = vld [vmem:[#allocation10 + $0x4b0] sm:$0xff]   ;;  %v12794_v26 = vld [vmem:[#allocation10 + $0x4b8] sm:$0xff]  }
 0x271   : > { %1028 = vst [vmem:[%s14464_s0 + $0xf0] sm:$0xf] %v10325_v21  ;;  %v911_v35 = vadd.f32 %v14445_v17, %v884_v25  ;;  %v885_v37 = vmul.f32 %v10947_v19, %v14443_v16  ;;  %11675 = vmatpush3.bf16.msra.mxu0 %v12776_v0  ;;  %v847_v22 = vpop.f32.mrb[19].mxu1  ;;  %v1491_v20 = vsel %vm666_vm0, %v1489_v38, %v14572_v62  ;;  %v12796_v25 = vld [vmem:[%s14009_s18] sm:$0xff]  }
 0x272   : > { %1026 = vst [vmem:[%s14464_s0 + $0xd0] sm:$0xf] %v10323_v27  ;;  %v909_v42 = vadd.f32 %v14445_v17, %v882_v28  ;;  %v883_v30 = vmul.f32 %v14443_v16, %v847_v22  ;;  %11676 = vmatprep.subr.bf16.mxu0 %v12780_v15  ;;  %v6853_v21 = vsel %vm666_vm0, %v6850_v61, %v6852_v7  ;;  %v6728_v27 = vld [vmem:[%s14009_s18 + $0x8] sm:$0xf]  ;;  %v13145_v28 = vld [vmem:[#allocation10 + $0x40] sm:$0xff]  }
 0x273   : > { %v931_v46 = vmax.f32 %v911_v35, 0.0  ;;  %v912_v49 = vadd.f32 %v14445_v17, %v885_v37  ;;  %v12793_v19 = vld [vmem:[#allocation10 + $0x50] sm:$0xff]   ;;  %v12799_v35 = vld [vmem:[#allocation10 + $0x500] sm:$0xff]   ;;  %v12795_v37 = vld [vmem:[#allocation10 + $0x58] sm:$0xff]   ;;  %v10144_v22 = vcombine.low %v6728_v27, %v14461_v39 }
 0x274   : > { %v929_v50 = vmax.f32 %v909_v42, 0.0  ;;  %v910_v51 = vadd.f32 %v14445_v17, %v883_v30  ;;  %11657 = vmatmul.mubr.bf16.gmra.mrb[24].mxu0 %v6845_v29  ;;  %v12801_v29 = vld [vmem:[#allocation10 + $0x508] sm:$0xff]   ;;  %v12803_v42 = vld [vmem:[#allocation10 + $0x510] sm:$0xff]   ;;  %v12809_v39 = vld [vmem:[#allocation10 + $0x518] sm:$0xff]  }
 0x275   : > { %v10328_v54 = vpack.c.bf16 %v931_v46, %v931_v46  ;;  %v932_v16 = vmax.f32 %v912_v49, 0.0  ;;  %11677 = vmatpush3.bf16.msra.mxu0 %v12780_v15  ;;  %11660 = vmatprep.mubr.bf16.mxu0 %v6847_v32  ;;  %v12798_v30 = vld [vmem:[#allocation10 + $0x68] sm:$0xff]   ;;  %v14584_v32 = vld [vmem:[%s14009_s18 + $0x10c] sm:$0xf]  ;;  %v14588_v49 = vld [vmem:[%s14009_s18 + $0x110] sm:$0xf] }
 0x276   : > { %v10326_v59 = vpack.c.bf16 %v929_v50, %v929_v50  ;;  %v930_v60 = vmax.f32 %v910_v51, 0.0  ;;  %11678 = vmatprep.subr.bf16.mxu0 %v12782_v41  ;;  %v1262_v0 = vpop.f32.mrb[20].mxu1  ;;  %v12800_v46 = vld [vmem:[#allocation10 + $0x70] sm:$0xff]   ;;  %v9760_v50 = vcombine.low %v14410_v40, %v14584_v32  ;;  %v12811_v51 = vld [vmem:[#allocation10 + $0x520] sm:$0xff]  }
 0x277   : > { %1031 = vst [vmem:[%s14464_s0 + $0x120] sm:$0xf] %v10328_v54  ;;  %v10329_v17 = vpack.c.bf16 %v932_v16, %v932_v16  ;;  %v1269_v5 = vmul.f32 %v1268_v55, %v1262_v0  ;;  %v10966_v45 = vpop.f32.mrb[21].mxu1  ;;  %v12814_v54 = vld [vmem:[#allocation10 + $0x528] sm:$0xff]   ;;  %v14602_v16 = vld [vmem:[%s14009_s18 + $0x11c] sm:$0xf] }
 0x278   : > { %1029 = vst [vmem:[%s14464_s0 + $0x100] sm:$0xf] %v10326_v59  ;;  %v10327_v10 = vpack.c.bf16 %v930_v60, %v930_v60  ;;  %v1265_v14 = vpop.f32.mrb[22].mxu1  ;;  %v1492_v53 = vrot.slane %v9760_v50, 1  ;;  %v12808_v40 = vld [vmem:[#allocation10] sm:$0xff]   ;;  %v12816_v61 = vld [vmem:[#allocation10 + $0x530] sm:$0xff]  }
 0x279   : > { %1032 = vst [vmem:[%s14464_s0 + $0x130] sm:$0xf] %v10329_v17  ;;  %11679 = vmatpush3.bf16.msra.mxu0 %v12782_v41  ;;  %v1271_v15 = vadd.f32 %v1270_v4, %v1269_v5  ;;  %v10967_v13 = vpop.f32.mrb[23].mxu1  ;;  %v12797_v41 = vld [vmem:[#allocation10 + $0x60] sm:$0xff]   ;;  %v14610_v59 = vld [vmem:[%s14009_s18 + $0x124] sm:$0xf] }
 0x27a   : > { %1030 = vst [vmem:[%s14464_s0 + $0x110] sm:$0xf] %v10327_v10  ;;  %11680 = vmatprep.subr.bf16.mxu0 %v12786_v56  ;;  %v12810_v17 = vld [vmem:[#allocation10 + $0x8] sm:$0xff]   ;;  %v14620_v10 = vld [vmem:[%s14009_s18 + $0x128] sm:$0xf] }
 0x27b   : > { %v1272_v18 = vmax.f32 %v1271_v15, 0.0  ;;  %v12820_v0 = vld [vmem:[#allocation10 + $0x538] sm:$0xff]   ;;  %v14625_v5 = vld [vmem:[%s14009_s18 + $0x12c] sm:$0xf]  ;;  %v7299_v15 = vrot.slane %v12822_v36, 2 }
 0x27c   : > { %11661 = vmatmul.mubr.bf16.gmra.mrb[28].mxu0 %v6849_v1  ;;  %v12823_v1 = vld [vmem:[%s14009_s18 + $0x18] sm:$0xff]   ;;  %v14632_v14 = vld [vmem:[%s14009_s18 + $0x134] sm:$0xf]  ;;  %v9764_v38 = vcombine.low %v14620_v10, %v14625_v5  ;;  %v12828_v27 = vld [vmem:[%s14009_s18 + $0x28] sm:$0xff]  }
 0x27d   : > { %11681 = vmatpush3.bf16.msra.mxu0 %v12786_v56  ;;  %11664 = vmatprep.mubr.bf16.mxu0 %v6851_v8  ;;  %v1273_v24 = vpack.c.bf16 %v1272_v18, %v1272_v18  ;;  %v14606_v56 = vld [vmem:[%s14009_s18 + $0x120] sm:$0xf]  ;;  %v14629_v8 = vld [vmem:[%s14009_s18 + $0x130] sm:$0xf]  ;;  %v12839_v36 = vld [vmem:[%s14009_s18 + $0xf4] sm:$0xfc]  }
 0x27e   : > { %11682 = vmatprep.subr.bf16.mxu0 %v12788_v47  ;;  %v12815_v45 = vld [vmem:[#allocation10 + $0x10] sm:$0xff]   ;;  %v12818_v13 = vld [vmem:[#allocation10 + $0x18] sm:$0xff]  }
 0x27f   : > { %10985 = vmatmul.mubr.bf16.vlgmr.msra.gmra.mrb[24].mxu1 %v1273_v24  ;;  %v1500_v24 = vrot.slane %v9764_v38, 1  ;;  %v12829_v50 = vld [vmem:[%s14009_s18 + $0x30] sm:$0xff]   ;;  %v1699_v38 = vrot.slane %v12839_v36, 2 }
 0x280   : > { %10989 = vmatpush3.bf16.msra.mxu1 %v13145_v28  ;;  %11004 = vmatprep.mubr.bf16.mxu1 %v1491_v20  ;;  %v12821_v20 = vld [vmem:[#allocation10 + $0x20] sm:$0xff]   ;;  %v12870_v36 = vld [vmem:[#allocation10 + $0x588] sm:$0xff]  }
 0x281   : > { %11683 = vmatpush3.bf16.msra.mxu0 %v12788_v47  ;;  %10990 = vmatprep.subr.bf16.mxu1 %v12789_v23 }
 0x282   : > { %11684 = vmatprep.subr.bf16.mxu0 %v12792_v2 }
 0x284   : > { %11665 = vmatmul.mubr.bf16.gmra.mrb[32].mxu0 %v6853_v21  ;;  %10991 = vmatpush3.bf16.msra.mxu1 %v12789_v23  ;;  %v12824_v23 = vld [vmem:[%s14009_s18 + $0x20] sm:$0xff]  }
 0x285   : > { %11685 = vmatpush3.bf16.msra.mxu0 %v12792_v2  ;;  %11688 = vmatprep.mubr.bf16.mxu0 %v12796_v25  ;;  %v9765_v2 = vcombine.low %v14629_v8, %v14632_v14  ;;  %v14644_v25 = vld [vmem:[%s14009_s18 + $0x138] sm:$0xf]  ;;  %v7302_v28 = vrot.slane %v12824_v23, 2 }
 0x286   : > { %11686 = vmatprep.subr.bf16.mxu0 %v12794_v26  ;;  %10992 = vmatprep.subr.bf16.mxu1 %v12793_v19  ;;  %v12846_v23 = vld [vmem:[#allocation10 + $0x560] sm:$0xff]  }
 0x288   : > { %10993 = vmatpush3.bf16.msra.mxu1 %v12793_v19  ;;  %v1502_v19 = vrot.slane %v9765_v2, 1 }
 0x289   : > { %11687 = vmatpush3.bf16.msra.mxu0 %v12794_v26  ;;  %10994 = vmatprep.subr.bf16.mxu1 %v12795_v37  ;;  %v14647_v26 = vld [vmem:[%s14009_s18 + $0x13c] sm:$0xf] }
 0x28a   : > { %11708 = vmatprep.subr.bf16.mxu0 %v12799_v35 }
 0x28c   : > { %11689 = vmatmul.mubr.bf16.vlgmr.msra.gmra.mrb[20].mxu0 %v10144_v22  ;;  %10995 = vmatpush3.bf16.msra.mxu1 %v12795_v37  ;;  %v14655_v37 = vld [vmem:[%s14009_s18 + $0x144] sm:$0xf]  ;;  %v7304_v22 = vrot.slane %v12828_v27, 2 }
 0x28d   : > { %11692 = vmatprep.mubr.bf16.mxu0 %v14482_v44  ;;  %11709 = vmatpush3.bf16.msra.mxu0 %v12799_v35  ;;  %v14592_v44 = vld [vmem:[%s14009_s18 + $0x114] sm:$0xf]  ;;  %v14652_v35 = vld [vmem:[%s14009_s18 + $0x140] sm:$0xf] }
 0x28e   : > { %11710 = vmatprep.subr.bf16.mxu0 %v12801_v29  ;;  %10996 = vmatprep.subr.bf16.mxu1 %v12797_v41  ;;  %v12849_v27 = vld [vmem:[#allocation10 + $0x568] sm:$0xff]  }
 0x290   : > { %10997 = vmatpush3.bf16.msra.mxu1 %v12797_v41  ;;  %v9766_v41 = vcombine.low %v14644_v25, %v14647_v26 }
 0x291   : > { %11711 = vmatpush3.bf16.msra.mxu0 %v12801_v29  ;;  %10998 = vmatprep.subr.bf16.mxu1 %v12798_v30 }
 0x292   : > { %11712 = vmatprep.subr.bf16.mxu0 %v12803_v42 }
 0x294   : > { %11693 = vmatmul.mubr.bf16.gmra.mrb[24].mxu0 %v14499_v34  ;;  %10999 = vmatpush3.bf16.msra.mxu1 %v12798_v30  ;;  %v9761_v34 = vcombine.low %v14588_v49, %v14592_v44  ;;  %v1503_v30 = vsel %vm666_vm0, %v1500_v24, %v1502_v19 }
 0x295   : > { %11696 = vmatprep.mubr.bf16.mxu0 %v14507_v48  ;;  %11713 = vmatpush3.bf16.msra.mxu0 %v12803_v42  ;;  %v14599_v48 = vld [vmem:[%s14009_s18 + $0x118] sm:$0xf] }
 0x296   : > { %11714 = vmatprep.subr.bf16.mxu0 %v12809_v39  ;;  %11000 = vmatprep.subr.bf16.mxu1 %v12800_v46  ;;  %v1494_v55 = vrot.slane %v9761_v34, 1  ;;  %v9762_v60 = vcombine.low %v14599_v48, %v14602_v16  ;;  %v12827_v42 = vld [vmem:[#allocation10 + $0x28] sm:$0xff]  }
 0x297   : > { %v12836_v34 = vld [vmem:[%s14009_s18 + $0x38] sm:$0xff]  }
 0x298   : > { %11001 = vmatpush3.bf16.msra.mxu1 %v12800_v46  ;;  %v1495_v4 = vsel %vm666_vm0, %v1492_v53, %v1494_v55  ;;  %v1496_v57 = vrot.slane %v9762_v60, 1  ;;  %v12833_v60 = vld [vmem:[%s14009_s18 + $0x148] ss:$0 sps:$4 sm:$0x11]  }
 0x299   : > { %11715 = vmatpush3.bf16.msra.mxu0 %v12809_v39  ;;  %11002 = vmatprep.subr.bf16.mxu1 %v12802_v52  ;;  %v9767_v39 = vcombine.low %v14652_v35, %v14655_v37 }
 0x29a   : > { %11716 = vmatprep.subr.bf16.mxu0 %v12811_v51  ;;  %v1497_v18 = vsel %vm666_vm0, %v1494_v55, %v1496_v57  ;;  %v7306_v55 = vrot.slane %v12829_v50, 2  ;;  %v12857_v50 = vld [vmem:[#allocation10 + $0x578] sm:$0xff]  }
 0x29c   : > { %11697 = vmatmul.mubr.bf16.gmra.mrb[28].mxu0 %v14516_v12  ;;  %11003 = vmatpush3.bf16.msra.mxu1 %v12802_v52  ;;  %v1493_v12 = vsel %vm666_vm0, %v14572_v62, %v1492_v53  ;;  %v7300_v62 = vrot.slane %v12823_v1, 2  ;;  %v12834_v52 = vld [vmem:[#allocation10 + $0x548] sm:$0xff]   ;;  %v1504_v53 = vrot.slane %v9766_v41, 1  ;;  %v14691_v41 = vcombine.low %v14592_v44, %v14599_v48 }
 0x29d   : > { %11700 = vmatprep.mubr.bf16.mxu0 %v14525_v33  ;;  %11717 = vmatpush3.bf16.msra.mxu0 %v12811_v51  ;;  %v9763_v33 = vcombine.low %v14606_v56, %v14610_v59  ;;  %v7305_v51 = vsel %vm1075_vm1, %v7302_v28, %v7304_v22 }
 0x29e   : > { %11718 = vmatprep.subr.bf16.mxu0 %v12814_v54  ;;  %11024 = vmatprep.subr.bf16.mxu1 %v12808_v40  ;;  %v7301_v21 = vsel %vm1075_vm1, %v7299_v15, %v7300_v62  ;;  %v7303_v46 = vsel %vm1075_vm1, %v7300_v62, %v7302_v28  ;;  %v1508_v15 = vrot.slane %v12833_v60, 1  ;;  %v12841_v62 = vld [vmem:[#allocation10 + $0x80] sm:$0xff]   ;;  %v1706_v44 = vrot.slane %v14691_v41, 2 }
 0x29f   : > { %11005 = vmatmul.mubr.bf16.vlgmr.msra.gmra.mrb[28].mxu1 %v1493_v12  ;;  %v1498_v47 = vrot.slane %v9763_v33, 1  ;;  %v7308_v12 = vrot.slane %v12836_v34, 2  ;;  %v1505_v33 = vsel %vm666_vm0, %v1502_v19, %v1504_v53  ;;  %v12851_v28 = vld [vmem:[%s14009_s18 + $0x58] sm:$0xff]   ;;  %v12860_v60 = vld [vmem:[%s14009_s18 + $0x170] sm:$0xff]  }
 0x2a0   : > { %11025 = vmatpush3.bf16.msra.mxu1 %v12808_v40  ;;  %11008 = vmatprep.mubr.bf16.mxu1 %v1495_v4  ;;  %v1506_v40 = vrot.slane %v9767_v39, 1  ;;  %v12838_v4 = vld [vmem:[#allocation10 + $0x550] sm:$0xff]  }
 0x2a1   : > { %11719 = vmatpush3.bf16.msra.mxu0 %v12814_v54  ;;  %11026 = vmatprep.subr.bf16.mxu1 %v12810_v17  ;;  %v1501_v29 = vsel %vm666_vm0, %v1498_v47, %v1500_v24  ;;  %v12831_v54 = vld [vmem:[#allocation10 + $0x30] sm:$0xff]   ;;  %v7309_v1 = vsel %vm1075_vm1, %v7306_v55, %v7308_v12  ;;  %v14682_v24 = vcombine.low %v14584_v32, %v14588_v49  ;;  %v7316_v32 = vrot.slane %v12851_v28, 2  ;;  %v12887_v28 = vld [vmem:[#allocation10 + $0x5b8] sm:$0xff]  }
 0x2a2   : > { %11720 = vmatprep.subr.bf16.mxu0 %v12816_v61  ;;  %v1509_v2 = vsel %vm666_vm0, %v1506_v40, %v1508_v15  ;;  %v12852_v49 = vld [vmem:[%s14009_s18 + $0x60] ss:$0 sps:$4 sm:$0x33]  }
 0x2a3   : > { %v7318_v48 = vrot.slane %v12852_v49, 2  ;;  %v12884_v49 = vld [vmem:[%s14009_s18 + $0x1b0] sm:$0xff]  }
 0x2a4   : > { %11701 = vmatmul.mubr.bf16.gmra.mrb[32].mxu0 %v14541_v31  ;;  %v12830_v31 = vld [vmem:[#allocation10 + $0x540] sm:$0xff]   ;;  %11027 = vmatpush3.bf16.msra.mxu1 %v12810_v17  ;;  %v12837_v17 = vld [vmem:[%s14009_s18 + $0x40] sm:$0xff]  }
 0x2a5   : > { %11704 = vmatprep.mubr.bf16.mxu0 %v14552_v43  ;;  %11721 = vmatpush3.bf16.msra.mxu0 %v12816_v61  ;;  %v1499_v43 = vsel %vm666_vm0, %v1496_v57, %v1498_v47  ;;  %v12835_v61 = vld [vmem:[#allocation10 + $0x38] sm:$0xff]   ;;  %v1507_v57 = vsel %vm666_vm0, %v1504_v53, %v1506_v40  ;;  %v14713_v53 = vcombine.low %v14625_v5, %v14629_v8  ;;  %v12863_v8 = vld [vmem:[#allocation10 + $0xa8] sm:$0xff]  }
 0x2a6   : > { %11722 = vmatprep.subr.bf16.mxu0 %v12820_v0  ;;  %11028 = vmatprep.subr.bf16.mxu1 %v12815_v45  ;;  %v12843_v47 = vld [vmem:[%s14009_s18 + $0x48] sm:$0xff]   ;;  %v14722_v5 = vcombine.low %v14632_v14, %v14644_v25 }
 0x2a7   : > { %11009 = vmatmul.mubr.bf16.gmra.mrb[32].mxu1 %v1497_v18  ;;  %v12845_v18 = vld [vmem:[%s14009_s18 + $0x50] sm:$0xff]   ;;  %v12859_v40 = vld [vmem:[%s14009_s18 + $0x168] sm:$0xff]  }
 0x2a8   : > { %11029 = vmatpush3.bf16.msra.mxu1 %v12815_v45  ;;  %11012 = vmatprep.mubr.bf16.mxu1 %v1499_v43  ;;  %v12842_v45 = vld [vmem:[#allocation10 + $0x558] sm:$0xff]   ;;  %v1701_v43 = vsel %vm1075_vm1, %v1699_v38, %v1700_v6  ;;  %v7314_v19 = vrot.slane %v12845_v18, 2  ;;  %v1704_v6 = vrot.slane %v14682_v24, 2  ;;  %v12867_v14 = vld [vmem:[#allocation10 + $0xb0] sm:$0xff]   ;;  %v12875_v38 = vld [vmem:[#allocation10 + $0x280] sm:$0xff]  }
 0x2a9   : > { %11723 = vmatpush3.bf16.msra.mxu0 %v12820_v0  ;;  %11030 = vmatprep.subr.bf16.mxu1 %v12818_v13  ;;  %v7307_v0 = vsel %vm1075_vm1, %v7304_v22, %v7306_v55  ;;  %v12853_v22 = vld [vmem:[#allocation10 + $0x570] sm:$0xff]   ;;  %v1712_v55 = vrot.slane %v14713_v53, 2  ;;  %v12873_v18 = vld [vmem:[%s14009_s18 + $0x190] sm:$0xff]  }
 0x2aa   : > { %11744 = vmatprep.subr.bf16.mxu0 %v12830_v31 }
 0x2ac   : > { %11705 = vmatmul.mubr.bf16.gmra.mrb[36].mxu0 %v14560_v63  ;;  %11031 = vmatpush3.bf16.msra.mxu1 %v12818_v13  ;;  %v7310_v13 = vrot.slane %v12837_v17, 2 }
 0x2ad   : > { %11724 = vmatprep.mubr.bf16.mxu0 %v7301_v21  ;;  %11032 = vmatprep.subr.bf16.mxu1 %v12821_v20 }
 0x2af   : > { %11013 = vmatmul.mubr.bf16.gmra.mrb[36].mxu1 %v1501_v29  ;;  %v12844_v29 = vld [vmem:[#allocation10 + $0x88] sm:$0xff]  }
 0x2b0   : > { %11033 = vmatpush3.bf16.msra.mxu1 %v12821_v20  ;;  %11016 = vmatprep.mubr.bf16.mxu1 %v1503_v30  ;;  %v7311_v20 = vsel %vm1075_vm1, %v7308_v12, %v7310_v13  ;;  %v14698_v30 = vcombine.low %v14602_v16, %v14606_v56  ;;  %v12866_v56 = vld [vmem:[#allocation10 + $0x580] sm:$0xff]  }
 0x2b1   : > { %11034 = vmatprep.subr.bf16.mxu1 %v12827_v42  ;;  %v12864_v12 = vld [vmem:[%s14009_s18 + $0x178] sm:$0xff]  }
 0x2b2   : > { %v1708_v16 = vrot.slane %v14698_v30, 2 }
 0x2b4   : > { %11725 = vmatmul.mubr.bf16.vlgmr.msra.gmra.mrb[20].mxu0 %v7303_v46  ;;  %11035 = vmatpush3.bf16.msra.mxu1 %v12827_v42  ;;  %v1705_v42 = vsel %vm1075_vm1, %v1702_v11, %v1704_v6  ;;  %v7317_v46 = vsel %vm1075_vm1, %v7314_v19, %v7316_v32  ;;  %v12850_v11 = vld [vmem:[#allocation10 + $0x90] sm:$0xff]   ;;  %v1709_v34 = vsel %vm1075_vm1, %v1706_v44, %v1708_v16 }
 0x2b5   : > { %11728 = vmatprep.mubr.bf16.mxu0 %v7305_v51  ;;  %11745 = vmatpush3.bf16.msra.mxu0 %v12830_v31  ;;  %v7312_v31 = vrot.slane %v12843_v47, 2  ;;  %v12855_v51 = vld [vmem:[#allocation10 + $0x98] sm:$0xff]  }
 0x2b6   : > { %11746 = vmatprep.subr.bf16.mxu0 %v12834_v52  ;;  %11036 = vmatprep.subr.bf16.mxu1 %v12831_v54  ;;  %v12872_v47 = vld [vmem:[%s14009_s18 + $0x188] sm:$0xff]  }
 0x2b7   : > { %11017 = vmatmul.mubr.bf16.gmra.mrb[40].mxu1 %v1505_v33  ;;  %v7313_v21 = vsel %vm1075_vm1, %v7310_v13, %v7312_v31  ;;  %v7315_v39 = vsel %vm1075_vm1, %v7312_v31, %v7314_v19  ;;  %v1714_v33 = vrot.slane %v14722_v5, 2  ;;  %v12876_v13 = vld [vmem:[#allocation10 + $0x598] sm:$0xff]  }
 0x2b8   : > { %11020 = vmatprep.mubr.bf16.mxu1 %v1507_v57  ;;  %11037 = vmatpush3.bf16.msra.mxu1 %v12831_v54  ;;  %v7319_v54 = vsel %vm1075_vm1, %v7316_v32, %v7318_v48  ;;  %v12869_v57 = vld [vmem:[%s14009_s18 + $0x144] ss:$0 sps:$4 sm:$0x33]   ;;  %v12889_v19 = vld [vmem:[%s14009_s18 + $0x170] sm:$0xfe]  }
 0x2b9   : > { %11747 = vmatpush3.bf16.msra.mxu0 %v12834_v52  ;;  %11038 = vmatprep.subr.bf16.mxu1 %v12835_v61  ;;  %v1707_v52 = vsel %vm1075_vm1, %v1704_v6, %v1706_v44  ;;  %v1718_v15 = vrot.slane %v12869_v57, 2  ;;  %v12890_v6 = vld [vmem:[%s14009_s18 + $0x178] sm:$0xff]   ;;  %v7880_v32 = vrot.slane %v12889_v19, 1  ;;  %v12894_v48 = vld [vmem:[%s14009_s18 + $0x190] sm:$0xff]   ;;  %v14801_v19 = vld [vmem:[%s14009_s18 + $0xa8] sm:$0xff]  }
 0x2ba   : > { %11748 = vmatprep.subr.bf16.mxu0 %v12838_v4  ;;  %v12892_v44 = vld [vmem:[#allocation10 + $0x2a8] sm:$0xff]  }
 0x2bc   : > { %11729 = vmatmul.mubr.bf16.gmra.mrb[24].mxu0 %v7307_v0  ;;  %11039 = vmatpush3.bf16.msra.mxu1 %v12835_v61  ;;  %v12865_v0 = vld [vmem:[%s14009_s18 + $0x180] sm:$0xff]  }
 0x2bd   : > { %11732 = vmatprep.mubr.bf16.mxu0 %v7309_v1  ;;  %11749 = vmatpush3.bf16.msra.mxu0 %v12838_v4  ;;  %v14729_v4 = vcombine.low %v14647_v26, %v14652_v35  ;;  %v12871_v1 = vld [vmem:[#allocation10 + $0xb8] sm:$0xff]   ;;  %v12874_v26 = vld [vmem:[#allocation10 + $0x590] sm:$0xff]   ;;  %v1715_v35 = vsel %vm1075_vm1, %v1712_v55, %v1714_v33 }
 0x2be   : > { %11750 = vmatprep.subr.bf16.mxu0 %v12842_v45  ;;  %11060 = vmatprep.subr.bf16.mxu1 %v12841_v62 }
 0x2bf   : > { %11021 = vmatmul.mubr.bf16.gmra.mrb[44].mxu1 %v1509_v2  ;;  %v1716_v25 = vrot.slane %v14729_v4, 2  ;;  %v12881_v2 = vld [vmem:[#allocation10 + $0x5a8] sm:$0xff]  }
 0x2c0   : > { %11040 = vmatprep.mubr.bf16.mxu1 %v1701_v43  ;;  %v12878_v43 = vld [vmem:[#allocation10 + $0x288] sm:$0xff]  }
 0x2c1   : > { %11751 = vmatpush3.bf16.msra.mxu0 %v12842_v45  ;;  %v1717_v45 = vsel %vm1075_vm1, %v1714_v33, %v1716_v25  ;;  %v1719_v31 = vsel %vm1075_vm1, %v1716_v25, %v1718_v15  ;;  %v14777_v25 = vld [vmem:[%s14009_s18 + $0x90] sm:$0xff]  }
 0x2c2   : > { %11752 = vmatprep.subr.bf16.mxu0 %v12846_v23  ;;  %v12914_v15 = vld [vmem:[#allocation10 + $0x5e8] sm:$0xff]  }
 0x2c4   : > { %11733 = vmatmul.mubr.bf16.gmra.mrb[28].mxu0 %v7311_v20  ;;  %v12879_v20 = vld [vmem:[%s14009_s18 + $0x1a0] sm:$0xff]  }
 0x2c5   : > { %11736 = vmatprep.mubr.bf16.mxu0 %v7313_v21  ;;  %11753 = vmatpush3.bf16.msra.mxu0 %v12846_v23  ;;  %v12877_v23 = vld [vmem:[%s14009_s18 + $0x198] sm:$0xff]  }
 0x2c6   : > { %11754 = vmatprep.subr.bf16.mxu0 %v12849_v27  ;;  %v12885_v21 = vld [vmem:[#allocation10 + $0x5b0] sm:$0xff]  }
 0x2c7   : > { %11041 = vmatmul.mubr.bf16.vlgmr.msra.gmra.mrb[28].mxu1 %v14439_v9  ;;  %v14707_v9 = vcombine.low %v14610_v59, %v14620_v10  ;;  %v12858_v10 = vld [vmem:[#allocation10 + $0xa0] sm:$0xff]  }
 0x2c8   : > { %11061 = vmatpush3.bf16.msra.mxu1 %v12841_v62  ;;  %11044 = vmatprep.mubr.bf16.mxu1 %v1705_v42  ;;  %v12880_v62 = vld [vmem:[#allocation10 + $0x5a0] sm:$0xff]  }
 0x2c9   : > { %11755 = vmatpush3.bf16.msra.mxu0 %v12849_v27  ;;  %11062 = vmatprep.subr.bf16.mxu1 %v12844_v29  ;;  %v1710_v59 = vrot.slane %v14707_v9, 2  ;;  %v12883_v27 = vld [vmem:[%s14009_s18 + $0x1a8] sm:$0xff]  }
 0x2ca   : > { %11756 = vmatprep.subr.bf16.mxu0 %v12853_v22  ;;  %v12895_v42 = vld [vmem:[#allocation10 + $0x5c0] sm:$0xff]  }
 0x2cb   : > { %v1711_v61 = vsel %vm1075_vm1, %v1708_v16, %v1710_v59  ;;  %v1713_v17 = vsel %vm1075_vm1, %v1710_v59, %v1712_v55  ;;  %v12902_v59 = vld [vmem:[#allocation10 + $0x5d0] sm:$0xff]  }
 0x2cc   : > { %11737 = vmatmul.mubr.bf16.gmra.mrb[32].mxu0 %v7315_v39  ;;  %11063 = vmatpush3.bf16.msra.mxu1 %v12844_v29  ;;  %v7881_v29 = vrot.slane %v12890_v6, 1  ;;  %v12893_v39 = vld [vmem:[%s14009_s18 + $0x188] sm:$0xff]  }
 0x2cd   : > { %11740 = vmatprep.mubr.bf16.mxu0 %v7317_v46  ;;  %11757 = vmatpush3.bf16.msra.mxu0 %v12853_v22  ;;  %v12886_v22 = vld [vmem:[#allocation10 + $0x298] sm:$0xff]   ;;  %v12888_v46 = vld [vmem:[#allocation10 + $0x2a0] sm:$0xff]  }
 0x2ce   : > { %11758 = vmatprep.subr.bf16.mxu0 %v12857_v50  ;;  %11064 = vmatprep.subr.bf16.mxu1 %v12850_v11 }
 0x2cf   : > { %11045 = vmatmul.mubr.bf16.gmra.mrb[32].mxu1 %v1707_v52  ;;  %v12896_v52 = vld [vmem:[#allocation10 + $0x2b0] sm:$0xff]  }
 0x2d0   : > { %11065 = vmatpush3.bf16.msra.mxu1 %v12850_v11  ;;  %11048 = vmatprep.mubr.bf16.mxu1 %v1709_v34  ;;  %v7885_v11 = vrot.slane %v12893_v39, 1  ;;  %v14761_v34 = vld [vmem:[%s14009_s18 + $0x84] sm:$0xf] }
 0x2d1   : > { %11759 = vmatpush3.bf16.msra.mxu0 %v12857_v50  ;;  %11066 = vmatprep.subr.bf16.mxu1 %v12855_v51 }
 0x2d2   : > { %11780 = vmatprep.subr.bf16.mxu0 %v12866_v56 }
 0x2d4   : > { %11741 = vmatmul.mubr.bf16.gmra.mrb[36].mxu0 %v7319_v54  ;;  %11067 = vmatpush3.bf16.msra.mxu1 %v12855_v51  ;;  %v7887_v51 = vrot.slane %v12894_v48, 1  ;;  %v3965_v54 = vld [vmem:[%s14009_s18 + $0x80] sm:$0xe] }
 0x2d5   : > { %11760 = vmatprep.mubr.bf16.mxu0 %v12859_v40  ;;  %11068 = vmatprep.subr.bf16.mxu1 %v12858_v10 }
 0x2d6   : > { %v7888_v55 = vsel %vm666_vm0, %v7885_v11, %v7887_v51 }
 0x2d7   : > { %11049 = vmatmul.mubr.bf16.gmra.mrb[36].mxu1 %v1711_v61  ;;  %v12907_v61 = vld [vmem:[#allocation10 + $0x5d8] sm:$0xff]  }
 0x2d8   : > { %11069 = vmatpush3.bf16.msra.mxu1 %v12858_v10  ;;  %11052 = vmatprep.mubr.bf16.mxu1 %v1713_v17  ;;  %v14765_v10 = vld [vmem:[%s14009_s18 + $0x88] sm:$0xff]  }
 0x2d9   : > { %11070 = vmatprep.subr.bf16.mxu1 %v12863_v8  ;;  %v1891_v17 = vld [vmem:[%s14009_s18 + $0x148] sm:$0xf] }
 0x2da   : > { %v9796_v57 = vcombine.low %v14655_v37, %v1891_v17  ;;  %v12916_v37 = vld [vmem:[%s14009_s18 + $0x1b8] sm:$0xff]   ;;  %v14836_v17 = vld [vmem:[%s14009_s18 + $0xc0] sm:$0xff]  }
 0x2dc   : > { %11761 = vmatmul.mubr.bf16.vlgmr.msra.gmra.mrb[20].mxu0 %v12860_v60  ;;  %11071 = vmatpush3.bf16.msra.mxu1 %v12863_v8  ;;  %v12901_v60 = vld [vmem:[%s14009_s18 + $0x1a0] sm:$0xff]  }
 0x2dd   : > { %11764 = vmatprep.mubr.bf16.mxu0 %v12864_v12  ;;  %11781 = vmatpush3.bf16.msra.mxu0 %v12866_v56  ;;  %v12898_v56 = vld [vmem:[#allocation10 + $0x5c8] sm:$0xff]   ;;  %v12908_v12 = vld [vmem:[%s14009_s18 + $0x1a8] sm:$0xff]  }
 0x2de   : > { %11782 = vmatprep.subr.bf16.mxu0 %v12870_v36  ;;  %11072 = vmatprep.subr.bf16.mxu1 %v12867_v14 }
 0x2df   : > { %11053 = vmatmul.mubr.bf16.gmra.mrb[40].mxu1 %v1715_v35 }
 0x2e0   : > { %11056 = vmatprep.mubr.bf16.mxu1 %v1717_v45  ;;  %11073 = vmatpush3.bf16.msra.mxu1 %v12867_v14  ;;  %v12906_v14 = vld [vmem:[#allocation10 + $0x240] sm:$0xff]  }
 0x2e1   : > { %11783 = vmatpush3.bf16.msra.mxu0 %v12870_v36  ;;  %11074 = vmatprep.subr.bf16.mxu1 %v12871_v1  ;;  %v4040_v36 = vrot.slane %v14765_v10, 1  ;;  %v12910_v45 = vld [vmem:[%s14009_s18 + $0x1b0] sm:$0xff]  }
 0x2e2   : > { %11784 = vmatprep.subr.bf16.mxu0 %v12874_v26 }
 0x2e4   : > { %11765 = vmatmul.mubr.bf16.gmra.mrb[24].mxu0 %v12865_v0  ;;  %11075 = vmatpush3.bf16.msra.mxu1 %v12871_v1  ;;  %v12911_v0 = vld [vmem:[#allocation10 + $0x5e0] sm:$0xff]  }
 0x2e5   : > { %11768 = vmatprep.mubr.bf16.mxu0 %v12872_v47  ;;  %11785 = vmatpush3.bf16.msra.mxu0 %v12874_v26  ;;  %v14781_v1 = vld [vmem:[%s14009_s18 + $0x98] sm:$0xff]  }
 0x2e6   : > { %11786 = vmatprep.subr.bf16.mxu0 %v12876_v13  ;;  %11312 = vmatprep.subr.bf16.mxu1 %v12875_v38 }
 0x2e7   : > { %11057 = vmatmul.mubr.bf16.gmra.mrb[44].mxu1 %v1719_v31  ;;  %v12909_v31 = vld [vmem:[#allocation10 + $0x248] sm:$0xff]  }
 0x2e8   : > { %11076 = vmatprep.mubr.bf16.mxu1 %v14428_v3  ;;  %v12882_v3 = vld [vmem:[#allocation10 + $0x290] sm:$0xff]  }
 0x2e9   : > { %11787 = vmatpush3.bf16.msra.mxu0 %v12876_v13  ;;  %v4042_v13 = vrot.slane %v14777_v25, 1 }
 0x2ea   : > { %11788 = vmatprep.subr.bf16.mxu0 %v12880_v62 }
 0x2ec   : > { %11769 = vmatmul.mubr.bf16.gmra.mrb[28].mxu0 %v12873_v18  ;;  %v7897_v18 = vrot.slane %v12916_v37, 1 }
 0x2ed   : > { %11772 = vmatprep.mubr.bf16.mxu0 %v12877_v23  ;;  %11789 = vmatpush3.bf16.msra.mxu0 %v12880_v62  ;;  %v7895_v62 = vrot.slane %v12910_v45, 1  ;;  %v12917_v23 = vld [vmem:[%s14009_s18 + $0x1c0] ss:$0 sps:$4 sm:$0x11]  }
 0x2ee   : > { %11790 = vmatprep.subr.bf16.mxu0 %v12881_v2  ;;  %v7899_v39 = vrot.slane %v12917_v23, 1 }
 0x2ef   : > { %11077 = vmatmul.mubr.bf16.vlgmr.msra.gmra.mrb[28].mxu1 %v14416_v58  ;;  %v12891_v58 = vld [vmem:[%s14009_s18 + $0x180] sm:$0xff]  }
 0x2f0   : > { %11313 = vmatpush3.bf16.msra.mxu1 %v12875_v38  ;;  %11080 = vmatprep.mubr.bf16.mxu1 %v14682_v24  ;;  %v7882_v24 = vsel %vm666_vm0, %v7880_v32, %v7881_v29  ;;  %v7883_v50 = vrot.slane %v12891_v58, 1  ;;  %v4044_v38 = vrot.slane %v14781_v1, 1  ;;  %v12924_v32 = vld [vmem:[%s14009_s18 + $0x178] sm:$0xfc]  }
 0x2f1   : > { %11791 = vmatpush3.bf16.msra.mxu0 %v12881_v2  ;;  %11314 = vmatprep.subr.bf16.mxu1 %v12878_v43  ;;  %v12918_v2 = vld [vmem:[#allocation10 + $0x5f0] sm:$0xff]  }
 0x2f2   : > { %11792 = vmatprep.subr.bf16.mxu0 %v12885_v21  ;;  %v7886_v16 = vsel %vm666_vm0, %v7883_v50, %v7885_v11  ;;  %v12920_v11 = vld [vmem:[#allocation10 + $0x258] sm:$0xff]  }
 0x2f4   : > { %11773 = vmatmul.mubr.bf16.gmra.mrb[32].mxu0 %v12879_v20  ;;  %11315 = vmatpush3.bf16.msra.mxu1 %v12878_v43  ;;  %v4043_v20 = vsel %vm666_vm0, %v4040_v36, %v4042_v13 }
 0x2f5   : > { %11776 = vmatprep.mubr.bf16.mxu0 %v12883_v27  ;;  %11793 = vmatpush3.bf16.msra.mxu0 %v12885_v21  ;;  %v14795_v21 = vld [vmem:[%s14009_s18 + $0xa0] sm:$0xff]  }
 0x2f6   : > { %11794 = vmatprep.subr.bf16.mxu0 %v12887_v28  ;;  %11316 = vmatprep.subr.bf16.mxu1 %v12882_v3  ;;  %v4046_v58 = vrot.slane %v14795_v21, 1 }
 0x2f7   : > { %11081 = vmatmul.mubr.bf16.gmra.mrb[32].mxu1 %v14691_v41  ;;  %v7884_v41 = vsel %vm666_vm0, %v7881_v29, %v7883_v50  ;;  %v12922_v29 = vld [vmem:[#allocation10 + $0x5f8] sm:$0xff]  }
 0x2f8   : > { %11317 = vmatpush3.bf16.msra.mxu1 %v12882_v3  ;;  %11084 = vmatprep.mubr.bf16.mxu1 %v14698_v30  ;;  %v12900_v30 = vld [vmem:[%s14009_s18 + $0x198] sm:$0xff]   ;;  %v14814_v50 = vld [vmem:[%s14009_s18 + $0xb0] sm:$0xff]  }
 0x2f9   : > { %11795 = vmatpush3.bf16.msra.mxu0 %v12887_v28  ;;  %11318 = vmatprep.subr.bf16.mxu1 %v12886_v22  ;;  %v7889_v40 = vrot.slane %v12900_v30, 1  ;;  %v4045_v28 = vsel %vm666_vm0, %v4042_v13, %v4044_v38  ;;  %v12926_v30 = vld [vmem:[%s14009_s18 + $0x188] sm:$0xff]   ;;  %v12936_v13 = vld [vmem:[#allocation10 + $0x608] sm:$0xff]  }
 0x2fa   : > { %11816 = vmatprep.subr.bf16.mxu0 %v12895_v42 }
 0x2fb   : > { %v7890_v8 = vsel %vm666_vm0, %v7887_v51, %v7889_v40 }
 0x2fc   : > { %11777 = vmatmul.mubr.bf16.gmra.mrb[36].mxu0 %v12884_v49  ;;  %11319 = vmatpush3.bf16.msra.mxu1 %v12886_v22  ;;  %v7898_v22 = vsel %vm666_vm0, %v7895_v62, %v7897_v18 }
 0x2fd   : > { %11796 = vmatprep.mubr.bf16.mxu0 %v7882_v24  ;;  %11320 = vmatprep.subr.bf16.mxu1 %v12888_v46  ;;  %v12915_v24 = vld [vmem:[#allocation10 + $0x250] sm:$0xff]  }
 0x2ff   : > { %11085 = vmatmul.mubr.bf16.gmra.mrb[36].mxu1 %v14707_v9  ;;  %v12899_v9 = vld [vmem:[#allocation10 + $0x2b8] sm:$0xff]  }
 0x300   : > { %11321 = vmatpush3.bf16.msra.mxu1 %v12888_v46  ;;  %11088 = vmatprep.mubr.bf16.mxu1 %v14713_v53  ;;  %v9939_v53 = vcombine.low %v3965_v54, %v14761_v34  ;;  %v4048_v46 = vrot.slane %v14801_v19, 1  ;;  %v14824_v54 = vld [vmem:[%s14009_s18 + $0xb8] sm:$0xff]  }
 0x301   : > { %11322 = vmatprep.subr.bf16.mxu1 %v12892_v44 }
 0x302   : > { %v4039_v33 = vrot.slane %v9939_v53, 1 }
 0x304   : > { %11797 = vmatmul.mubr.bf16.vlgmr.msra.gmra.mrb[20].mxu0 %v7884_v41  ;;  %11323 = vmatpush3.bf16.msra.mxu1 %v12892_v44  ;;  %v4041_v26 = vsel %vm666_vm0, %v4039_v33, %v4040_v36  ;;  %v8183_v44 = vrot.slane %v12924_v32, 2  ;;  %v12932_v41 = vld [vmem:[#allocation10 + $0x600] sm:$0xff]   ;;  %v12929_v33 = vld [vmem:[#allocation10 + $0x268] sm:$0xff]  }
 0x305   : > { %11800 = vmatprep.mubr.bf16.mxu0 %v7886_v16  ;;  %11817 = vmatpush3.bf16.msra.mxu0 %v12895_v42  ;;  %v12925_v42 = vld [vmem:[%s14009_s18 + $0x180] sm:$0xff]  }
 0x306   : > { %11818 = vmatprep.subr.bf16.mxu0 %v12898_v56  ;;  %11324 = vmatprep.subr.bf16.mxu1 %v12896_v52  ;;  %v8184_v48 = vrot.slane %v12925_v42, 2 }
 0x307   : > { %11089 = vmatmul.mubr.bf16.gmra.mrb[40].mxu1 %v14722_v5  ;;  %v7891_v5 = vrot.slane %v12901_v60, 1  ;;  %v4050_v60 = vrot.slane %v14814_v50, 1 }
 0x308   : > { %11092 = vmatprep.mubr.bf16.mxu1 %v14729_v4  ;;  %11325 = vmatpush3.bf16.msra.mxu1 %v12896_v52  ;;  %v7893_v4 = vrot.slane %v12908_v12, 1  ;;  %v4049_v52 = vsel %vm666_vm0, %v4046_v58, %v4048_v46  ;;  %v8185_v53 = vsel %vm1075_vm1, %v8183_v44, %v8184_v48  ;;  %v4052_v12 = vrot.slane %v14824_v54, 1  ;;  %v12939_v44 = vld [vmem:[%s14009_s18 + $0x1a8] sm:$0xff]  }
 0x309   : > { %11819 = vmatpush3.bf16.msra.mxu0 %v12898_v56  ;;  %11326 = vmatprep.subr.bf16.mxu1 %v12899_v9  ;;  %v7892_v35 = vsel %vm666_vm0, %v7889_v40, %v7891_v5  ;;  %v4047_v56 = vsel %vm666_vm0, %v4044_v38, %v4046_v58  ;;  %v7900_v40 = vsel %vm666_vm0, %v7897_v18, %v7899_v39  ;;  %v4054_v38 = vrot.slane %v14836_v17, 1  ;;  %v12937_v58 = vld [vmem:[#allocation10 + $0x278] sm:$0xff]  }
 0x30a   : > { %11820 = vmatprep.subr.bf16.mxu0 %v12902_v59  ;;  %v7894_v47 = vsel %vm666_vm0, %v7891_v5, %v7893_v4  ;;  %v7896_v3 = vsel %vm666_vm0, %v7893_v4, %v7895_v62  ;;  %v14843_v4 = vld [vmem:[%s14009_s18 + $0xc8] sm:$0xff]  }
 0x30b   : > { %v4056_v18 = vrot.slane %v14843_v4, 1 }
 0x30c   : > { %11801 = vmatmul.mubr.bf16.gmra.mrb[24].mxu0 %v7888_v55  ;;  %11327 = vmatpush3.bf16.msra.mxu1 %v12899_v9  ;;  %v12930_v55 = vld [vmem:[%s14009_s18 + $0x190] sm:$0xff]  }
 0x30d   : > { %11804 = vmatprep.mubr.bf16.mxu0 %v7890_v8  ;;  %11821 = vmatpush3.bf16.msra.mxu0 %v12902_v59  ;;  %v12923_v8 = vld [vmem:[#allocation10 + $0x260] sm:$0xff]   ;;  %v8188_v36 = vrot.slane %v12930_v55, 2  ;;  %v4057_v42 = vsel %vm666_vm0, %v4054_v38, %v4056_v18 }
 0x30e   : > { %11822 = vmatprep.subr.bf16.mxu0 %v12907_v61  ;;  %11348 = vmatprep.subr.bf16.mxu1 %v12906_v14 }
 0x30f   : > { %11093 = vmatmul.mubr.bf16.gmra.mrb[44].mxu1 %v9796_v57  ;;  %v4051_v57 = vsel %vm666_vm0, %v4048_v46, %v4050_v60 }
 0x310   : > { %11328 = vmatprep.mubr.bf16.mxu1 %v4041_v26  ;;  %v4053_v26 = vsel %vm666_vm0, %v4050_v60, %v4052_v12  ;;  %v12948_v60 = vld [vmem:[#allocation10 + $0x620] sm:$0xff]  }
 0x311   : > { %11823 = vmatpush3.bf16.msra.mxu0 %v12907_v61  ;;  %v8186_v61 = vrot.slane %v12926_v30, 2 }
 0x312   : > { %11824 = vmatprep.subr.bf16.mxu0 %v12911_v0 }
 0x313   : > { %v8189_v37 = vsel %vm1075_vm1, %v8186_v61, %v8188_v36 }
 0x314   : > { %11805 = vmatmul.mubr.bf16.gmra.mrb[28].mxu0 %v7892_v35  ;;  %v14849_v35 = vld [vmem:[%s14009_s18 + $0x1a0] sm:$0xff]  }
 0x315   : > { %11808 = vmatprep.mubr.bf16.mxu0 %v7894_v47  ;;  %11825 = vmatpush3.bf16.msra.mxu0 %v12911_v0  ;;  %v8187_v47 = vsel %vm1075_vm1, %v8184_v48, %v8186_v61  ;;  %v8192_v23 = vrot.slane %v14849_v35, 2  ;;  %v12949_v35 = vld [vmem:[#allocation10 + $0x628] sm:$0xff]  }
 0x316   : > { %11826 = vmatprep.subr.bf16.mxu0 %v12914_v15 }
 0x317   : > { %v14791_v43 = vpop.f32.mrb[0].mxu0  ;;  %11329 = vmatmul.mubr.bf16.vlgmr.msra.gmra.mrb[48].mxu1 %v4043_v20  ;;  %v3929_v20 = vld [vmem:[%s14009_s18 + $0x80] sm:$0xf] }
 0x318   : > { %v14797_v27 = vpop.f32.mrb[1].mxu0  ;;  %11349 = vmatpush3.bf16.msra.mxu1 %v12906_v14  ;;  %11332 = vmatprep.mubr.bf16.mxu1 %v4045_v28  ;;  %v12931_v14 = vld [vmem:[%s14009_s18 + $0x198] sm:$0xff]   ;;  %v12935_v28 = vld [vmem:[%s14009_s18 + $0xd0] ss:$0 sps:$4 sm:$0x11]  }
 0x319   : > { %v14803_v6 = vpop.f32.mrb[2].mxu0  ;;  %11827 = vmatpush3.bf16.msra.mxu0 %v12914_v15  ;;  %11350 = vmatprep.subr.bf16.mxu1 %v12909_v31  ;;  %v8190_v62 = vrot.slane %v12931_v14, 2  ;;  %v4058_v30 = vrot.slane %v12935_v28, 1  ;;  %v12952_v28 = vld [vmem:[%s14009_s18 + $0x1c8] ss:$0 sps:$4 sm:$0x33]  }
 0x31a   : > { %v14807_v49 = vpop.f32.mrb[3].mxu0  ;;  %11828 = vmatprep.subr.bf16.mxu0 %v12918_v2 }
 0x31b   : > { %v8191_v46 = vsel %vm1075_vm1, %v8188_v36, %v8190_v62  ;;  %v8193_v48 = vsel %vm1075_vm1, %v8190_v62, %v8192_v23  ;;  %v4059_v61 = vsel %vm666_vm0, %v4056_v18, %v4058_v30  ;;  %v4256_v30 = vrot.slane %v14814_v50, 3  ;;  %v12963_v50 = vld [vmem:[#allocation10 + $0x2f0] sm:$0xff]  }
 0x31c   : > { %11809 = vmatmul.mubr.bf16.gmra.mrb[32].mxu0 %v7896_v3  ;;  %11351 = vmatpush3.bf16.msra.mxu1 %v12909_v31  ;;  %v12933_v31 = vld [vmem:[#allocation10 + $0x270] sm:$0xff]  }
 0x31d   : > { %11812 = vmatprep.mubr.bf16.mxu0 %v7898_v22  ;;  %11829 = vmatpush3.bf16.msra.mxu0 %v12918_v2  ;;  %v12940_v2 = vld [vmem:[#allocation10 + $0x610] sm:$0xff]   ;;  %v4055_v22 = vsel %vm666_vm0, %v4052_v12, %v4054_v38 }
 0x31e   : > { %11830 = vmatprep.subr.bf16.mxu0 %v12922_v29  ;;  %11352 = vmatprep.subr.bf16.mxu1 %v12915_v24  ;;  %v12941_v3 = vld [vmem:[%s14009_s18 + $0x78] sm:$0xf8]  }
 0x31f   : > { %v14816_v16 = vpop.f32.mrb[4].mxu0  ;;  %11333 = vmatmul.mubr.bf16.gmra.mrb[52].mxu1 %v4047_v56  ;;  %v12945_v56 = vld [vmem:[%s14009_s18 + $0x1b0] sm:$0xff]  }
 0x320   : > { %v14820_v51 = vpop.f32.mrb[5].mxu0  ;;  %11353 = vmatpush3.bf16.msra.mxu1 %v12915_v24  ;;  %11336 = vmatprep.mubr.bf16.mxu1 %v4049_v52  ;;  %v9959_v24 = vcombine.low %v3929_v20, %v14761_v34  ;;  %v4243_v34 = vrot.slane %v12941_v3, 3  ;;  %v8196_v55 = vrot.slane %v12945_v56, 2  ;;  %v4250_v3 = vrot.slane %v14781_v1, 3  ;;  %v12956_v56 = vld [vmem:[#allocation10 + $0x2e0] sm:$0xff]  }
 0x321   : > { %v14826_v9 = vpop.f32.mrb[6].mxu0  ;;  %11831 = vmatpush3.bf16.msra.mxu0 %v12922_v29  ;;  %11354 = vmatprep.subr.bf16.mxu1 %v12920_v11 }
 0x322   : > { %v14829_v59 = vpop.f32.mrb[7].mxu0  ;;  %11852 = vmatprep.subr.bf16.mxu0 %v12932_v41  ;;  %v4244_v52 = vrot.slane %v9959_v24, 3  ;;  %v12962_v24 = vld [vmem:[#allocation10 + $0x640] sm:$0xff]  }
 0x324   : > { %11813 = vmatmul.mubr.bf16.gmra.mrb[36].mxu0 %v7900_v40  ;;  %11355 = vmatpush3.bf16.msra.mxu1 %v12920_v11  ;;  %v12943_v40 = vld [vmem:[#allocation10 + $0x2c0] sm:$0xff]  }
 0x325   : > { %11832 = vmatprep.mubr.bf16.mxu0 %v8185_v53  ;;  %11356 = vmatprep.subr.bf16.mxu1 %v12923_v8  ;;  %v8194_v53 = vrot.slane %v12939_v44, 2 }
 0x327   : > { %v14839_v5 = vpop.f32.mrb[8].mxu0  ;;  %11337 = vmatmul.mubr.bf16.gmra.mrb[56].mxu1 %v4051_v57  ;;  %v8195_v14 = vsel %vm1075_vm1, %v8192_v23, %v8194_v53  ;;  %v12947_v57 = vld [vmem:[%s14009_s18 + $0x1b8] sm:$0xff]  }
 0x328   : > { %v14845_v0 = vpop.f32.mrb[9].mxu0  ;;  %11357 = vmatpush3.bf16.msra.mxu1 %v12923_v8  ;;  %11340 = vmatprep.mubr.bf16.mxu1 %v4053_v26  ;;  %v8197_v26 = vsel %vm1075_vm1, %v8194_v53, %v8196_v55  ;;  %v8198_v38 = vrot.slane %v12947_v57, 2  ;;  %v12946_v23 = vld [vmem:[#allocation10 + $0x2c8] sm:$0xff]   ;;  %v12969_v57 = vld [vmem:[#allocation10 + $0x650] sm:$0xff]  }
 0x329   : > { %v14851_v45 = vpop.f32.mrb[10].mxu0  ;;  %11358 = vmatprep.subr.bf16.mxu1 %v12929_v33  ;;  %v12959_v53 = vld [vmem:[#allocation10 + $0x2e8] sm:$0xff]  }
 0x32a   : > { %v14854_v15 = vpop.f32.mrb[11].mxu0  ;;  %v8199_v20 = vsel %vm1075_vm1, %v8196_v55, %v8198_v38  ;;  %v12960_v55 = vld [vmem:[%s14009_s18 + $0x2e0] sm:$0xff]  }
 0x32c   : > { %11833 = vmatmul.mubr.bf16.vlgmr.msra.gmra.mrb[20].mxu0 %v8187_v47  ;;  %11359 = vmatpush3.bf16.msra.mxu1 %v12929_v33  ;;  %v4245_v33 = vsel %vm4242_vm3, %v4243_v34, %v4244_v52  ;;  %v12951_v47 = vld [vmem:[%s14009_s18 + $0x1c0] sm:$0xff]  }
 0x32d   : > { %11836 = vmatprep.mubr.bf16.mxu0 %v8189_v37  ;;  %11853 = vmatpush3.bf16.msra.mxu0 %v12932_v41  ;;  %v12944_v41 = vld [vmem:[#allocation10 + $0x618] sm:$0xff]   ;;  %v4246_v37 = vrot.slane %v14765_v10, 3  ;;  %v8200_v62 = vrot.slane %v12951_v47, 2 }
 0x32e   : > { %11854 = vmatprep.subr.bf16.mxu0 %v12936_v13  ;;  %11360 = vmatprep.subr.bf16.mxu1 %v12933_v31  ;;  %v12964_v47 = vld [vmem:[%s14009_s18 + $0xc8] ss:$0 sps:$4 sm:$0x77]  }
 0x32f   : > { %v14863_v32 = vpop.f32.mrb[12].mxu0  ;;  %11341 = vmatmul.mubr.bf16.gmra.mrb[60].mxu1 %v4055_v22  ;;  %v4247_v18 = vsel %vm4242_vm3, %v4244_v52, %v4246_v37  ;;  %v8201_v10 = vsel %vm1075_vm1, %v8198_v38, %v8200_v62  ;;  %v12950_v22 = vld [vmem:[#allocation10 + $0x2d0] sm:$0xff]  }
 0x330   : > { %v14866_v29 = vpop.f32.mrb[13].mxu0  ;;  %11344 = vmatprep.mubr.bf16.mxu1 %v4057_v42  ;;  %11361 = vmatpush3.bf16.msra.mxu1 %v12933_v31  ;;  %v12953_v31 = vld [vmem:[#allocation10 + $0x630] sm:$0xff]   ;;  %v4252_v42 = vrot.slane %v14795_v21, 3  ;;  %v4254_v21 = vrot.slane %v14801_v19, 3  ;;  %v4258_v19 = vrot.slane %v14824_v54, 3 }
 0x331   : > { %v14870_v39 = vpop.f32.mrb[14].mxu0  ;;  %11855 = vmatpush3.bf16.msra.mxu0 %v12936_v13  ;;  %11362 = vmatprep.subr.bf16.mxu1 %v12937_v58  ;;  %v4248_v13 = vrot.slane %v14777_v25, 3  ;;  %v12955_v25 = vld [vmem:[#allocation10 + $0x638] sm:$0xff]   ;;  %v12958_v52 = vld [vmem:[%s14009_s18 + $0x2d8] sm:$0xff]  }
 0x332   : > { %v14874_v11 = vpop.f32.mrb[15].mxu0  ;;  %11856 = vmatprep.subr.bf16.mxu0 %v12940_v2  ;;  %v4253_v44 = vsel %vm4242_vm3, %v4250_v3, %v4252_v42  ;;  %v4255_v34 = vsel %vm4242_vm3, %v4252_v42, %v4254_v21  ;;  %v12970_v38 = vld [vmem:[%s14009_s18 + $0x84] sm:$0xf8]  }
 0x334   : > { %11837 = vmatmul.mubr.bf16.gmra.mrb[24].mxu0 %v8191_v46  ;;  %11363 = vmatpush3.bf16.msra.mxu1 %v12937_v58  ;;  %v8202_v58 = vrot.slane %v12952_v28, 2  ;;  %v4251_v46 = vsel %vm4242_vm3, %v4248_v13, %v4250_v3  ;;  %v12973_v28 = vld [vmem:[#allocation10 + $0x300] sm:$0xff]  }
 0x335   : > { %11840 = vmatprep.mubr.bf16.mxu0 %v8193_v48  ;;  %11857 = vmatpush3.bf16.msra.mxu0 %v12940_v2  ;;  %v4249_v2 = vsel %vm4242_vm3, %v4246_v37, %v4248_v13  ;;  %v12954_v48 = vld [vmem:[#allocation10 + $0x2d8] sm:$0xff]  }
 0x336   : > { %11858 = vmatprep.subr.bf16.mxu0 %v12944_v41  ;;  %11384 = vmatprep.subr.bf16.mxu1 %v12943_v40  ;;  %v8203_v1 = vsel %vm1075_vm1, %v8200_v62, %v8202_v58  ;;  %v12966_v13 = vld [vmem:[#allocation10 + $0x2f8] sm:$0xff]   ;;  %v12979_v58 = vld [vmem:[%s14009_s18 + $0x9c] sm:$0xff]  }
 0x337   : > { %v14878_v8 = vpop.f32.mrb[16].mxu0  ;;  %11345 = vmatmul.mubr.bf16.gmra.mrb[64].mxu1 %v4059_v61  ;;  %v4260_v61 = vrot.slane %v14836_v17, 3  ;;  %v12971_v62 = vld [vmem:[%s14009_s18 + $0x8c] sm:$0xff]   ;;  %v12972_v3 = vld [vmem:[%s14009_s18 + $0x94] sm:$0xff]  }
 0x338   : > { %v14881_v12 = vpop.f32.mrb[17].mxu0  ;;  %11364 = vmatprep.mubr.bf16.mxu1 %v4245_v33 }
 0x339   : > { %v14884_v36 = vpop.f32.mrb[18].mxu0  ;;  %11859 = vmatpush3.bf16.msra.mxu0 %v12944_v41  ;;  %v12957_v41 = vld [vmem:[%s14009_s18 + $0x2d0] sm:$0xff]   ;;  %v4261_v17 = vsel %vm4242_vm3, %v4258_v19, %v4260_v61 }
 0x33a   : > { %v14888_v4 = vpop.f32.mrb[19].mxu0  ;;  %11860 = vmatprep.subr.bf16.mxu0 %v12948_v60 }
 0x33c   : > { %11841 = vmatmul.mubr.bf16.gmra.mrb[28].mxu0 %v8195_v14 }
 0x33d   : > { %11844 = vmatprep.mubr.bf16.mxu0 %v8197_v26  ;;  %11861 = vmatpush3.bf16.msra.mxu0 %v12948_v60  ;;  %v12965_v60 = vld [vmem:[#allocation10 + $0x648] sm:$0xff]   ;;  %v4259_v26 = vsel %vm4242_vm3, %v4256_v30, %v4258_v19 }
 0x33e   : > { %11862 = vmatprep.subr.bf16.mxu0 %v12949_v35 }
 0x33f   : > { %11365 = vmatmul.mubr.bf16.vlgmr.msra.gmra.mrb[48].mxu1 %v4247_v18  ;;  %v12974_v18 = vld [vmem:[#allocation10 + $0x658] sm:$0xff]  }
 0x340   : > { %11385 = vmatpush3.bf16.msra.mxu1 %v12943_v40  ;;  %11368 = vmatprep.mubr.bf16.mxu1 %v4249_v2  ;;  %v4257_v40 = vsel %vm4242_vm3, %v4254_v21, %v4256_v30  ;;  %v4526_v2 = vrot.slane %v12970_v38, 3  ;;  %v12980_v21 = vld [vmem:[%s14009_s18 + $0xa4] sm:$0xff]  }
 0x341   : > { %11863 = vmatpush3.bf16.msra.mxu0 %v12949_v35  ;;  %11386 = vmatprep.subr.bf16.mxu1 %v12946_v23  ;;  %v12961_v35 = vld [vmem:[%s14009_s18 + $0x2e8] sm:$0xff]   ;;  %v4533_v19 = vrot.slane %v12980_v21, 3 }
 0x342   : > { %11864 = vmatprep.subr.bf16.mxu0 %v12953_v31  ;;  %v12977_v30 = vld [vmem:[%s14009_s18 + $0x308] sm:$0xff]  }
 0x344   : > { %11845 = vmatmul.mubr.bf16.gmra.mrb[32].mxu0 %v8199_v20  ;;  %11387 = vmatpush3.bf16.msra.mxu1 %v12946_v23  ;;  %v4262_v23 = vrot.slane %v12964_v47, 3  ;;  %v4527_v20 = vrot.slane %v12971_v62, 3  ;;  %v12997_v62 = vld [vmem:[%s14009_s18 + $0x2f0] sm:$0xff]  }
 0x345   : > { %11848 = vmatprep.mubr.bf16.mxu0 %v8201_v10  ;;  %11865 = vmatpush3.bf16.msra.mxu0 %v12953_v31  ;;  %v12967_v31 = vld [vmem:[%s14009_s18 + $0x2f0] sm:$0xff]  }
 0x346   : > { %11866 = vmatprep.subr.bf16.mxu0 %v12955_v25  ;;  %11388 = vmatprep.subr.bf16.mxu1 %v12950_v22  ;;  %v12978_v10 = vld [vmem:[#allocation10 + $0x660] sm:$0xff]   ;;  %v4528_v42 = vsel %vm4242_vm3, %v4526_v2, %v4527_v20 }
 0x347   : > { %11369 = vmatmul.mubr.bf16.gmra.mrb[52].mxu1 %v4251_v46  ;;  %v12981_v46 = vld [vmem:[#allocation10 + $0x668] sm:$0xff]  }
 0x348   : > { %11389 = vmatpush3.bf16.msra.mxu1 %v12950_v22  ;;  %11372 = vmatprep.mubr.bf16.mxu1 %v4253_v44  ;;  %v12968_v22 = vld [vmem:[%s14009_s18 + $0x2f8] sm:$0xff]   ;;  %v4529_v44 = vrot.slane %v12972_v3, 3 }
 0x349   : > { %11867 = vmatpush3.bf16.msra.mxu0 %v12955_v25  ;;  %11390 = vmatprep.subr.bf16.mxu1 %v12954_v48  ;;  %v4263_v25 = vsel %vm4242_vm3, %v4260_v61, %v4262_v23  ;;  %v12996_v3 = vld [vmem:[#allocation10 + $0x328] sm:$0xff]  }
 0x34a   : > { %11888 = vmatprep.subr.bf16.mxu0 %v12962_v24 }
 0x34c   : > { %11849 = vmatmul.mubr.bf16.gmra.mrb[36].mxu0 %v8203_v1  ;;  %11391 = vmatpush3.bf16.msra.mxu1 %v12954_v48  ;;  %v4531_v48 = vrot.slane %v12979_v58, 3  ;;  %v12985_v1 = vld [vmem:[#allocation10 + $0x670] sm:$0xff]  }
 0x34d   : > { %11868 = vmatprep.mubr.bf16.mxu0 %v12957_v41  ;;  %11392 = vmatprep.subr.bf16.mxu1 %v12956_v56  ;;  %v4530_v41 = vsel %vm4242_vm3, %v4527_v20, %v4529_v44  ;;  %v8769_v20 = vrot.slane %v12997_v62, 1  ;;  %v12998_v58 = vld [vmem:[%s14009_s18 + $0x2f8] sm:$0xff]  }
 0x34e   : > { %v8771_v21 = vrot.slane %v12998_v58, 1 }
 0x34f   : > { %11373 = vmatmul.mubr.bf16.gmra.mrb[56].mxu1 %v4255_v34  ;;  %v4532_v34 = vsel %vm4242_vm3, %v4529_v44, %v4531_v48  ;;  %v13005_v44 = vld [vmem:[%s14009_s18 + $0x300] sm:$0xff]  }
 0x350   : > { %11393 = vmatpush3.bf16.msra.mxu1 %v12956_v56  ;;  %11376 = vmatprep.mubr.bf16.mxu1 %v4257_v40  ;;  %v12976_v56 = vld [vmem:[#allocation10 + $0x308] sm:$0xff]  }
 0x351   : > { %11394 = vmatprep.subr.bf16.mxu1 %v12959_v53  ;;  %v12983_v40 = vld [vmem:[%s14009_s18 + $0x310] sm:$0xff]  }
 0x352   : > { %v1372_v33 = vpop.f32.mrb[24].mxu1 }
 0x353   : > { %1378 = vst [vmem:[%s574_s29] sm:$0x1] %v1372_v33  ;;  %v10986_v14 = vpop.f32.mrb[25].mxu1 }
 0x354   : > { %11869 = vmatmul.mubr.bf16.vlgmr.msra.gmra.mrb[20].mxu0 %v12958_v52  ;;  %v1375_v54 = vpop.f32.mrb[26].mxu1  ;;  %11395 = vmatpush3.bf16.msra.mxu1 %v12959_v53  ;;  %v12986_v52 = vld [vmem:[%s14009_s18 + $0xac] sm:$0xff]  }
 0x355   : > { %11872 = vmatprep.mubr.bf16.mxu0 %v12960_v55  ;;  %11889 = vmatpush3.bf16.msra.mxu0 %v12962_v24  ;;  %v10987_v37 = vpop.f32.mrb[27].mxu1  ;;  %v12975_v24 = vld [vmem:[%s14009_s18 + $0x300] sm:$0xff]   ;;  %v12991_v55 = vld [vmem:[%s14009_s18 + $0x2d8] sm:$0xfe]   ;;  %v4535_v61 = vrot.slane %v12986_v52, 3  ;;  %v4534_v54 = vsel %vm4242_vm3, %v4531_v48, %v4533_v19 }
 0x356   : > { %11890 = vmatprep.subr.bf16.mxu0 %v12965_v60  ;;  %11396 = vmatprep.subr.bf16.mxu1 %v12963_v50  ;;  %v12989_v53 = vld [vmem:[#allocation10 + $0x678] sm:$0xff]   ;;  %v8764_v33 = vrot.slane %v12991_v55, 1 }
 0x357   : > { %11377 = vmatmul.mubr.bf16.gmra.mrb[60].mxu1 %v4259_v26  ;;  %v12988_v26 = vld [vmem:[%s14009_s18 + $0xb4] sm:$0xff]   ;;  %v4536_v47 = vsel %vm4242_vm3, %v4533_v19, %v4535_v61  ;;  %v13008_v55 = vld [vmem:[%s14009_s18 + $0x168] sm:$0xf8]   ;;  %v8772_v19 = vsel %vm666_vm0, %v8769_v20, %v8771_v21 }
 0x358   : > { %11380 = vmatprep.mubr.bf16.mxu1 %v4261_v17  ;;  %11397 = vmatpush3.bf16.msra.mxu1 %v12963_v50  ;;  %v12982_v50 = vld [vmem:[#allocation10 + $0x310] sm:$0xff]   ;;  %v12987_v37 = vld [vmem:[#allocation10 + $0x318] sm:$0xff]  }
 0x359   : > { %11891 = vmatpush3.bf16.msra.mxu0 %v12965_v60  ;;  %11398 = vmatprep.subr.bf16.mxu1 %v12966_v13  ;;  %v12992_v60 = vld [vmem:[%s14009_s18 + $0x2e0] sm:$0xff]   ;;  %v13002_v52 = vld [vmem:[%s14009_s18 + $0xd4] ss:$0 sps:$4 sm:$0x77]  }
 0x35a   : > { %11892 = vmatprep.subr.bf16.mxu0 %v12969_v57  ;;  %v8765_v14 = vrot.slane %v12992_v60, 1  ;;  %v12994_v17 = vld [vmem:[%s14009_s18 + $0xbc] sm:$0xff]   ;;  %v13009_v60 = vld [vmem:[%s14009_s18 + $0x170] sm:$0xff]  }
 0x35b   : > { %v4539_v23 = vrot.slane %v12994_v17, 3  ;;  %v13016_v17 = vld [vmem:[#allocation10 + $0x6a0] sm:$0xff]  }
 0x35c   : > { %11873 = vmatmul.mubr.bf16.gmra.mrb[24].mxu0 %v12961_v35  ;;  %11399 = vmatpush3.bf16.msra.mxu1 %v12966_v13  ;;  %v12984_v35 = vld [vmem:[%s14009_s18 + $0x318] sm:$0xff]   ;;  %v12993_v13 = vld [vmem:[%s14009_s18 + $0x2e8] sm:$0xff]   ;;  %v8766_v38 = vsel %vm666_vm0, %v8764_v33, %v8765_v14 }
 0x35d   : > { %11876 = vmatprep.mubr.bf16.mxu0 %v12967_v31  ;;  %11893 = vmatpush3.bf16.msra.mxu0 %v12969_v57  ;;  %v12999_v57 = vld [vmem:[#allocation10 + $0x680] sm:$0xff]   ;;  %v4537_v31 = vrot.slane %v12988_v26, 3  ;;  %v8767_v2 = vrot.slane %v12993_v13, 1  ;;  %v13012_v33 = vld [vmem:[#allocation10 + $0x698] sm:$0xff]   ;;  %v4830_v26 = vrot.slane %v13009_v60, 3 }
 0x35e   : > { %11894 = vmatprep.subr.bf16.mxu0 %v12974_v18  ;;  %11420 = vmatprep.subr.bf16.mxu1 %v12973_v28 }
 0x35f   : > { %11381 = vmatmul.mubr.bf16.gmra.mrb[64].mxu1 %v4263_v25  ;;  %v4540_v25 = vsel %vm4242_vm3, %v4537_v31, %v4539_v23 }
 0x360   : > { %11400 = vmatprep.mubr.bf16.mxu1 %v4528_v42  ;;  %v8768_v42 = vsel %vm666_vm0, %v8765_v14, %v8767_v2  ;;  %v13013_v14 = vld [vmem:[%s14009_s18 + $0x310] sm:$0xff]  }
 0x361   : > { %11895 = vmatpush3.bf16.msra.mxu0 %v12974_v18  ;;  %v12990_v18 = vld [vmem:[#allocation10 + $0x320] sm:$0xff]  }
 0x362   : > { %11896 = vmatprep.subr.bf16.mxu0 %v12978_v10 }
 0x364   : > { %11877 = vmatmul.mubr.bf16.gmra.mrb[28].mxu0 %v12968_v22  ;;  %v13001_v22 = vld [vmem:[%s14009_s18 + $0xcc] sm:$0xff]  }
 0x365   : > { %11880 = vmatprep.mubr.bf16.mxu0 %v12975_v24  ;;  %11897 = vmatpush3.bf16.msra.mxu0 %v12978_v10  ;;  %v12995_v10 = vld [vmem:[%s14009_s18 + $0xc4] sm:$0xff]   ;;  %v8770_v24 = vsel %vm666_vm0, %v8767_v2, %v8769_v20 }
 0x366   : > { %11898 = vmatprep.subr.bf16.mxu0 %v12981_v46  ;;  %v4541_v48 = vrot.slane %v12995_v10, 3  ;;  %v13019_v20 = vld [vmem:[#allocation10 + $0x6a8] sm:$0xff]  }
 0x367   : > { %11401 = vmatmul.mubr.bf16.vlgmr.msra.gmra.mrb[48].mxu1 %v4530_v41  ;;  %v4543_v41 = vrot.slane %v13001_v22, 3 }
 0x368   : > { %11421 = vmatpush3.bf16.msra.mxu1 %v12973_v28  ;;  %11404 = vmatprep.mubr.bf16.mxu1 %v4532_v34  ;;  %v4538_v28 = vsel %vm4242_vm3, %v4535_v61, %v4537_v31  ;;  %v4542_v34 = vsel %vm4242_vm3, %v4539_v23, %v4541_v48  ;;  %v13017_v31 = vld [vmem:[%s14009_s18 + $0x180] sm:$0xff]   ;;  %v13015_v23 = vld [vmem:[%s14009_s18 + $0x318] sm:$0xff]  }
 0x369   : > { %11899 = vmatpush3.bf16.msra.mxu0 %v12981_v46  ;;  %11422 = vmatprep.subr.bf16.mxu1 %v12976_v56  ;;  %v13003_v46 = vld [vmem:[#allocation10 + $0x688] sm:$0xff]  }
 0x36a   : > { %11900 = vmatprep.subr.bf16.mxu0 %v12985_v1 }
 0x36c   : > { %11881 = vmatmul.mubr.bf16.gmra.mrb[32].mxu0 %v12977_v30  ;;  %11423 = vmatpush3.bf16.msra.mxu1 %v12976_v56  ;;  %v8773_v56 = vrot.slane %v13005_v44, 1  ;;  %v13007_v30 = vld [vmem:[#allocation10 + $0x690] sm:$0xff]  }
 0x36d   : > { %11884 = vmatprep.mubr.bf16.mxu0 %v12983_v40  ;;  %11901 = vmatpush3.bf16.msra.mxu0 %v12985_v1  ;;  %v13000_v1 = vld [vmem:[#allocation10 + $0x330] sm:$0xff]   ;;  %v4544_v40 = vsel %vm4242_vm3, %v4541_v48, %v4543_v41  ;;  %v13024_v48 = vld [vmem:[%s14009_s18 + $0x190] sm:$0xff]  }
 0x36e   : > { %11902 = vmatprep.subr.bf16.mxu0 %v12989_v53  ;;  %11424 = vmatprep.subr.bf16.mxu1 %v12982_v50  ;;  %v8774_v61 = vsel %vm666_vm0, %v8771_v21, %v8773_v56 }
 0x36f   : > { %11405 = vmatmul.mubr.bf16.gmra.mrb[52].mxu1 %v4534_v54  ;;  %v4829_v54 = vrot.slane %v13008_v55, 3 }
 0x370   : > { %11425 = vmatpush3.bf16.msra.mxu1 %v12982_v50  ;;  %11408 = vmatprep.mubr.bf16.mxu1 %v4536_v47  ;;  %v13006_v50 = vld [vmem:[%s14009_s18 + $0x308] sm:$0xff]  }
 0x371   : > { %11903 = vmatpush3.bf16.msra.mxu0 %v12989_v53  ;;  %11426 = vmatprep.subr.bf16.mxu1 %v12987_v37  ;;  %v13004_v53 = vld [vmem:[#allocation10 + $0x338] sm:$0xff]   ;;  %v8775_v47 = vrot.slane %v13006_v50, 1  ;;  %v4831_v62 = vsel %vm4242_vm3, %v4829_v54, %v4830_v26 }
 0x372   : > { %11924 = vmatprep.subr.bf16.mxu0 %v12999_v57 }
 0x374   : > { %11885 = vmatmul.mubr.bf16.gmra.mrb[36].mxu0 %v12984_v35  ;;  %11427 = vmatpush3.bf16.msra.mxu1 %v12987_v37  ;;  %v13011_v35 = vld [vmem:[#allocation10 + $0x340] sm:$0xff]   ;;  %v8777_v37 = vrot.slane %v13013_v14, 1  ;;  %v13025_v14 = vld [vmem:[#allocation10 + $0x358] sm:$0xff]  }
 0x375   : > { %11904 = vmatprep.mubr.bf16.mxu0 %v8766_v38  ;;  %11428 = vmatprep.subr.bf16.mxu1 %v12990_v18  ;;  %v13010_v38 = vld [vmem:[%s14009_s18 + $0x178] sm:$0xff]  }
 0x376   : > { %v8778_v2 = vsel %vm666_vm0, %v8775_v47, %v8777_v37  ;;  %v4832_v10 = vrot.slane %v13010_v38, 3 }
 0x377   : > { %11409 = vmatmul.mubr.bf16.gmra.mrb[56].mxu1 %v4538_v28  ;;  %v13021_v28 = vld [vmem:[%s14009_s18 + $0x320] sm:$0xff]  }
 0x378   : > { %11429 = vmatpush3.bf16.msra.mxu1 %v12990_v18  ;;  %11412 = vmatprep.mubr.bf16.mxu1 %v4540_v25  ;;  %v8776_v18 = vsel %vm666_vm0, %v8773_v56, %v8775_v47  ;;  %v4834_v25 = vrot.slane %v13017_v31, 3  ;;  %v8781_v22 = vrot.slane %v13021_v28, 1  ;;  %v4833_v58 = vsel %vm4242_vm3, %v4830_v26, %v4832_v10  ;;  %v13027_v56 = vld [vmem:[#allocation10 + $0x6b8] sm:$0xff]   ;;  %v13035_v47 = vld [vmem:[%s14009_s18 + $0x2f8] sm:$0xff]  }
 0x379   : > { %11430 = vmatprep.subr.bf16.mxu1 %v12996_v3  ;;  %v13031_v26 = vld [vmem:[%s14009_s18 + $0x2f0] sm:$0xff]  }
 0x37a   : > { %v4835_v44 = vsel %vm4242_vm3, %v4832_v10, %v4834_v25  ;;  %v9070_v38 = vrot.slane %v13031_v26, 2  ;;  %v13036_v10 = vld [vmem:[%s14009_s18 + $0x300] sm:$0xff]  }
 0x37c   : > { %11905 = vmatmul.mubr.bf16.vlgmr.msra.gmra.mrb[20].mxu0 %v8768_v42  ;;  %11431 = vmatpush3.bf16.msra.mxu1 %v12996_v3  ;;  %v8779_v3 = vrot.slane %v13015_v23, 1  ;;  %v13023_v42 = vld [vmem:[#allocation10 + $0x6b0] sm:$0xff]  }
 0x37d   : > { %11908 = vmatprep.mubr.bf16.mxu0 %v8770_v24  ;;  %11925 = vmatpush3.bf16.msra.mxu0 %v12999_v57  ;;  %v4545_v57 = vrot.slane %v13002_v52, 3  ;;  %v13018_v24 = vld [vmem:[%s14009_s18 + $0x188] sm:$0xff]  }
 0x37e   : > { %11926 = vmatprep.subr.bf16.mxu0 %v13003_v46  ;;  %11432 = vmatprep.subr.bf16.mxu1 %v13000_v1  ;;  %v8782_v21 = vsel %vm666_vm0, %v8779_v3, %v8781_v22  ;;  %v4836_v52 = vrot.slane %v13018_v24, 3  ;;  %v9074_v24 = vrot.slane %v13036_v10, 2  ;;  %v13054_v10 = vld [vmem:[%s14009_s18 + $0x330] ss:$0 sps:$4 sm:$0x33]  }
 0x37f   : > { %11413 = vmatmul.mubr.bf16.gmra.mrb[60].mxu1 %v4542_v34  ;;  %v4546_v13 = vsel %vm4242_vm3, %v4543_v41, %v4545_v57  ;;  %v13022_v41 = vld [vmem:[%s14009_s18 + $0x328] ss:$0 sps:$4 sm:$0x11]   ;;  %v13032_v57 = vld [vmem:[%s14009_s18 + $0x1a0] sm:$0xff]  }
 0x380   : > { %11416 = vmatprep.mubr.bf16.mxu1 %v4544_v40  ;;  %11433 = vmatpush3.bf16.msra.mxu1 %v13000_v1  ;;  %v8780_v1 = vsel %vm666_vm0, %v8777_v37, %v8779_v3  ;;  %v13030_v34 = vld [vmem:[%s14009_s18 + $0x2e8] sm:$0xff]   ;;  %v8783_v55 = vrot.slane %v13022_v41, 1  ;;  %v4837_v50 = vsel %vm4242_vm3, %v4834_v25, %v4836_v52 }
 0x381   : > { %11927 = vmatpush3.bf16.msra.mxu0 %v13003_v46  ;;  %11434 = vmatprep.subr.bf16.mxu1 %v13004_v53  ;;  %v13014_v46 = vld [vmem:[#allocation10 + $0x348] sm:$0xff]   ;;  %v13020_v40 = vld [vmem:[#allocation10 + $0x350] sm:$0xff]   ;;  %v13040_v41 = vld [vmem:[#allocation10 + $0x378] sm:$0xff]  }
 0x382   : > { %11928 = vmatprep.subr.bf16.mxu0 %v13007_v30  ;;  %v8784_v54 = vsel %vm666_vm0, %v8781_v22, %v8783_v55  ;;  %v13041_v3 = vld [vmem:[%s14009_s18 + $0x308] sm:$0xff]  }
 0x384   : > { %11909 = vmatmul.mubr.bf16.gmra.mrb[24].mxu0 %v8772_v19  ;;  %11435 = vmatpush3.bf16.msra.mxu1 %v13004_v53  ;;  %v4838_v53 = vrot.slane %v13024_v48, 3  ;;  %v9068_v19 = vrot.slane %v13030_v34, 2  ;;  %v13039_v48 = vld [vmem:[%s14009_s18 + $0x1b8] ss:$0 sps:$4 sm:$0x77]   ;;  %v13042_v34 = vld [vmem:[%s14009_s18 + $0x310] sm:$0xff]  }
 0x385   : > { %11912 = vmatprep.mubr.bf16.mxu0 %v8774_v61  ;;  %11929 = vmatpush3.bf16.msra.mxu0 %v13007_v30  ;;  %v13029_v30 = vld [vmem:[%s14009_s18 + $0x2e0] sm:$0xfc]   ;;  %v13026_v61 = vld [vmem:[%s14009_s18 + $0x198] sm:$0xff]  }
 0x386   : > { %11930 = vmatprep.subr.bf16.mxu0 %v13012_v33  ;;  %11456 = vmatprep.subr.bf16.mxu1 %v13011_v35  ;;  %v9067_v60 = vrot.slane %v13029_v30, 2  ;;  %v4840_v37 = vrot.slane %v13026_v61, 3  ;;  %v9071_v28 = vsel %vm1075_vm1, %v9068_v19, %v9070_v38 }
 0x387   : > { %11417 = vmatmul.mubr.bf16.gmra.mrb[64].mxu1 %v4546_v13  ;;  %v4842_v13 = vrot.slane %v13032_v57, 3 }
 0x388   : > { %11436 = vmatprep.mubr.bf16.mxu1 %v4831_v62  ;;  %v9072_v62 = vrot.slane %v13035_v47, 2  ;;  %v4841_v31 = vsel %vm4242_vm3, %v4838_v53, %v4840_v37 }
 0x389   : > { %11931 = vmatpush3.bf16.msra.mxu0 %v13012_v33  ;;  %v4839_v33 = vsel %vm4242_vm3, %v4836_v52, %v4838_v53  ;;  %v4843_v23 = vsel %vm4242_vm3, %v4840_v37, %v4842_v13  ;;  %v4848_v53 = vrot.slane %v13039_v48, 3  ;;  %v13053_v37 = vld [vmem:[%s14009_s18 + $0x328] sm:$0xff]  }
 0x38a   : > { %11932 = vmatprep.subr.bf16.mxu0 %v13016_v17  ;;  %v9073_v25 = vsel %vm1075_vm1, %v9070_v38, %v9072_v62  ;;  %v9075_v30 = vsel %vm1075_vm1, %v9072_v62, %v9074_v24  ;;  %v9084_v62 = vrot.slane %v13053_v37, 2  ;;  %v13056_v48 = vld [vmem:[#allocation10 + $0x398] sm:$0xff]  }
 0x38c   : > { %11913 = vmatmul.mubr.bf16.gmra.mrb[28].mxu0 %v8776_v18  ;;  %v13033_v18 = vld [vmem:[%s14009_s18 + $0x1a8] sm:$0xff]  }
 0x38d   : > { %11916 = vmatprep.mubr.bf16.mxu0 %v8778_v2  ;;  %11933 = vmatpush3.bf16.msra.mxu0 %v13016_v17  ;;  %v13028_v17 = vld [vmem:[#allocation10 + $0x360] sm:$0xff]   ;;  %v13034_v2 = vld [vmem:[#allocation10 + $0x368] sm:$0xff]   ;;  %v4844_v22 = vrot.slane %v13033_v18, 3 }
 0x38e   : > { %11934 = vmatprep.subr.bf16.mxu0 %v13019_v20  ;;  %v13051_v18 = vld [vmem:[%s14009_s18 + $0x190] sm:$0xff]  }
 0x38f   : > { %11437 = vmatmul.mubr.bf16.vlgmr.msra.gmra.mrb[48].mxu1 %v4833_v58 }
 0x390   : > { %11457 = vmatpush3.bf16.msra.mxu1 %v13011_v35  ;;  %11440 = vmatprep.mubr.bf16.mxu1 %v4835_v44  ;;  %v9069_v35 = vsel %vm1075_vm1, %v9067_v60, %v9068_v19  ;;  %v4845_v44 = vsel %vm4242_vm3, %v4842_v13, %v4844_v22  ;;  %v13046_v19 = vld [vmem:[#allocation10 + $0x380] sm:$0xff]  }
 0x391   : > { %11935 = vmatpush3.bf16.msra.mxu0 %v13019_v20  ;;  %11458 = vmatprep.subr.bf16.mxu1 %v13014_v46  ;;  %v13038_v20 = vld [vmem:[%s14009_s18 + $0x1b0] sm:$0xff]  }
 0x392   : > { %11936 = vmatprep.subr.bf16.mxu0 %v13023_v42  ;;  %v4846_v58 = vrot.slane %v13038_v20, 3  ;;  %v13055_v20 = vld [vmem:[%s14009_s18 + $0x198] sm:$0xff]  }
 0x394   : > { %11917 = vmatmul.mubr.bf16.gmra.mrb[32].mxu0 %v8780_v1  ;;  %11459 = vmatpush3.bf16.msra.mxu1 %v13014_v46  ;;  %v9076_v46 = vrot.slane %v13041_v3, 2  ;;  %v4847_v1 = vsel %vm4242_vm3, %v4844_v22, %v4846_v58  ;;  %v5139_v3 = vrot.slane %v13051_v18, 1  ;;  %v13052_v22 = vld [vmem:[#allocation10 + $0x390] sm:$0xff]  }
 0x395   : > { %11920 = vmatprep.mubr.bf16.mxu0 %v8782_v21  ;;  %11937 = vmatpush3.bf16.msra.mxu0 %v13023_v42  ;;  %v13037_v42 = vld [vmem:[#allocation10 + $0x370] sm:$0xff]   ;;  %v13043_v21 = vld [vmem:[%s14009_s18 + $0x170] sm:$0xfe]  }
 0x396   : > { %11938 = vmatprep.subr.bf16.mxu0 %v13027_v56  ;;  %11460 = vmatprep.subr.bf16.mxu1 %v13020_v40  ;;  %v9077_v52 = vsel %vm1075_vm1, %v9074_v24, %v9076_v46  ;;  %v5132_v55 = vrot.slane %v13043_v21, 1 }
 0x397   : > { %11441 = vmatmul.mubr.bf16.gmra.mrb[52].mxu1 %v4837_v50  ;;  %v9078_v50 = vrot.slane %v13042_v34, 2 }
 0x398   : > { %11461 = vmatpush3.bf16.msra.mxu1 %v13020_v40  ;;  %11444 = vmatprep.mubr.bf16.mxu1 %v4839_v33  ;;  %v13047_v40 = vld [vmem:[%s14009_s18 + $0x318] sm:$0xff]   ;;  %v4849_v33 = vsel %vm4242_vm3, %v4846_v58, %v4848_v53  ;;  %v9086_v58 = vrot.slane %v13054_v10, 2 }
 0x399   : > { %11939 = vmatpush3.bf16.msra.mxu0 %v13027_v56  ;;  %11462 = vmatprep.subr.bf16.mxu1 %v13025_v14  ;;  %v13044_v56 = vld [vmem:[%s14009_s18 + $0x178] sm:$0xff]   ;;  %v9080_v61 = vrot.slane %v13047_v40, 2  ;;  %v9079_v26 = vsel %vm1075_vm1, %v9076_v46, %v9078_v50  ;;  %v13057_v46 = vld [vmem:[%s14009_s18 + $0x1a0] sm:$0xff]  }
 0x39a   : > { %v5133_v60 = vrot.slane %v13044_v56, 1  ;;  %v5143_v21 = vrot.slane %v13057_v46, 1  ;;  %v13058_v56 = vld [vmem:[#allocation10 + $0x3a0] sm:$0xff]   ;;  %v13064_v46 = vld [vmem:[%s14009_s18 + $0x1c0] ss:$0 sps:$4 sm:$0x11]  }
 0x39b   : > { %v9081_v47 = vsel %vm1075_vm1, %v9078_v50, %v9080_v61 }
 0x39c   : > { %11921 = vmatmul.mubr.bf16.gmra.mrb[36].mxu0 %v8784_v54  ;;  %11463 = vmatpush3.bf16.msra.mxu1 %v13025_v14  ;;  %v13045_v14 = vld [vmem:[%s14009_s18 + $0x180] sm:$0xff]   ;;  %v5134_v57 = vsel %vm666_vm0, %v5132_v55, %v5133_v60  ;;  %v13050_v54 = vld [vmem:[%s14009_s18 + $0x188] sm:$0xff]   ;;  %v15027_v55 = vld [vmem:[#allocation13] ss:$0 sm:$0xff] }
 0x39d   : > { %11940 = vmatprep.mubr.bf16.mxu0 %v9069_v35  ;;  %11464 = vmatprep.subr.bf16.mxu1 %v13028_v17  ;;  %v13049_v35 = vld [vmem:[%s14009_s18 + $0x320] sm:$0xff]   ;;  %v5137_v13 = vrot.slane %v13050_v54, 1 }
 0x39e   : > { %v9082_v38 = vrot.slane %v13049_v35, 2 }
 0x39f   : > { %11445 = vmatmul.mubr.bf16.gmra.mrb[56].mxu1 %v4841_v31  ;;  %v5140_v24 = vsel %vm666_vm0, %v5137_v13, %v5139_v3 }
 0x3a0   : > { %11465 = vmatpush3.bf16.msra.mxu1 %v13028_v17  ;;  %11448 = vmatprep.mubr.bf16.mxu1 %v4843_v23  ;;  %v5135_v17 = vrot.slane %v13045_v14, 1  ;;  %v13048_v23 = vld [vmem:[#allocation10 + $0x388] sm:$0xff]  }
 0x3a1   : > { %11466 = vmatprep.subr.bf16.mxu1 %v13034_v2 }
 0x3a2   : > { %v5136_v31 = vsel %vm666_vm0, %v5133_v60, %v5135_v17 }
 0x3a4   : > { %11941 = vmatmul.mubr.bf16.vlgmr.msra.gmra.mrb[20].mxu0 %v9071_v28  ;;  %11467 = vmatpush3.bf16.msra.mxu1 %v13034_v2  ;;  %v5138_v2 = vsel %vm666_vm0, %v5135_v17, %v5137_v13  ;;  %v9083_v28 = vsel %vm1075_vm1, %v9080_v61, %v9082_v38  ;;  %v13060_v61 = vld [vmem:[%s14009_s18 + $0x1b0] sm:$0xff]  }
 0x3a5   : > { %11944 = vmatprep.mubr.bf16.mxu0 %v9073_v25  ;;  %11468 = vmatprep.subr.bf16.mxu1 %v13037_v42  ;;  %v9085_v25 = vsel %vm1075_vm1, %v9082_v38, %v9084_v62  ;;  %v5147_v13 = vrot.slane %v13060_v61, 1 }
 0x3a7   : > { %11449 = vmatmul.mubr.bf16.gmra.mrb[60].mxu1 %v4845_v44 }
 0x3a8   : > { %11452 = vmatprep.mubr.bf16.mxu1 %v4847_v1  ;;  %11469 = vmatpush3.bf16.msra.mxu1 %v13037_v42  ;;  %v5141_v42 = vrot.slane %v13055_v20, 1  ;;  %v13059_v1 = vld [vmem:[%s14009_s18 + $0x1a8] sm:$0xff]  }
 0x3a9   : > { %11470 = vmatprep.subr.bf16.mxu1 %v13040_v41 }
 0x3aa   : > { %v5142_v44 = vsel %vm666_vm0, %v5139_v3, %v5141_v42  ;;  %v5144_v50 = vsel %vm666_vm0, %v5141_v42, %v5143_v21 }
 0x3ac   : > { %11945 = vmatmul.mubr.bf16.gmra.mrb[24].mxu0 %v9075_v30  ;;  %11471 = vmatpush3.bf16.msra.mxu1 %v13040_v41  ;;  %v9087_v41 = vsel %vm1075_vm1, %v9084_v62, %v9086_v58  ;;  %v5145_v30 = vrot.slane %v13059_v1, 1 }
 0x3ad   : > { %11948 = vmatprep.mubr.bf16.mxu0 %v9077_v52  ;;  %11492 = vmatprep.subr.bf16.mxu1 %v13046_v19  ;;  %v15024_v52 = vld [vmem:[#allocation11] ss:$0 sm:$0xff] }
 0x3ae   : > { %v5146_v54 = vsel %vm666_vm0, %v5143_v21, %v5145_v30  ;;  %v13065_v21 = vld [vmem:[#allocation10 + $0x3b8] sm:$0xff]  }
 0x3af   : > { %11453 = vmatmul.mubr.bf16.gmra.mrb[64].mxu1 %v4849_v33 }
 0x3b0   : > { %11472 = vmatprep.mubr.bf16.mxu1 %v5134_v57 }
 0x3b4   : > { %11949 = vmatmul.mubr.bf16.gmra.mrb[28].mxu0 %v9079_v26  ;;  %v13061_v26 = vld [vmem:[#allocation10 + $0x3a8] sm:$0xff]  }
 0x3b5   : > { %11952 = vmatprep.mubr.bf16.mxu0 %v9081_v47 }
 0x3b7   : > { %11473 = vmatmul.mubr.bf16.vlgmr.msra.gmra.mrb[48].mxu1 %v5136_v31  ;;  %v13062_v31 = vld [vmem:[#allocation10 + $0x3b0] sm:$0xff]  }
 0x3b8   : > { %11493 = vmatpush3.bf16.msra.mxu1 %v13046_v19  ;;  %11476 = vmatprep.mubr.bf16.mxu1 %v5138_v2 }
 0x3b9   : > { %11494 = vmatprep.subr.bf16.mxu1 %v13048_v23 }
 0x3bc   : > { %11953 = vmatmul.mubr.bf16.gmra.mrb[32].mxu0 %v9083_v28  ;;  %11495 = vmatpush3.bf16.msra.mxu1 %v13048_v23 }
 0x3bd   : > { %11956 = vmatprep.mubr.bf16.mxu0 %v9085_v25  ;;  %11496 = vmatprep.subr.bf16.mxu1 %v13052_v22 }
 0x3bf   : > { %11477 = vmatmul.mubr.bf16.gmra.mrb[52].mxu1 %v5140_v24  ;;  %v5148_v24 = vsel %vm666_vm0, %v5145_v30, %v5147_v13 }
 0x3c0   : > { %11497 = vmatpush3.bf16.msra.mxu1 %v13052_v22  ;;  %11480 = vmatprep.mubr.bf16.mxu1 %v5142_v44 }
 0x3c1   : > { %11498 = vmatprep.subr.bf16.mxu1 %v13056_v48 }
 0x3c2   : > { %v11078_v34 = vpop.f32.mrb[28].mxu1 }
 0x3c3   : > { %v11976_v40 = vadd.f32 %v14791_v43, %v11078_v34  ;;  %v2004_v53 = vpop.f32.mrb[29].mxu1  ;;  %v15036_v43 = vld [vmem:[%s14009_s18 + $0x1b8] sm:$0xff]  }
 0x3c4   : > { %11957 = vmatmul.mubr.bf16.gmra.mrb[36].mxu0 %v9087_v41  ;;  %v11977_v60 = vadd.f32 %v14797_v27, %v2004_v53  ;;  %v11079_v19 = vpop.f32.mrb[30].mxu1  ;;  %11499 = vmatpush3.bf16.msra.mxu1 %v13056_v48 }
 0x3c5   : > { %v3764_v33 = vmul.f32 %v11976_v40, %v15024_v52  ;;  %v11978_v14 = vadd.f32 %v14803_v6, %v11079_v19  ;;  %v2007_v57 = vpop.f32.mrb[31].mxu1  ;;  %11500 = vmatprep.subr.bf16.mxu1 %v13058_v56 }
 0x3c6   : > { %v3762_v35 = vmul.f32 %v11977_v60, %v15024_v52  ;;  %v11979_v27 = vadd.f32 %v14807_v49, %v2007_v57  ;;  %v5149_v49 = vrot.slane %v15036_v43, 1  ;;  %v15070_v57 = vld [vmem:[#allocation10 + $0x3c0] sm:$0xff]  }
 0x3c7   : > { %v3789_v47 = vadd.f32 %v15027_v55, %v3764_v33  ;;  %v3765_v37 = vmul.f32 %v11978_v14, %v15024_v52  ;;  %11481 = vmatmul.mubr.bf16.gmra.mrb[56].mxu1 %v5144_v50  ;;  %v5151_v50 = vrot.slane %v13064_v46, 1 }
 0x3c8   : > { %v3787_v17 = vadd.f32 %v15027_v55, %v3762_v35  ;;  %v3763_v6 = vmul.f32 %v11979_v27, %v15024_v52  ;;  %11501 = vmatpush3.bf16.msra.mxu1 %v13058_v56  ;;  %11484 = vmatprep.mubr.bf16.mxu1 %v5146_v54  ;;  %v5150_v41 = vsel %vm666_vm0, %v5147_v13, %v5149_v49  ;;  %v13066_v56 = vld [vmem:[%s14009_s18 + $0x174] sm:$0xf8]  }
 0x3c9   : > { %v3809_v38 = vmax.f32 %v3789_v47, 0.0  ;;  %v3790_v62 = vadd.f32 %v15027_v55, %v3765_v37  ;;  %11502 = vmatprep.subr.bf16.mxu1 %v13061_v26  ;;  %v5435_v14 = vrot.slane %v13066_v56, 3 }
 0x3ca   : > { %v3807_v18 = vmax.f32 %v3787_v17, 0.0  ;;  %v3788_v23 = vadd.f32 %v15027_v55, %v3763_v6  ;;  %v11082_v2 = vpop.f32.mrb[32].mxu1 }
 0x3cb   : > { %v10332_v20 = vpack.c.bf16 %v3809_v38, %v3809_v38  ;;  %v3810_v28 = vmax.f32 %v3790_v62, 0.0  ;;  %v11980_v10 = vadd.f32 %v14816_v16, %v11082_v2  ;;  %v2020_v25 = vpop.f32.mrb[33].mxu1  ;;  %v5152_v62 = vsel %vm666_vm0, %v5149_v49, %v5151_v50 }
 0x3cc   : > { %v10330_v3 = vpack.c.bf16 %v3807_v18, %v3807_v18  ;;  %v3808_v22 = vmax.f32 %v3788_v23, 0.0  ;;  %v11981_v42 = vadd.f32 %v14820_v51, %v2020_v25  ;;  %v11083_v58 = vpop.f32.mrb[34].mxu1  ;;  %11503 = vmatpush3.bf16.msra.mxu1 %v13061_v26  ;;  %v15057_v51 = vld [vmem:[%s14009_s18 + $0x17c] sm:$0xff]  }
 0x3cd   : > { %3909 = vst [vmem:[%s14464_s0 + $0x24] sm:$0xf] %v10332_v20  ;;  %v10333_v44 = vpack.c.bf16 %v3810_v28, %v3810_v28  ;;  %v3768_v48 = vmul.f32 %v11980_v10, %v15024_v52  ;;  %v11982_v16 = vadd.f32 %v14826_v9, %v11083_v58  ;;  %v2023_v1 = vpop.f32.mrb[35].mxu1  ;;  %11504 = vmatprep.subr.bf16.mxu1 %v13062_v31  ;;  %v15083_v28 = vld [vmem:[%s14009_s18 + $0x18c] sm:$0xff]  }
 0x3ce   : > { %3907 = vst [vmem:[%s14464_s0 + $0x4] sm:$0xf] %v10330_v3  ;;  %v10331_v30 = vpack.c.bf16 %v3808_v22, %v3808_v22  ;;  %v3766_v34 = vmul.f32 %v11981_v42, %v15024_v52  ;;  %v11983_v40 = vadd.f32 %v14829_v59, %v2023_v1  ;;  %v5436_v59 = vrot.slane %v15057_v51, 3 }
 0x3cf   : > { %3910 = vst [vmem:[%s14464_s0 + $0x34] sm:$0xf] %v10333_v44  ;;  %v3793_v53 = vadd.f32 %v15027_v55, %v3768_v48  ;;  %v3769_v60 = vmul.f32 %v11982_v16, %v15024_v52  ;;  %11485 = vmatmul.mubr.bf16.gmra.mrb[60].mxu1 %v5148_v24 }
 0x3d0   : > { %3908 = vst [vmem:[%s14464_s0 + $0x14] sm:$0xf] %v10331_v30  ;;  %v3791_v9 = vadd.f32 %v15027_v55, %v3766_v34  ;;  %v3767_v19 = vmul.f32 %v11983_v40, %v15024_v52  ;;  %11488 = vmatprep.mubr.bf16.mxu1 %v5150_v41  ;;  %11505 = vmatpush3.bf16.msra.mxu1 %v13062_v31  ;;  %v13068_v31 = vld [vmem:[%s14009_s18 + $0x184] sm:$0xff]  }
 0x3d1   : > { %v3813_v61 = vmax.f32 %v3793_v53, 0.0  ;;  %v3794_v33 = vadd.f32 %v15027_v55, %v3769_v60  ;;  %11506 = vmatprep.subr.bf16.mxu1 %v13065_v21  ;;  %v5437_v20 = vsel %vm4242_vm3, %v5435_v14, %v5436_v59  ;;  %v5438_v42 = vrot.slane %v13068_v31, 3  ;;  %v13072_v53 = vld [vmem:[%s14009_s18 + $0x194] sm:$0xff]  }
 0x3d2   : > { %v3811_v54 = vmax.f32 %v3791_v9, 0.0  ;;  %v3792_v26 = vadd.f32 %v15027_v55, %v3767_v19  ;;  %v11086_v43 = vpop.f32.mrb[36].mxu1 }
 0x3d3   : > { %v10336_v35 = vpack.c.bf16 %v3813_v61, %v3813_v61  ;;  %v3814_v27 = vmax.f32 %v3794_v33, 0.0  ;;  %v11984_v47 = vadd.f32 %v14839_v5, %v11086_v43  ;;  %v2036_v37 = vpop.f32.mrb[37].mxu1  ;;  %v5439_v40 = vsel %vm4242_vm3, %v5436_v59, %v5438_v42  ;;  %v15106_v33 = vld [vmem:[%s14009_s18 + $0x19c] sm:$0xff]  }
 0x3d4   : > { %v10334_v17 = vpack.c.bf16 %v3811_v54, %v3811_v54  ;;  %v3812_v6 = vmax.f32 %v3792_v26, 0.0  ;;  %v11985_v13 = vadd.f32 %v14845_v0, %v2036_v37  ;;  %v11087_v38 = vpop.f32.mrb[38].mxu1  ;;  %11507 = vmatpush3.bf16.msra.mxu1 %v13065_v21  ;;  %v5444_v37 = vrot.slane %v15106_v33, 3  ;;  %v13083_v33 = vld [vmem:[%s14009_s18 + $0x1c4] ss:$0 sps:$4 sm:$0x77]  }
 0x3d5   : > { %3913 = vst [vmem:[%s14464_s0 + $0x64] sm:$0xf] %v10336_v35  ;;  %v10337_v18 = vpack.c.bf16 %v3814_v27, %v3814_v27  ;;  %v3772_v23 = vmul.f32 %v11984_v47, %v15024_v52  ;;  %v11986_v5 = vadd.f32 %v14851_v45, %v11087_v38  ;;  %v2039_v2 = vpop.f32.mrb[39].mxu1  ;;  %11528 = vmatprep.subr.bf16.mxu1 %v15070_v57  ;;  %v5442_v35 = vrot.slane %v13072_v53, 3 }
 0x3d6   : > { %3911 = vst [vmem:[%s14464_s0 + $0x44] sm:$0xf] %v10334_v17  ;;  %v10335_v0 = vpack.c.bf16 %v3812_v6, %v3812_v6  ;;  %v3770_v49 = vmul.f32 %v11985_v13, %v15024_v52  ;;  %v11987_v10 = vadd.f32 %v14854_v15, %v2039_v2  ;;  %v5440_v15 = vrot.slane %v15083_v28, 3  ;;  %v13076_v28 = vld [vmem:[%s14009_s18 + $0x1a4] sm:$0xff]  }
 0x3d7   : > { %3914 = vst [vmem:[%s14464_s0 + $0x74] sm:$0xf] %v10337_v18  ;;  %v3797_v25 = vadd.f32 %v15027_v55, %v3772_v23  ;;  %v3773_v3 = vmul.f32 %v11986_v5, %v15024_v52  ;;  %11489 = vmatmul.mubr.bf16.gmra.mrb[64].mxu1 %v5152_v62 }
 0x3d8   : > { %3912 = vst [vmem:[%s14464_s0 + $0x54] sm:$0xf] %v10335_v0  ;;  %v3795_v45 = vadd.f32 %v15027_v55, %v3770_v49  ;;  %v3771_v22 = vmul.f32 %v11987_v10, %v15024_v52  ;;  %11508 = vmatprep.mubr.bf16.mxu1 %v5437_v20  ;;  %v5441_v61 = vsel %vm4242_vm3, %v5438_v42, %v5440_v15 }
 0x3d9   : > { %v3817_v58 = vmax.f32 %v3797_v25, 0.0  ;;  %v3798_v24 = vadd.f32 %v15027_v55, %v3773_v3  ;;  %v5443_v20 = vsel %vm4242_vm3, %v5440_v15, %v5442_v35  ;;  %v5445_v25 = vsel %vm4242_vm3, %v5442_v35, %v5444_v37  ;;  %v13075_v3 = vld [vmem:[#allocation10 + $0x3d8] sm:$0xff]   ;;  %v13088_v35 = vld [vmem:[#allocation10 + $0x400] sm:$0xff]  }
 0x3da   : > { %v3815_v46 = vmax.f32 %v3795_v45, 0.0  ;;  %v3796_v44 = vadd.f32 %v15027_v55, %v3771_v22  ;;  %v11090_v48 = vpop.f32.mrb[40].mxu1  ;;  %v13078_v45 = vld [vmem:[%s14009_s18 + $0x1ac] sm:$0xff]  }
 0x3db   : > { %v10340_v16 = vpack.c.bf16 %v3817_v58, %v3817_v58  ;;  %v3818_v1 = vmax.f32 %v3798_v24, 0.0  ;;  %v11988_v41 = vadd.f32 %v14863_v32, %v11090_v48  ;;  %v2052_v21 = vpop.f32.mrb[41].mxu1  ;;  %v13070_v32 = vld [vmem:[#allocation10 + $0x3c8] sm:$0xff]  }
 0x3dc   : > { %v10338_v56 = vpack.c.bf16 %v3815_v46, %v3815_v46  ;;  %v3816_v51 = vmax.f32 %v3796_v44, 0.0  ;;  %v11989_v30 = vadd.f32 %v14866_v29, %v2052_v21  ;;  %v11091_v34 = vpop.f32.mrb[42].mxu1  ;;  %v5446_v46 = vrot.slane %v13076_v28, 3 }
 0x3dd   : > { %3917 = vst [vmem:[%s14464_s0 + $0xa4] sm:$0xf] %v10340_v16  ;;  %v10341_v60 = vpack.c.bf16 %v3818_v1, %v3818_v1  ;;  %v3776_v9 = vmul.f32 %v11988_v41, %v15024_v52  ;;  %v11990_v19 = vadd.f32 %v14870_v39, %v11091_v34  ;;  %v2055_v50 = vpop.f32.mrb[43].mxu1  ;;  %v5448_v16 = vrot.slane %v13078_v45, 3  ;;  %v13079_v34 = vld [vmem:[%s14009_s18 + $0x1b4] sm:$0xff]  }
 0x3de   : > { %3915 = vst [vmem:[%s14464_s0 + $0x84] sm:$0xf] %v10338_v56  ;;  %v10339_v29 = vpack.c.bf16 %v3816_v51, %v3816_v51  ;;  %v3774_v14 = vmul.f32 %v11989_v30, %v15024_v52  ;;  %v11991_v59 = vadd.f32 %v14874_v11, %v2055_v50  ;;  %v13073_v11 = vld [vmem:[#allocation10 + $0x3d0] sm:$0xff]   ;;  %v5447_v30 = vsel %vm4242_vm3, %v5444_v37, %v5446_v46  ;;  %v13090_v37 = vld [vmem:[%s14009_s18 + $0x270] sm:$0xff]  }
 0x3df   : > { %3918 = vst [vmem:[%s14464_s0 + $0xb4] sm:$0xf] %v10341_v60  ;;  %v3801_v54 = vadd.f32 %v15027_v55, %v3776_v9  ;;  %v3777_v26 = vmul.f32 %v11990_v19, %v15024_v52  ;;  %11509 = vmatmul.mubr.bf16.vlgmr.msra.gmra.mrb[48].mxu1 %v5439_v40  ;;  %v5449_v53 = vsel %vm4242_vm3, %v5446_v46, %v5448_v16  ;;  %v13080_v60 = vld [vmem:[#allocation10 + $0x3e8] sm:$0xff]   ;;  %v5450_v19 = vrot.slane %v13079_v34, 3  ;;  %v13081_v50 = vld [vmem:[#allocation10 + $0x3f0] sm:$0xff]  }
 0x3e0   : > { %3916 = vst [vmem:[%s14464_s0 + $0x94] sm:$0xf] %v10339_v29  ;;  %v3799_v39 = vadd.f32 %v15027_v55, %v3774_v14  ;;  %v3775_v43 = vmul.f32 %v11991_v59, %v15024_v52  ;;  %11529 = vmatpush3.bf16.msra.mxu1 %v15070_v57  ;;  %11512 = vmatprep.mubr.bf16.mxu1 %v5441_v61  ;;  %v13082_v9 = vld [vmem:[%s14009_s18 + $0x1bc] sm:$0xff]   ;;  %v13084_v14 = vld [vmem:[#allocation10 + $0x3f8] sm:$0xff]  }
 0x3e1   : > { %v3821_v27 = vmax.f32 %v3801_v54, 0.0  ;;  %v3802_v47 = vadd.f32 %v15027_v55, %v3777_v26  ;;  %11530 = vmatprep.subr.bf16.mxu1 %v13070_v32  ;;  %v5451_v61 = vsel %vm4242_vm3, %v5448_v16, %v5450_v19  ;;  %v13085_v59 = vld [vmem:[%s14009_s18 + $0x258] sm:$0xf8]   ;;  %v13086_v54 = vld [vmem:[%s14009_s18 + $0x260] sm:$0xff]   ;;  %v5454_v26 = vrot.slane %v13083_v33, 3  ;;  %v13105_v16 = vld [vmem:[%s14009_s18 + $0x268] sm:$0xff]  }
 0x3e2   : > { %v3819_v17 = vmax.f32 %v3799_v39, 0.0  ;;  %v3800_v6 = vadd.f32 %v15027_v55, %v3775_v43  ;;  %v11094_v13 = vpop.f32.mrb[44].mxu1  ;;  %v5738_v39 = vrot.slane %v13085_v59, 3  ;;  %v5739_v43 = vrot.slane %v13086_v54, 3  ;;  %v13098_v45 = vld [vmem:[%s14009_s18 + $0x298] sm:$0xff]   ;;  %v13113_v54 = vld [vmem:[#allocation10 + $0x458] sm:$0xff]  }
 0x3e3   : > { %v10344_v38 = vpack.c.bf16 %v3821_v27, %v3821_v27  ;;  %v3822_v62 = vmax.f32 %v3802_v47, 0.0  ;;  %v11992_v31 = vadd.f32 %v14878_v8, %v11094_v13  ;;  %v2068_v57 = vpop.f32.mrb[45].mxu1  ;;  %v13087_v47 = vld [vmem:[%s14009_s18 + $0x268] sm:$0xff]   ;;  %v13109_v34 = vld [vmem:[%s14009_s18 + $0x278] sm:$0xff]  }
 0x3e4   : > { %v10342_v18 = vpack.c.bf16 %v3819_v17, %v3819_v17  ;;  %v3820_v23 = vmax.f32 %v3800_v6, 0.0  ;;  %v11993_v5 = vadd.f32 %v14881_v12, %v2068_v57  ;;  %v11095_v2 = vpop.f32.mrb[46].mxu1  ;;  %11531 = vmatpush3.bf16.msra.mxu1 %v13070_v32  ;;  %v5452_v32 = vrot.slane %v13082_v9, 3  ;;  %v13093_v57 = vld [vmem:[%s14009_s18 + $0x280] sm:$0xff]  }
 0x3e5   : > { %3921 = vst [vmem:[%s14464_s0 + $0xe4] sm:$0xf] %v10344_v38  ;;  %v10345_v0 = vpack.c.bf16 %v3822_v62, %v3822_v62  ;;  %v3780_v49 = vmul.f32 %v11992_v31, %v15024_v52  ;;  %v11994_v8 = vadd.f32 %v14884_v36, %v11095_v2  ;;  %v2071_v10 = vpop.f32.mrb[47].mxu1  ;;  %11532 = vmatprep.subr.bf16.mxu1 %v13073_v11  ;;  %v5741_v17 = vrot.slane %v13087_v47, 3  ;;  %v13091_v38 = vld [vmem:[%s14009_s18 + $0x278] sm:$0xff]   ;;  %v13110_v9 = vld [vmem:[%s14009_s18 + $0x280] sm:$0xff]  }
 0x3e6   : > { %3919 = vst [vmem:[%s14464_s0 + $0xc4] sm:$0xf] %v10342_v18  ;;  %v10343_v12 = vpack.c.bf16 %v3820_v23, %v3820_v23  ;;  %v3778_v22 = vmul.f32 %v11993_v5, %v15024_v52  ;;  %v11995_v42 = vadd.f32 %v14888_v4, %v2071_v10  ;;  %v13077_v4 = vld [vmem:[#allocation10 + $0x3e0] sm:$0xff]   ;;  %v5453_v29 = vsel %vm4242_vm3, %v5450_v19, %v5452_v32  ;;  %v13089_v62 = vld [vmem:[#allocation10 + $0x408] sm:$0xff]   ;;  %v13092_v23 = vld [vmem:[#allocation10 + $0x410] sm:$0xff]  }
 0x3e7   : > { %3922 = vst [vmem:[%s14464_s0 + $0xf4] sm:$0xf] %v10345_v0  ;;  %v3805_v58 = vadd.f32 %v15027_v55, %v3780_v49  ;;  %v3781_v24 = vmul.f32 %v11994_v8, %v15024_v52  ;;  %11513 = vmatmul.mubr.bf16.gmra.mrb[52].mxu1 %v5443_v20  ;;  %v5455_v27 = vsel %vm4242_vm3, %v5452_v32, %v5454_v26  ;;  %v5743_v6 = vrot.slane %v13090_v37, 3  ;;  %v13095_v20 = vld [vmem:[%s14009_s18 + $0x288] sm:$0xff]   ;;  %v13097_v49 = vld [vmem:[%s14009_s18 + $0x290] sm:$0xff]   ;;  %v13116_v26 = vld [vmem:[%s14009_s18 + $0x298] sm:$0xff]  }
 0x3e8   : > { %3920 = vst [vmem:[%s14464_s0 + $0xd4] sm:$0xf] %v10343_v12  ;;  %v3803_v36 = vadd.f32 %v15027_v55, %v3778_v22  ;;  %v3779_v15 = vmul.f32 %v11995_v42, %v15024_v52  ;;  %11533 = vmatpush3.bf16.msra.mxu1 %v13073_v11  ;;  %11516 = vmatprep.mubr.bf16.mxu1 %v5445_v25  ;;  %v5745_v18 = vrot.slane %v13091_v38, 3  ;;  %v5747_v5 = vrot.slane %v13093_v57, 3  ;;  %v13094_v0 = vld [vmem:[#allocation10 + $0x418] sm:$0xff]   ;;  %v13096_v10 = vld [vmem:[#allocation10 + $0x420] sm:$0xff]  }
 0x3e9   : > { %v3825_v44 = vmax.f32 %v3805_v58, 0.0  ;;  %v3806_v48 = vadd.f32 %v15027_v55, %v3781_v24  ;;  %11534 = vmatprep.subr.bf16.mxu1 %v13075_v3  ;;  %v5740_v11 = vsel %vm4242_vm3, %v5738_v39, %v5739_v43  ;;  %v5742_v13 = vsel %vm4242_vm3, %v5739_v43, %v5741_v17  ;;  %v13099_v22 = vld [vmem:[#allocation10 + $0x428] sm:$0xff]   ;;  %v13100_v24 = vld [vmem:[#allocation10 + $0x430] sm:$0xff]   ;;  %v13115_v43 = vld [vmem:[#allocation10 + $0x460] sm:$0xff]  }
 0x3ea   : > { %v3823_v1 = vmax.f32 %v3803_v36, 0.0  ;;  %v3804_v41 = vadd.f32 %v15027_v55, %v3779_v15  ;;  %v5744_v31 = vsel %vm4242_vm3, %v5741_v17, %v5743_v6  ;;  %v5746_v2 = vsel %vm4242_vm3, %v5743_v6, %v5745_v18  ;;  %v13101_v42 = vld [vmem:[%s14009_s18 + $0x2a0] sm:$0xff]   ;;  %v13102_v46 = vld [vmem:[%s14009_s18 + $0x2a8] ss:$0 sps:$4 sm:$0x77]  }
 0x3eb   : > { %v10348_v21 = vpack.c.bf16 %v3825_v44, %v3825_v44  ;;  %v3826_v56 = vmax.f32 %v3806_v48, 0.0  ;;  %v5748_v28 = vsel %vm4242_vm3, %v5745_v18, %v5747_v5  ;;  %v5749_v8 = vrot.slane %v13095_v20, 3  ;;  %v13103_v48 = vld [vmem:[#allocation10 + $0x438] sm:$0xff]   ;;  %v13118_v37 = vld [vmem:[#allocation10 + $0x468] sm:$0xff]  }
 0x3ec   : > { %v10346_v52 = vpack.c.bf16 %v3823_v1, %v3823_v1  ;;  %v3824_v51 = vmax.f32 %v3804_v41, 0.0  ;;  %11535 = vmatpush3.bf16.msra.mxu1 %v13075_v3  ;;  %v5751_v25 = vrot.slane %v13097_v49, 3  ;;  %v5753_v58 = vrot.slane %v13098_v45, 3  ;;  %v13117_v47 = vld [vmem:[%s14009_s18 + $0x2a0] sm:$0xff]   ;;  %v13120_v17 = vld [vmem:[%s14009_s18 + $0x2a8] sm:$0xff]   ;;  %v13125_v49 = vld [vmem:[%s14009_s18 + $0x274] sm:$0xff]  }
 0x3ed   : > { %3925 = vst [vmem:[%s14464_s0 + $0x124] sm:$0xf] %v10348_v21  ;;  %v10349_v40 = vpack.c.bf16 %v3826_v56, %v3826_v56  ;;  %11536 = vmatprep.subr.bf16.mxu1 %v13077_v4  ;;  %v5750_v3 = vsel %vm4242_vm3, %v5747_v5, %v5749_v8  ;;  %v5755_v36 = vrot.slane %v13101_v42, 3  ;;  %v5757_v1 = vrot.slane %v13102_v46, 3  ;;  %v13107_v56 = vld [vmem:[#allocation10 + $0x440] sm:$0xff]   ;;  %v13122_v18 = vld [vmem:[#allocation10 + $0x478] sm:$0xff]  }
 0x3ee   : > { %3923 = vst [vmem:[%s14464_s0 + $0x104] sm:$0xf] %v10346_v52  ;;  %v10347_v55 = vpack.c.bf16 %v3824_v51, %v3824_v51  ;;  %v5752_v12 = vsel %vm4242_vm3, %v5749_v8, %v5751_v25  ;;  %v5754_v15 = vsel %vm4242_vm3, %v5751_v25, %v5753_v58  ;;  %v6042_v21 = vrot.slane %v13105_v16, 1  ;;  %v13106_v51 = vld [vmem:[%s14009_s18 + $0x270] sm:$0xff]   ;;  %v13126_v25 = vld [vmem:[%s14009_s18 + $0x27c] sm:$0xff]  }
 0x3ef   : > { %3926 = vst [vmem:[%s14464_s0 + $0x134] sm:$0xf] %v10349_v40  ;;  %11517 = vmatmul.mubr.bf16.gmra.mrb[56].mxu1 %v5447_v30  ;;  %v5756_v44 = vsel %vm4242_vm3, %v5753_v58, %v5755_v36  ;;  %v5758_v52 = vsel %vm4242_vm3, %v5755_v36, %v5757_v1  ;;  %v6044_v40 = vrot.slane %v13106_v51, 1  ;;  %v6048_v32 = vrot.slane %v13110_v9, 1  ;;  %v13124_v5 = vld [vmem:[%s14009_s18 + $0x26c] sm:$0xff]   ;;  %v13147_v36 = vld [vmem:[#allocation10 + $0x4c8] sm:$0xff]  }
 0x3f0   : > { %3924 = vst [vmem:[%s14464_s0 + $0x114] sm:$0xf] %v10347_v55  ;;  %11537 = vmatpush3.bf16.msra.mxu1 %v13077_v4  ;;  %11520 = vmatprep.mubr.bf16.mxu1 %v5449_v53  ;;  %v13104_v4 = vld [vmem:[%s14009_s18 + $0x260] sm:$0xfe]   ;;  %v6046_v53 = vrot.slane %v13109_v34, 1  ;;  %v6056_v6 = vrot.slane %v13117_v47, 1 }
 0x3f1   : > { %11538 = vmatprep.subr.bf16.mxu1 %v13080_v60  ;;  %v6041_v41 = vrot.slane %v13104_v4, 1  ;;  %v13108_v55 = vld [vmem:[#allocation10 + $0x448] sm:$0xff]   ;;  %v6058_v38 = vrot.slane %v13120_v17, 1  ;;  %v6349_v45 = vrot.slane %v13126_v25, 3  ;;  %v13128_v58 = vld [vmem:[%s14009_s18 + $0x28c] sm:$0xff]  }
 0x3f2   : > { %v6047_v19 = vsel %vm666_vm0, %v6044_v40, %v6046_v53  ;;  %v13130_v16 = vld [vmem:[%s14009_s18 + $0x29c] sm:$0xff]   ;;  %v13132_v34 = vld [vmem:[%s14009_s18 + $0x2ac] sm:$0xff]  }
 0x3f3   : > { %v6043_v30 = vsel %vm666_vm0, %v6041_v41, %v6042_v21  ;;  %v6059_v57 = vsel %vm666_vm0, %v6056_v6, %v6058_v38  ;;  %v13149_v41 = vld [vmem:[#allocation10 + $0x4d8] sm:$0xff]   ;;  %v13150_v51 = vld [vmem:[#allocation10 + $0x4e0] sm:$0xff]  }
 0x3f4   : > { %11539 = vmatpush3.bf16.msra.mxu1 %v13080_v60  ;;  %v6045_v60 = vsel %vm666_vm0, %v6042_v21, %v6044_v40  ;;  %v6357_v21 = vrot.slane %v13130_v16, 3 }
 0x3f5   : > { %11540 = vmatprep.subr.bf16.mxu1 %v13081_v50 }
 0x3f7   : > { %11521 = vmatmul.mubr.bf16.gmra.mrb[60].mxu1 %v5451_v61  ;;  %v13111_v61 = vld [vmem:[#allocation10 + $0x450] sm:$0xff]  }
 0x3f8   : > { %11524 = vmatprep.mubr.bf16.mxu1 %v5453_v29  ;;  %11541 = vmatpush3.bf16.msra.mxu1 %v13081_v50  ;;  %v13112_v50 = vld [vmem:[%s14009_s18 + $0x288] sm:$0xff]   ;;  %v6049_v29 = vsel %vm666_vm0, %v6046_v53, %v6048_v32  ;;  %v13151_v53 = vld [vmem:[#allocation10 + $0x4e8] sm:$0xff]  }
 0x3f9   : > { %11542 = vmatprep.subr.bf16.mxu1 %v13084_v14  ;;  %v6050_v33 = vrot.slane %v13112_v50, 1 }
 0x3fb   : > { %v6051_v59 = vsel %vm666_vm0, %v6048_v32, %v6050_v33  ;;  %v13134_v32 = vld [vmem:[%s14009_s18 + $0x50] sm:$0xff]  }
 0x3fc   : > { %11543 = vmatpush3.bf16.msra.mxu1 %v13084_v14  ;;  %v13114_v14 = vld [vmem:[%s14009_s18 + $0x290] sm:$0xff]  }
 0x3fd   : > { %11564 = vmatprep.subr.bf16.mxu1 %v13088_v35  ;;  %v6052_v39 = vrot.slane %v13114_v14, 1  ;;  %v15216_v14 = vld [vmem:[#allocation11 + $0x2] ss:$0 sm:$0xff] }
 0x3ff   : > { %11525 = vmatmul.mubr.bf16.gmra.mrb[64].mxu1 %v5455_v27  ;;  %v6053_v27 = vsel %vm666_vm0, %v6050_v33, %v6052_v39  ;;  %v13153_v33 = vld [vmem:[#allocation10 + $0x4f8] sm:$0xff]  }
 0x400   : > { %11544 = vmatprep.mubr.bf16.mxu1 %v5740_v11 }
 0x407   : > { %11545 = vmatmul.mubr.bf16.vlgmr.msra.gmra.mrb[48].mxu1 %v5742_v13  ;;  %v13119_v13 = vld [vmem:[#allocation10 + $0x470] sm:$0xff]  }
 0x408   : > { %11565 = vmatpush3.bf16.msra.mxu1 %v13088_v35  ;;  %11548 = vmatprep.mubr.bf16.mxu1 %v5744_v31  ;;  %v6054_v35 = vrot.slane %v13116_v26, 1  ;;  %v13121_v31 = vld [vmem:[%s14009_s18 + $0x2b0] ss:$0 sps:$4 sm:$0x11]   ;;  %v15219_v26 = vld [vmem:[#allocation13 + $0x2] ss:$0 sm:$0xff] }
 0x409   : > { %11566 = vmatprep.subr.bf16.mxu1 %v13089_v62 }
 0x40a   : > { %v6055_v11 = vsel %vm666_vm0, %v6052_v39, %v6054_v35  ;;  %v13135_v39 = vld [vmem:[%s14009_s18 + $0x58] ss:$0 sps:$4 sm:$0x11]  }
 0x40c   : > { %11567 = vmatpush3.bf16.msra.mxu1 %v13089_v62  ;;  %v6057_v62 = vsel %vm666_vm0, %v6054_v35, %v6056_v6 }
 0x40d   : > { %11568 = vmatprep.subr.bf16.mxu1 %v13092_v23 }
 0x40f   : > { %11549 = vmatmul.mubr.bf16.gmra.mrb[52].mxu1 %v5746_v2  ;;  %v6060_v2 = vrot.slane %v13121_v31, 1 }
 0x410   : > { %11569 = vmatpush3.bf16.msra.mxu1 %v13092_v23  ;;  %11552 = vmatprep.mubr.bf16.mxu1 %v5748_v28  ;;  %v13123_v23 = vld [vmem:[%s14009_s18 + $0x264] sm:$0xf8]   ;;  %v6345_v28 = vrot.slane %v13124_v5, 3 }
 0x411   : > { %11570 = vmatprep.subr.bf16.mxu1 %v13094_v0  ;;  %v6344_v20 = vrot.slane %v13123_v23, 3 }
 0x413   : > { %v6346_v8 = vsel %vm4242_vm3, %v6344_v20, %v6345_v28 }
 0x414   : > { %11571 = vmatpush3.bf16.msra.mxu1 %v13094_v0  ;;  %v6061_v0 = vsel %vm666_vm0, %v6058_v38, %v6060_v2 }
 0x415   : > { %11572 = vmatprep.subr.bf16.mxu1 %v13096_v10 }
 0x417   : > { %11553 = vmatmul.mubr.bf16.gmra.mrb[56].mxu1 %v5750_v3  ;;  %v6347_v3 = vrot.slane %v13125_v49, 3 }
 0x418   : > { %11573 = vmatpush3.bf16.msra.mxu1 %v13096_v10  ;;  %11556 = vmatprep.mubr.bf16.mxu1 %v5752_v12  ;;  %v13146_v10 = vld [vmem:[#allocation10 + $0x4c0] sm:$0xff]  }
 0x419   : > { %11574 = vmatprep.subr.bf16.mxu1 %v13099_v22  ;;  %v6348_v12 = vsel %vm4242_vm3, %v6345_v28, %v6347_v3  ;;  %v6350_v42 = vsel %vm4242_vm3, %v6347_v3, %v6349_v45 }
 0x41c   : > { %11575 = vmatpush3.bf16.msra.mxu1 %v13099_v22  ;;  %v13127_v22 = vld [vmem:[%s14009_s18 + $0x284] sm:$0xff]  }
 0x41d   : > { %11576 = vmatprep.subr.bf16.mxu1 %v13100_v24 }
 0x41f   : > { %11557 = vmatmul.mubr.bf16.gmra.mrb[60].mxu1 %v5754_v15  ;;  %v6353_v15 = vrot.slane %v13128_v58, 3 }
 0x420   : > { %11560 = vmatprep.mubr.bf16.mxu1 %v5756_v44  ;;  %11577 = vmatpush3.bf16.msra.mxu1 %v13100_v24  ;;  %v6351_v24 = vrot.slane %v13127_v22, 3  ;;  %v13129_v44 = vld [vmem:[%s14009_s18 + $0x294] sm:$0xff]  }
 0x421   : > { %11578 = vmatprep.subr.bf16.mxu1 %v13103_v48  ;;  %v6355_v1 = vrot.slane %v13129_v44, 3 }
 0x422   : > { %v6352_v46 = vsel %vm4242_vm3, %v6349_v45, %v6351_v24  ;;  %v6354_v4 = vsel %vm4242_vm3, %v6351_v24, %v6353_v15 }
 0x424   : > { %11579 = vmatpush3.bf16.msra.mxu1 %v13103_v48  ;;  %v13148_v48 = vld [vmem:[#allocation10 + $0x4d0] sm:$0xff]  }
 0x425   : > { %11600 = vmatprep.subr.bf16.mxu1 %v13107_v56 }
 0x427   : > { %11561 = vmatmul.mubr.bf16.gmra.mrb[64].mxu1 %v5758_v52  ;;  %v13131_v52 = vld [vmem:[%s14009_s18 + $0x2a4] sm:$0xff]  }
 0x428   : > { %11580 = vmatprep.mubr.bf16.mxu1 %v6043_v30  ;;  %v6358_v30 = vsel %vm4242_vm3, %v6355_v1, %v6357_v21  ;;  %v6359_v40 = vrot.slane %v13131_v52, 3 }
 0x42a   : > { %v6360_v9 = vsel %vm4242_vm3, %v6357_v21, %v6359_v40 }
 0x42f   : > { %11581 = vmatmul.mubr.bf16.vlgmr.msra.gmra.mrb[48].mxu1 %v6045_v60  ;;  %v6361_v60 = vrot.slane %v13132_v34, 3 }
 0x430   : > { %11601 = vmatpush3.bf16.msra.mxu1 %v13107_v56  ;;  %11584 = vmatprep.mubr.bf16.mxu1 %v6047_v19  ;;  %v6356_v56 = vsel %vm4242_vm3, %v6353_v15, %v6355_v1  ;;  %v13152_v19 = vld [vmem:[#allocation10 + $0x4f0] sm:$0xff]  }
 0x431   : > { %11602 = vmatprep.subr.bf16.mxu1 %v13108_v55  ;;  %v6362_v50 = vsel %vm4242_vm3, %v6359_v40, %v6361_v60 }
 0x434   : > { %11603 = vmatpush3.bf16.msra.mxu1 %v13108_v55  ;;  %v13133_v55 = vld [vmem:[%s14009_s18 + $0x2b4] ss:$0 sps:$4 sm:$0x77]  }
 0x435   : > { %11604 = vmatprep.subr.bf16.mxu1 %v13111_v61 }
 0x437   : > { %11585 = vmatmul.mubr.bf16.gmra.mrb[52].mxu1 %v6049_v29  ;;  %v6854_v29 = vrot.slane %v13134_v32, 1 }
 0x438   : > { %11605 = vmatpush3.bf16.msra.mxu1 %v13111_v61  ;;  %11588 = vmatprep.mubr.bf16.mxu1 %v6051_v59  ;;  %v6363_v61 = vrot.slane %v13133_v55, 3 }
 0x439   : > { %11606 = vmatprep.subr.bf16.mxu1 %v13113_v54 }
 0x43a   : > { %v6364_v59 = vsel %vm4242_vm3, %v6361_v60, %v6363_v61 }
 0x43c   : > { %11607 = vmatpush3.bf16.msra.mxu1 %v13113_v54 }
 0x43d   : > { %11608 = vmatprep.subr.bf16.mxu1 %v13115_v43 }
 0x43f   : > { %11589 = vmatmul.mubr.bf16.gmra.mrb[56].mxu1 %v6053_v27  ;;  %v6855_v27 = vsel %vm666_vm0, %v6852_v7, %v6854_v29 }
 0x440   : > { %11609 = vmatpush3.bf16.msra.mxu1 %v13115_v43  ;;  %11592 = vmatprep.mubr.bf16.mxu1 %v6055_v11 }
 0x441   : > { %11610 = vmatprep.subr.bf16.mxu1 %v13118_v37 }
 0x444   : > { %11611 = vmatpush3.bf16.msra.mxu1 %v13118_v37 }
 0x445   : > { %11612 = vmatprep.subr.bf16.mxu1 %v13119_v13 }
 0x447   : > { %11593 = vmatmul.mubr.bf16.gmra.mrb[60].mxu1 %v6057_v62  ;;  %v6856_v62 = vrot.slane %v13135_v39, 1 }
 0x448   : > { %11596 = vmatprep.mubr.bf16.mxu1 %v6059_v57  ;;  %11613 = vmatpush3.bf16.msra.mxu1 %v13119_v13 }
 0x449   : > { %11614 = vmatprep.subr.bf16.mxu1 %v13122_v18  ;;  %v6857_v20 = vsel %vm666_vm0, %v6854_v29, %v6856_v62 }
 0x44c   : > { %11615 = vmatpush3.bf16.msra.mxu1 %v13122_v18 }
 0x44d   : > { %11960 = vmatprep.subr.bf16.mxu1 %v13146_v10 }
 0x44f   : > { %11597 = vmatmul.mubr.bf16.gmra.mrb[64].mxu1 %v6061_v0 }
 0x450   : > { %11616 = vmatprep.mubr.bf16.mxu1 %v6346_v8 }
 0x457   : > { %11617 = vmatmul.mubr.bf16.vlgmr.msra.gmra.mrb[48].mxu1 %v6348_v12 }
 0x458   : > { %11968 = vmatpush3.bf16.msra.mxu1 %v13146_v10  ;;  %11620 = vmatprep.mubr.bf16.mxu1 %v6350_v42 }
 0x459   : > { %11961 = vmatprep.subr.bf16.mxu1 %v13147_v36 }
 0x45c   : > { %11969 = vmatpush3.bf16.msra.mxu1 %v13147_v36 }
 0x45d   : > { %11962 = vmatprep.subr.bf16.mxu1 %v13148_v48 }
 0x45f   : > { %11621 = vmatmul.mubr.bf16.gmra.mrb[52].mxu1 %v6352_v46 }
 0x460   : > { %11970 = vmatpush3.bf16.msra.mxu1 %v13148_v48  ;;  %11624 = vmatprep.mubr.bf16.mxu1 %v6354_v4 }
 0x461   : > { %11963 = vmatprep.subr.bf16.mxu1 %v13149_v41 }
 0x464   : > { %11971 = vmatpush3.bf16.msra.mxu1 %v13149_v41 }
 0x465   : > { %11964 = vmatprep.subr.bf16.mxu1 %v13150_v51 }
 0x467   : > { %11625 = vmatmul.mubr.bf16.gmra.mrb[56].mxu1 %v6356_v56 }
 0x468   : > { %11972 = vmatpush3.bf16.msra.mxu1 %v13150_v51  ;;  %11628 = vmatprep.mubr.bf16.mxu1 %v6358_v30 }
 0x469   : > { %11965 = vmatprep.subr.bf16.mxu1 %v13151_v53 }
 0x46c   : > { %11973 = vmatpush3.bf16.msra.mxu1 %v13151_v53 }
 0x46d   : > { %11966 = vmatprep.subr.bf16.mxu1 %v13152_v19 }
 0x46f   : > { %11629 = vmatmul.mubr.bf16.gmra.mrb[60].mxu1 %v6360_v9 }
 0x470   : > { %11632 = vmatprep.mubr.bf16.mxu1 %v6362_v50  ;;  %11974 = vmatpush3.bf16.msra.mxu1 %v13152_v19 }
 0x471   : > { %11967 = vmatprep.subr.bf16.mxu1 %v13153_v33 }
 0x474   : > { %11975 = vmatpush3.bf16.msra.mxu1 %v13153_v33 }
 0x477   : > { %v11942_v54 = vpop.f32.mrb[20].mxu0  ;;  %11633 = vmatmul.mubr.bf16.gmra.mrb[64].mxu1 %v6364_v59 }
 0x478   : > { %v9286_v43 = vmul.f32 %v11942_v54, %v15216_v14  ;;  %v9180_v35 = vpop.f32.mrb[21].mxu0  ;;  %11668 = vmatprep.mubr.bf16.mxu1 %v6855_v27 }
 0x479   : > { %v9284_v47 = vmul.f32 %v15216_v14, %v9180_v35  ;;  %v11943_v11 = vpop.f32.mrb[22].mxu0 }
 0x47a   : > { %v9311_v37 = vadd.f32 %v15219_v26, %v9286_v43  ;;  %v9287_v17 = vmul.f32 %v11943_v11, %v15216_v14  ;;  %v9183_v6 = vpop.f32.mrb[23].mxu0 }
 0x47b   : > { %v9309_v13 = vadd.f32 %v15219_v26, %v9284_v47  ;;  %v9285_v38 = vmul.f32 %v15216_v14, %v9183_v6 }
 0x47c   : > { %v9331_v63 = vmax.f32 %v9311_v37, 0.0  ;;  %v9312_v7 = vadd.f32 %v15219_v26, %v9287_v17 }
 0x47d   : > { %v9329_v31 = vmax.f32 %v9309_v13, 0.0  ;;  %v9310_v57 = vadd.f32 %v15219_v26, %v9285_v38 }
 0x47e   : > { %v10372_v18 = vpack.c.bf16 %v9331_v63, %v9331_v63  ;;  %v9332_v23 = vmax.f32 %v9312_v7, 0.0 }
 0x47f   : > { %v10370_v5 = vpack.c.bf16 %v9329_v31, %v9329_v31  ;;  %v9330_v2 = vmax.f32 %v9310_v57, 0.0  ;;  %v11946_v28 = vpop.f32.mrb[24].mxu0  ;;  %11669 = vmatmul.mubr.bf16.vlgmr.msra.gmra.mrb[68].mxu1 %v6857_v20 }
 0x480   : > { %9431 = vst [vmem:[%s14464_s0 + $0x2c] sm:$0xf] %v10372_v18  ;;  %v10373_v0 = vpack.c.bf16 %v9332_v23, %v9332_v23  ;;  %v9290_v49 = vmul.f32 %v11946_v28, %v15216_v14  ;;  %v9196_v8 = vpop.f32.mrb[25].mxu0 }
 0x481   : > { %9429 = vst [vmem:[%s14464_s0 + $0xc] sm:$0xf] %v10370_v5  ;;  %v10371_v10 = vpack.c.bf16 %v9330_v2, %v9330_v2  ;;  %v9288_v25 = vmul.f32 %v15216_v14, %v9196_v8  ;;  %v11947_v3 = vpop.f32.mrb[26].mxu0 }
 0x482   : > { %9432 = vst [vmem:[%s14464_s0 + $0x3c] sm:$0xf] %v10373_v0  ;;  %v9315_v45 = vadd.f32 %v15219_v26, %v9290_v49  ;;  %v9291_v12 = vmul.f32 %v11947_v3, %v15216_v14  ;;  %v9199_v22 = vpop.f32.mrb[27].mxu0 }
 0x483   : > { %9430 = vst [vmem:[%s14464_s0 + $0x1c] sm:$0xf] %v10371_v10  ;;  %v9313_v42 = vadd.f32 %v15219_v26, %v9288_v25  ;;  %v9289_v58 = vmul.f32 %v15216_v14, %v9199_v22 }
 0x484   : > { %v9335_v24 = vmax.f32 %v9315_v45, 0.0  ;;  %v9316_v36 = vadd.f32 %v15219_v26, %v9291_v12 }
 0x485   : > { %v9333_v15 = vmax.f32 %v9313_v42, 0.0  ;;  %v9314_v46 = vadd.f32 %v15219_v26, %v9289_v58 }
 0x486   : > { %v10376_v44 = vpack.c.bf16 %v9335_v24, %v9335_v24  ;;  %v9336_v48 = vmax.f32 %v9316_v36, 0.0 }
 0x487   : > { %v10374_v4 = vpack.c.bf16 %v9333_v15, %v9333_v15  ;;  %v9334_v16 = vmax.f32 %v9314_v46, 0.0  ;;  %v11950_v1 = vpop.f32.mrb[28].mxu0 }
 0x488   : > { %9435 = vst [vmem:[%s14464_s0 + $0x6c] sm:$0xf] %v10376_v44  ;;  %v10377_v41 = vpack.c.bf16 %v9336_v48, %v9336_v48  ;;  %v9294_v21 = vmul.f32 %v11950_v1, %v15216_v14  ;;  %v9212_v56 = vpop.f32.mrb[29].mxu0 }
 0x489   : > { %9433 = vst [vmem:[%s14464_s0 + $0x4c] sm:$0xf] %v10374_v4  ;;  %v10375_v52 = vpack.c.bf16 %v9334_v16, %v9334_v16  ;;  %v9292_v51 = vmul.f32 %v15216_v14, %v9212_v56  ;;  %v11951_v30 = vpop.f32.mrb[30].mxu0 }
 0x48a   : > { %9436 = vst [vmem:[%s14464_s0 + $0x7c] sm:$0xf] %v10377_v41  ;;  %v9319_v34 = vadd.f32 %v15219_v26, %v9294_v21  ;;  %v9295_v40 = vmul.f32 %v11951_v30, %v15216_v14  ;;  %v9215_v53 = vpop.f32.mrb[31].mxu0 }
 0x48b   : > { %9434 = vst [vmem:[%s14464_s0 + $0x5c] sm:$0xf] %v10375_v52  ;;  %v9317_v60 = vadd.f32 %v15219_v26, %v9292_v51  ;;  %v9293_v9 = vmul.f32 %v15216_v14, %v9215_v53 }
 0x48c   : > { %v9339_v55 = vmax.f32 %v9319_v34, 0.0  ;;  %v9320_v19 = vadd.f32 %v15219_v26, %v9295_v40 }
 0x48d   : > { %v9337_v50 = vmax.f32 %v9317_v60, 0.0  ;;  %v9318_v32 = vadd.f32 %v15219_v26, %v9293_v9 }
 0x48e   : > { %v10380_v61 = vpack.c.bf16 %v9339_v55, %v9339_v55  ;;  %v9340_v33 = vmax.f32 %v9320_v19, 0.0 }
 0x48f   : > { %v10378_v29 = vpack.c.bf16 %v9337_v50, %v9337_v50  ;;  %v9338_v59 = vmax.f32 %v9318_v32, 0.0  ;;  %v11954_v54 = vpop.f32.mrb[32].mxu0 }
 0x490   : > { %9439 = vst [vmem:[%s14464_s0 + $0xac] sm:$0xf] %v10380_v61  ;;  %v10381_v39 = vpack.c.bf16 %v9340_v33, %v9340_v33  ;;  %v9298_v43 = vmul.f32 %v11954_v54, %v15216_v14  ;;  %v9228_v35 = vpop.f32.mrb[33].mxu0 }
 0x491   : > { %9437 = vst [vmem:[%s14464_s0 + $0x8c] sm:$0xf] %v10378_v29  ;;  %v10379_v27 = vpack.c.bf16 %v9338_v59, %v9338_v59  ;;  %v9296_v47 = vmul.f32 %v15216_v14, %v9228_v35  ;;  %v11955_v11 = vpop.f32.mrb[34].mxu0 }
 0x492   : > { %9440 = vst [vmem:[%s14464_s0 + $0xbc] sm:$0xf] %v10381_v39  ;;  %v9323_v37 = vadd.f32 %v15219_v26, %v9298_v43  ;;  %v9299_v17 = vmul.f32 %v11955_v11, %v15216_v14  ;;  %v9231_v6 = vpop.f32.mrb[35].mxu0 }
 0x493   : > { %9438 = vst [vmem:[%s14464_s0 + $0x9c] sm:$0xf] %v10379_v27  ;;  %v9321_v13 = vadd.f32 %v15219_v26, %v9296_v47  ;;  %v9297_v38 = vmul.f32 %v15216_v14, %v9231_v6 }
 0x494   : > { %v9343_v62 = vmax.f32 %v9323_v37, 0.0  ;;  %v9324_v63 = vadd.f32 %v15219_v26, %v9299_v17 }
 0x495   : > { %v9341_v7 = vmax.f32 %v9321_v13, 0.0  ;;  %v9322_v31 = vadd.f32 %v15219_v26, %v9297_v38 }
 0x496   : > { %v10384_v57 = vpack.c.bf16 %v9343_v62, %v9343_v62  ;;  %v9344_v18 = vmax.f32 %v9324_v63, 0.0 }
 0x497   : > { %v10382_v23 = vpack.c.bf16 %v9341_v7, %v9341_v7  ;;  %v9342_v5 = vmax.f32 %v9322_v31, 0.0  ;;  %v15270_v2 = vpop.f32.mrb[36].mxu0 }
 0x498   : > { %9443 = vst [vmem:[%s14464_s0 + $0xec] sm:$0xf] %v10384_v57  ;;  %v10385_v20 = vpack.c.bf16 %v9344_v18, %v9344_v18  ;;  %v15273_v28 = vpop.f32.mrb[37].mxu0 }
 0x499   : > { %9441 = vst [vmem:[%s14464_s0 + $0xcc] sm:$0xf] %v10382_v23  ;;  %v10383_v0 = vpack.c.bf16 %v9342_v5, %v9342_v5  ;;  %v15276_v49 = vpop.f32.mrb[38].mxu0 }
 0x49a   : > { %9444 = vst [vmem:[%s14464_s0 + $0xfc] sm:$0xf] %v10385_v20  ;;  %v15279_v8 = vpop.f32.mrb[39].mxu0 }
 0x49b   : > { %9442 = vst [vmem:[%s14464_s0 + $0xdc] sm:$0xf] %v10383_v0 }
 0x49c   : > { %13477 = shalt.err (!%p13474_p3)
}
 0x49d   : > { %s13478_s18 = scalar_lea.hbm %s9481_s17, 16  ;;  %s13482_s12 = scalar_lea.hbm %s15499_s1, 32 }
 0x49e   : > { %p13479_p6 = scmp.ne.s32.totalorder %s9481_s17, %s13478_s18  ;;  %p13483_p9 = scmp.lt.u32.totalorder %s9481_s17, %s15499_s1 }
 0x49f   : > { %p13484_p12 = scmp.lt.u32.totalorder %s13482_s12, %s13478_s18  ;;  %p13486_p13 = scmp.lt.u32.totalorder %s13478_s18, %s9481_s17 }
 0x4a0   : > { %p13480_p7 = pnand %p13479_p6, %p15500_p0 }
 0x4a1   : > { %p13485_p1 = por %p13484_p12, %p13483_p9 }
 0x4a2   : > { %p13481_p5 = pneg %p13480_p7 }
 0x4a3   : > { %p13487_p2 = por %p13486_p13, %p13485_p1 }
 0x4a5   : > { %p13488_p8 = pnand %p13487_p2, %p13481_p5 }
 0x4a7   : > { %13491 = shalt.err (!%p13488_p8)
}
 0x4a8   : > { %12504 = dma.vmem_to_hbm [thread:$0]  (%p15500_p0), %s15285_s11, 16, %s9481_s17, %s9455_s19   ;;  %v15307_v10 = vld [vmem:[#allocation11 + $0x1] ss:$0 sm:$0xff]  ;;  %v15309_v3 = vld [vmem:[#allocation13 + $0x1] ss:$0 sm:$0xff] }
 0x4a9   : > { %s12460_s11 = smul.u32 5120, %s13689_s27  ;;  %s9467_s17 = sshll.u32 %s14464_s0, 4  ;;  %s15391_s17 = int_to_ptr.vmem [resolvable:$true] %s9467_s17 }
 0x4aa   : > { %s15501_s3 = sld [smem:[#allocation38_spill]]  ;;  %s9450_s27 = scalar_lea.sflag [#allocation4], %s14005_s5 }
 0x4ab   : > { %s13492_s30 = scalar_lea.vmem %s15391_s17, 5120  ;;  %s13600_s18 = smov [#allocation20]  }
 0x4ac   : > { %p13493_p4 = scmp.ne.s32.totalorder %s15391_s17, %s13492_s30  ;;  %s13496_s2 = sshll.u32 %s13600_s18, 4  ;;  %s13497_s2 = int_to_ptr.vmem [resolvable:$false] %s13496_s2 }
 0x4ad   : > { %s13498_s29 = scalar_lea.vmem %s13497_s2, 10240  ;;  %p13499_p3 = scmp.lt.s32.totalorder %s15391_s17, %s13497_s2 }
 0x4ae   : > { %p13494_p10 = pnand %p13493_p4, %p15500_p0  ;;  %p13500_p6 = scmp.lt.s32.totalorder %s13498_s29, %s13492_s30 }
 0x4b0   : > { %s15389_s20 = scalar_lea.hbm %s15501_s3, %s12460_s11  ;;  %p13495_p11 = pneg %p13494_p10 }
 0x4b1   : > { %p13501_p7 = por %p13500_p6, %p13499_p3 }
 0x4b3   : > { %p13502_p5 = pnand %p13501_p7, %p13495_p11 }
 0x52a   : > { %v11618_v25 = vpop.f32.mrb[48].mxu1 }
 0x52b   : > { %v6563_v45 = vmul.f32 %v11618_v25, %v15307_v10  ;;  %v6457_v12 = vpop.f32.mrb[49].mxu1 }
 0x52c   : > { %v6561_v22 = vmul.f32 %v15307_v10, %v6457_v12  ;;  %v11619_v42 = vpop.f32.mrb[50].mxu1 }
 0x52d   : > { %v6588_v58 = vadd.f32 %v15309_v3, %v6563_v45  ;;  %v6564_v24 = vmul.f32 %v11619_v42, %v15307_v10  ;;  %v6460_v36 = vpop.f32.mrb[51].mxu1 }
 0x52e   : > { %v6586_v15 = vadd.f32 %v15309_v3, %v6561_v22  ;;  %v6562_v46 = vmul.f32 %v15307_v10, %v6460_v36 }
 0x52f   : > { %v6608_v44 = vmax.f32 %v6588_v58, 0.0  ;;  %v6589_v48 = vadd.f32 %v15309_v3, %v6564_v24 }
 0x530   : > { %v6606_v4 = vmax.f32 %v6586_v15, 0.0  ;;  %v6587_v16 = vadd.f32 %v15309_v3, %v6562_v46 }
 0x531   : > { %v10352_v1 = vpack.c.bf16 %v6608_v44, %v6608_v44  ;;  %v6609_v41 = vmax.f32 %v6589_v48, 0.0 }
 0x532   : > { %v10350_v21 = vpack.c.bf16 %v6606_v4, %v6606_v4  ;;  %v6607_v56 = vmax.f32 %v6587_v16, 0.0  ;;  %v11622_v52 = vpop.f32.mrb[52].mxu1 }
 0x533   : > { %6708 = vst [vmem:[%s14464_s0 + $0x28] sm:$0xf] %v10352_v1  ;;  %v10353_v51 = vpack.c.bf16 %v6609_v41, %v6609_v41  ;;  %v6567_v30 = vmul.f32 %v11622_v52, %v15307_v10  ;;  %v6473_v34 = vpop.f32.mrb[53].mxu1 }
 0x534   : > { %6706 = vst [vmem:[%s14464_s0 + $0x8] sm:$0xf] %v10350_v21  ;;  %v10351_v40 = vpack.c.bf16 %v6607_v56, %v6607_v56  ;;  %v6565_v53 = vmul.f32 %v15307_v10, %v6473_v34  ;;  %v11623_v60 = vpop.f32.mrb[54].mxu1 }
 0x535   : > { %6709 = vst [vmem:[%s14464_s0 + $0x38] sm:$0xf] %v10353_v51  ;;  %v6592_v9 = vadd.f32 %v15309_v3, %v6567_v30  ;;  %v6568_v55 = vmul.f32 %v11623_v60, %v15307_v10  ;;  %v6476_v19 = vpop.f32.mrb[55].mxu1 }
 0x536   : > { %6707 = vst [vmem:[%s14464_s0 + $0x18] sm:$0xf] %v10351_v40  ;;  %v6590_v50 = vadd.f32 %v15309_v3, %v6565_v53  ;;  %v6566_v32 = vmul.f32 %v15307_v10, %v6476_v19 }
 0x537   : > { %v6612_v61 = vmax.f32 %v6592_v9, 0.0  ;;  %v6593_v33 = vadd.f32 %v15309_v3, %v6568_v55 }
 0x538   : > { %v6610_v29 = vmax.f32 %v6590_v50, 0.0  ;;  %v6591_v59 = vadd.f32 %v15309_v3, %v6566_v32 }
 0x539   : > { %v10356_v54 = vpack.c.bf16 %v6612_v61, %v6612_v61  ;;  %v6613_v39 = vmax.f32 %v6593_v33, 0.0 }
 0x53a   : > { %v10354_v43 = vpack.c.bf16 %v6610_v29, %v6610_v29  ;;  %v6611_v35 = vmax.f32 %v6591_v59, 0.0  ;;  %v11626_v27 = vpop.f32.mrb[56].mxu1 }
 0x53b   : > { %6712 = vst [vmem:[%s14464_s0 + $0x68] sm:$0xf] %v10356_v54  ;;  %v10357_v47 = vpack.c.bf16 %v6613_v39, %v6613_v39  ;;  %v6571_v11 = vmul.f32 %v11626_v27, %v15307_v10  ;;  %v6489_v37 = vpop.f32.mrb[57].mxu1 }
 0x53c   : > { %6710 = vst [vmem:[%s14464_s0 + $0x48] sm:$0xf] %v10354_v43  ;;  %v10355_v17 = vpack.c.bf16 %v6611_v35, %v6611_v35  ;;  %v6569_v6 = vmul.f32 %v15307_v10, %v6489_v37  ;;  %v11627_v13 = vpop.f32.mrb[58].mxu1 }
 0x53d   : > { %6713 = vst [vmem:[%s14464_s0 + $0x78] sm:$0xf] %v10357_v47  ;;  %v6596_v38 = vadd.f32 %v15309_v3, %v6571_v11  ;;  %v6572_v62 = vmul.f32 %v11627_v13, %v15307_v10  ;;  %v6492_v63 = vpop.f32.mrb[59].mxu1 }
 0x53e   : > { %6711 = vst [vmem:[%s14464_s0 + $0x58] sm:$0xf] %v10355_v17  ;;  %v6594_v7 = vadd.f32 %v15309_v3, %v6569_v6  ;;  %v6570_v31 = vmul.f32 %v15307_v10, %v6492_v63 }
 0x53f   : > { %v6616_v57 = vmax.f32 %v6596_v38, 0.0  ;;  %v6597_v18 = vadd.f32 %v15309_v3, %v6572_v62 }
 0x540   : > { %v6614_v23 = vmax.f32 %v6594_v7, 0.0  ;;  %v6595_v5 = vadd.f32 %v15309_v3, %v6570_v31 }
 0x541   : > { %v10360_v20 = vpack.c.bf16 %v6616_v57, %v6616_v57  ;;  %v6617_v0 = vmax.f32 %v6597_v18, 0.0 }
 0x542   : > { %v10358_v25 = vpack.c.bf16 %v6614_v23, %v6614_v23  ;;  %v6615_v45 = vmax.f32 %v6595_v5, 0.0  ;;  %v11630_v12 = vpop.f32.mrb[60].mxu1 }
 0x543   : > { %6716 = vst [vmem:[%s14464_s0 + $0xa8] sm:$0xf] %v10360_v20  ;;  %v10361_v22 = vpack.c.bf16 %v6617_v0, %v6617_v0  ;;  %v6575_v42 = vmul.f32 %v11630_v12, %v15307_v10  ;;  %v6505_v58 = vpop.f32.mrb[61].mxu1 }
 0x544   : > { %6714 = vst [vmem:[%s14464_s0 + $0x88] sm:$0xf] %v10358_v25  ;;  %v10359_v24 = vpack.c.bf16 %v6615_v45, %v6615_v45  ;;  %v6573_v36 = vmul.f32 %v15307_v10, %v6505_v58  ;;  %v11631_v15 = vpop.f32.mrb[62].mxu1 }
 0x545   : > { %6717 = vst [vmem:[%s14464_s0 + $0xb8] sm:$0xf] %v10361_v22  ;;  %v6600_v46 = vadd.f32 %v15309_v3, %v6575_v42  ;;  %v6576_v44 = vmul.f32 %v11631_v15, %v15307_v10  ;;  %v6508_v48 = vpop.f32.mrb[63].mxu1 }
 0x546   : > { %6715 = vst [vmem:[%s14464_s0 + $0x98] sm:$0xf] %v10359_v24  ;;  %v6598_v4 = vadd.f32 %v15309_v3, %v6573_v36  ;;  %v6574_v16 = vmul.f32 %v15307_v10, %v6508_v48 }
 0x547   : > { %v6620_v1 = vmax.f32 %v6600_v46, 0.0  ;;  %v6601_v41 = vadd.f32 %v15309_v3, %v6576_v44 }
 0x548   : > { %v6618_v21 = vmax.f32 %v6598_v4, 0.0  ;;  %v6599_v56 = vadd.f32 %v15309_v3, %v6574_v16 }
 0x549   : > { %v10364_v52 = vpack.c.bf16 %v6620_v1, %v6620_v1  ;;  %v6621_v51 = vmax.f32 %v6601_v41, 0.0 }
 0x54a   : > { %v10362_v30 = vpack.c.bf16 %v6618_v21, %v6618_v21  ;;  %v6619_v34 = vmax.f32 %v6599_v56, 0.0  ;;  %v11634_v40 = vpop.f32.mrb[64].mxu1 }
 0x54b   : > { %6720 = vst [vmem:[%s14464_s0 + $0xe8] sm:$0xf] %v10364_v52  ;;  %v10365_v53 = vpack.c.bf16 %v6621_v51, %v6621_v51  ;;  %v6579_v60 = vmul.f32 %v11634_v40, %v15307_v10  ;;  %v6521_v9 = vpop.f32.mrb[65].mxu1 }
 0x54c   : > { %6718 = vst [vmem:[%s14464_s0 + $0xc8] sm:$0xf] %v10362_v30  ;;  %v10363_v55 = vpack.c.bf16 %v6619_v34, %v6619_v34  ;;  %v6577_v19 = vmul.f32 %v15307_v10, %v6521_v9  ;;  %v11635_v50 = vpop.f32.mrb[66].mxu1 }
 0x54d   : > { %6721 = vst [vmem:[%s14464_s0 + $0xf8] sm:$0xf] %v10365_v53  ;;  %v6604_v32 = vadd.f32 %v15309_v3, %v6579_v60  ;;  %v6580_v61 = vmul.f32 %v11635_v50, %v15307_v10  ;;  %v6524_v33 = vpop.f32.mrb[67].mxu1 }
 0x54e   : > { %6719 = vst [vmem:[%s14464_s0 + $0xd8] sm:$0xf] %v10363_v55  ;;  %v6602_v29 = vadd.f32 %v15309_v3, %v6577_v19  ;;  %v6578_v59 = vmul.f32 %v15307_v10, %v6524_v33 }
 0x54f   : > { %v6624_v54 = vmax.f32 %v6604_v32, 0.0  ;;  %v6605_v39 = vadd.f32 %v15309_v3, %v6580_v61 }
 0x550   : > { %v6622_v43 = vmax.f32 %v6602_v29, 0.0  ;;  %v6603_v35 = vadd.f32 %v15309_v3, %v6578_v59 }
 0x551   : > { %v10368_v27 = vpack.c.bf16 %v6624_v54, %v6624_v54  ;;  %v6625_v47 = vmax.f32 %v6605_v39, 0.0 }
 0x552   : > { %v10366_v11 = vpack.c.bf16 %v6622_v43, %v6622_v43  ;;  %v6623_v37 = vmax.f32 %v6603_v35, 0.0  ;;  %v11670_v17 = vpop.f32.mrb[68].mxu1 }
 0x553   : > { %6724 = vst [vmem:[%s14464_s0 + $0x128] sm:$0xf] %v10368_v27  ;;  %v10369_v6 = vpack.c.bf16 %v6625_v47, %v6625_v47  ;;  %v11996_v13 = vadd.f32 %v15270_v2, %v11670_v17  ;;  %v7014_v38 = vpop.f32.mrb[69].mxu1 }
 0x554   : > { %6722 = vst [vmem:[%s14464_s0 + $0x108] sm:$0xf] %v10366_v11  ;;  %v10367_v10 = vpack.c.bf16 %v6623_v37, %v6623_v37  ;;  %v11997_v62 = vadd.f32 %v15273_v28, %v7014_v38  ;;  %v11671_v63 = vpop.f32.mrb[70].mxu1 }
 0x555   : > { %6725 = vst [vmem:[%s14464_s0 + $0x138] sm:$0xf] %v10369_v6  ;;  %v9302_v3 = vmul.f32 %v11996_v13, %v15216_v14  ;;  %v11998_v7 = vadd.f32 %v15276_v49, %v11671_v63  ;;  %v7017_v31 = vpop.f32.mrb[71].mxu1 }
 0x556   : > { %6723 = vst [vmem:[%s14464_s0 + $0x118] sm:$0xf] %v10367_v10  ;;  %v9300_v57 = vmul.f32 %v11997_v62, %v15216_v14  ;;  %v11999_v2 = vadd.f32 %v15279_v8, %v7017_v31 }
 0x557   : > { %v9327_v18 = vadd.f32 %v15219_v26, %v9302_v3  ;;  %v9303_v23 = vmul.f32 %v11998_v7, %v15216_v14 }
 0x558   : > { %v9325_v28 = vadd.f32 %v15219_v26, %v9300_v57  ;;  %v9301_v5 = vmul.f32 %v11999_v2, %v15216_v14 }
 0x559   : > { %v9347_v20 = vmax.f32 %v9327_v18, 0.0  ;;  %v9328_v49 = vadd.f32 %v15219_v26, %v9303_v23 }
 0x55a   : > { %v9345_v0 = vmax.f32 %v9325_v28, 0.0  ;;  %v9326_v25 = vadd.f32 %v15219_v26, %v9301_v5 }
 0x55b   : > { %v10388_v8 = vpack.c.bf16 %v9347_v20, %v9347_v20  ;;  %v9348_v45 = vmax.f32 %v9328_v49, 0.0 }
 0x55c   : > { %v10386_v12 = vpack.c.bf16 %v9345_v0, %v9345_v0  ;;  %v9346_v22 = vmax.f32 %v9326_v25, 0.0 }
 0x55d   : > { %9447 = vst [vmem:[%s14464_s0 + $0x12c] sm:$0xf] %v10388_v8  ;;  %v10389_v42 = vpack.c.bf16 %v9348_v45, %v9348_v45 }
 0x55e   : > { %9445 = vst [vmem:[%s14464_s0 + $0x10c] sm:$0xf] %v10386_v12  ;;  %v10387_v14 = vpack.c.bf16 %v9346_v22, %v9346_v22 }
 0x55f   : > { %9448 = vst [vmem:[%s14464_s0 + $0x13c] sm:$0xf] %v10389_v42 }
 0x560   : > { %9446 = vst [vmem:[%s14464_s0 + $0x11c] sm:$0xf] %v10387_v14 }
 0x561   : > { %13505 = shalt.err (!%p13502_p5)
}
 0x562   : > { %s13506_s0 = scalar_lea.hbm %s15389_s20, 5120  ;;  %s13510_s14 = scalar_lea.hbm %s15501_s3, 10240 }
 0x563   : > { %p13507_p9 = scmp.ne.s32.totalorder %s15389_s20, %s13506_s0  ;;  %p13511_p13 = scmp.lt.u32.totalorder %s15389_s20, %s15501_s3 }
 0x564   : > { %p13512_p2 = scmp.lt.u32.totalorder %s13510_s14, %s13506_s0  ;;  %p13514_p4 = scmp.lt.u32.totalorder %s13506_s0, %s15389_s20 }
 0x565   : > { %p13508_p12 = pnand %p13507_p9, %p15500_p0 }
 0x566   : > { %p13513_p8 = por %p13512_p2, %p13511_p13 }
 0x567   : > { %p13509_p1 = pneg %p13508_p12 }
 0x568   : > { %p13515_p10 = por %p13514_p4, %p13513_p8 }
 0x56a   : > { %p13516_p11 = pnand %p13515_p10, %p13509_p1 }
 0x56c   : > { %13519 = shalt.err (!%p13516_p11)
}
 0x56d   : > { %s13601_s4 = smov 256   ;;  %s13602_s30 = smov 16  }
 0x56e   : > { %12503 = dma.vmem_to_hbm [thread:$0]  (%p15500_p0), %s15391_s17, 5120, %s15389_s20, %s9450_s27, %s13601_s4, %s13601_s4, %s13602_s30  }
 0x56f PF: > { %s9495_s18 = sand.u32 1, %s13570_s21   ;;  %p15502_p3 = scmp.ne.s32.totalorder %s15484_s28, 0 }
 0x570   : > { %p15503_p6 = scmp.ge.s32.totalorder %s13582_s24, 2  ;;  %s9496_s2 = scalar_lea.sflag [#allocation4], %s9495_s18 }
 0x572   : > { %p12543_p7 = pnand %p15503_p6, %p15502_p3 }
 0x574   : > { %13561 = dma.done.wait (!%p12543_p7), %s9496_s2, 5120  }
 0x575   : > { %13563 = vsyncadd (!%p12543_p7), %s9496_s2, 4294962176  ;;  %s9505_s29 = scalar_lea.sflag [#allocation22], %s9495_s18 }
 0x576   : > { %13565 = dma.done.wait (!%p12543_p7), %s9505_s29, 16  }
 0x577   : > { %13567 = vsyncadd (!%p12543_p7), %s9505_s29, 4294967280  ;;  %p34_p0 = scmp.ge.s32.totalorder %s13929_s25, 4   ;;  %s15504_s21 = smov %s13574_s22 }
 0x578   : > { %s15505_s22 = smov %s13578_s23  ;;  %s15506_s23 = smov %s13940_s26 }
 0x579   : > { %s15507_s24 = smov %s13929_s25  ;;  %36 = sbr.rel (!%p34_p0) target bundleno = 21 (0x15), region = 192 }
 0x580   :  { %9509 = vsyncpa [#allocation3], 1 }
 0x581   :  { %9511 = vsyncpa [#allocation3 + $0x1], 1 }
 0x582   :  { %9512 = vsyncpa [#allocation6], 1 }
 0x583   :  { %9513 = vsyncpa [#allocation9], 1 }
 0x584   :  { %9514 = vsyncpa [#allocation12], 1 }
 0x585   :  { %9515 = vsyncpa [#allocation15], 1 }
 0x586   :  { %9516 = vsyncpa [#allocation18], 1 }
 0x587   :  { %9517 = vsyncpa [#allocation4], 1 }
 0x588   :  { %9519 = vsyncpa [#allocation4 + $0x1], 1 }
 0x589   :  { %9520 = vsyncpa [#allocation22], 1 }
 0x58a   :  { %9522 = vsyncpa [#allocation22 + $0x1], 1 }

</bundles_post_ra>
